<compile_context>
chip_gen: v7x
topology: tpu7x:2x2x1
jax: 0.10.0
libtpu: 0.0.40
codegen_flags: <defaults>
</compile_context>

<pallas_src>
import numpy as np
import jax
import jax.numpy as jnp
from jax.experimental import pallas as pl
from jax.experimental.pallas import tpu as pltpu

CIN = 256                      # fixed by Mixed_6a.__init__
CMID = 192
C_B0 = 384                     # branch0 output channels
C_B1 = 256                     # branch1 output channels
C_POOL = CIN                   # branch2 (max-pool) output channels
COUT = C_B0 + C_B1 + C_POOL    # 896


def mixed_6a_kernel(x_ref, g_ref, t_ref,
                    w0_ref, b0_ref,
                    w1a_ref, b1a_ref,
                    w1b_ref, b1b_ref,
                    w1c_ref, b1c_ref,
                    o_ref):
    bf16 = jnp.bfloat16

    def mm(a, b):                      # bf16 x bf16 -> f32 accumulation (MXU)
        return jnp.dot(a, b, preferred_element_type=jnp.float32)

    x = x_ref[...]                     # (Mi, 256) bf16, Mi = N*H*W

    # ---- branch1 stage a: 1x1 conv (256->192) + BN + ReLU, full resolution.
    y1a = jnp.maximum(mm(x, w1a_ref[...]) + b1a_ref[...], 0.0).astype(bf16)

    # ---- branch1 stage b: 3x3 conv, stride 1, pad 1 (192->192) + BN + ReLU.
    # T[t] is a (Mi, Mi) one-hot shift matrix implementing the zero-padded
    # spatial tap t = kh*3 + kw (out-of-bounds rows are all-zero).
    acc_b = b1b_ref[...]
    for t in range(9):
        shifted = mm(t_ref[t], y1a).astype(bf16)   # exact gather of bf16 vals
        acc_b = acc_b + mm(shifted, w1b_ref[t])
    y1b = jnp.maximum(acc_b, 0.0).astype(bf16)

    # ---- downsampling stage: branch0 (3x3/2 conv 256->384), branch1 stage c
    # (3x3/2 conv 192->256) and branch2 (3x3/2 max-pool) share the same
    # stride-2 tap geometry, encoded in the one-hot gather matrices G[t]
    # of shape (Mo, Mi).  The x-patches are reused for conv and max-pool.
    acc_0 = b0_ref[...]
    acc_c = b1c_ref[...]
    mp = None
    for t in range(9):
        px_f32 = mm(g_ref[t], x)                   # (Mo, 256) exact x taps
        acc_0 = acc_0 + mm(px_f32.astype(bf16), w0_ref[t])
        py = mm(g_ref[t], y1b).astype(bf16)        # (Mo, 192) y1b taps
        acc_c = acc_c + mm(py, w1c_ref[t])
        mp = px_f32 if mp is None else jnp.maximum(mp, px_f32)

    # ---- concat(branch0, branch1, branch2) along channels (lane-aligned).
    o_ref[:, 0:C_B0] = jnp.maximum(acc_0, 0.0)
    o_ref[:, C_B0:C_B0 + C_B1] = jnp.maximum(acc_c, 0.0)
    o_ref[:, C_B0 + C_B1:COUT] = mp


def build_gather_mats(n, h, w):
    """One-hot gather matrices over the flattened (N*H*W) row space."""
    ho, wo = (h - 3) // 2 + 1, (w - 3) // 2 + 1
    p, po = h * w, ho * wo
    g = np.zeros((9, n * po, n * p), np.float32)
    t = np.zeros((9, n * p, n * p), np.float32)
    for kh in range(3):
        for kw in range(3):
            tap = kh * 3 + kw
            for nn in range(n):
                # stride-2 "valid" taps (branch0 / branch1c / max-pool)
                for oh in range(ho):
                    for ow in range(wo):
                        g[tap, nn * po + oh * wo + ow,
                          nn * p + (2 * oh + kh) * w + (2 * ow + kw)] = 1.0
                # stride-1 "same" (pad=1) taps (branch1b); OOB rows stay zero
                for hh in range(h):
                    for ww in range(w):
                        sh, sw = hh + kh - 1, ww + kw - 1
                        if 0 <= sh < h and 0 <= sw < w:
                            t[tap, nn * p + hh * w + ww,
                              nn * p + sh * w + sw] = 1.0
    return jnp.asarray(g, jnp.bfloat16), jnp.asarray(t, jnp.bfloat16)


def pack_kernel_params(params, n, h, w):
    w0, b0, w1a, b1a, w1b, b1b, w1c, b1c = params
    g, t = build_gather_mats(n, h, w)
    bf16 = jnp.bfloat16
    return (g, t,
            w0.reshape(9, CIN, C_B0).astype(bf16), b0.reshape(1, -1),
            w1a.reshape(CIN, CMID).astype(bf16), b1a.reshape(1, -1),
            w1b.reshape(9, CMID, CMID).astype(bf16), b1b.reshape(1, -1),
            w1c.reshape(9, CMID, C_B1).astype(bf16), b1c.reshape(1, -1))


def mixed_6a_forward(x_nchw, kparams):
    n, c, h, w = x_nchw.shape
    ho, wo = (h - 3) // 2 + 1, (w - 3) // 2 + 1
    xf = jnp.transpose(x_nchw, (0, 2, 3, 1)).reshape(n * h * w, c)
    xf = xf.astype(jnp.bfloat16)
    mo = n * ho * wo

    vmem = pl.BlockSpec(memory_space=pltpu.MemorySpace.VMEM)
    args = (xf,) + tuple(kparams)
    out = pl.pallas_call(
        mixed_6a_kernel,
        out_shape=jax.ShapeDtypeStruct((mo, COUT), jnp.float32),
        in_specs=[vmem] * len(args),
        out_specs=vmem,
        compiler_params=pltpu.CompilerParams(
            vmem_limit_bytes=32 * 1024 * 1024),
    )(*args)
    out = out.reshape(n, ho, wo, COUT)
    return jnp.transpose(out, (0, 3, 1, 2))        # NCHW, like torch.cat(dim=1)


def make_params(key):
    ks = jax.random.split(key, 8)

    def conv_w(k, shape):
        return jax.random.normal(k, shape, jnp.float32) * 0.02

    def bn(k, c):
        k1, k2, k3, k4 = jax.random.split(k, 4)
        gamma = jax.random.uniform(k1, (c,), jnp.float32, 0.5, 1.5)
        beta = jax.random.normal(k2, (c,), jnp.float32) * 0.1
        mean = jax.random.normal(k3, (c,), jnp.float32) * 0.1
        var = jax.random.uniform(k4, (c,), jnp.float32, 0.5, 1.5)
        s = gamma * jax.lax.rsqrt(var + 1e-3)      # eps = 0.001
        return s, beta - mean * s

    def fold(w, s):
        # Fold BN scale into conv weights, then snap to bf16 so the kernel
        # (bf16 MXU operands) and the f32 reference share exact weights.
        wf = w * s.reshape(1, 1, 1, -1)
        return wf.astype(jnp.bfloat16).astype(jnp.float32)

    w0 = conv_w(ks[0], (3, 3, CIN, C_B0)); s0, b0 = bn(ks[1], C_B0)
    w1a = conv_w(ks[2], (1, 1, CIN, CMID)); s1a, b1a = bn(ks[3], CMID)
    w1b = conv_w(ks[4], (3, 3, CMID, CMID)); s1b, b1b = bn(ks[5], CMID)
    w1c = conv_w(ks[6], (3, 3, CMID, C_B1)); s1c, b1c = bn(ks[7], C_B1)
    return (fold(w0, s0), b0, fold(w1a, s1a), b1a,
            fold(w1b, s1b), b1b, fold(w1c, s1c), b1c)


def mixed_6a_ref(x_nchw, params):
    w0, b0, w1a, b1a, w1b, b1b, w1c, b1c = params
    x = jnp.transpose(x_nchw, (0, 2, 3, 1))

    def conv(inp, w, stride, padding):
        return jax.lax.conv_general_dilated(
            inp, w, window_strides=(stride, stride), padding=padding,
            dimension_numbers=('NHWC', 'HWIO', 'NHWC'),
            precision=jax.lax.Precision.HIGHEST)

    def brelu(z, b):
        return jnp.maximum(z + b.reshape(1, 1, 1, -1), 0.0)

    x0 = brelu(conv(x, w0, 2, 'VALID'), b0)
    y = brelu(conv(x, w1a, 1, 'VALID'), b1a)
    y = brelu(conv(y, w1b, 1, [(1, 1), (1, 1)]), b1b)
    x1 = brelu(conv(y, w1c, 2, 'VALID'), b1c)
    x2 = jax.lax.reduce_window(x, -jnp.inf, jax.lax.max,
                               (1, 3, 3, 1), (1, 2, 2, 1), 'VALID')
    out = jnp.concatenate([x0, x1, x2], axis=-1)
    return jnp.transpose(out, (0, 3, 1, 2))


if __name__ == "__main__":
    N, H, W = 2, 9, 9
    key = jax.random.PRNGKey(0)
    kx, kp = jax.random.split(key)
    x = jax.random.normal(kx, (N, CIN, H, W), jnp.float32)
    # Snap to the bf16 grid so kernel and reference consume identical inputs.
    x = x.astype(jnp.bfloat16).astype(jnp.float32)

    params = make_params(kp)
    kparams = pack_kernel_params(params, N, H, W)

    out = jax.block_until_ready(mixed_6a_forward(x, kparams))
    ref = jax.block_until_ready(mixed_6a_ref(x, params))

    np.testing.assert_allclose(np.asarray(out, np.float32), np.asarray(ref),
                               rtol=2e-2, atol=2e-2)
    print("KERNEL_OK")
</pallas_src>

<mosaic_0001>
module attributes {stable_mosaic.version = 11 : i64} {
  func.func @mixed_6a_kernel(%arg0: memref<162x256xbf16, #tpu.memory_space<vmem>>, %arg1: memref<9x32x162xbf16, #tpu.memory_space<vmem>>, %arg2: memref<9x162x162xbf16, #tpu.memory_space<vmem>>, %arg3: memref<9x256x384xbf16, #tpu.memory_space<vmem>>, %arg4: memref<1x384xf32, #tpu.memory_space<vmem>>, %arg5: memref<256x192xbf16, #tpu.memory_space<vmem>>, %arg6: memref<1x192xf32, #tpu.memory_space<vmem>>, %arg7: memref<9x192x192xbf16, #tpu.memory_space<vmem>>, %arg8: memref<1x192xf32, #tpu.memory_space<vmem>>, %arg9: memref<9x192x256xbf16, #tpu.memory_space<vmem>>, %arg10: memref<1x256xf32, #tpu.memory_space<vmem>>, %arg11: memref<32x896xf32, #tpu.memory_space<vmem>>) attributes {dimension_semantics = [], scalar_prefetch = 0 : i64, scratch_operands = 0 : i64, tpu.core_type = #tpu.core_type<tc>} {
    %c0 = arith.constant 0 : index
    %c0_0 = arith.constant 0 : index
    %0 = vector.load %arg0[%c0, %c0_0] : memref<162x256xbf16, #tpu.memory_space<vmem>>, vector<162x256xbf16>
    %c0_1 = arith.constant 0 : index
    %c0_2 = arith.constant 0 : index
    %1 = vector.load %arg5[%c0_1, %c0_2] : memref<256x192xbf16, #tpu.memory_space<vmem>>, vector<256x192xbf16>
    %cst = arith.constant dense<0.000000e+00> : vector<162x192xf32>
    %2 = tpu.matmul %0, %1, %cst {dimension_numbers = #tpu.dot_dimension_numbers<[1], [0], [0], [1], [0, 0, 1, 1], [], []>} : vector<162x256xbf16>, vector<256x192xbf16>, vector<162x192xf32> -> vector<162x192xf32>
    %c0_3 = arith.constant 0 : index
    %c0_4 = arith.constant 0 : index
    %3 = vector.load %arg6[%c0_3, %c0_4] : memref<1x192xf32, #tpu.memory_space<vmem>>, vector<1x192xf32>
    %4 = vector.broadcast %3 : vector<1x192xf32> to vector<162x192xf32>
    %5 = arith.addf %2, %4 : vector<162x192xf32>
    %cst_5 = arith.constant 0.000000e+00 : f32
    %6 = vector.broadcast %cst_5 : f32 to vector<162x192xf32>
    %7 = arith.maximumf %5, %6 : vector<162x192xf32>
    %8 = arith.truncf %7 : vector<162x192xf32> to vector<162x192xbf16>
    %c0_6 = arith.constant 0 : index
    %c0_7 = arith.constant 0 : index
    %9 = vector.load %arg8[%c0_6, %c0_7] : memref<1x192xf32, #tpu.memory_space<vmem>>, vector<1x192xf32>
    %c0_8 = arith.constant 0 : index
    %c0_9 = arith.constant 0 : index
    %c0_10 = arith.constant 0 : index
    %10 = vector.load %arg2[%c0_8, %c0_9, %c0_10] : memref<9x162x162xbf16, #tpu.memory_space<vmem>>, vector<1x162x162xbf16>
    %11 = vector.shape_cast %10 : vector<1x162x162xbf16> to vector<162x162xbf16>
    %cst_11 = arith.constant dense<0.000000e+00> : vector<162x192xf32>
    %12 = tpu.matmul %11, %8, %cst_11 {dimension_numbers = #tpu.dot_dimension_numbers<[1], [0], [0], [1], [0, 0, 1, 1], [], []>} : vector<162x162xbf16>, vector<162x192xbf16>, vector<162x192xf32> -> vector<162x192xf32>
    %13 = arith.truncf %12 : vector<162x192xf32> to vector<162x192xbf16>
    %c0_12 = arith.constant 0 : index
    %c0_13 = arith.constant 0 : index
    %c0_14 = arith.constant 0 : index
    %14 = vector.load %arg7[%c0_12, %c0_13, %c0_14] : memref<9x192x192xbf16, #tpu.memory_space<vmem>>, vector<1x192x192xbf16>
    %15 = vector.shape_cast %14 : vector<1x192x192xbf16> to vector<192x192xbf16>
    %cst_15 = arith.constant dense<0.000000e+00> : vector<162x192xf32>
    %16 = tpu.matmul %13, %15, %cst_15 {dimension_numbers = #tpu.dot_dimension_numbers<[1], [0], [0], [1], [0, 0, 1, 1], [], []>} : vector<162x192xbf16>, vector<192x192xbf16>, vector<162x192xf32> -> vector<162x192xf32>
    %17 = vector.broadcast %9 : vector<1x192xf32> to vector<162x192xf32>
    %18 = arith.addf %17, %16 : vector<162x192xf32>
    %c1 = arith.constant 1 : index
    %c0_16 = arith.constant 0 : index
    %c0_17 = arith.constant 0 : index
    %19 = vector.load %arg2[%c1, %c0_16, %c0_17] : memref<9x162x162xbf16, #tpu.memory_space<vmem>>, vector<1x162x162xbf16>
    %20 = vector.shape_cast %19 : vector<1x162x162xbf16> to vector<162x162xbf16>
    %cst_18 = arith.constant dense<0.000000e+00> : vector<162x192xf32>
    %21 = tpu.matmul %20, %8, %cst_18 {dimension_numbers = #tpu.dot_dimension_numbers<[1], [0], [0], [1], [0, 0, 1, 1], [], []>} : vector<162x162xbf16>, vector<162x192xbf16>, vector<162x192xf32> -> vector<162x192xf32>
    %22 = arith.truncf %21 : vector<162x192xf32> to vector<162x192xbf16>
    %c1_19 = arith.constant 1 : index
    %c0_20 = arith.constant 0 : index
    %c0_21 = arith.constant 0 : index
    %23 = vector.load %arg7[%c1_19, %c0_20, %c0_21] : memref<9x192x192xbf16, #tpu.memory_space<vmem>>, vector<1x192x192xbf16>
    %24 = vector.shape_cast %23 : vector<1x192x192xbf16> to vector<192x192xbf16>
    %cst_22 = arith.constant dense<0.000000e+00> : vector<162x192xf32>
    %25 = tpu.matmul %22, %24, %cst_22 {dimension_numbers = #tpu.dot_dimension_numbers<[1], [0], [0], [1], [0, 0, 1, 1], [], []>} : vector<162x192xbf16>, vector<192x192xbf16>, vector<162x192xf32> -> vector<162x192xf32>
    %26 = arith.addf %18, %25 : vector<162x192xf32>
    %c2 = arith.constant 2 : index
    %c0_23 = arith.constant 0 : index
    %c0_24 = arith.constant 0 : index
    %27 = vector.load %arg2[%c2, %c0_23, %c0_24] : memref<9x162x162xbf16, #tpu.memory_space<vmem>>, vector<1x162x162xbf16>
    %28 = vector.shape_cast %27 : vector<1x162x162xbf16> to vector<162x162xbf16>
    %cst_25 = arith.constant dense<0.000000e+00> : vector<162x192xf32>
    %29 = tpu.matmul %28, %8, %cst_25 {dimension_numbers = #tpu.dot_dimension_numbers<[1], [0], [0], [1], [0, 0, 1, 1], [], []>} : vector<162x162xbf16>, vector<162x192xbf16>, vector<162x192xf32> -> vector<162x192xf32>
    %30 = arith.truncf %29 : vector<162x192xf32> to vector<162x192xbf16>
    %c2_26 = arith.constant 2 : index
    %c0_27 = arith.constant 0 : index
    %c0_28 = arith.constant 0 : index
    %31 = vector.load %arg7[%c2_26, %c0_27, %c0_28] : memref<9x192x192xbf16, #tpu.memory_space<vmem>>, vector<1x192x192xbf16>
    %32 = vector.shape_cast %31 : vector<1x192x192xbf16> to vector<192x192xbf16>
    %cst_29 = arith.constant dense<0.000000e+00> : vector<162x192xf32>
    %33 = tpu.matmul %30, %32, %cst_29 {dimension_numbers = #tpu.dot_dimension_numbers<[1], [0], [0], [1], [0, 0, 1, 1], [], []>} : vector<162x192xbf16>, vector<192x192xbf16>, vector<162x192xf32> -> vector<162x192xf32>
    %34 = arith.addf %26, %33 : vector<162x192xf32>
    %c3 = arith.constant 3 : index
    %c0_30 = arith.constant 0 : index
    %c0_31 = arith.constant 0 : index
    %35 = vector.load %arg2[%c3, %c0_30, %c0_31] : memref<9x162x162xbf16, #tpu.memory_space<vmem>>, vector<1x162x162xbf16>
    %36 = vector.shape_cast %35 : vector<1x162x162xbf16> to vector<162x162xbf16>
    %cst_32 = arith.constant dense<0.000000e+00> : vector<162x192xf32>
    %37 = tpu.matmul %36, %8, %cst_32 {dimension_numbers = #tpu.dot_dimension_numbers<[1], [0], [0], [1], [0, 0, 1, 1], [], []>} : vector<162x162xbf16>, vector<162x192xbf16>, vector<162x192xf32> -> vector<162x192xf32>
    %38 = arith.truncf %37 : vector<162x192xf32> to vector<162x192xbf16>
    %c3_33 = arith.constant 3 : index
    %c0_34 = arith.constant 0 : index
    %c0_35 = arith.constant 0 : index
    %39 = vector.load %arg7[%c3_33, %c0_34, %c0_35] : memref<9x192x192xbf16, #tpu.memory_space<vmem>>, vector<1x192x192xbf16>
    %40 = vector.shape_cast %39 : vector<1x192x192xbf16> to vector<192x192xbf16>
    %cst_36 = arith.constant dense<0.000000e+00> : vector<162x192xf32>
    %41 = tpu.matmul %38, %40, %cst_36 {dimension_numbers = #tpu.dot_dimension_numbers<[1], [0], [0], [1], [0, 0, 1, 1], [], []>} : vector<162x192xbf16>, vector<192x192xbf16>, vector<162x192xf32> -> vector<162x192xf32>
    %42 = arith.addf %34, %41 : vector<162x192xf32>
    %c4 = arith.constant 4 : index
    %c0_37 = arith.constant 0 : index
    %c0_38 = arith.constant 0 : index
    %43 = vector.load %arg2[%c4, %c0_37, %c0_38] : memref<9x162x162xbf16, #tpu.memory_space<vmem>>, vector<1x162x162xbf16>
    %44 = vector.shape_cast %43 : vector<1x162x162xbf16> to vector<162x162xbf16>
    %cst_39 = arith.constant dense<0.000000e+00> : vector<162x192xf32>
    %45 = tpu.matmul %44, %8, %cst_39 {dimension_numbers = #tpu.dot_dimension_numbers<[1], [0], [0], [1], [0, 0, 1, 1], [], []>} : vector<162x162xbf16>, vector<162x192xbf16>, vector<162x192xf32> -> vector<162x192xf32>
    %46 = arith.truncf %45 : vector<162x192xf32> to vector<162x192xbf16>
    %c4_40 = arith.constant 4 : index
    %c0_41 = arith.constant 0 : index
    %c0_42 = arith.constant 0 : index
    %47 = vector.load %arg7[%c4_40, %c0_41, %c0_42] : memref<9x192x192xbf16, #tpu.memory_space<vmem>>, vector<1x192x192xbf16>
    %48 = vector.shape_cast %47 : vector<1x192x192xbf16> to vector<192x192xbf16>
    %cst_43 = arith.constant dense<0.000000e+00> : vector<162x192xf32>
    %49 = tpu.matmul %46, %48, %cst_43 {dimension_numbers = #tpu.dot_dimension_numbers<[1], [0], [0], [1], [0, 0, 1, 1], [], []>} : vector<162x192xbf16>, vector<192x192xbf16>, vector<162x192xf32> -> vector<162x192xf32>
    %50 = arith.addf %42, %49 : vector<162x192xf32>
    %c5 = arith.constant 5 : index
    %c0_44 = arith.constant 0 : index
    %c0_45 = arith.constant 0 : index
    %51 = vector.load %arg2[%c5, %c0_44, %c0_45] : memref<9x162x162xbf16, #tpu.memory_space<vmem>>, vector<1x162x162xbf16>
    %52 = vector.shape_cast %51 : vector<1x162x162xbf16> to vector<162x162xbf16>
    %cst_46 = arith.constant dense<0.000000e+00> : vector<162x192xf32>
    %53 = tpu.matmul %52, %8, %cst_46 {dimension_numbers = #tpu.dot_dimension_numbers<[1], [0], [0], [1], [0, 0, 1, 1], [], []>} : vector<162x162xbf16>, vector<162x192xbf16>, vector<162x192xf32> -> vector<162x192xf32>
    %54 = arith.truncf %53 : vector<162x192xf32> to vector<162x192xbf16>
    %c5_47 = arith.constant 5 : index
    %c0_48 = arith.constant 0 : index
    %c0_49 = arith.constant 0 : index
    %55 = vector.load %arg7[%c5_47, %c0_48, %c0_49] : memref<9x192x192xbf16, #tpu.memory_space<vmem>>, vector<1x192x192xbf16>
    %56 = vector.shape_cast %55 : vector<1x192x192xbf16> to vector<192x192xbf16>
    %cst_50 = arith.constant dense<0.000000e+00> : vector<162x192xf32>
    %57 = tpu.matmul %54, %56, %cst_50 {dimension_numbers = #tpu.dot_dimension_numbers<[1], [0], [0], [1], [0, 0, 1, 1], [], []>} : vector<162x192xbf16>, vector<192x192xbf16>, vector<162x192xf32> -> vector<162x192xf32>
    %58 = arith.addf %50, %57 : vector<162x192xf32>
    %c6 = arith.constant 6 : index
    %c0_51 = arith.constant 0 : index
    %c0_52 = arith.constant 0 : index
    %59 = vector.load %arg2[%c6, %c0_51, %c0_52] : memref<9x162x162xbf16, #tpu.memory_space<vmem>>, vector<1x162x162xbf16>
    %60 = vector.shape_cast %59 : vector<1x162x162xbf16> to vector<162x162xbf16>
    %cst_53 = arith.constant dense<0.000000e+00> : vector<162x192xf32>
    %61 = tpu.matmul %60, %8, %cst_53 {dimension_numbers = #tpu.dot_dimension_numbers<[1], [0], [0], [1], [0, 0, 1, 1], [], []>} : vector<162x162xbf16>, vector<162x192xbf16>, vector<162x192xf32> -> vector<162x192xf32>
    %62 = arith.truncf %61 : vector<162x192xf32> to vector<162x192xbf16>
    %c6_54 = arith.constant 6 : index
    %c0_55 = arith.constant 0 : index
    %c0_56 = arith.constant 0 : index
    %63 = vector.load %arg7[%c6_54, %c0_55, %c0_56] : memref<9x192x192xbf16, #tpu.memory_space<vmem>>, vector<1x192x192xbf16>
    %64 = vector.shape_cast %63 : vector<1x192x192xbf16> to vector<192x192xbf16>
    %cst_57 = arith.constant dense<0.000000e+00> : vector<162x192xf32>
    %65 = tpu.matmul %62, %64, %cst_57 {dimension_numbers = #tpu.dot_dimension_numbers<[1], [0], [0], [1], [0, 0, 1, 1], [], []>} : vector<162x192xbf16>, vector<192x192xbf16>, vector<162x192xf32> -> vector<162x192xf32>
    %66 = arith.addf %58, %65 : vector<162x192xf32>
    %c7 = arith.constant 7 : index
    %c0_58 = arith.constant 0 : index
    %c0_59 = arith.constant 0 : index
    %67 = vector.load %arg2[%c7, %c0_58, %c0_59] : memref<9x162x162xbf16, #tpu.memory_space<vmem>>, vector<1x162x162xbf16>
    %68 = vector.shape_cast %67 : vector<1x162x162xbf16> to vector<162x162xbf16>
    %cst_60 = arith.constant dense<0.000000e+00> : vector<162x192xf32>
    %69 = tpu.matmul %68, %8, %cst_60 {dimension_numbers = #tpu.dot_dimension_numbers<[1], [0], [0], [1], [0, 0, 1, 1], [], []>} : vector<162x162xbf16>, vector<162x192xbf16>, vector<162x192xf32> -> vector<162x192xf32>
    %70 = arith.truncf %69 : vector<162x192xf32> to vector<162x192xbf16>
    %c7_61 = arith.constant 7 : index
    %c0_62 = arith.constant 0 : index
    %c0_63 = arith.constant 0 : index
    %71 = vector.load %arg7[%c7_61, %c0_62, %c0_63] : memref<9x192x192xbf16, #tpu.memory_space<vmem>>, vector<1x192x192xbf16>
    %72 = vector.shape_cast %71 : vector<1x192x192xbf16> to vector<192x192xbf16>
    %cst_64 = arith.constant dense<0.000000e+00> : vector<162x192xf32>
    %73 = tpu.matmul %70, %72, %cst_64 {dimension_numbers = #tpu.dot_dimension_numbers<[1], [0], [0], [1], [0, 0, 1, 1], [], []>} : vector<162x192xbf16>, vector<192x192xbf16>, vector<162x192xf32> -> vector<162x192xf32>
    %74 = arith.addf %66, %73 : vector<162x192xf32>
    %c8 = arith.constant 8 : index
    %c0_65 = arith.constant 0 : index
    %c0_66 = arith.constant 0 : index
    %75 = vector.load %arg2[%c8, %c0_65, %c0_66] : memref<9x162x162xbf16, #tpu.memory_space<vmem>>, vector<1x162x162xbf16>
    %76 = vector.shape_cast %75 : vector<1x162x162xbf16> to vector<162x162xbf16>
    %cst_67 = arith.constant dense<0.000000e+00> : vector<162x192xf32>
    %77 = tpu.matmul %76, %8, %cst_67 {dimension_numbers = #tpu.dot_dimension_numbers<[1], [0], [0], [1], [0, 0, 1, 1], [], []>} : vector<162x162xbf16>, vector<162x192xbf16>, vector<162x192xf32> -> vector<162x192xf32>
    %78 = arith.truncf %77 : vector<162x192xf32> to vector<162x192xbf16>
    %c8_68 = arith.constant 8 : index
    %c0_69 = arith.constant 0 : index
    %c0_70 = arith.constant 0 : index
    %79 = vector.load %arg7[%c8_68, %c0_69, %c0_70] : memref<9x192x192xbf16, #tpu.memory_space<vmem>>, vector<1x192x192xbf16>
    %80 = vector.shape_cast %79 : vector<1x192x192xbf16> to vector<192x192xbf16>
    %cst_71 = arith.constant dense<0.000000e+00> : vector<162x192xf32>
    %81 = tpu.matmul %78, %80, %cst_71 {dimension_numbers = #tpu.dot_dimension_numbers<[1], [0], [0], [1], [0, 0, 1, 1], [], []>} : vector<162x192xbf16>, vector<192x192xbf16>, vector<162x192xf32> -> vector<162x192xf32>
    %82 = arith.addf %74, %81 : vector<162x192xf32>
    %cst_72 = arith.constant 0.000000e+00 : f32
    %83 = vector.broadcast %cst_72 : f32 to vector<162x192xf32>
    %84 = arith.maximumf %82, %83 : vector<162x192xf32>
    %85 = arith.truncf %84 : vector<162x192xf32> to vector<162x192xbf16>
    %c0_73 = arith.constant 0 : index
    %c0_74 = arith.constant 0 : index
    %86 = vector.load %arg4[%c0_73, %c0_74] : memref<1x384xf32, #tpu.memory_space<vmem>>, vector<1x384xf32>
    %c0_75 = arith.constant 0 : index
    %c0_76 = arith.constant 0 : index
    %87 = vector.load %arg10[%c0_75, %c0_76] : memref<1x256xf32, #tpu.memory_space<vmem>>, vector<1x256xf32>
    %c0_77 = arith.constant 0 : index
    %c0_78 = arith.constant 0 : index
    %c0_79 = arith.constant 0 : index
    %88 = vector.load %arg1[%c0_77, %c0_78, %c0_79] : memref<9x32x162xbf16, #tpu.memory_space<vmem>>, vector<1x32x162xbf16>
    %89 = vector.shape_cast %88 : vector<1x32x162xbf16> to vector<32x162xbf16>
    %cst_80 = arith.constant dense<0.000000e+00> : vector<32x256xf32>
    %90 = tpu.matmul %89, %0, %cst_80 {dimension_numbers = #tpu.dot_dimension_numbers<[1], [0], [0], [1], [0, 0, 1, 1], [], []>} : vector<32x162xbf16>, vector<162x256xbf16>, vector<32x256xf32> -> vector<32x256xf32>
    %91 = arith.truncf %90 : vector<32x256xf32> to vector<32x256xbf16>
    %c0_81 = arith.constant 0 : index
    %c0_82 = arith.constant 0 : index
    %c0_83 = arith.constant 0 : index
    %92 = vector.load %arg3[%c0_81, %c0_82, %c0_83] : memref<9x256x384xbf16, #tpu.memory_space<vmem>>, vector<1x256x384xbf16>
    %93 = vector.shape_cast %92 : vector<1x256x384xbf16> to vector<256x384xbf16>
    %cst_84 = arith.constant dense<0.000000e+00> : vector<32x384xf32>
    %94 = tpu.matmul %91, %93, %cst_84 {dimension_numbers = #tpu.dot_dimension_numbers<[1], [0], [0], [1], [0, 0, 1, 1], [], []>} : vector<32x256xbf16>, vector<256x384xbf16>, vector<32x384xf32> -> vector<32x384xf32>
    %95 = vector.broadcast %86 : vector<1x384xf32> to vector<32x384xf32>
    %96 = arith.addf %95, %94 : vector<32x384xf32>
    %c0_85 = arith.constant 0 : index
    %c0_86 = arith.constant 0 : index
    %c0_87 = arith.constant 0 : index
    %97 = vector.load %arg1[%c0_85, %c0_86, %c0_87] : memref<9x32x162xbf16, #tpu.memory_space<vmem>>, vector<1x32x162xbf16>
    %98 = vector.shape_cast %97 : vector<1x32x162xbf16> to vector<32x162xbf16>
    %cst_88 = arith.constant dense<0.000000e+00> : vector<32x192xf32>
    %99 = tpu.matmul %98, %85, %cst_88 {dimension_numbers = #tpu.dot_dimension_numbers<[1], [0], [0], [1], [0, 0, 1, 1], [], []>} : vector<32x162xbf16>, vector<162x192xbf16>, vector<32x192xf32> -> vector<32x192xf32>
    %100 = arith.truncf %99 : vector<32x192xf32> to vector<32x192xbf16>
    %c0_89 = arith.constant 0 : index
    %c0_90 = arith.constant 0 : index
    %c0_91 = arith.constant 0 : index
    %101 = vector.load %arg9[%c0_89, %c0_90, %c0_91] : memref<9x192x256xbf16, #tpu.memory_space<vmem>>, vector<1x192x256xbf16>
    %102 = vector.shape_cast %101 : vector<1x192x256xbf16> to vector<192x256xbf16>
    %cst_92 = arith.constant dense<0.000000e+00> : vector<32x256xf32>
    %103 = tpu.matmul %100, %102, %cst_92 {dimension_numbers = #tpu.dot_dimension_numbers<[1], [0], [0], [1], [0, 0, 1, 1], [], []>} : vector<32x192xbf16>, vector<192x256xbf16>, vector<32x256xf32> -> vector<32x256xf32>
    %104 = vector.broadcast %87 : vector<1x256xf32> to vector<32x256xf32>
    %105 = arith.addf %104, %103 : vector<32x256xf32>
    %c1_93 = arith.constant 1 : index
    %c0_94 = arith.constant 0 : index
    %c0_95 = arith.constant 0 : index
    %106 = vector.load %arg1[%c1_93, %c0_94, %c0_95] : memref<9x32x162xbf16, #tpu.memory_space<vmem>>, vector<1x32x162xbf16>
    %107 = vector.shape_cast %106 : vector<1x32x162xbf16> to vector<32x162xbf16>
    %cst_96 = arith.constant dense<0.000000e+00> : vector<32x256xf32>
    %108 = tpu.matmul %107, %0, %cst_96 {dimension_numbers = #tpu.dot_dimension_numbers<[1], [0], [0], [1], [0, 0, 1, 1], [], []>} : vector<32x162xbf16>, vector<162x256xbf16>, vector<32x256xf32> -> vector<32x256xf32>
    %109 = arith.truncf %108 : vector<32x256xf32> to vector<32x256xbf16>
    %c1_97 = arith.constant 1 : index
    %c0_98 = arith.constant 0 : index
    %c0_99 = arith.constant 0 : index
    %110 = vector.load %arg3[%c1_97, %c0_98, %c0_99] : memref<9x256x384xbf16, #tpu.memory_space<vmem>>, vector<1x256x384xbf16>
    %111 = vector.shape_cast %110 : vector<1x256x384xbf16> to vector<256x384xbf16>
    %cst_100 = arith.constant dense<0.000000e+00> : vector<32x384xf32>
    %112 = tpu.matmul %109, %111, %cst_100 {dimension_numbers = #tpu.dot_dimension_numbers<[1], [0], [0], [1], [0, 0, 1, 1], [], []>} : vector<32x256xbf16>, vector<256x384xbf16>, vector<32x384xf32> -> vector<32x384xf32>
    %113 = arith.addf %96, %112 : vector<32x384xf32>
    %c1_101 = arith.constant 1 : index
    %c0_102 = arith.constant 0 : index
    %c0_103 = arith.constant 0 : index
    %114 = vector.load %arg1[%c1_101, %c0_102, %c0_103] : memref<9x32x162xbf16, #tpu.memory_space<vmem>>, vector<1x32x162xbf16>
    %115 = vector.shape_cast %114 : vector<1x32x162xbf16> to vector<32x162xbf16>
    %cst_104 = arith.constant dense<0.000000e+00> : vector<32x192xf32>
    %116 = tpu.matmul %115, %85, %cst_104 {dimension_numbers = #tpu.dot_dimension_numbers<[1], [0], [0], [1], [0, 0, 1, 1], [], []>} : vector<32x162xbf16>, vector<162x192xbf16>, vector<32x192xf32> -> vector<32x192xf32>
    %117 = arith.truncf %116 : vector<32x192xf32> to vector<32x192xbf16>
    %c1_105 = arith.constant 1 : index
    %c0_106 = arith.constant 0 : index
    %c0_107 = arith.constant 0 : index
    %118 = vector.load %arg9[%c1_105, %c0_106, %c0_107] : memref<9x192x256xbf16, #tpu.memory_space<vmem>>, vector<1x192x256xbf16>
    %119 = vector.shape_cast %118 : vector<1x192x256xbf16> to vector<192x256xbf16>
    %cst_108 = arith.constant dense<0.000000e+00> : vector<32x256xf32>
    %120 = tpu.matmul %117, %119, %cst_108 {dimension_numbers = #tpu.dot_dimension_numbers<[1], [0], [0], [1], [0, 0, 1, 1], [], []>} : vector<32x192xbf16>, vector<192x256xbf16>, vector<32x256xf32> -> vector<32x256xf32>
    %121 = arith.addf %105, %120 : vector<32x256xf32>
    %122 = arith.maximumf %90, %108 : vector<32x256xf32>
    %c2_109 = arith.constant 2 : index
    %c0_110 = arith.constant 0 : index
    %c0_111 = arith.constant 0 : index
    %123 = vector.load %arg1[%c2_109, %c0_110, %c0_111] : memref<9x32x162xbf16, #tpu.memory_space<vmem>>, vector<1x32x162xbf16>
    %124 = vector.shape_cast %123 : vector<1x32x162xbf16> to vector<32x162xbf16>
    %cst_112 = arith.constant dense<0.000000e+00> : vector<32x256xf32>
    %125 = tpu.matmul %124, %0, %cst_112 {dimension_numbers = #tpu.dot_dimension_numbers<[1], [0], [0], [1], [0, 0, 1, 1], [], []>} : vector<32x162xbf16>, vector<162x256xbf16>, vector<32x256xf32> -> vector<32x256xf32>
    %126 = arith.truncf %125 : vector<32x256xf32> to vector<32x256xbf16>
    %c2_113 = arith.constant 2 : index
    %c0_114 = arith.constant 0 : index
    %c0_115 = arith.constant 0 : index
    %127 = vector.load %arg3[%c2_113, %c0_114, %c0_115] : memref<9x256x384xbf16, #tpu.memory_space<vmem>>, vector<1x256x384xbf16>
    %128 = vector.shape_cast %127 : vector<1x256x384xbf16> to vector<256x384xbf16>
    %cst_116 = arith.constant dense<0.000000e+00> : vector<32x384xf32>
    %129 = tpu.matmul %126, %128, %cst_116 {dimension_numbers = #tpu.dot_dimension_numbers<[1], [0], [0], [1], [0, 0, 1, 1], [], []>} : vector<32x256xbf16>, vector<256x384xbf16>, vector<32x384xf32> -> vector<32x384xf32>
    %130 = arith.addf %113, %129 : vector<32x384xf32>
    %c2_117 = arith.constant 2 : index
    %c0_118 = arith.constant 0 : index
    %c0_119 = arith.constant 0 : index
    %131 = vector.load %arg1[%c2_117, %c0_118, %c0_119] : memref<9x32x162xbf16, #tpu.memory_space<vmem>>, vector<1x32x162xbf16>
    %132 = vector.shape_cast %131 : vector<1x32x162xbf16> to vector<32x162xbf16>
    %cst_120 = arith.constant dense<0.000000e+00> : vector<32x192xf32>
    %133 = tpu.matmul %132, %85, %cst_120 {dimension_numbers = #tpu.dot_dimension_numbers<[1], [0], [0], [1], [0, 0, 1, 1], [], []>} : vector<32x162xbf16>, vector<162x192xbf16>, vector<32x192xf32> -> vector<32x192xf32>
    %134 = arith.truncf %133 : vector<32x192xf32> to vector<32x192xbf16>
    %c2_121 = arith.constant 2 : index
    %c0_122 = arith.constant 0 : index
    %c0_123 = arith.constant 0 : index
    %135 = vector.load %arg9[%c2_121, %c0_122, %c0_123] : memref<9x192x256xbf16, #tpu.memory_space<vmem>>, vector<1x192x256xbf16>
    %136 = vector.shape_cast %135 : vector<1x192x256xbf16> to vector<192x256xbf16>
    %cst_124 = arith.constant dense<0.000000e+00> : vector<32x256xf32>
    %137 = tpu.matmul %134, %136, %cst_124 {dimension_numbers = #tpu.dot_dimension_numbers<[1], [0], [0], [1], [0, 0, 1, 1], [], []>} : vector<32x192xbf16>, vector<192x256xbf16>, vector<32x256xf32> -> vector<32x256xf32>
    %138 = arith.addf %121, %137 : vector<32x256xf32>
    %139 = arith.maximumf %122, %125 : vector<32x256xf32>
    %c3_125 = arith.constant 3 : index
    %c0_126 = arith.constant 0 : index
    %c0_127 = arith.constant 0 : index
    %140 = vector.load %arg1[%c3_125, %c0_126, %c0_127] : memref<9x32x162xbf16, #tpu.memory_space<vmem>>, vector<1x32x162xbf16>
    %141 = vector.shape_cast %140 : vector<1x32x162xbf16> to vector<32x162xbf16>
    %cst_128 = arith.constant dense<0.000000e+00> : vector<32x256xf32>
    %142 = tpu.matmul %141, %0, %cst_128 {dimension_numbers = #tpu.dot_dimension_numbers<[1], [0], [0], [1], [0, 0, 1, 1], [], []>} : vector<32x162xbf16>, vector<162x256xbf16>, vector<32x256xf32> -> vector<32x256xf32>
    %143 = arith.truncf %142 : vector<32x256xf32> to vector<32x256xbf16>
    %c3_129 = arith.constant 3 : index
    %c0_130 = arith.constant 0 : index
    %c0_131 = arith.constant 0 : index
    %144 = vector.load %arg3[%c3_129, %c0_130, %c0_131] : memref<9x256x384xbf16, #tpu.memory_space<vmem>>, vector<1x256x384xbf16>
    %145 = vector.shape_cast %144 : vector<1x256x384xbf16> to vector<256x384xbf16>
    %cst_132 = arith.constant dense<0.000000e+00> : vector<32x384xf32>
    %146 = tpu.matmul %143, %145, %cst_132 {dimension_numbers = #tpu.dot_dimension_numbers<[1], [0], [0], [1], [0, 0, 1, 1], [], []>} : vector<32x256xbf16>, vector<256x384xbf16>, vector<32x384xf32> -> vector<32x384xf32>
    %147 = arith.addf %130, %146 : vector<32x384xf32>
    %c3_133 = arith.constant 3 : index
    %c0_134 = arith.constant 0 : index
    %c0_135 = arith.constant 0 : index
    %148 = vector.load %arg1[%c3_133, %c0_134, %c0_135] : memref<9x32x162xbf16, #tpu.memory_space<vmem>>, vector<1x32x162xbf16>
    %149 = vector.shape_cast %148 : vector<1x32x162xbf16> to vector<32x162xbf16>
    %cst_136 = arith.constant dense<0.000000e+00> : vector<32x192xf32>
    %150 = tpu.matmul %149, %85, %cst_136 {dimension_numbers = #tpu.dot_dimension_numbers<[1], [0], [0], [1], [0, 0, 1, 1], [], []>} : vector<32x162xbf16>, vector<162x192xbf16>, vector<32x192xf32> -> vector<32x192xf32>
    %151 = arith.truncf %150 : vector<32x192xf32> to vector<32x192xbf16>
    %c3_137 = arith.constant 3 : index
    %c0_138 = arith.constant 0 : index
    %c0_139 = arith.constant 0 : index
    %152 = vector.load %arg9[%c3_137, %c0_138, %c0_139] : memref<9x192x256xbf16, #tpu.memory_space<vmem>>, vector<1x192x256xbf16>
    %153 = vector.shape_cast %152 : vector<1x192x256xbf16> to vector<192x256xbf16>
    %cst_140 = arith.constant dense<0.000000e+00> : vector<32x256xf32>
    %154 = tpu.matmul %151, %153, %cst_140 {dimension_numbers = #tpu.dot_dimension_numbers<[1], [0], [0], [1], [0, 0, 1, 1], [], []>} : vector<32x192xbf16>, vector<192x256xbf16>, vector<32x256xf32> -> vector<32x256xf32>
    %155 = arith.addf %138, %154 : vector<32x256xf32>
    %156 = arith.maximumf %139, %142 : vector<32x256xf32>
    %c4_141 = arith.constant 4 : index
    %c0_142 = arith.constant 0 : index
    %c0_143 = arith.constant 0 : index
    %157 = vector.load %arg1[%c4_141, %c0_142, %c0_143] : memref<9x32x162xbf16, #tpu.memory_space<vmem>>, vector<1x32x162xbf16>
    %158 = vector.shape_cast %157 : vector<1x32x162xbf16> to vector<32x162xbf16>
    %cst_144 = arith.constant dense<0.000000e+00> : vector<32x256xf32>
    %159 = tpu.matmul %158, %0, %cst_144 {dimension_numbers = #tpu.dot_dimension_numbers<[1], [0], [0], [1], [0, 0, 1, 1], [], []>} : vector<32x162xbf16>, vector<162x256xbf16>, vector<32x256xf32> -> vector<32x256xf32>
    %160 = arith.truncf %159 : vector<32x256xf32> to vector<32x256xbf16>
    %c4_145 = arith.constant 4 : index
    %c0_146 = arith.constant 0 : index
    %c0_147 = arith.constant 0 : index
    %161 = vector.load %arg3[%c4_145, %c0_146, %c0_147] : memref<9x256x384xbf16, #tpu.memory_space<vmem>>, vector<1x256x384xbf16>
    %162 = vector.shape_cast %161 : vector<1x256x384xbf16> to vector<256x384xbf16>
    %cst_148 = arith.constant dense<0.000000e+00> : vector<32x384xf32>
    %163 = tpu.matmul %160, %162, %cst_148 {dimension_numbers = #tpu.dot_dimension_numbers<[1], [0], [0], [1], [0, 0, 1, 1], [], []>} : vector<32x256xbf16>, vector<256x384xbf16>, vector<32x384xf32> -> vector<32x384xf32>
    %164 = arith.addf %147, %163 : vector<32x384xf32>
    %c4_149 = arith.constant 4 : index
    %c0_150 = arith.constant 0 : index
    %c0_151 = arith.constant 0 : index
    %165 = vector.load %arg1[%c4_149, %c0_150, %c0_151] : memref<9x32x162xbf16, #tpu.memory_space<vmem>>, vector<1x32x162xbf16>
    %166 = vector.shape_cast %165 : vector<1x32x162xbf16> to vector<32x162xbf16>
    %cst_152 = arith.constant dense<0.000000e+00> : vector<32x192xf32>
    %167 = tpu.matmul %166, %85, %cst_152 {dimension_numbers = #tpu.dot_dimension_numbers<[1], [0], [0], [1], [0, 0, 1, 1], [], []>} : vector<32x162xbf16>, vector<162x192xbf16>, vector<32x192xf32> -> vector<32x192xf32>
    %168 = arith.truncf %167 : vector<32x192xf32> to vector<32x192xbf16>
    %c4_153 = arith.constant 4 : index
    %c0_154 = arith.constant 0 : index
    %c0_155 = arith.constant 0 : index
    %169 = vector.load %arg9[%c4_153, %c0_154, %c0_155] : memref<9x192x256xbf16, #tpu.memory_space<vmem>>, vector<1x192x256xbf16>
    %170 = vector.shape_cast %169 : vector<1x192x256xbf16> to vector<192x256xbf16>
    %cst_156 = arith.constant dense<0.000000e+00> : vector<32x256xf32>
    %171 = tpu.matmul %168, %170, %cst_156 {dimension_numbers = #tpu.dot_dimension_numbers<[1], [0], [0], [1], [0, 0, 1, 1], [], []>} : vector<32x192xbf16>, vector<192x256xbf16>, vector<32x256xf32> -> vector<32x256xf32>
    %172 = arith.addf %155, %171 : vector<32x256xf32>
    %173 = arith.maximumf %156, %159 : vector<32x256xf32>
    %c5_157 = arith.constant 5 : index
    %c0_158 = arith.constant 0 : index
    %c0_159 = arith.constant 0 : index
    %174 = vector.load %arg1[%c5_157, %c0_158, %c0_159] : memref<9x32x162xbf16, #tpu.memory_space<vmem>>, vector<1x32x162xbf16>
    %175 = vector.shape_cast %174 : vector<1x32x162xbf16> to vector<32x162xbf16>
    %cst_160 = arith.constant dense<0.000000e+00> : vector<32x256xf32>
    %176 = tpu.matmul %175, %0, %cst_160 {dimension_numbers = #tpu.dot_dimension_numbers<[1], [0], [0], [1], [0, 0, 1, 1], [], []>} : vector<32x162xbf16>, vector<162x256xbf16>, vector<32x256xf32> -> vector<32x256xf32>
    %177 = arith.truncf %176 : vector<32x256xf32> to vector<32x256xbf16>
    %c5_161 = arith.constant 5 : index
    %c0_162 = arith.constant 0 : index
    %c0_163 = arith.constant 0 : index
    %178 = vector.load %arg3[%c5_161, %c0_162, %c0_163] : memref<9x256x384xbf16, #tpu.memory_space<vmem>>, vector<1x256x384xbf16>
    %179 = vector.shape_cast %178 : vector<1x256x384xbf16> to vector<256x384xbf16>
    %cst_164 = arith.constant dense<0.000000e+00> : vector<32x384xf32>
    %180 = tpu.matmul %177, %179, %cst_164 {dimension_numbers = #tpu.dot_dimension_numbers<[1], [0], [0], [1], [0, 0, 1, 1], [], []>} : vector<32x256xbf16>, vector<256x384xbf16>, vector<32x384xf32> -> vector<32x384xf32>
    %181 = arith.addf %164, %180 : vector<32x384xf32>
    %c5_165 = arith.constant 5 : index
    %c0_166 = arith.constant 0 : index
    %c0_167 = arith.constant 0 : index
    %182 = vector.load %arg1[%c5_165, %c0_166, %c0_167] : memref<9x32x162xbf16, #tpu.memory_space<vmem>>, vector<1x32x162xbf16>
    %183 = vector.shape_cast %182 : vector<1x32x162xbf16> to vector<32x162xbf16>
    %cst_168 = arith.constant dense<0.000000e+00> : vector<32x192xf32>
    %184 = tpu.matmul %183, %85, %cst_168 {dimension_numbers = #tpu.dot_dimension_numbers<[1], [0], [0], [1], [0, 0, 1, 1], [], []>} : vector<32x162xbf16>, vector<162x192xbf16>, vector<32x192xf32> -> vector<32x192xf32>
    %185 = arith.truncf %184 : vector<32x192xf32> to vector<32x192xbf16>
    %c5_169 = arith.constant 5 : index
    %c0_170 = arith.constant 0 : index
    %c0_171 = arith.constant 0 : index
    %186 = vector.load %arg9[%c5_169, %c0_170, %c0_171] : memref<9x192x256xbf16, #tpu.memory_space<vmem>>, vector<1x192x256xbf16>
    %187 = vector.shape_cast %186 : vector<1x192x256xbf16> to vector<192x256xbf16>
    %cst_172 = arith.constant dense<0.000000e+00> : vector<32x256xf32>
    %188 = tpu.matmul %185, %187, %cst_172 {dimension_numbers = #tpu.dot_dimension_numbers<[1], [0], [0], [1], [0, 0, 1, 1], [], []>} : vector<32x192xbf16>, vector<192x256xbf16>, vector<32x256xf32> -> vector<32x256xf32>
    %189 = arith.addf %172, %188 : vector<32x256xf32>
    %190 = arith.maximumf %173, %176 : vector<32x256xf32>
    %c6_173 = arith.constant 6 : index
    %c0_174 = arith.constant 0 : index
    %c0_175 = arith.constant 0 : index
    %191 = vector.load %arg1[%c6_173, %c0_174, %c0_175] : memref<9x32x162xbf16, #tpu.memory_space<vmem>>, vector<1x32x162xbf16>
    %192 = vector.shape_cast %191 : vector<1x32x162xbf16> to vector<32x162xbf16>
    %cst_176 = arith.constant dense<0.000000e+00> : vector<32x256xf32>
    %193 = tpu.matmul %192, %0, %cst_176 {dimension_numbers = #tpu.dot_dimension_numbers<[1], [0], [0], [1], [0, 0, 1, 1], [], []>} : vector<32x162xbf16>, vector<162x256xbf16>, vector<32x256xf32> -> vector<32x256xf32>
    %194 = arith.truncf %193 : vector<32x256xf32> to vector<32x256xbf16>
    %c6_177 = arith.constant 6 : index
    %c0_178 = arith.constant 0 : index
    %c0_179 = arith.constant 0 : index
    %195 = vector.load %arg3[%c6_177, %c0_178, %c0_179] : memref<9x256x384xbf16, #tpu.memory_space<vmem>>, vector<1x256x384xbf16>
    %196 = vector.shape_cast %195 : vector<1x256x384xbf16> to vector<256x384xbf16>
    %cst_180 = arith.constant dense<0.000000e+00> : vector<32x384xf32>
    %197 = tpu.matmul %194, %196, %cst_180 {dimension_numbers = #tpu.dot_dimension_numbers<[1], [0], [0], [1], [0, 0, 1, 1], [], []>} : vector<32x256xbf16>, vector<256x384xbf16>, vector<32x384xf32> -> vector<32x384xf32>
    %198 = arith.addf %181, %197 : vector<32x384xf32>
    %c6_181 = arith.constant 6 : index
    %c0_182 = arith.constant 0 : index
    %c0_183 = arith.constant 0 : index
    %199 = vector.load %arg1[%c6_181, %c0_182, %c0_183] : memref<9x32x162xbf16, #tpu.memory_space<vmem>>, vector<1x32x162xbf16>
    %200 = vector.shape_cast %199 : vector<1x32x162xbf16> to vector<32x162xbf16>
    %cst_184 = arith.constant dense<0.000000e+00> : vector<32x192xf32>
    %201 = tpu.matmul %200, %85, %cst_184 {dimension_numbers = #tpu.dot_dimension_numbers<[1], [0], [0], [1], [0, 0, 1, 1], [], []>} : vector<32x162xbf16>, vector<162x192xbf16>, vector<32x192xf32> -> vector<32x192xf32>
    %202 = arith.truncf %201 : vector<32x192xf32> to vector<32x192xbf16>
    %c6_185 = arith.constant 6 : index
    %c0_186 = arith.constant 0 : index
    %c0_187 = arith.constant 0 : index
    %203 = vector.load %arg9[%c6_185, %c0_186, %c0_187] : memref<9x192x256xbf16, #tpu.memory_space<vmem>>, vector<1x192x256xbf16>
    %204 = vector.shape_cast %203 : vector<1x192x256xbf16> to vector<192x256xbf16>
    %cst_188 = arith.constant dense<0.000000e+00> : vector<32x256xf32>
    %205 = tpu.matmul %202, %204, %cst_188 {dimension_numbers = #tpu.dot_dimension_numbers<[1], [0], [0], [1], [0, 0, 1, 1], [], []>} : vector<32x192xbf16>, vector<192x256xbf16>, vector<32x256xf32> -> vector<32x256xf32>
    %206 = arith.addf %189, %205 : vector<32x256xf32>
    %207 = arith.maximumf %190, %193 : vector<32x256xf32>
    %c7_189 = arith.constant 7 : index
    %c0_190 = arith.constant 0 : index
    %c0_191 = arith.constant 0 : index
    %208 = vector.load %arg1[%c7_189, %c0_190, %c0_191] : memref<9x32x162xbf16, #tpu.memory_space<vmem>>, vector<1x32x162xbf16>
    %209 = vector.shape_cast %208 : vector<1x32x162xbf16> to vector<32x162xbf16>
    %cst_192 = arith.constant dense<0.000000e+00> : vector<32x256xf32>
    %210 = tpu.matmul %209, %0, %cst_192 {dimension_numbers = #tpu.dot_dimension_numbers<[1], [0], [0], [1], [0, 0, 1, 1], [], []>} : vector<32x162xbf16>, vector<162x256xbf16>, vector<32x256xf32> -> vector<32x256xf32>
    %211 = arith.truncf %210 : vector<32x256xf32> to vector<32x256xbf16>
    %c7_193 = arith.constant 7 : index
    %c0_194 = arith.constant 0 : index
    %c0_195 = arith.constant 0 : index
    %212 = vector.load %arg3[%c7_193, %c0_194, %c0_195] : memref<9x256x384xbf16, #tpu.memory_space<vmem>>, vector<1x256x384xbf16>
    %213 = vector.shape_cast %212 : vector<1x256x384xbf16> to vector<256x384xbf16>
    %cst_196 = arith.constant dense<0.000000e+00> : vector<32x384xf32>
    %214 = tpu.matmul %211, %213, %cst_196 {dimension_numbers = #tpu.dot_dimension_numbers<[1], [0], [0], [1], [0, 0, 1, 1], [], []>} : vector<32x256xbf16>, vector<256x384xbf16>, vector<32x384xf32> -> vector<32x384xf32>
    %215 = arith.addf %198, %214 : vector<32x384xf32>
    %c7_197 = arith.constant 7 : index
    %c0_198 = arith.constant 0 : index
    %c0_199 = arith.constant 0 : index
    %216 = vector.load %arg1[%c7_197, %c0_198, %c0_199] : memref<9x32x162xbf16, #tpu.memory_space<vmem>>, vector<1x32x162xbf16>
    %217 = vector.shape_cast %216 : vector<1x32x162xbf16> to vector<32x162xbf16>
    %cst_200 = arith.constant dense<0.000000e+00> : vector<32x192xf32>
    %218 = tpu.matmul %217, %85, %cst_200 {dimension_numbers = #tpu.dot_dimension_numbers<[1], [0], [0], [1], [0, 0, 1, 1], [], []>} : vector<32x162xbf16>, vector<162x192xbf16>, vector<32x192xf32> -> vector<32x192xf32>
    %219 = arith.truncf %218 : vector<32x192xf32> to vector<32x192xbf16>
    %c7_201 = arith.constant 7 : index
    %c0_202 = arith.constant 0 : index
    %c0_203 = arith.constant 0 : index
    %220 = vector.load %arg9[%c7_201, %c0_202, %c0_203] : memref<9x192x256xbf16, #tpu.memory_space<vmem>>, vector<1x192x256xbf16>
    %221 = vector.shape_cast %220 : vector<1x192x256xbf16> to vector<192x256xbf16>
    %cst_204 = arith.constant dense<0.000000e+00> : vector<32x256xf32>
    %222 = tpu.matmul %219, %221, %cst_204 {dimension_numbers = #tpu.dot_dimension_numbers<[1], [0], [0], [1], [0, 0, 1, 1], [], []>} : vector<32x192xbf16>, vector<192x256xbf16>, vector<32x256xf32> -> vector<32x256xf32>
    %223 = arith.addf %206, %222 : vector<32x256xf32>
    %224 = arith.maximumf %207, %210 : vector<32x256xf32>
    %c8_205 = arith.constant 8 : index
    %c0_206 = arith.constant 0 : index
    %c0_207 = arith.constant 0 : index
    %225 = vector.load %arg1[%c8_205, %c0_206, %c0_207] : memref<9x32x162xbf16, #tpu.memory_space<vmem>>, vector<1x32x162xbf16>
    %226 = vector.shape_cast %225 : vector<1x32x162xbf16> to vector<32x162xbf16>
    %cst_208 = arith.constant dense<0.000000e+00> : vector<32x256xf32>
    %227 = tpu.matmul %226, %0, %cst_208 {dimension_numbers = #tpu.dot_dimension_numbers<[1], [0], [0], [1], [0, 0, 1, 1], [], []>} : vector<32x162xbf16>, vector<162x256xbf16>, vector<32x256xf32> -> vector<32x256xf32>
    %228 = arith.truncf %227 : vector<32x256xf32> to vector<32x256xbf16>
    %c8_209 = arith.constant 8 : index
    %c0_210 = arith.constant 0 : index
    %c0_211 = arith.constant 0 : index
    %229 = vector.load %arg3[%c8_209, %c0_210, %c0_211] : memref<9x256x384xbf16, #tpu.memory_space<vmem>>, vector<1x256x384xbf16>
    %230 = vector.shape_cast %229 : vector<1x256x384xbf16> to vector<256x384xbf16>
    %cst_212 = arith.constant dense<0.000000e+00> : vector<32x384xf32>
    %231 = tpu.matmul %228, %230, %cst_212 {dimension_numbers = #tpu.dot_dimension_numbers<[1], [0], [0], [1], [0, 0, 1, 1], [], []>} : vector<32x256xbf16>, vector<256x384xbf16>, vector<32x384xf32> -> vector<32x384xf32>
    %232 = arith.addf %215, %231 : vector<32x384xf32>
    %c8_213 = arith.constant 8 : index
    %c0_214 = arith.constant 0 : index
    %c0_215 = arith.constant 0 : index
    %233 = vector.load %arg1[%c8_213, %c0_214, %c0_215] : memref<9x32x162xbf16, #tpu.memory_space<vmem>>, vector<1x32x162xbf16>
    %234 = vector.shape_cast %233 : vector<1x32x162xbf16> to vector<32x162xbf16>
    %cst_216 = arith.constant dense<0.000000e+00> : vector<32x192xf32>
    %235 = tpu.matmul %234, %85, %cst_216 {dimension_numbers = #tpu.dot_dimension_numbers<[1], [0], [0], [1], [0, 0, 1, 1], [], []>} : vector<32x162xbf16>, vector<162x192xbf16>, vector<32x192xf32> -> vector<32x192xf32>
    %236 = arith.truncf %235 : vector<32x192xf32> to vector<32x192xbf16>
    %c8_217 = arith.constant 8 : index
    %c0_218 = arith.constant 0 : index
    %c0_219 = arith.constant 0 : index
    %237 = vector.load %arg9[%c8_217, %c0_218, %c0_219] : memref<9x192x256xbf16, #tpu.memory_space<vmem>>, vector<1x192x256xbf16>
    %238 = vector.shape_cast %237 : vector<1x192x256xbf16> to vector<192x256xbf16>
    %cst_220 = arith.constant dense<0.000000e+00> : vector<32x256xf32>
    %239 = tpu.matmul %236, %238, %cst_220 {dimension_numbers = #tpu.dot_dimension_numbers<[1], [0], [0], [1], [0, 0, 1, 1], [], []>} : vector<32x192xbf16>, vector<192x256xbf16>, vector<32x256xf32> -> vector<32x256xf32>
    %240 = arith.addf %223, %239 : vector<32x256xf32>
    %241 = arith.maximumf %224, %227 : vector<32x256xf32>
    %cst_221 = arith.constant 0.000000e+00 : f32
    %242 = vector.broadcast %cst_221 : f32 to vector<32x384xf32>
    %243 = arith.maximumf %232, %242 : vector<32x384xf32>
    %c0_222 = arith.constant 0 : index
    %c0_223 = arith.constant 0 : index
    %244 = vector.load %arg11[%c0_222, %c0_223] : memref<32x896xf32, #tpu.memory_space<vmem>>, vector<32x384xf32>
    tpu.vector_store %arg11[%c0_222, %c0_223], %243 {strides = array<i32>} : memref<32x896xf32, #tpu.memory_space<vmem>>, vector<32x384xf32>,
    %cst_224 = arith.constant 0.000000e+00 : f32
    %245 = vector.broadcast %cst_224 : f32 to vector<32x256xf32>
    %246 = arith.maximumf %240, %245 : vector<32x256xf32>
    %c0_225 = arith.constant 0 : index
    %c384 = arith.constant 384 : index
    %247 = vector.load %arg11[%c0_225, %c384] : memref<32x896xf32, #tpu.memory_space<vmem>>, vector<32x256xf32>
    tpu.vector_store %arg11[%c0_225, %c384], %246 {strides = array<i32>} : memref<32x896xf32, #tpu.memory_space<vmem>>, vector<32x256xf32>,
    %c0_226 = arith.constant 0 : index
    %c640 = arith.constant 640 : index
    %248 = vector.load %arg11[%c0_226, %c640] : memref<32x896xf32, #tpu.memory_space<vmem>>, vector<32x256xf32>
    tpu.vector_store %arg11[%c0_226, %c640], %241 {strides = array<i32>} : memref<32x896xf32, #tpu.memory_space<vmem>>, vector<32x256xf32>,
    return
  }
}

</mosaic_0001>

<bundles_post_ra>
// kernel: tpu_custom_call.1
= control target key start
LH: loop header
LB: loop body
LE: loop exit
PB: predicated region body
PF: predicated region fallthrough
CT: control target
= control target key end

     0   :  { %16 = vsyncpa [#allocation3], 0  ;;  %s22024_s0 = inlined_call_operand.hbm [shape: bf16[162,256], index: 0, kind: input, shape index: {}]   ;;  %s22025_s1 = inlined_call_operand.hbm [shape: bf16[9,32,162], index: 1, kind: input, shape index: {}]   ;;  %s22026_s2 = inlined_call_operand.hbm [shape: bf16[9,162,162], index: 2, kind: input, shape index: {}]   ;;  %s22027_s3 = inlined_call_operand.hbm [shape: bf16[9,256,384], index: 3, kind: input, shape index: {}]   ;;  %s22028_s4 = inlined_call_operand.hbm [shape: f32[1,384], index: 4, kind: input, shape index: {}]   ;;  %s22029_s5 = inlined_call_operand.vmem [shape: bf16[256,192], index: 5, kind: input, shape index: {}]   ;;  %s22030_s6 = inlined_call_operand.hbm [shape: f32[1,192], index: 6, kind: input, shape index: {}]   ;;  %s22031_s7 = inlined_call_operand.hbm [shape: bf16[9,192,192], index: 7, kind: input, shape index: {}]   ;;  %s22032_s8 = inlined_call_operand.hbm [shape: f32[1,192], index: 8, kind: input, shape index: {}]   ;;  %s22033_s9 = inlined_call_operand.hbm [shape: bf16[9,192,256], index: 9, kind: input, shape index: {}]   ;;  %s22034_s10 = inlined_call_operand.hbm [shape: f32[1,256], index: 10, kind: input, shape index: {}]   ;;  %s22035_s11 = inlined_call_operand.hbm [shape: f32[32,896], index: 11, kind: output, shape index: {}]  }
   0x1   :  { %17 = vsyncpa [#allocation6], 0 }
   0x2   :  { %18 = vsyncpa [#allocation9], 0 }
   0x3   :  { %19 = vsyncpa [#allocation12], 0 }
   0x4   :  { %20 = vsyncpa [#allocation15], 0 }
   0x5   :  { %21 = vsyncpa [#allocation18], 0 }
   0x6   :  { %22 = vsyncpa [#allocation4], 0  ;;  %s18369_s17 = smov [#allocation5]   ;;  %s18370_s19 = smov [#allocation8]  }
   0x7   :  { %s40_s18 = sshll.u32 %s18369_s17, 4  ;;  %s64_s20 = sshll.u32 %s18370_s19, 4  ;;  %s41_s18 = int_to_ptr.vmem [resolvable:$true] %s40_s18  ;;  %s18446_s20 = int_to_ptr.vmem [resolvable:$true] %s64_s20 }
   0x8   :  { %s18113_s23 = scalar_lea.hbm %s22025_s1, 4608 }
   0x9   :  { %p18114_p0 = scmp.ne.s32.totalorder %s22025_s1, %s18113_s23  ;;  %p18117_p1 = scmp.lt.u32.totalorder %s18113_s23, %s22025_s1 }
   0xb   :  { %p18119_p2 = pnand %p18117_p1, %p18114_p0 }
   0xd   :  { %18122 = shalt.err (!%p18119_p2)
}
   0xe   :  { %s18123_s28 = scalar_lea.vmem %s41_s18, 4608  ;;  %p18128_p4 = scmp.lt.s32.totalorder %s41_s18, %s41_s18 }
   0xf   :  { %p18124_p3 = scmp.ne.s32.totalorder %s41_s18, %s18123_s28  ;;  %p18129_p5 = scmp.lt.s32.totalorder %s18123_s28, %s18123_s28 }
  0x11   :  { %p18130_p6 = por %p18129_p5, %p18128_p4 }
  0x13   :  { %p18131_p7 = pnand %p18130_p6, %p18124_p3 }
  0x15   :  { %18134 = shalt.err (!%p18131_p7)
}
  0x16   :  { %s18371_s29 = smov 128   ;;  %s18372_s30 = smov 8  }
  0x17   :  { %46 = dma.hbm_to_vmem [thread:$0]  %s22025_s1, 4608, %s41_s18, [#allocation6], %s18371_s29, %s18371_s29, %s18372_s30  }
  0x18   :  { %s18135_s16 = scalar_lea.hbm %s22027_s3, 55296 }
  0x19   :  { %p18136_p8 = scmp.ne.s32.totalorder %s22027_s3, %s18135_s16  ;;  %p18139_p9 = scmp.lt.u32.totalorder %s18135_s16, %s22027_s3 }
  0x1b   :  { %p18141_p10 = pnand %p18139_p9, %p18136_p8 }
  0x1d   :  { %18144 = shalt.err (!%p18141_p10)
}
  0x1e   :  { %s18145_s23 = scalar_lea.vmem %s18446_s20, 55296  ;;  %p18150_p12 = scmp.lt.s32.totalorder %s18446_s20, %s18446_s20 }
  0x1f   :  { %p18146_p11 = scmp.ne.s32.totalorder %s18446_s20, %s18145_s23  ;;  %p18151_p13 = scmp.lt.s32.totalorder %s18145_s23, %s18145_s23 }
  0x21   :  { %p18152_p0 = por %p18151_p13, %p18150_p12 }
  0x23   :  { %p18153_p1 = pnand %p18152_p0, %p18146_p11 }
  0x25   :  { %18156 = shalt.err (!%p18153_p1)
}
  0x26   :  { %s18373_s1 = smov 192   ;;  %s18374_s18 = smov 12  }
  0x27   :  { %70 = dma.hbm_to_vmem [thread:$0]  %s22027_s3, 55296, %s18446_s20, [#allocation9], %s18373_s1, %s18373_s1, %s18374_s18  }
  0x28   :  { %s18375_s26 = smov [#allocation11]   ;;  %s18376_s28 = smov [#allocation14]  }
  0x29   :  { %s89_s27 = sshll.u32 %s18375_s26, 4  ;;  %s111_s12 = sshll.u32 %s18376_s28, 4  ;;  %s90_s27 = int_to_ptr.vmem [resolvable:$true] %s89_s27  ;;  %s112_s12 = int_to_ptr.vmem [resolvable:$true] %s111_s12 }
  0x2a   :  { %s18157_s15 = scalar_lea.hbm %s22030_s6, 32 }
  0x2b   :  { %p18158_p2 = scmp.ne.s32.totalorder %s22030_s6, %s18157_s15  ;;  %p18161_p3 = scmp.lt.u32.totalorder %s18157_s15, %s22030_s6 }
  0x2d   :  { %p18163_p4 = pnand %p18161_p3, %p18158_p2 }
  0x2f   :  { %18166 = shalt.err (!%p18163_p4)
}
  0x30   :  { %s18167_s3 = scalar_lea.vmem %s90_s27, 32  ;;  %p18172_p6 = scmp.lt.s32.totalorder %s90_s27, %s90_s27 }
  0x31   :  { %p18168_p5 = scmp.ne.s32.totalorder %s90_s27, %s18167_s3  ;;  %p18173_p7 = scmp.lt.s32.totalorder %s18167_s3, %s18167_s3 }
  0x33   :  { %p18174_p8 = por %p18173_p7, %p18172_p6 }
  0x35   :  { %p18175_p9 = pnand %p18174_p8, %p18168_p5 }
  0x37   :  { %18178 = shalt.err (!%p18175_p9)
}
  0x38   :  { %92 = dma.hbm_to_vmem [thread:$0]  %s22030_s6, 32, %s90_s27, [#allocation12]  }
  0x39   :  { %s18179_s18 = scalar_lea.hbm %s22032_s8, 32 }
  0x3a   :  { %p18180_p10 = scmp.ne.s32.totalorder %s22032_s8, %s18179_s18  ;;  %p18183_p11 = scmp.lt.u32.totalorder %s18179_s18, %s22032_s8 }
  0x3c   :  { %p18185_p12 = pnand %p18183_p11, %p18180_p10 }
  0x3e   :  { %18188 = shalt.err (!%p18185_p12)
}
  0x3f   :  { %s18189_s13 = scalar_lea.vmem %s112_s12, 32  ;;  %p18194_p0 = scmp.lt.s32.totalorder %s112_s12, %s112_s12 }
  0x40   :  { %p18190_p13 = scmp.ne.s32.totalorder %s112_s12, %s18189_s13  ;;  %p18195_p1 = scmp.lt.s32.totalorder %s18189_s13, %s18189_s13 }
  0x42   :  { %p18196_p2 = por %p18195_p1, %p18194_p0 }
  0x44   :  { %p18197_p3 = pnand %p18196_p2, %p18190_p13 }
  0x46   :  { %18200 = shalt.err (!%p18197_p3)
}
  0x47   :  { %114 = dma.hbm_to_vmem [thread:$0]  %s22032_s8, 32, %s112_s12, [#allocation15]  }
  0x48   :  { %s18377_s14 = smov [#allocation2]   ;;  %s18378_s16 = smov [#allocation7]  }
  0x49   :  { %s28_s15 = sshll.u32 %s18377_s14, 4  ;;  %s52_s17 = sshll.u32 %s18378_s16, 4  ;;  %s29_s15 = int_to_ptr.vmem [resolvable:$true] %s28_s15  ;;  %s18504_s17 = int_to_ptr.vmem [resolvable:$true] %s52_s17 }
  0x4a   :  { %s18201_s3 = scalar_lea.hbm %s22024_s0, 2688 }
  0x4b   :  { %p18202_p4 = scmp.ne.s32.totalorder %s22024_s0, %s18201_s3  ;;  %p18205_p5 = scmp.lt.u32.totalorder %s18201_s3, %s22024_s0 }
  0x4d   :  { %p18207_p6 = pnand %p18205_p5, %p18202_p4 }
  0x4f   :  { %18210 = shalt.err (!%p18207_p6)
}
  0x50   :  { %s18211_s8 = scalar_lea.vmem %s29_s15, 2688  ;;  %p18216_p8 = scmp.lt.s32.totalorder %s29_s15, %s29_s15 }
  0x51   :  { %p18212_p7 = scmp.ne.s32.totalorder %s29_s15, %s18211_s8  ;;  %p18217_p9 = scmp.lt.s32.totalorder %s18211_s8, %s18211_s8 }
  0x53   :  { %p18218_p10 = por %p18217_p9, %p18216_p8 }
  0x55   :  { %p18219_p11 = pnand %p18218_p10, %p18212_p7 }
  0x57   :  { %18222 = shalt.err (!%p18219_p11)
}
  0x58   :  { %34 = dma.hbm_to_vmem [thread:$0]  %s22024_s0, 2688, %s29_s15, [#allocation3], %s18371_s29, %s18371_s29, %s18372_s30  }
  0x59   :  { %s18223_s26 = scalar_lea.hbm %s22026_s2, 24192 }
  0x5a   :  { %p18224_p12 = scmp.ne.s32.totalorder %s22026_s2, %s18223_s26  ;;  %p18227_p13 = scmp.lt.u32.totalorder %s18223_s26, %s22026_s2 }
  0x5c   :  { %p18229_p0 = pnand %p18227_p13, %p18224_p12 }
  0x5e   :  { %18232 = shalt.err (!%p18229_p0)
}
  0x5f   :  { %s18233_s14 = scalar_lea.vmem %s18504_s17, 24192  ;;  %p18238_p2 = scmp.lt.s32.totalorder %s18504_s17, %s18504_s17 }
  0x60   :  { %p18234_p1 = scmp.ne.s32.totalorder %s18504_s17, %s18233_s14  ;;  %p18239_p3 = scmp.lt.s32.totalorder %s18233_s14, %s18233_s14 }
  0x62   :  { %p18240_p4 = por %p18239_p3, %p18238_p2 }
  0x64   :  { %p18241_p5 = pnand %p18240_p4, %p18234_p1 }
  0x66   :  { %18244 = shalt.err (!%p18241_p5)
}
  0x67   :  { %58 = dma.hbm_to_vmem [thread:$0]  %s22026_s2, 24192, %s18504_s17, [#allocation6], %s18371_s29, %s18371_s29, %s18372_s30  }
  0x68   :  { %s18379_s16 = smov [#allocation10]   ;;  %s18380_s21 = smov [#allocation13]  }
  0x69   :  { %s77_s19 = sshll.u32 %s18379_s16, 4  ;;  %s98_s3 = sshll.u32 %s18380_s21, 4  ;;  %s78_s19 = int_to_ptr.vmem [resolvable:$true] %s77_s19  ;;  %s18541_s3 = int_to_ptr.vmem [resolvable:$true] %s98_s3 }
  0x6a   :  { %s18245_s23 = scalar_lea.hbm %s22028_s4, 48 }
  0x6b   :  { %p18246_p6 = scmp.ne.s32.totalorder %s22028_s4, %s18245_s23  ;;  %p18249_p7 = scmp.lt.u32.totalorder %s18245_s23, %s22028_s4 }
  0x6d   :  { %p18251_p8 = pnand %p18249_p7, %p18246_p6 }
  0x6f   :  { %18254 = shalt.err (!%p18251_p8)
}
  0x70   :  { %s18255_s2 = scalar_lea.vmem %s78_s19, 48  ;;  %s18259_s17 = scalar_lea.vmem %s78_s19, 64 }
  0x71   :  { %p18256_p9 = scmp.ne.s32.totalorder %s78_s19, %s18255_s2  ;;  %p18260_p10 = scmp.lt.s32.totalorder %s78_s19, %s78_s19 }
  0x72   :  { %p18261_p11 = scmp.lt.s32.totalorder %s18259_s17, %s18255_s2 }
  0x74   :  { %p18262_p12 = por %p18261_p11, %p18260_p10 }
  0x76   :  { %p18263_p13 = pnand %p18262_p12, %p18256_p9 }
  0x78   :  { %18266 = shalt.err (!%p18263_p13)
}
  0x79   :  { %80 = dma.hbm_to_vmem [thread:$0]  %s22028_s4, 48, %s78_s19, [#allocation9]  }
  0x7a   :  { %s18267_s13 = scalar_lea.hbm %s22031_s7, 27648 }
  0x7b   :  { %p18268_p0 = scmp.ne.s32.totalorder %s22031_s7, %s18267_s13  ;;  %p18271_p1 = scmp.lt.u32.totalorder %s18267_s13, %s22031_s7 }
  0x7d   :  { %p18273_p2 = pnand %p18271_p1, %p18268_p0 }
  0x7f   :  { %18276 = shalt.err (!%p18273_p2)
}
  0x80   :  { %s18277_s15 = scalar_lea.vmem %s18541_s3, 27648  ;;  %p18282_p4 = scmp.lt.s32.totalorder %s18541_s3, %s18541_s3 }
  0x81   :  { %p18278_p3 = scmp.ne.s32.totalorder %s18541_s3, %s18277_s15  ;;  %p18283_p5 = scmp.lt.s32.totalorder %s18277_s15, %s18277_s15 }
  0x83   :  { %p18284_p6 = por %p18283_p5, %p18282_p4 }
  0x85   :  { %p18285_p7 = pnand %p18284_p6, %p18278_p3 }
  0x87   :  { %18288 = shalt.err (!%p18285_p7)
}
  0x88   :  { %104 = dma.hbm_to_vmem [thread:$0]  %s22031_s7, 27648, %s18541_s3, [#allocation12], %s18371_s29, %s18371_s29, %s18372_s30  }
  0x89   :  { %s18381_s19 = smov [#allocation16]   ;;  %s18382_s20 = smov [#allocation17]  }
  0x8a   :  { %s120_s21 = sshll.u32 %s18381_s19, 4  ;;  %s133_s22 = sshll.u32 %s18382_s20, 4  ;;  %s121_s21 = int_to_ptr.vmem [resolvable:$true] %s120_s21  ;;  %s134_s22 = int_to_ptr.vmem [resolvable:$true] %s133_s22 }
  0x8b   :  { %s18289_s8 = scalar_lea.hbm %s22033_s9, 27648 }
  0x8c   :  { %p18290_p8 = scmp.ne.s32.totalorder %s22033_s9, %s18289_s8  ;;  %p18293_p9 = scmp.lt.u32.totalorder %s18289_s8, %s22033_s9 }
  0x8e   :  { %p18295_p10 = pnand %p18293_p9, %p18290_p8 }
  0x90   :  { %18298 = shalt.err (!%p18295_p10)
}
  0x91   :  { %s18299_s7 = scalar_lea.vmem %s121_s21, 27648  ;;  %p18304_p12 = scmp.lt.s32.totalorder %s121_s21, %s121_s21 }
  0x92   :  { %p18300_p11 = scmp.ne.s32.totalorder %s121_s21, %s18299_s7  ;;  %p18305_p13 = scmp.lt.s32.totalorder %s18299_s7, %s18299_s7 }
  0x94   :  { %p18306_p0 = por %p18305_p13, %p18304_p12 }
  0x96   :  { %p18307_p1 = pnand %p18306_p0, %p18300_p11 }
  0x98   :  { %18310 = shalt.err (!%p18307_p1)
}
  0x99   :  { %126 = dma.hbm_to_vmem [thread:$0]  %s22033_s9, 27648, %s121_s21, [#allocation15], %s18371_s29, %s18371_s29, %s18372_s30  }
  0x9a   :  { %s18311_s28 = scalar_lea.hbm %s22034_s10, 32 }
  0x9b   :  { %p18312_p2 = scmp.ne.s32.totalorder %s22034_s10, %s18311_s28  ;;  %p18315_p3 = scmp.lt.u32.totalorder %s18311_s28, %s22034_s10 }
  0x9d   :  { %p18317_p4 = pnand %p18315_p3, %p18312_p2 }
  0x9f   :  { %18320 = shalt.err (!%p18317_p4)
}
  0xa0   :  { %s18321_s0 = scalar_lea.vmem %s134_s22, 32  ;;  %p18326_p6 = scmp.lt.s32.totalorder %s134_s22, %s134_s22 }
  0xa1   :  { %p18322_p5 = scmp.ne.s32.totalorder %s134_s22, %s18321_s0  ;;  %p18327_p7 = scmp.lt.s32.totalorder %s18321_s0, %s18321_s0 }
  0xa3   :  { %p18328_p8 = por %p18327_p7, %p18326_p6 }
  0xa5   :  { %p18329_p9 = pnand %p18328_p8, %p18322_p5 }
  0xa7   :  { %18332 = shalt.err (!%p18329_p9)
}
  0xa8   :  { %136 = dma.hbm_to_vmem [thread:$0]  %s22034_s10, 32, %s134_s22, [#allocation18]  }
  0xa9   :  { %18355 = dma.done.wait [#allocation3], 2688  }
  0xaa   :  { %18356 = vsyncadd [#allocation3], 4294964608 }
  0xab   :  { %18357 = dma.done.wait [#allocation6], 28800  }
  0xac   :  { %18358 = vsyncadd [#allocation6], 4294938496 }
  0xad   :  { %18359 = dma.done.wait [#allocation9], 55344  }
  0xae   :  { %18360 = vsyncadd [#allocation9], 4294911952 }
  0xaf   :  { %18361 = dma.done.wait [#allocation12], 27680  }
  0xb0   :  { %18362 = vsyncadd [#allocation12], 4294939616 }
  0xb1   :  { %18363 = dma.done.wait [#allocation15], 27680  }
  0xb2   :  { %18364 = vsyncadd [#allocation15], 4294939616 }
  0xb3   :  { %18365 = dma.done.wait [#allocation18], 32  }
  0xb4   :  { %18366 = vsyncadd [#allocation18], 4294967264  ;;  %v16383_v0 = vld [vmem:[%s22029_s5 + $0x4] ss:$8 sps:$4 sm:$0xff]   ;;  %v16385_v1 = vld [vmem:[%s22029_s5] ss:$8 sps:$4 sm:$0xff]   ;;  %v223_v57 = vlaneseq }
  0xb5   :  { %500 = vmatprep.subr.bf16.mxu0 %v16383_v0  ;;  %v16386_v2 = vld [vmem:[%s22029_s5 + $0x14] ss:$8 sps:$4 sm:$0xff]   ;;  %v16388_v3 = vld [vmem:[%s22029_s5 + $0x10] ss:$8 sps:$4 sm:$0xff]   ;;  %v16389_v4 = vld [vmem:[%s22029_s5 + $0x24] ss:$8 sps:$4 sm:$0xff]  }
  0xb6   :  { %501 = vmatpush1.bf16.msra.mxu0 %v16385_v1  ;;  %v16391_v5 = vld [vmem:[%s22029_s5 + $0x20] ss:$8 sps:$4 sm:$0xff]   ;;  %v16392_v6 = vld [vmem:[%s22029_s5 + $0x34] ss:$8 sps:$4 sm:$0xff]   ;;  %v16394_v7 = vld [vmem:[%s22029_s5 + $0x30] ss:$8 sps:$4 sm:$0xff]  }
  0xb7   :  { %502 = vmatprep.subr.bf16.mxu0 %v16386_v2  ;;  %v16395_v8 = vld [vmem:[%s22029_s5 + $0x44] ss:$8 sps:$4 sm:$0xff]   ;;  %v16397_v9 = vld [vmem:[%s22029_s5 + $0x40] ss:$8 sps:$4 sm:$0xff]   ;;  %v16398_v10 = vld [vmem:[%s22029_s5 + $0x54] ss:$8 sps:$4 sm:$0xff]  }
  0xb8   :  { %v16400_v11 = vld [vmem:[%s22029_s5 + $0x50] ss:$8 sps:$4 sm:$0xff]   ;;  %v16401_v12 = vld [vmem:[%s22029_s5 + $0x64] ss:$8 sps:$4 sm:$0xff]   ;;  %v16403_v14 = vld [vmem:[%s22029_s5 + $0x60] ss:$8 sps:$4 sm:$0xff]  }
  0xb9   :  { %v16431_v13 = vld [vmem:[#allocation2 + $0x4] ss:$8 sps:$4 sm:$0xff]   ;;  %v16404_v15 = vld [vmem:[%s22029_s5 + $0x74] ss:$8 sps:$4 sm:$0xff]   ;;  %v16406_v16 = vld [vmem:[%s22029_s5 + $0x70] ss:$8 sps:$4 sm:$0xff]  }
  0xba   :  { %503 = vmatpush1.bf16.msra.mxu0 %v16388_v3  ;;  %532 = vmatprep.mubr.bf16.mxu0 %v16431_v13  ;;  %v16407_v17 = vld [vmem:[%s22029_s5 + $0x84] ss:$8 sps:$4 sm:$0xff]   ;;  %v16409_v18 = vld [vmem:[%s22029_s5 + $0x80] ss:$8 sps:$4 sm:$0xff]   ;;  %v16410_v19 = vld [vmem:[%s22029_s5 + $0x94] ss:$8 sps:$4 sm:$0xff]  }
  0xbb   :  { %504 = vmatprep.subr.bf16.mxu0 %v16389_v4  ;;  %v16412_v20 = vld [vmem:[%s22029_s5 + $0x90] ss:$8 sps:$4 sm:$0xff]   ;;  %v16413_v21 = vld [vmem:[%s22029_s5 + $0xa4] ss:$8 sps:$4 sm:$0xff]   ;;  %v16415_v22 = vld [vmem:[%s22029_s5 + $0xa0] ss:$8 sps:$4 sm:$0xff]  }
  0xbc   :  { %v16416_v23 = vld [vmem:[%s22029_s5 + $0xb4] ss:$8 sps:$4 sm:$0xff]   ;;  %v16418_v24 = vld [vmem:[%s22029_s5 + $0xb0] ss:$8 sps:$4 sm:$0xff]   ;;  %v16419_v25 = vld [vmem:[%s22029_s5 + $0xc4] ss:$8 sps:$4 sm:$0xff]  }
  0xbd   :  { %v16421_v26 = vld [vmem:[%s22029_s5 + $0xc0] ss:$8 sps:$4 sm:$0xff]   ;;  %v16422_v27 = vld [vmem:[%s22029_s5 + $0xd4] ss:$8 sps:$4 sm:$0xff]   ;;  %v16424_v28 = vld [vmem:[%s22029_s5 + $0xd0] ss:$8 sps:$4 sm:$0xff]  }
  0xbe   :  { %505 = vmatpush1.bf16.msra.mxu0 %v16391_v5  ;;  %v16425_v29 = vld [vmem:[%s22029_s5 + $0xe4] ss:$8 sps:$4 sm:$0xff]   ;;  %v16427_v30 = vld [vmem:[%s22029_s5 + $0xe0] ss:$8 sps:$4 sm:$0xff]   ;;  %v16428_v31 = vld [vmem:[%s22029_s5 + $0xf4] ss:$8 sps:$4 sm:$0xff]  }
  0xbf   :  { %506 = vmatprep.subr.bf16.mxu0 %v16392_v6  ;;  %v16430_v32 = vld [vmem:[%s22029_s5 + $0xf0] ss:$8 sps:$4 sm:$0xff]   ;;  %v16433_v33 = vld [vmem:[#allocation2] ss:$8 sps:$4 sm:$0xff]   ;;  %v16434_v34 = vld [vmem:[#allocation2 + $0x14] ss:$8 sps:$4 sm:$0xff]  }
  0xc0   :  { %v16436_v35 = vld [vmem:[#allocation2 + $0x10] ss:$8 sps:$4 sm:$0xff]   ;;  %v16437_v36 = vld [vmem:[#allocation2 + $0x24] ss:$8 sps:$4 sm:$0xff]   ;;  %v16439_v37 = vld [vmem:[#allocation2 + $0x20] ss:$8 sps:$4 sm:$0xff]  }
  0xc1   :  { %v16440_v38 = vld [vmem:[#allocation2 + $0x34] ss:$8 sps:$4 sm:$0xff]   ;;  %v16442_v39 = vld [vmem:[#allocation2 + $0x30] ss:$8 sps:$4 sm:$0xff]   ;;  %v16443_v40 = vld [vmem:[#allocation2 + $0x44] ss:$8 sps:$4 sm:$0xff]  }
  0xc2   :  { %507 = vmatpush1.bf16.msra.mxu0 %v16394_v7  ;;  %v16445_v41 = vld [vmem:[#allocation2 + $0x40] ss:$8 sps:$4 sm:$0xff]   ;;  %v16446_v42 = vld [vmem:[#allocation2 + $0x54] ss:$8 sps:$4 sm:$0xff]   ;;  %v16448_v43 = vld [vmem:[#allocation2 + $0x50] ss:$8 sps:$4 sm:$0xff]  }
  0xc3   :  { %508 = vmatprep.subr.bf16.mxu0 %v16395_v8  ;;  %v16449_v44 = vld [vmem:[#allocation2 + $0x64] ss:$8 sps:$4 sm:$0xff]   ;;  %v16451_v45 = vld [vmem:[#allocation2 + $0x60] ss:$8 sps:$4 sm:$0xff]   ;;  %v16452_v46 = vld [vmem:[#allocation2 + $0x74] ss:$8 sps:$4 sm:$0xff]  }
  0xc4   :  { %v16454_v47 = vld [vmem:[#allocation2 + $0x70] ss:$8 sps:$4 sm:$0xff]   ;;  %v16455_v48 = vld [vmem:[#allocation2 + $0x84] ss:$8 sps:$4 sm:$0xff]   ;;  %v16457_v49 = vld [vmem:[#allocation2 + $0x80] ss:$8 sps:$4 sm:$0xff]  }
  0xc5   :  { %v16458_v50 = vld [vmem:[#allocation2 + $0x94] ss:$8 sps:$4 sm:$0xff]   ;;  %v188_v51 = vld [vmem:[#allocation2 + $0xa0] sm:$0x11]  ;;  %v16460_v52 = vld [vmem:[#allocation2 + $0x90] ss:$8 sps:$4 sm:$0xff]  }
  0xc6   :  { %509 = vmatpush1.bf16.msra.mxu0 %v16397_v9  ;;  %v18698_v53 = vcombine.high %v188_v51, %v188_v51  ;;  %v18701_v54 = vcombine.low %v188_v51, %v188_v51  ;;  %v16465_v55 = vld [vmem:[#allocation7 + $0x4] ss:$8 sps:$4 sm:$0xff]   ;;  %vm823_vm0 = vcmask 277504   ;;  %v18706_v58 = vshrl.u32 %v223_v57, 7  ;;  %s18383_s5 = smov [#allocation19]  }
  0xc7   :  { %510 = vmatprep.subr.bf16.mxu0 %v16398_v10  ;;  %v16468_v56 = vld [vmem:[#allocation7 + $0xac] ss:$8 sps:$4 sm:$0xff]   ;;  %14222 = vmatprep.mubr.msk.bf16.mxu1 %vm823_vm0, %v16465_v55  ;;  %vm857_vm1 = vcmask 1040384   ;;  %vm1171_vm2 = vcmask 523264   ;;  %s14128_s21 = sshll.u32 %s18383_s5, 4  ;;  %s14129_s21 = int_to_ptr.vmem [resolvable:$true] %s14128_s21 }
  0xc8   :  { %22191 = vst [vmem:[#allocation27_spill] sm:$0xff] %v18698_v53  ;;  %22192 = vst [vmem:[#allocation28_spill] sm:$0xff] %v18701_v54  ;;  %v18709_v59 = vsub.s32 0, %v18706_v58  ;;  %v221_v60 = vld [vmem:[#allocation11] sm:$0x3]  ;;  %v18712_v61 = vsub.s32 1, %v18706_v58  ;;  %p18338_p11 = scmp.lt.s32.totalorder %s14129_s21, %s14129_s21 }
  0xc9   :  { %22193 = vst [vmem:[#allocation29_spill] sm:$0xff] %v18706_v58  ;;  %v16669_v58 = vld [vmem:[#allocation13 + $0x160] ss:$8 sps:$4 sm:$0xff]   ;;  %s18333_s20 = scalar_lea.vmem %s14129_s21, 3584 }
  0xca   :  { %511 = vmatpush1.bf16.msra.mxu0 %v16400_v11  ;;  %22194 = vst [vmem:[#allocation30_spill] sm:$0xff] %v18709_v59  ;;  %22195 = vst [vmem:[#allocation31_spill] sm:$0xff] %v18712_v61  ;;  %v18715_v62 = vrot.slane %v221_v60, %v18709_v59  ;;  %v18718_v63 = vrot.slane %v221_v60, %v18712_v61  ;;  %p18334_p10 = scmp.ne.s32.totalorder %s14129_s21, %s18333_s20  ;;  %p18339_p12 = scmp.lt.s32.totalorder %s18333_s20, %s18333_s20 }
  0xcb   :  { %512 = vmatprep.subr.bf16.mxu0 %v16401_v12 }
  0xcc   :  { %p18340_p13 = por %p18339_p12, %p18338_p11 }
  0xce   :  { %513 = vmatpush1.bf16.msra.mxu0 %v16403_v14  ;;  %p18341_p0 = pnand %p18340_p13, %p18334_p10 }
  0xcf   :  { %514 = vmatprep.subr.bf16.mxu0 %v16404_v15 }
  0xd2   :  { %515 = vmatpush1.bf16.msra.mxu0 %v16406_v16 }
  0xd3   :  { %516 = vmatprep.subr.bf16.mxu0 %v16407_v17 }
  0xd6   :  { %517 = vmatpush1.bf16.msra.mxu0 %v16409_v18 }
  0xd7   :  { %518 = vmatprep.subr.bf16.mxu0 %v16410_v19 }
  0xda   :  { %519 = vmatpush1.bf16.msra.mxu0 %v16412_v20 }
  0xdb   :  { %520 = vmatprep.subr.bf16.mxu0 %v16413_v21 }
  0xde   :  { %521 = vmatpush1.bf16.msra.mxu0 %v16415_v22 }
  0xdf   :  { %522 = vmatprep.subr.bf16.mxu0 %v16416_v23 }
  0xe2   :  { %523 = vmatpush1.bf16.msra.mxu0 %v16418_v24 }
  0xe3   :  { %524 = vmatprep.subr.bf16.mxu0 %v16419_v25 }
  0xe6   :  { %525 = vmatpush1.bf16.msra.mxu0 %v16421_v26 }
  0xe7   :  { %526 = vmatprep.subr.bf16.mxu0 %v16422_v27 }
  0xea   :  { %527 = vmatpush1.bf16.msra.mxu0 %v16424_v28 }
  0xeb   :  { %528 = vmatprep.subr.bf16.mxu0 %v16425_v29 }
  0xee   :  { %529 = vmatpush1.bf16.msra.mxu0 %v16427_v30 }
  0xef   :  { %530 = vmatprep.subr.bf16.mxu0 %v16428_v31 }
  0xf2   :  { %531 = vmatpush1.bf16.msra.mxu0 %v16430_v32 }
  0xf5   :  { %533 = vmatmul.mubr.bf16.vlgmr.msra.gmra.mrb[0].mxu0 %v16433_v33 }
  0xf6   :  { %542 = vmatprep.mubr.bf16.mxu0 %v16434_v34 }
  0xfd   :  { %543 = vmatmul.mubr.bf16.gmra.mrb[4].mxu0 %v16436_v35 }
  0xfe   :  { %552 = vmatprep.mubr.bf16.mxu0 %v16437_v36 }
 0x105   :  { %553 = vmatmul.mubr.bf16.gmra.mrb[8].mxu0 %v16439_v37 }
 0x106   :  { %562 = vmatprep.mubr.bf16.mxu0 %v16440_v38 }
 0x10d   :  { %563 = vmatmul.mubr.bf16.gmra.mrb[12].mxu0 %v16442_v39 }
 0x10e   :  { %572 = vmatprep.mubr.bf16.mxu0 %v16443_v40 }
 0x115   :  { %573 = vmatmul.mubr.bf16.gmra.mrb[16].mxu0 %v16445_v41 }
 0x116   :  { %582 = vmatprep.mubr.bf16.mxu0 %v16446_v42 }
 0x11d   :  { %583 = vmatmul.mubr.bf16.gmra.mrb[20].mxu0 %v16448_v43 }
 0x11e   :  { %592 = vmatprep.mubr.bf16.mxu0 %v16449_v44 }
 0x125   :  { %593 = vmatmul.mubr.bf16.gmra.mrb[24].mxu0 %v16451_v45 }
 0x126   :  { %602 = vmatprep.mubr.bf16.mxu0 %v16452_v46 }
 0x12d   :  { %603 = vmatmul.mubr.bf16.gmra.mrb[28].mxu0 %v16454_v47 }
 0x12e   :  { %612 = vmatprep.mubr.bf16.mxu0 %v16455_v48 }
 0x135   :  { %613 = vmatmul.mubr.bf16.gmra.mrb[32].mxu0 %v16457_v49 }
 0x136   :  { %622 = vmatprep.mubr.bf16.mxu0 %v16458_v50 }
 0x13d   :  { %623 = vmatmul.mubr.bf16.gmra.mrb[36].mxu0 %v16460_v52 }
 0x13e   :  { %632 = vmatprep.mubr.bf16.mxu0 %v18698_v53  ;;  %v16660_v53 = vld [vmem:[#allocation7 + $0x2c4] ss:$8 sps:$4 sm:$0xff]  }
 0x145   :  { %633 = vmatmul.mubr.bf16.gmra.mrb[40].mxu0 %v18701_v54 }
 0x146   :  { %14291 = vmatprep.mubr.msk.bf16.mxu0 %vm823_vm0, %v16468_v56 }
 0x1c8   :  { %v534_v0 = vpop.f32.mrb[0].mxu0 }
 0x1c9   :  { %v535_v1 = vadd.f32 %v534_v0, %v18715_v62  ;;  %v536_v2 = vpop.f32.mrb[1].mxu0 }
 0x1ca   :  { %v537_v3 = vadd.f32 %v536_v2, %v18718_v63  ;;  %v538_v4 = vpop.f32.mrb[2].mxu0 }
 0x1cb   :  { %v539_v5 = vadd.f32 %v538_v4, %v18715_v62  ;;  %v540_v6 = vpop.f32.mrb[3].mxu0  ;;  %v641_v7 = vmax.f32 %v535_v1, 0.0 }
 0x1cc   :  { %v541_v8 = vadd.f32 %v540_v6, %v18718_v63  ;;  %v642_v10 = vmax.f32 %v537_v3, 0.0 }
 0x1cd   :  { %v643_v9 = vmax.f32 %v539_v5, 0.0 }
 0x1ce   :  { %v644_v11 = vmax.f32 %v541_v8, 0.0 }
 0x1cf   :  { %v18724_v12 = vpack.c.bf16 %v643_v9, %v641_v7 }
 0x1d0   :  { %v18726_v13 = vpack.c.bf16 %v644_v11, %v642_v10  ;;  %v544_v14 = vpop.f32.mrb[4].mxu0 }
 0x1d1   :  { %v545_v15 = vadd.f32 %v544_v14, %v18715_v62  ;;  %v546_v16 = vpop.f32.mrb[5].mxu0 }
 0x1d2   :  { %22196 = vst [vmem:[#allocation32_spill] sm:$0xff] %v18726_v13  ;;  %v547_v17 = vadd.f32 %v546_v16, %v18718_v63  ;;  %v548_v18 = vpop.f32.mrb[6].mxu0  ;;  %864 = vmatprep.subr.bf16.mxu1 %v18726_v13  ;;  %1550 = vmatprep.subr.bf16.mxu0 %v18726_v13 }
 0x1d3   :  { %v549_v19 = vadd.f32 %v548_v18, %v18715_v62  ;;  %v550_v20 = vpop.f32.mrb[7].mxu0  ;;  %865 = vmatpush1.bf16.msra.mxu1 %v18724_v12  ;;  %1551 = vmatpush1.bf16.msra.mxu0 %v18724_v12  ;;  %v645_v22 = vmax.f32 %v545_v15, 0.0 }
 0x1d4   :  { %v551_v21 = vadd.f32 %v550_v20, %v18718_v63  ;;  %v646_v23 = vmax.f32 %v547_v17, 0.0 }
 0x1d5   :  { %v647_v24 = vmax.f32 %v549_v19, 0.0 }
 0x1d6   :  { %v648_v25 = vmax.f32 %v551_v21, 0.0 }
 0x1d7   :  { %v18736_v26 = vpack.c.bf16 %v647_v24, %v645_v22 }
 0x1d8   :  { %v18738_v27 = vpack.c.bf16 %v648_v25, %v646_v23  ;;  %v554_v28 = vpop.f32.mrb[8].mxu0 }
 0x1d9   :  { %v555_v29 = vadd.f32 %v554_v28, %v18715_v62  ;;  %v556_v30 = vpop.f32.mrb[9].mxu0 }
 0x1da   :  { %v557_v31 = vadd.f32 %v556_v30, %v18718_v63  ;;  %v558_v32 = vpop.f32.mrb[10].mxu0  ;;  %866 = vmatprep.subr.bf16.mxu1 %v18738_v27  ;;  %1552 = vmatprep.subr.bf16.mxu0 %v18738_v27 }
 0x1db   :  { %v559_v33 = vadd.f32 %v558_v32, %v18715_v62  ;;  %v560_v34 = vpop.f32.mrb[11].mxu0  ;;  %867 = vmatpush1.bf16.msra.mxu1 %v18736_v26  ;;  %1553 = vmatpush1.bf16.msra.mxu0 %v18736_v26  ;;  %v649_v36 = vmax.f32 %v555_v29, 0.0 }
 0x1dc   :  { %v561_v35 = vadd.f32 %v560_v34, %v18718_v63  ;;  %v650_v37 = vmax.f32 %v557_v31, 0.0 }
 0x1dd   :  { %v651_v38 = vmax.f32 %v559_v33, 0.0 }
 0x1de   :  { %v652_v39 = vmax.f32 %v561_v35, 0.0 }
 0x1df   :  { %v18748_v40 = vpack.c.bf16 %v651_v38, %v649_v36 }
 0x1e0   :  { %v18750_v41 = vpack.c.bf16 %v652_v39, %v650_v37  ;;  %v564_v42 = vpop.f32.mrb[12].mxu0 }
 0x1e1   :  { %22197 = vst [vmem:[#allocation33_spill] sm:$0xff] %v18748_v40  ;;  %v565_v43 = vadd.f32 %v564_v42, %v18715_v62  ;;  %v566_v44 = vpop.f32.mrb[13].mxu0 }
 0x1e2   :  { %v567_v45 = vadd.f32 %v566_v44, %v18718_v63  ;;  %v568_v46 = vpop.f32.mrb[14].mxu0  ;;  %868 = vmatprep.subr.bf16.mxu1 %v18750_v41  ;;  %1554 = vmatprep.subr.bf16.mxu0 %v18750_v41 }
 0x1e3   :  { %v569_v47 = vadd.f32 %v568_v46, %v18715_v62  ;;  %v570_v48 = vpop.f32.mrb[15].mxu0  ;;  %869 = vmatpush1.bf16.msra.mxu1 %v18748_v40  ;;  %1555 = vmatpush1.bf16.msra.mxu0 %v18748_v40  ;;  %v653_v50 = vmax.f32 %v565_v43, 0.0 }
 0x1e4   :  { %v571_v49 = vadd.f32 %v570_v48, %v18718_v63  ;;  %v654_v52 = vmax.f32 %v567_v45, 0.0 }
 0x1e5   :  { %v655_v51 = vmax.f32 %v569_v47, 0.0 }
 0x1e6   :  { %v656_v55 = vmax.f32 %v571_v49, 0.0 }
 0x1e7   :  { %v18760_v56 = vpack.c.bf16 %v655_v51, %v653_v50 }
 0x1e8   :  { %v18762_v57 = vpack.c.bf16 %v656_v55, %v654_v52  ;;  %v574_v60 = vpop.f32.mrb[16].mxu0 }
 0x1e9   :  { %22198 = vst [vmem:[#allocation34_spill] sm:$0xff] %v18760_v56  ;;  %v575_v0 = vadd.f32 %v574_v60, %v18715_v62  ;;  %v576_v1 = vpop.f32.mrb[17].mxu0 }
 0x1ea   :  { %22199 = vst [vmem:[#allocation35_spill] sm:$0xff] %v18762_v57  ;;  %v577_v2 = vadd.f32 %v576_v1, %v18718_v63  ;;  %v578_v3 = vpop.f32.mrb[18].mxu0  ;;  %870 = vmatprep.subr.bf16.mxu1 %v18762_v57  ;;  %1556 = vmatprep.subr.bf16.mxu0 %v18762_v57 }
 0x1eb   :  { %v579_v4 = vadd.f32 %v578_v3, %v18715_v62  ;;  %v580_v5 = vpop.f32.mrb[19].mxu0  ;;  %871 = vmatpush1.bf16.msra.mxu1 %v18760_v56  ;;  %1557 = vmatpush1.bf16.msra.mxu0 %v18760_v56  ;;  %v657_v7 = vmax.f32 %v575_v0, 0.0 }
 0x1ec   :  { %v581_v6 = vadd.f32 %v580_v5, %v18718_v63  ;;  %v658_v9 = vmax.f32 %v577_v2, 0.0 }
 0x1ed   :  { %v659_v8 = vmax.f32 %v579_v4, 0.0 }
 0x1ee   :  { %v660_v10 = vmax.f32 %v581_v6, 0.0 }
 0x1ef   :  { %v18772_v11 = vpack.c.bf16 %v659_v8, %v657_v7 }
 0x1f0   :  { %v18774_v14 = vpack.c.bf16 %v660_v10, %v658_v9  ;;  %v584_v15 = vpop.f32.mrb[20].mxu0 }
 0x1f1   :  { %22200 = vst [vmem:[#allocation36_spill] sm:$0xff] %v18772_v11  ;;  %v585_v16 = vadd.f32 %v584_v15, %v18715_v62  ;;  %v586_v17 = vpop.f32.mrb[21].mxu0 }
 0x1f2   :  { %22201 = vst [vmem:[#allocation37_spill] sm:$0xff] %v18774_v14  ;;  %v587_v18 = vadd.f32 %v586_v17, %v18718_v63  ;;  %v588_v19 = vpop.f32.mrb[22].mxu0  ;;  %872 = vmatprep.subr.bf16.mxu1 %v18774_v14  ;;  %1558 = vmatprep.subr.bf16.mxu0 %v18774_v14 }
 0x1f3   :  { %v589_v20 = vadd.f32 %v588_v19, %v18715_v62  ;;  %v590_v21 = vpop.f32.mrb[23].mxu0  ;;  %873 = vmatpush1.bf16.msra.mxu1 %v18772_v11  ;;  %1559 = vmatpush1.bf16.msra.mxu0 %v18772_v11  ;;  %v661_v22 = vmax.f32 %v585_v16, 0.0 }
 0x1f4   :  { %v662_v23 = vmax.f32 %v587_v18, 0.0  ;;  %v591_v24 = vadd.f32 %v590_v21, %v18718_v63 }
 0x1f5   :  { %v663_v25 = vmax.f32 %v589_v20, 0.0 }
 0x1f6   :  { %v664_v28 = vmax.f32 %v591_v24, 0.0 }
 0x1f7   :  { %v18784_v29 = vpack.c.bf16 %v663_v25, %v661_v22 }
 0x1f8   :  { %v18786_v30 = vpack.c.bf16 %v664_v28, %v662_v23  ;;  %v594_v31 = vpop.f32.mrb[24].mxu0 }
 0x1f9   :  { %22202 = vst [vmem:[#allocation38_spill] sm:$0xff] %v18784_v29  ;;  %v595_v32 = vadd.f32 %v594_v31, %v18715_v62  ;;  %v596_v33 = vpop.f32.mrb[25].mxu0 }
 0x1fa   :  { %22203 = vst [vmem:[#allocation39_spill] sm:$0xff] %v18786_v30  ;;  %v597_v34 = vadd.f32 %v596_v33, %v18718_v63  ;;  %v598_v35 = vpop.f32.mrb[26].mxu0  ;;  %874 = vmatprep.subr.bf16.mxu1 %v18786_v30  ;;  %1560 = vmatprep.subr.bf16.mxu0 %v18786_v30 }
 0x1fb   :  { %v665_v36 = vmax.f32 %v595_v32, 0.0  ;;  %v599_v37 = vadd.f32 %v598_v35, %v18715_v62  ;;  %v600_v38 = vpop.f32.mrb[27].mxu0  ;;  %875 = vmatpush1.bf16.msra.mxu1 %v18784_v29  ;;  %1561 = vmatpush1.bf16.msra.mxu0 %v18784_v29 }
 0x1fc   :  { %v666_v39 = vmax.f32 %v597_v34, 0.0  ;;  %v601_v42 = vadd.f32 %v600_v38, %v18718_v63 }
 0x1fd   :  { %v667_v43 = vmax.f32 %v599_v37, 0.0 }
 0x1fe   :  { %v668_v44 = vmax.f32 %v601_v42, 0.0 }
 0x1ff   :  { %v18796_v45 = vpack.c.bf16 %v667_v43, %v665_v36 }
 0x200   :  { %v18798_v46 = vpack.c.bf16 %v668_v44, %v666_v39  ;;  %v604_v47 = vpop.f32.mrb[28].mxu0 }
 0x201   :  { %v605_v48 = vadd.f32 %v604_v47, %v18715_v62  ;;  %v606_v49 = vpop.f32.mrb[29].mxu0 }
 0x202   :  { %22204 = vst [vmem:[#allocation40_spill] sm:$0xff] %v18798_v46  ;;  %v607_v50 = vadd.f32 %v606_v49, %v18718_v63  ;;  %v608_v51 = vpop.f32.mrb[30].mxu0  ;;  %876 = vmatprep.subr.bf16.mxu1 %v18798_v46  ;;  %1562 = vmatprep.subr.bf16.mxu0 %v18798_v46 }
 0x203   :  { %v609_v52 = vadd.f32 %v608_v51, %v18715_v62  ;;  %v610_v55 = vpop.f32.mrb[31].mxu0  ;;  %877 = vmatpush1.bf16.msra.mxu1 %v18796_v45  ;;  %1563 = vmatpush1.bf16.msra.mxu0 %v18796_v45  ;;  %v669_v0 = vmax.f32 %v605_v48, 0.0 }
 0x204   :  { %v611_v60 = vadd.f32 %v610_v55, %v18718_v63  ;;  %v670_v2 = vmax.f32 %v607_v50, 0.0 }
 0x205   :  { %v671_v1 = vmax.f32 %v609_v52, 0.0 }
 0x206   :  { %v672_v3 = vmax.f32 %v611_v60, 0.0 }
 0x207   :  { %v18808_v4 = vpack.c.bf16 %v671_v1, %v669_v0  ;;  %v16466_v1 = vld [vmem:[#allocation7 + $0xa8] ss:$8 sps:$4 sm:$0xff]  }
 0x208   :  { %v18810_v5 = vpack.c.bf16 %v672_v3, %v670_v2  ;;  %v614_v6 = vpop.f32.mrb[32].mxu0  ;;  %v16469_v2 = vld [vmem:[#allocation7 + $0x14] ss:$8 sps:$4 sm:$0xff]  }
 0x209   :  { %v615_v7 = vadd.f32 %v614_v6, %v18715_v62  ;;  %v616_v8 = vpop.f32.mrb[33].mxu0  ;;  %v16471_v3 = vld [vmem:[#allocation7 + $0xbc] ss:$8 sps:$4 sm:$0xff]   ;;  %v16545_v6 = vld [vmem:[#allocation13] ss:$8 sps:$4 sm:$0xff]  }
 0x20a   :  { %22205 = vst [vmem:[#allocation41_spill] sm:$0xff] %v18810_v5  ;;  %v617_v9 = vadd.f32 %v616_v8, %v18718_v63  ;;  %v618_v10 = vpop.f32.mrb[34].mxu0  ;;  %878 = vmatprep.subr.bf16.mxu1 %v18810_v5  ;;  %1564 = vmatprep.subr.bf16.mxu0 %v18810_v5  ;;  %v16473_v8 = vld [vmem:[#allocation7 + $0x10] ss:$8 sps:$4 sm:$0xff]  }
 0x20b   :  { %v619_v15 = vadd.f32 %v618_v10, %v18715_v62  ;;  %v620_v16 = vpop.f32.mrb[35].mxu0  ;;  %879 = vmatpush1.bf16.msra.mxu1 %v18808_v4  ;;  %1565 = vmatpush1.bf16.msra.mxu0 %v18808_v4  ;;  %v673_v18 = vmax.f32 %v615_v7, 0.0  ;;  %v16547_v7 = vld [vmem:[#allocation13 + $0x4] ss:$8 sps:$4 sm:$0xff]   ;;  %v16475_v10 = vld [vmem:[#allocation7 + $0x24] ss:$8 sps:$4 sm:$0xff]  }
 0x20c   :  { %v621_v17 = vadd.f32 %v620_v16, %v18718_v63  ;;  %v674_v20 = vmax.f32 %v617_v9, 0.0  ;;  %v16474_v9 = vld [vmem:[#allocation7 + $0xb8] ss:$8 sps:$4 sm:$0xff]  }
 0x20d   :  { %v675_v19 = vmax.f32 %v619_v15, 0.0  ;;  %v16477_v15 = vld [vmem:[#allocation7 + $0xcc] ss:$8 sps:$4 sm:$0xff]   ;;  %v16551_v16 = vld [vmem:[#allocation13 + $0x10] ss:$8 sps:$4 sm:$0xff]  }
 0x20e   :  { %v676_v21 = vmax.f32 %v621_v17, 0.0  ;;  %v16553_v17 = vld [vmem:[#allocation13 + $0x14] ss:$8 sps:$4 sm:$0xff]  }
 0x20f   :  { %v18820_v22 = vpack.c.bf16 %v675_v19, %v673_v18  ;;  %v16558_v18 = vld [vmem:[#allocation13 + $0x24] ss:$8 sps:$4 sm:$0xff]   ;;  %v16479_v19 = vld [vmem:[#allocation7 + $0x20] ss:$8 sps:$4 sm:$0xff]  }
 0x210   :  { %v18822_v23 = vpack.c.bf16 %v676_v21, %v674_v20  ;;  %v624_v24 = vpop.f32.mrb[36].mxu0  ;;  %v16480_v20 = vld [vmem:[#allocation7 + $0xc8] ss:$8 sps:$4 sm:$0xff]   ;;  %v16481_v21 = vld [vmem:[#allocation7 + $0x34] ss:$8 sps:$4 sm:$0xff]  }
 0x211   :  { %22206 = vst [vmem:[#allocation42_spill] sm:$0xff] %v18820_v22  ;;  %v625_v25 = vadd.f32 %v624_v24, %v18715_v62  ;;  %v626_v28 = vpop.f32.mrb[37].mxu0  ;;  %v16483_v24 = vld [vmem:[#allocation7 + $0xdc] ss:$8 sps:$4 sm:$0xff]  }
 0x212   :  { %v627_v31 = vadd.f32 %v626_v28, %v18718_v63  ;;  %v628_v32 = vpop.f32.mrb[38].mxu0  ;;  %880 = vmatprep.subr.bf16.mxu1 %v18822_v23  ;;  %1566 = vmatprep.subr.bf16.mxu0 %v18822_v23  ;;  %v16562_v28 = vld [vmem:[#allocation13 + $0x34] ss:$8 sps:$4 sm:$0xff]  }
 0x213   :  { %v629_v33 = vadd.f32 %v628_v32, %v18715_v62  ;;  %v630_v34 = vpop.f32.mrb[39].mxu0  ;;  %881 = vmatpush1.bf16.msra.mxu1 %v18820_v22  ;;  %1567 = vmatpush1.bf16.msra.mxu0 %v18820_v22  ;;  %v677_v36 = vmax.f32 %v625_v25, 0.0  ;;  %v16556_v25 = vld [vmem:[#allocation13 + $0x20] ss:$8 sps:$4 sm:$0xff]  }
 0x214   :  { %v631_v35 = vadd.f32 %v630_v34, %v18718_v63  ;;  %v678_v38 = vmax.f32 %v627_v31, 0.0  ;;  %v16560_v31 = vld [vmem:[#allocation13 + $0x30] ss:$8 sps:$4 sm:$0xff]   ;;  %v16485_v32 = vld [vmem:[#allocation7 + $0x30] ss:$8 sps:$4 sm:$0xff]  }
 0x215   :  { %v679_v37 = vmax.f32 %v629_v33, 0.0  ;;  %v16486_v33 = vld [vmem:[#allocation7 + $0xd8] ss:$8 sps:$4 sm:$0xff]   ;;  %v16487_v34 = vld [vmem:[#allocation7 + $0x44] ss:$8 sps:$4 sm:$0xff]  }
 0x216   :  { %v680_v39 = vmax.f32 %v631_v35, 0.0  ;;  %v16489_v35 = vld [vmem:[#allocation7 + $0xec] ss:$8 sps:$4 sm:$0xff]  }
 0x217   :  { %v18832_v42 = vpack.c.bf16 %v679_v37, %v677_v36  ;;  %v16566_v36 = vld [vmem:[#allocation13 + $0x40] ss:$8 sps:$4 sm:$0xff]   ;;  %v16568_v37 = vld [vmem:[#allocation13 + $0x44] ss:$8 sps:$4 sm:$0xff]  }
 0x218   :  { %v18834_v43 = vpack.c.bf16 %v680_v39, %v678_v38  ;;  %v634_v44 = vpop.f32.mrb[40].mxu0  ;;  %v16491_v38 = vld [vmem:[#allocation7 + $0x40] ss:$8 sps:$4 sm:$0xff]  }
 0x219   :  { %22207 = vst [vmem:[#allocation43_spill] sm:$0xff] %v18832_v42  ;;  %v635_v47 = vadd.f32 %v634_v44, %v18715_v62  ;;  %v636_v48 = vpop.f32.mrb[41].mxu0  ;;  %v16463_v62 = vld [vmem:[#allocation7] ss:$8 sps:$4 sm:$0xff]   ;;  %v16493_v44 = vld [vmem:[#allocation7 + $0x54] ss:$8 sps:$4 sm:$0xff]  }
 0x21a   :  { %22208 = vst [vmem:[#allocation44_spill] sm:$0xff] %v18834_v43  ;;  %v637_v49 = vadd.f32 %v636_v48, %v18718_v63  ;;  %v638_v50 = vpop.f32.mrb[42].mxu0  ;;  %882 = vmatprep.subr.bf16.mxu1 %v18834_v43  ;;  %1568 = vmatprep.subr.bf16.mxu0 %v18834_v43  ;;  %v16492_v39 = vld [vmem:[#allocation7 + $0xe8] ss:$8 sps:$4 sm:$0xff]  }
 0x21b   :  { %v681_v51 = vmax.f32 %v635_v47, 0.0  ;;  %v639_v52 = vpop.f32.mrb[43].mxu0  ;;  %883 = vmatpush1.bf16.msra.mxu1 %v18832_v42  ;;  %1569 = vmatpush1.bf16.msra.mxu0 %v18832_v42  ;;  %v16495_v47 = vld [vmem:[#allocation7 + $0xfc] ss:$8 sps:$4 sm:$0xff]   ;;  %v16497_v50 = vld [vmem:[#allocation7 + $0x50] ss:$8 sps:$4 sm:$0xff]  }
 0x21c   :  { %v682_v55 = vmax.f32 %v637_v49, 0.0  ;;  %v16572_v48 = vld [vmem:[#allocation13 + $0x50] ss:$8 sps:$4 sm:$0xff]   ;;  %v16574_v49 = vld [vmem:[#allocation13 + $0x54] ss:$8 sps:$4 sm:$0xff]  }
 0x21d   :  { %v703_v60 = vpack.c.bf16 %v681_v51, %v681_v51  ;;  %v16498_v51 = vld [vmem:[#allocation7 + $0xf8] ss:$8 sps:$4 sm:$0xff]   ;;  %v16499_v52 = vld [vmem:[#allocation7 + $0x64] ss:$8 sps:$4 sm:$0xff]  }
 0x21e   :  { %v18842_v0 = vpack.c.bf16 %v682_v55, %v682_v55  ;;  %v16501_v55 = vld [vmem:[#allocation7 + $0x10c] ss:$8 sps:$4 sm:$0xff]  }
 0x21f   :  { %v18845_v63 = vsel %vm857_vm1, %v703_v60, 0  ;;  %v16577_v60 = vld [vmem:[#allocation13 + $0x60] ss:$8 sps:$4 sm:$0xff]  }
 0x220   :  { %22209 = vst [vmem:[#allocation45_spill] sm:$0xff] %v18842_v0  ;;  %22210 = vst [vmem:[#allocation46_spill] sm:$0xff] %v18845_v63  ;;  %14221 = vmatprep.subr.msk.bf16.mxu1 %vm857_vm1, %v18842_v0  ;;  %14290 = vmatprep.subr.msk.bf16.mxu0 %vm857_vm1, %v18842_v0 }
 0x221   :  { %885 = vmatpush1.bf16.msra.mxu1 %v18845_v63  ;;  %1571 = vmatpush1.bf16.msra.mxu0 %v18845_v63 }
 0x222   :  { %2225 = vmatprep.subr.bf16.mxu0 %v18726_v13  ;;  %1205 = vmatprep.subr.bf16.mxu1 %v16547_v7  ;;  %v16509_v7 = vld [vmem:[#allocation7 + $0x70] ss:$8 sps:$4 sm:$0xff]  }
 0x224   :  { %897 = vmatmul.mubr.bf16.vlgmr.msra.gmra.mrb[0].mxu1 %v16463_v62  ;;  %1583 = vmatmul.mubr.bf16.vlgmr.msra.gmra.mrb[44].mxu0 %v16466_v1  ;;  %v16579_v62 = vld [vmem:[#allocation13 + $0x64] ss:$8 sps:$4 sm:$0xff]   ;;  %v16503_v1 = vld [vmem:[#allocation7 + $0x60] ss:$8 sps:$4 sm:$0xff]  }
 0x225   :  { %2226 = vmatpush1.bf16.msra.mxu0 %v18724_v12  ;;  %14223 = vmatprep.mubr.msk.bf16.mxu1 %vm823_vm0, %v16469_v2  ;;  %v16504_v2 = vld [vmem:[#allocation7 + $0x108] ss:$8 sps:$4 sm:$0xff]  }
 0x226   :  { %2227 = vmatprep.subr.bf16.mxu0 %v18738_v27  ;;  %14292 = vmatprep.mubr.msk.bf16.mxu0 %vm823_vm0, %v16471_v3  ;;  %v16505_v3 = vld [vmem:[#allocation7 + $0x74] ss:$8 sps:$4 sm:$0xff]  }
 0x227   :  { %1206 = vmatpush1.bf16.msra.mxu1 %v16545_v6  ;;  %v16507_v6 = vld [vmem:[#allocation7 + $0x11c] ss:$8 sps:$4 sm:$0xff]  }
 0x228   :  { %1207 = vmatprep.subr.bf16.mxu1 %v16553_v17  ;;  %v16515_v17 = vld [vmem:[#allocation7 + $0x80] ss:$8 sps:$4 sm:$0xff]  }
 0x229   :  { %2228 = vmatpush1.bf16.msra.mxu0 %v18736_v26 }
 0x22a   :  { %2229 = vmatprep.subr.bf16.mxu0 %v18750_v41 }
 0x22b   :  { %1208 = vmatpush1.bf16.msra.mxu1 %v16551_v16  ;;  %v16583_v16 = vld [vmem:[#allocation13 + $0x70] ss:$8 sps:$4 sm:$0xff]  }
 0x22c   :  { %907 = vmatmul.mubr.bf16.gmra.mrb[4].mxu1 %v16473_v8  ;;  %1593 = vmatmul.mubr.bf16.gmra.mrb[48].mxu0 %v16474_v9  ;;  %v16510_v8 = vld [vmem:[#allocation7 + $0x118] ss:$8 sps:$4 sm:$0xff]   ;;  %v16511_v9 = vld [vmem:[#allocation7 + $0x84] ss:$8 sps:$4 sm:$0xff]  }
 0x22d   :  { %2230 = vmatpush1.bf16.msra.mxu0 %v18748_v40  ;;  %14224 = vmatprep.mubr.msk.bf16.mxu1 %vm823_vm0, %v16475_v10  ;;  %v16513_v10 = vld [vmem:[#allocation7 + $0x12c] ss:$8 sps:$4 sm:$0xff]  }
 0x22e   :  { %2231 = vmatprep.subr.bf16.mxu0 %v18762_v57  ;;  %14293 = vmatprep.mubr.msk.bf16.mxu0 %vm823_vm0, %v16477_v15  ;;  %v16585_v15 = vld [vmem:[#allocation13 + $0x74] ss:$8 sps:$4 sm:$0xff]  }
 0x22f   :  { %1209 = vmatprep.subr.bf16.mxu1 %v16558_v18  ;;  %v16516_v18 = vld [vmem:[#allocation7 + $0x128] ss:$8 sps:$4 sm:$0xff]  }
 0x230   :  { %1210 = vmatpush1.bf16.msra.mxu1 %v16556_v25  ;;  %v726_v25 = vld [vmem:[#allocation7 + $0xa0] sm:$0x11] }
 0x231   :  { %2232 = vmatpush1.bf16.msra.mxu0 %v18760_v56  ;;  %1211 = vmatprep.subr.bf16.mxu1 %v16562_v28  ;;  %v1420_v28 = vld [vmem:[#allocation7 + $0x148] sm:$0x11] }
 0x232   :  { %2233 = vmatprep.subr.bf16.mxu0 %v18774_v14 }
 0x234   :  { %917 = vmatmul.mubr.bf16.gmra.mrb[8].mxu1 %v16479_v19  ;;  %1603 = vmatmul.mubr.bf16.gmra.mrb[52].mxu0 %v16480_v20  ;;  %v16589_v19 = vld [vmem:[#allocation13 + $0x80] ss:$8 sps:$4 sm:$0xff]   ;;  %v16591_v20 = vld [vmem:[#allocation13 + $0x84] ss:$8 sps:$4 sm:$0xff]  }
 0x235   :  { %2234 = vmatpush1.bf16.msra.mxu0 %v18772_v11  ;;  %14225 = vmatprep.mubr.msk.bf16.mxu1 %vm823_vm0, %v16481_v21  ;;  %v16517_v21 = vld [vmem:[#allocation7 + $0x94] ss:$8 sps:$4 sm:$0xff]  }
 0x236   :  { %2235 = vmatprep.subr.bf16.mxu0 %v18786_v30  ;;  %14294 = vmatprep.mubr.msk.bf16.mxu0 %vm823_vm0, %v16483_v24  ;;  %v16519_v24 = vld [vmem:[#allocation7 + $0x13c] ss:$8 sps:$4 sm:$0xff]  }
 0x237   :  { %1212 = vmatpush1.bf16.msra.mxu1 %v16560_v31  ;;  %v16521_v31 = vld [vmem:[#allocation7 + $0x90] ss:$8 sps:$4 sm:$0xff]  }
 0x238   :  { %1213 = vmatprep.subr.bf16.mxu1 %v16568_v37  ;;  %v16601_v37 = vld [vmem:[#allocation13 + $0xa0] ss:$8 sps:$4 sm:$0xff]  }
 0x239   :  { %2236 = vmatpush1.bf16.msra.mxu0 %v18784_v29 }
 0x23a   :  { %2237 = vmatprep.subr.bf16.mxu0 %v18798_v46 }
 0x23b   :  { %1214 = vmatpush1.bf16.msra.mxu1 %v16566_v36  ;;  %v14289_v36 = vcombine.high %v1420_v28, %v1420_v28 }
 0x23c   :  { %927 = vmatmul.mubr.bf16.gmra.mrb[12].mxu1 %v16485_v32  ;;  %1613 = vmatmul.mubr.bf16.gmra.mrb[56].mxu0 %v16486_v33  ;;  %v16522_v32 = vld [vmem:[#allocation7 + $0x138] ss:$8 sps:$4 sm:$0xff]  }
 0x23d   :  { %2238 = vmatpush1.bf16.msra.mxu0 %v18796_v45  ;;  %14226 = vmatprep.mubr.msk.bf16.mxu1 %vm823_vm0, %v16487_v34  ;;  %v16595_v33 = vld [vmem:[#allocation13 + $0x90] ss:$8 sps:$4 sm:$0xff]   ;;  %v16597_v34 = vld [vmem:[#allocation13 + $0x94] ss:$8 sps:$4 sm:$0xff]  }
 0x23e   :  { %2239 = vmatprep.subr.bf16.mxu0 %v18810_v5  ;;  %14295 = vmatprep.mubr.msk.bf16.mxu0 %vm823_vm0, %v16489_v35  ;;  %v14220_v35 = vcombine.high %v726_v25, %v726_v25 }
 0x23f   :  { %1215 = vmatprep.subr.bf16.mxu1 %v16574_v49  ;;  %v16607_v49 = vld [vmem:[#allocation13 + $0xb0] ss:$8 sps:$4 sm:$0xff]  }
 0x240   :  { %1216 = vmatpush1.bf16.msra.mxu1 %v16572_v48  ;;  %v16527_v48 = vld [vmem:[#allocation7 + $0x150] ss:$8 sps:$4 sm:$0xff]  }
 0x241   :  { %2240 = vmatpush1.bf16.msra.mxu0 %v18808_v4  ;;  %1217 = vmatprep.subr.bf16.mxu1 %v16579_v62  ;;  %v16535_v62 = vld [vmem:[#allocation7 + $0x170] ss:$8 sps:$4 sm:$0xff]  }
 0x242   :  { %2241 = vmatprep.subr.bf16.mxu0 %v18822_v23 }
 0x244   :  { %937 = vmatmul.mubr.bf16.gmra.mrb[16].mxu1 %v16491_v38  ;;  %1623 = vmatmul.mubr.bf16.gmra.mrb[60].mxu0 %v16492_v39  ;;  %v16603_v38 = vld [vmem:[#allocation13 + $0xa4] ss:$8 sps:$4 sm:$0xff]  }
 0x245   :  { %2242 = vmatpush1.bf16.msra.mxu0 %v18820_v22  ;;  %14227 = vmatprep.mubr.msk.bf16.mxu1 %vm823_vm0, %v16493_v44  ;;  %v16529_v39 = vld [vmem:[#allocation7 + $0x154] ss:$8 sps:$4 sm:$0xff]   ;;  %v14219_v44 = vcombine.low %v726_v25, %v726_v25 }
 0x246   :  { %2243 = vmatprep.subr.bf16.mxu0 %v18834_v43  ;;  %14296 = vmatprep.mubr.msk.bf16.mxu0 %vm823_vm0, %v16495_v47  ;;  %v14288_v47 = vcombine.low %v1420_v28, %v1420_v28  ;;  %v16582_v28 = vld [vmem:[#allocation7 + $0x1fc] ss:$8 sps:$4 sm:$0xff]  }
 0x247   :  { %1218 = vmatpush1.bf16.msra.mxu1 %v16577_v60  ;;  %v16533_v60 = vld [vmem:[#allocation7 + $0x174] ss:$8 sps:$4 sm:$0xff]  }
 0x248   :  { %1219 = vmatprep.subr.bf16.mxu1 %v16585_v15  ;;  %v16554_v15 = vld [vmem:[#allocation7 + $0x1c4] ss:$8 sps:$4 sm:$0xff]  }
 0x249   :  { %2244 = vmatpush1.bf16.msra.mxu0 %v18832_v42 }
 0x24a   :  { %14359 = vmatprep.subr.msk.bf16.mxu0 %vm857_vm1, %v18842_v0 }
 0x24b   :  { %1220 = vmatpush1.bf16.msra.mxu1 %v16583_v16  ;;  %v16559_v16 = vld [vmem:[#allocation7 + $0x1c0] ss:$8 sps:$4 sm:$0xff]  }
 0x24c   :  { %947 = vmatmul.mubr.bf16.gmra.mrb[20].mxu1 %v16497_v50  ;;  %1633 = vmatmul.mubr.bf16.gmra.mrb[64].mxu0 %v16498_v51  ;;  %v16609_v50 = vld [vmem:[#allocation13 + $0xb4] ss:$8 sps:$4 sm:$0xff]  }
 0x24d   :  { %2246 = vmatpush1.bf16.msra.mxu0 %v18845_v63  ;;  %14228 = vmatprep.mubr.msk.bf16.mxu1 %vm823_vm0, %v16499_v52  ;;  %v16530_v51 = vld [vmem:[#allocation7 + $0x164] ss:$8 sps:$4 sm:$0xff]   ;;  %v16615_v52 = vld [vmem:[#allocation13 + $0xc4] ss:$8 sps:$4 sm:$0xff]  }
 0x24e   :  { %2900 = vmatprep.subr.bf16.mxu0 %v18726_v13  ;;  %14297 = vmatprep.mubr.msk.bf16.mxu0 %vm823_vm0, %v16501_v55  ;;  %v16532_v55 = vld [vmem:[#allocation7 + $0x160] ss:$8 sps:$4 sm:$0xff]  }
 0x24f   :  { %1221 = vmatprep.subr.bf16.mxu1 %v16591_v20  ;;  %v2095_v20 = vld [vmem:[#allocation7 + $0x1f0] sm:$0x11] }
 0x250   :  { %1222 = vmatpush1.bf16.msra.mxu1 %v16589_v19  ;;  %v16569_v19 = vld [vmem:[#allocation7 + $0x1e4] ss:$8 sps:$4 sm:$0xff]   ;;  %v14357_v25 = vcombine.low %v2095_v20, %v2095_v20 }
 0x251   :  { %1223 = vmatprep.subr.bf16.mxu1 %v16597_v34  ;;  %v16592_v34 = vld [vmem:[#allocation7 + $0x21c] ss:$8 sps:$4 sm:$0xff]  }
 0x254   :  { %957 = vmatmul.mubr.bf16.gmra.mrb[24].mxu1 %v16503_v1  ;;  %1643 = vmatmul.mubr.bf16.gmra.mrb[68].mxu0 %v16504_v2  ;;  %v16536_v1 = vld [vmem:[#allocation7 + $0x184] ss:$8 sps:$4 sm:$0xff]   ;;  %v16538_v2 = vld [vmem:[#allocation7 + $0x180] ss:$8 sps:$4 sm:$0xff]  }
 0x255   :  { %14229 = vmatprep.mubr.msk.bf16.mxu1 %vm823_vm0, %v16505_v3  ;;  %14298 = vmatprep.mubr.msk.bf16.mxu0 %vm823_vm0, %v16507_v6  ;;  %v16539_v3 = vld [vmem:[#allocation7 + $0x194] ss:$8 sps:$4 sm:$0xff]   ;;  %v16541_v6 = vld [vmem:[#allocation7 + $0x190] ss:$8 sps:$4 sm:$0xff]  }
 0x256   :  { %1224 = vmatpush1.bf16.msra.mxu1 %v16595_v33  ;;  %v16588_v33 = vld [vmem:[#allocation7 + $0x208] ss:$8 sps:$4 sm:$0xff]  }
 0x257   :  { %1225 = vmatprep.subr.bf16.mxu1 %v16603_v38  ;;  %v16604_v38 = vld [vmem:[#allocation7 + $0x23c] ss:$8 sps:$4 sm:$0xff]  }
 0x25a   :  { %1226 = vmatpush1.bf16.msra.mxu1 %v16601_v37  ;;  %v16600_v37 = vld [vmem:[#allocation7 + $0x228] ss:$8 sps:$4 sm:$0xff]  }
 0x25b   :  { %1227 = vmatprep.subr.bf16.mxu1 %v16609_v50  ;;  %v16612_v50 = vld [vmem:[#allocation7 + $0x248] ss:$8 sps:$4 sm:$0xff]  }
 0x25c   :  { %967 = vmatmul.mubr.bf16.gmra.mrb[28].mxu1 %v16509_v7  ;;  %1653 = vmatmul.mubr.bf16.gmra.mrb[72].mxu0 %v16510_v8  ;;  %v16542_v7 = vld [vmem:[#allocation7 + $0x1a4] ss:$8 sps:$4 sm:$0xff]   ;;  %v16544_v8 = vld [vmem:[#allocation7 + $0x1a0] ss:$8 sps:$4 sm:$0xff]  }
 0x25d   :  { %14230 = vmatprep.mubr.msk.bf16.mxu1 %vm823_vm0, %v16511_v9  ;;  %14299 = vmatprep.mubr.msk.bf16.mxu0 %vm823_vm0, %v16513_v10  ;;  %v16548_v9 = vld [vmem:[#allocation7 + $0x1b4] ss:$8 sps:$4 sm:$0xff]   ;;  %v16550_v10 = vld [vmem:[#allocation7 + $0x1b0] ss:$8 sps:$4 sm:$0xff]  }
 0x25e   :  { %1228 = vmatpush1.bf16.msra.mxu1 %v16607_v49 }
 0x25f   :  { %1891 = vmatprep.subr.bf16.mxu1 %v16615_v52 }
 0x264   :  { %977 = vmatmul.mubr.bf16.gmra.mrb[32].mxu1 %v16515_v17  ;;  %1663 = vmatmul.mubr.bf16.gmra.mrb[76].mxu0 %v16516_v18  ;;  %v16563_v17 = vld [vmem:[#allocation7 + $0x1d4] ss:$8 sps:$4 sm:$0xff]   ;;  %v16565_v18 = vld [vmem:[#allocation7 + $0x1d0] ss:$8 sps:$4 sm:$0xff]  }
 0x265   :  { %14231 = vmatprep.mubr.msk.bf16.mxu1 %vm823_vm0, %v16517_v21  ;;  %14300 = vmatprep.mubr.msk.bf16.mxu0 %vm823_vm0, %v16519_v24  ;;  %v16571_v21 = vld [vmem:[#allocation7 + $0x1e0] ss:$8 sps:$4 sm:$0xff]   ;;  %v14358_v24 = vcombine.high %v2095_v20, %v2095_v20 }
 0x26c   :  { %987 = vmatmul.mubr.bf16.gmra.mrb[36].mxu1 %v16521_v31  ;;  %1673 = vmatmul.mubr.bf16.gmra.mrb[80].mxu0 %v16522_v32  ;;  %v16580_v31 = vld [vmem:[#allocation7 + $0x1f8] ss:$8 sps:$4 sm:$0xff]   ;;  %v16586_v32 = vld [vmem:[#allocation7 + $0x20c] ss:$8 sps:$4 sm:$0xff]  }
 0x26d   :  { %14232 = vmatprep.mubr.msk.bf16.mxu1 %vm823_vm0, %v14220_v35  ;;  %14301 = vmatprep.mubr.msk.bf16.mxu0 %vm823_vm0, %v14289_v36  ;;  %v16594_v35 = vld [vmem:[#allocation7 + $0x218] ss:$8 sps:$4 sm:$0xff]   ;;  %v16598_v36 = vld [vmem:[#allocation7 + $0x22c] ss:$8 sps:$4 sm:$0xff]  }
 0x274   :  { %997 = vmatmul.mubr.bf16.gmra.mrb[40].mxu1 %v14219_v44  ;;  %1683 = vmatmul.mubr.bf16.gmra.mrb[84].mxu0 %v14288_v47  ;;  %v16610_v44 = vld [vmem:[#allocation7 + $0x24c] ss:$8 sps:$4 sm:$0xff]  }
 0x275   :  { %14360 = vmatprep.mubr.msk.bf16.mxu0 %vm823_vm0, %v16529_v39  ;;  %v16606_v39 = vld [vmem:[#allocation7 + $0x238] ss:$8 sps:$4 sm:$0xff]  }
 0x27c   :  { %2258 = vmatmul.mubr.bf16.vlgmr.msra.gmra.mrb[88].mxu0 %v16527_v48 }
 0x27d   :  { %2901 = vmatpush1.bf16.msra.mxu0 %v18724_v12  ;;  %14361 = vmatprep.mubr.msk.bf16.mxu0 %vm823_vm0, %v16530_v51 }
 0x27e   :  { %2902 = vmatprep.subr.bf16.mxu0 %v18738_v27 }
 0x281   :  { %2903 = vmatpush1.bf16.msra.mxu0 %v18736_v26 }
 0x282   :  { %2904 = vmatprep.subr.bf16.mxu0 %v18750_v41 }
 0x284   :  { %2268 = vmatmul.mubr.bf16.gmra.mrb[92].mxu0 %v16532_v55 }
 0x285   :  { %2905 = vmatpush1.bf16.msra.mxu0 %v18748_v40  ;;  %14362 = vmatprep.mubr.msk.bf16.mxu0 %vm823_vm0, %v16533_v60 }
 0x286   :  { %2906 = vmatprep.subr.bf16.mxu0 %v18762_v57 }
 0x289   :  { %2907 = vmatpush1.bf16.msra.mxu0 %v18760_v56 }
 0x28a   :  { %2908 = vmatprep.subr.bf16.mxu0 %v18774_v14 }
 0x28c   :  { %2278 = vmatmul.mubr.bf16.gmra.mrb[96].mxu0 %v16535_v62 }
 0x28d   :  { %2909 = vmatpush1.bf16.msra.mxu0 %v18772_v11  ;;  %14363 = vmatprep.mubr.msk.bf16.mxu0 %vm823_vm0, %v16536_v1 }
 0x28e   :  { %2910 = vmatprep.subr.bf16.mxu0 %v18786_v30 }
 0x291   :  { %2911 = vmatpush1.bf16.msra.mxu0 %v18784_v29 }
 0x292   :  { %2912 = vmatprep.subr.bf16.mxu0 %v18798_v46 }
 0x294   :  { %2288 = vmatmul.mubr.bf16.gmra.mrb[100].mxu0 %v16538_v2 }
 0x295   :  { %2913 = vmatpush1.bf16.msra.mxu0 %v18796_v45  ;;  %14364 = vmatprep.mubr.msk.bf16.mxu0 %vm823_vm0, %v16539_v3 }
 0x296   :  { %2914 = vmatprep.subr.bf16.mxu0 %v18810_v5 }
 0x299   :  { %2915 = vmatpush1.bf16.msra.mxu0 %v18808_v4 }
 0x29a   :  { %2916 = vmatprep.subr.bf16.mxu0 %v18822_v23 }
 0x29c   :  { %2298 = vmatmul.mubr.bf16.gmra.mrb[104].mxu0 %v16541_v6  ;;  %v16613_v6 = vld [vmem:[#allocation13 + $0xc0] ss:$8 sps:$4 sm:$0xff]  }
 0x29d   :  { %2917 = vmatpush1.bf16.msra.mxu0 %v18820_v22  ;;  %14365 = vmatprep.mubr.msk.bf16.mxu0 %vm823_vm0, %v16542_v7  ;;  %v16616_v7 = vld [vmem:[#allocation7 + $0x25c] ss:$8 sps:$4 sm:$0xff]  }
 0x29e   :  { %2918 = vmatprep.subr.bf16.mxu0 %v18834_v43 }
 0x2a1   :  { %2919 = vmatpush1.bf16.msra.mxu0 %v18832_v42 }
 0x2a2   :  { %14428 = vmatprep.subr.msk.bf16.mxu0 %vm857_vm1, %v18842_v0 }
 0x2a4   :  { %2308 = vmatmul.mubr.bf16.gmra.mrb[108].mxu0 %v16544_v8 }
 0x2a5   :  { %2921 = vmatpush1.bf16.msra.mxu0 %v18845_v63  ;;  %14366 = vmatprep.mubr.msk.bf16.mxu0 %vm823_vm0, %v16548_v9  ;;  %v16621_v9 = vld [vmem:[#allocation13 + $0xd4] ss:$8 sps:$4 sm:$0xff]  }
 0x2a6   :  { %3575 = vmatprep.subr.bf16.mxu0 %v18726_v13 }
 0x2ac   :  { %2318 = vmatmul.mubr.bf16.gmra.mrb[112].mxu0 %v16550_v10 }
 0x2ad   :  { %14367 = vmatprep.mubr.msk.bf16.mxu0 %vm823_vm0, %v16554_v15  ;;  %v16619_v15 = vld [vmem:[#allocation13 + $0xd0] ss:$8 sps:$4 sm:$0xff]  }
 0x2b4   :  { %2328 = vmatmul.mubr.bf16.gmra.mrb[116].mxu0 %v16559_v16 }
 0x2b5   :  { %14368 = vmatprep.mubr.msk.bf16.mxu0 %vm823_vm0, %v16563_v17 }
 0x2bc   :  { %2338 = vmatmul.mubr.bf16.gmra.mrb[120].mxu0 %v16565_v18  ;;  %v16618_v18 = vld [vmem:[#allocation7 + $0x258] ss:$8 sps:$4 sm:$0xff]  }
 0x2bd   :  { %14369 = vmatprep.mubr.msk.bf16.mxu0 %vm823_vm0, %v16569_v19  ;;  %v16626_v19 = vld [vmem:[#allocation13 + $0xe4] ss:$8 sps:$4 sm:$0xff]  }
 0x2c4   :  { %2348 = vmatmul.mubr.bf16.gmra.mrb[124].mxu0 %v16571_v21 }
 0x2c5   :  { %14370 = vmatprep.mubr.msk.bf16.mxu0 %vm823_vm0, %v14358_v24  ;;  %v16622_v24 = vld [vmem:[#allocation7 + $0x26c] ss:$8 sps:$4 sm:$0xff]  }
 0x2cc   :  { %2358 = vmatmul.mubr.bf16.gmra.mrb[128].mxu0 %v14357_v25 }
 0x2cd   :  { %14429 = vmatprep.mubr.msk.bf16.mxu0 %vm823_vm0, %v16582_v28 }
 0x2d4   :  { %2933 = vmatmul.mubr.bf16.vlgmr.msra.gmra.mrb[132].mxu0 %v16580_v31 }
 0x2d5   :  { %3576 = vmatpush1.bf16.msra.mxu0 %v18724_v12  ;;  %14430 = vmatprep.mubr.msk.bf16.mxu0 %vm823_vm0, %v16586_v32  ;;  %v16657_v32 = vld [vmem:[#allocation13 + $0x140] ss:$8 sps:$4 sm:$0xff]  }
 0x2d6   :  { %3577 = vmatprep.subr.bf16.mxu0 %v18738_v27 }
 0x2d9   :  { %3578 = vmatpush1.bf16.msra.mxu0 %v18736_v26 }
 0x2da   :  { %3579 = vmatprep.subr.bf16.mxu0 %v18750_v41 }
 0x2dc   :  { %2943 = vmatmul.mubr.bf16.gmra.mrb[136].mxu0 %v16588_v33 }
 0x2dd   :  { %3580 = vmatpush1.bf16.msra.mxu0 %v18748_v40  ;;  %14431 = vmatprep.mubr.msk.bf16.mxu0 %vm823_vm0, %v16592_v34 }
 0x2de   :  { %3581 = vmatprep.subr.bf16.mxu0 %v18762_v57 }
 0x2e1   :  { %3582 = vmatpush1.bf16.msra.mxu0 %v18760_v56 }
 0x2e2   :  { %3583 = vmatprep.subr.bf16.mxu0 %v18774_v14 }
 0x2e4   :  { %2953 = vmatmul.mubr.bf16.gmra.mrb[140].mxu0 %v16594_v35  ;;  %v16624_v35 = vld [vmem:[#allocation13 + $0xe0] ss:$8 sps:$4 sm:$0xff]  }
 0x2e5   :  { %3584 = vmatpush1.bf16.msra.mxu0 %v18772_v11  ;;  %14432 = vmatprep.mubr.msk.bf16.mxu0 %vm823_vm0, %v16598_v36  ;;  %v16665_v36 = vld [vmem:[#allocation13 + $0x154] ss:$8 sps:$4 sm:$0xff]  }
 0x2e6   :  { %3585 = vmatprep.subr.bf16.mxu0 %v18786_v30 }
 0x2e9   :  { %3586 = vmatpush1.bf16.msra.mxu0 %v18784_v29 }
 0x2ea   :  { %3587 = vmatprep.subr.bf16.mxu0 %v18798_v46 }
 0x2ec   :  { %2963 = vmatmul.mubr.bf16.gmra.mrb[144].mxu0 %v16600_v37  ;;  %v16630_v37 = vld [vmem:[#allocation13 + $0xf4] ss:$8 sps:$4 sm:$0xff]  }
 0x2ed   :  { %3588 = vmatpush1.bf16.msra.mxu0 %v18796_v45  ;;  %14433 = vmatprep.mubr.msk.bf16.mxu0 %vm823_vm0, %v16604_v38 }
 0x2ee   :  { %3589 = vmatprep.subr.bf16.mxu0 %v18810_v5 }
 0x2f1   :  { %3590 = vmatpush1.bf16.msra.mxu0 %v18808_v4 }
 0x2f2   :  { %3591 = vmatprep.subr.bf16.mxu0 %v18822_v23 }
 0x2f4   :  { %2973 = vmatmul.mubr.bf16.gmra.mrb[148].mxu0 %v16606_v39  ;;  %v16628_v39 = vld [vmem:[#allocation13 + $0xf0] ss:$8 sps:$4 sm:$0xff]  }
 0x2f5   :  { %3592 = vmatpush1.bf16.msra.mxu0 %v18820_v22  ;;  %14434 = vmatprep.mubr.msk.bf16.mxu0 %vm823_vm0, %v16610_v44 }
 0x2f6   :  { %3593 = vmatprep.subr.bf16.mxu0 %v18834_v43 }
 0x2f7   :  { %v898_v47 = vpop.f32.mrb[0].mxu1  ;;  %v18955_v48 = vpop.f32.mrb[44].mxu0 }
 0x2f8   :  { %v900_v49 = vpop.f32.mrb[1].mxu1  ;;  %v18957_v51 = vpop.f32.mrb[45].mxu0 }
 0x2f9   :  { %3594 = vmatpush1.bf16.msra.mxu0 %v18832_v42  ;;  %v902_v52 = vpop.f32.mrb[2].mxu1  ;;  %v18960_v55 = vpop.f32.mrb[46].mxu0 }
 0x2fa   :  { %v1005_v60 = vpack.c.bf16 %v902_v52, %v898_v47  ;;  %14497 = vmatprep.subr.msk.bf16.mxu0 %vm857_vm1, %v18842_v0  ;;  %v904_v62 = vpop.f32.mrb[3].mxu1  ;;  %v18966_v2 = vpop.f32.mrb[47].mxu0 }
 0x2fb   :  { %v1006_v3 = vpack.c.bf16 %v904_v62, %v900_v49  ;;  %v16627_v49 = vld [vmem:[#allocation7 + $0x268] ss:$8 sps:$4 sm:$0xff]   ;;  %v16631_v62 = vld [vmem:[#allocation7 + $0x27c] ss:$8 sps:$4 sm:$0xff]  }
 0x2fc   :  { %2983 = vmatmul.mubr.bf16.gmra.mrb[152].mxu0 %v16612_v50  ;;  %v16636_v50 = vld [vmem:[#allocation13 + $0x104] ss:$8 sps:$4 sm:$0xff]  }
 0x2fd   :  { %3596 = vmatpush1.bf16.msra.mxu0 %v18845_v63  ;;  %14257 = vmatprep.mubr.msk.bf16.mxu1 %vm1171_vm2, %v1006_v3 }
 0x2fe   :  { %4250 = vmatprep.subr.bf16.mxu0 %v18726_v13  ;;  %1238 = vmatmul.mubr.bf16.vlgmr.msra.gmra.mrb[44].mxu1 %v1005_v60 }
 0x2ff   :  { %1892 = vmatpush1.bf16.msra.mxu1 %v16613_v6  ;;  %v908_v10 = vpop.f32.mrb[4].mxu1  ;;  %14435 = vmatprep.mubr.msk.bf16.mxu0 %vm823_vm0, %v16616_v7  ;;  %v18974_v16 = vpop.f32.mrb[48].mxu0 }
 0x300   :  { %v910_v17 = vpop.f32.mrb[5].mxu1  ;;  %1893 = vmatprep.subr.bf16.mxu1 %v16621_v9  ;;  %v18976_v20 = vpop.f32.mrb[49].mxu0 }
 0x301   :  { %v912_v21 = vpop.f32.mrb[6].mxu1  ;;  %v18978_v25 = vpop.f32.mrb[50].mxu0 }
 0x302   :  { %v1007_v28 = vpack.c.bf16 %v912_v21, %v908_v10  ;;  %v914_v31 = vpop.f32.mrb[7].mxu1  ;;  %v18982_v33 = vpop.f32.mrb[51].mxu0 }
 0x303   :  { %v1008_v34 = vpack.c.bf16 %v914_v31, %v910_v17  ;;  %1894 = vmatpush1.bf16.msra.mxu1 %v16619_v15  ;;  %v16634_v17 = vld [vmem:[#allocation13 + $0x100] ss:$8 sps:$4 sm:$0xff]  }
 0x304   :  { %2993 = vmatmul.mubr.bf16.gmra.mrb[156].mxu0 %v16618_v18  ;;  %1895 = vmatprep.subr.bf16.mxu1 %v16626_v19  ;;  %v16642_v19 = vld [vmem:[#allocation13 + $0x114] ss:$8 sps:$4 sm:$0xff]  }
 0x305   :  { %14258 = vmatprep.mubr.msk.bf16.mxu1 %vm1171_vm2, %v1008_v34  ;;  %14436 = vmatprep.mubr.msk.bf16.mxu0 %vm823_vm0, %v16622_v24  ;;  %v16640_v24 = vld [vmem:[#allocation13 + $0x110] ss:$8 sps:$4 sm:$0xff]  }
 0x306   :  { %1248 = vmatmul.mubr.bf16.gmra.mrb[48].mxu1 %v1007_v28  ;;  %v16633_v34 = vld [vmem:[#allocation7 + $0x278] ss:$8 sps:$4 sm:$0xff]  }
 0x307   :  { %v918_v38 = vpop.f32.mrb[8].mxu1  ;;  %1896 = vmatpush1.bf16.msra.mxu1 %v16624_v35  ;;  %v18988_v44 = vpop.f32.mrb[52].mxu0  ;;  %v16647_v35 = vld [vmem:[#allocation13 + $0x124] ss:$8 sps:$4 sm:$0xff]  }
 0x308   :  { %v920_v47 = vpop.f32.mrb[9].mxu1  ;;  %1897 = vmatprep.subr.bf16.mxu1 %v16630_v37  ;;  %v18990_v52 = vpop.f32.mrb[53].mxu0 }
 0x309   :  { %v922_v60 = vpop.f32.mrb[10].mxu1  ;;  %v18992_v3 = vpop.f32.mrb[54].mxu0 }
 0x30a   :  { %v1009_v6 = vpack.c.bf16 %v922_v60, %v918_v38  ;;  %v924_v7 = vpop.f32.mrb[11].mxu1  ;;  %v18996_v10 = vpop.f32.mrb[55].mxu0 }
 0x30b   :  { %v1010_v15 = vpack.c.bf16 %v924_v7, %v920_v47  ;;  %1898 = vmatpush1.bf16.msra.mxu1 %v16628_v39  ;;  %v16637_v39 = vld [vmem:[#allocation7 + $0x28c] ss:$8 sps:$4 sm:$0xff]  }
 0x30c   :  { %3003 = vmatmul.mubr.bf16.gmra.mrb[160].mxu0 %v16627_v49  ;;  %1899 = vmatprep.subr.bf16.mxu1 %v16636_v50  ;;  %v16645_v7 = vld [vmem:[#allocation13 + $0x120] ss:$8 sps:$4 sm:$0xff]  }
 0x30d   :  { %14259 = vmatprep.mubr.msk.bf16.mxu1 %vm1171_vm2, %v1010_v15  ;;  %14437 = vmatprep.mubr.msk.bf16.mxu0 %vm823_vm0, %v16631_v62 }
 0x30e   :  { %1258 = vmatmul.mubr.bf16.gmra.mrb[52].mxu1 %v1009_v6 }
 0x30f   :  { %v928_v21 = vpop.f32.mrb[12].mxu1  ;;  %1900 = vmatpush1.bf16.msra.mxu1 %v16634_v17  ;;  %v19002_v28 = vpop.f32.mrb[56].mxu0  ;;  %v16653_v17 = vld [vmem:[#allocation13 + $0x134] ss:$8 sps:$4 sm:$0xff]  }
 0x310   :  { %v930_v31 = vpop.f32.mrb[13].mxu1  ;;  %1901 = vmatprep.subr.bf16.mxu1 %v16642_v19  ;;  %v19004_v37 = vpop.f32.mrb[57].mxu0  ;;  %v2770_v19 = vld [vmem:[#allocation7 + $0x298] sm:$0x11] }
 0x311   :  { %v932_v38 = vpop.f32.mrb[14].mxu1  ;;  %v19006_v47 = vpop.f32.mrb[58].mxu0 }
 0x312   :  { %v1011_v49 = vpack.c.bf16 %v932_v38, %v928_v21  ;;  %v934_v50 = vpop.f32.mrb[15].mxu1  ;;  %v19010_v62 = vpop.f32.mrb[59].mxu0  ;;  %v16651_v38 = vld [vmem:[#allocation13 + $0x130] ss:$8 sps:$4 sm:$0xff]  }
 0x313   :  { %v1012_v6 = vpack.c.bf16 %v934_v50, %v930_v31  ;;  %1902 = vmatpush1.bf16.msra.mxu1 %v16640_v24  ;;  %v16639_v24 = vld [vmem:[#allocation7 + $0x288] ss:$8 sps:$4 sm:$0xff]  }
 0x314   :  { %3013 = vmatmul.mubr.bf16.gmra.mrb[164].mxu0 %v16633_v34  ;;  %1903 = vmatprep.subr.bf16.mxu1 %v16647_v35  ;;  %v16659_v50 = vld [vmem:[#allocation13 + $0x144] ss:$8 sps:$4 sm:$0xff]   ;;  %v14427_v35 = vcombine.high %v2770_v19, %v2770_v19 }
 0x315   :  { %14260 = vmatprep.mubr.msk.bf16.mxu1 %vm1171_vm2, %v1012_v6  ;;  %14438 = vmatprep.mubr.msk.bf16.mxu0 %vm823_vm0, %v16637_v39 }
 0x316   :  { %1268 = vmatmul.mubr.bf16.gmra.mrb[56].mxu1 %v1011_v49 }
 0x317   :  { %v938_v21 = vpop.f32.mrb[16].mxu1  ;;  %1904 = vmatpush1.bf16.msra.mxu1 %v16645_v7  ;;  %v19016_v60 = vpop.f32.mrb[60].mxu0 }
 0x318   :  { %v940_v31 = vpop.f32.mrb[17].mxu1  ;;  %1905 = vmatprep.subr.bf16.mxu1 %v16653_v17  ;;  %v19018_v9 = vpop.f32.mrb[61].mxu0 }
 0x319   :  { %v942_v34 = vpop.f32.mrb[18].mxu1  ;;  %v19020_v15 = vpop.f32.mrb[62].mxu0 }
 0x31a   :  { %v1013_v6 = vpack.c.bf16 %v942_v34, %v938_v21  ;;  %v944_v18 = vpop.f32.mrb[19].mxu1  ;;  %v19024_v49 = vpop.f32.mrb[63].mxu0  ;;  %v16663_v34 = vld [vmem:[#allocation13 + $0x150] ss:$8 sps:$4 sm:$0xff]  }
 0x31b   :  { %v1014_v7 = vpack.c.bf16 %v944_v18, %v940_v31  ;;  %1906 = vmatpush1.bf16.msra.mxu1 %v16651_v38  ;;  %v14426_v18 = vcombine.low %v2770_v19, %v2770_v19  ;;  %v16671_v38 = vld [vmem:[#allocation13 + $0x164] ss:$8 sps:$4 sm:$0xff]   ;;  %v16677_v19 = vld [vmem:[#allocation13 + $0x174] ss:$8 sps:$4 sm:$0xff]  }
 0x31c   :  { %3023 = vmatmul.mubr.bf16.gmra.mrb[168].mxu0 %v16639_v24  ;;  %1907 = vmatprep.subr.bf16.mxu1 %v16659_v50  ;;  %v16650_v24 = vld [vmem:[#allocation7 + $0x2a4] ss:$8 sps:$4 sm:$0xff]  }
 0x31d   :  { %14261 = vmatprep.mubr.msk.bf16.mxu1 %vm1171_vm2, %v1014_v7  ;;  %14439 = vmatprep.mubr.msk.bf16.mxu0 %vm823_vm0, %v14427_v35 }
 0x31e   :  { %1278 = vmatmul.mubr.bf16.gmra.mrb[60].mxu1 %v1013_v6 }
 0x31f   :  { %v948_v21 = vpop.f32.mrb[20].mxu1  ;;  %1908 = vmatpush1.bf16.msra.mxu1 %v16657_v32  ;;  %v19030_v39 = vpop.f32.mrb[64].mxu0 }
 0x320   :  { %v950_v1 = vpop.f32.mrb[21].mxu1  ;;  %1909 = vmatprep.subr.bf16.mxu1 %v16665_v36  ;;  %v19032_v31 = vpop.f32.mrb[65].mxu0 }
 0x321   :  { %v952_v17 = vpop.f32.mrb[22].mxu1  ;;  %v19034_v50 = vpop.f32.mrb[66].mxu0 }
 0x322   :  { %v1015_v8 = vpack.c.bf16 %v952_v17, %v948_v21  ;;  %v954_v7 = vpop.f32.mrb[23].mxu1  ;;  %v19038_v6 = vpop.f32.mrb[67].mxu0  ;;  %v16675_v21 = vld [vmem:[#allocation13 + $0x170] ss:$8 sps:$4 sm:$0xff]  }
 0x323   :  { %v1016_v32 = vpack.c.bf16 %v954_v7, %v950_v1  ;;  %1910 = vmatpush1.bf16.msra.mxu1 %v16663_v34  ;;  %v16648_v1 = vld [vmem:[#allocation7 + $0x2a0] ss:$8 sps:$4 sm:$0xff]   ;;  %v16683_v34 = vld [vmem:[#allocation13 + $0x184] ss:$8 sps:$4 sm:$0xff]  }
 0x324   :  { %3033 = vmatmul.mubr.bf16.gmra.mrb[172].mxu0 %v14426_v18  ;;  %1911 = vmatprep.subr.bf16.mxu1 %v16671_v38 }
 0x325   :  { %14262 = vmatprep.mubr.msk.bf16.mxu1 %vm1171_vm2, %v1016_v32  ;;  %14498 = vmatprep.mubr.msk.bf16.mxu0 %vm823_vm0, %v16650_v24  ;;  %v16654_v32 = vld [vmem:[#allocation7 + $0x2b4] ss:$8 sps:$4 sm:$0xff]  }
 0x326   :  { %1288 = vmatmul.mubr.bf16.gmra.mrb[64].mxu1 %v1015_v8 }
 0x327   :  { %v958_v17 = vpop.f32.mrb[24].mxu1  ;;  %1912 = vmatpush1.bf16.msra.mxu1 %v16669_v58  ;;  %v19044_v35 = vpop.f32.mrb[68].mxu0 }
 0x328   :  { %v960_v61 = vpop.f32.mrb[25].mxu1  ;;  %1913 = vmatprep.subr.bf16.mxu1 %v16677_v19  ;;  %v19046_v7 = vpop.f32.mrb[69].mxu0 }
 0x329   :  { %v962_v36 = vpop.f32.mrb[26].mxu1  ;;  %v19048_v18 = vpop.f32.mrb[70].mxu0 }
 0x32a   :  { %v1017_v38 = vpack.c.bf16 %v962_v36, %v958_v17  ;;  %v964_v59 = vpop.f32.mrb[27].mxu1  ;;  %v19052_v8 = vpop.f32.mrb[71].mxu0 }
 0x32b   :  { %v1018_v58 = vpack.c.bf16 %v964_v59, %v960_v61  ;;  %1914 = vmatpush1.bf16.msra.mxu1 %v16675_v21  ;;  %v16656_v61 = vld [vmem:[#allocation7 + $0x2b0] ss:$8 sps:$4 sm:$0xff]  }
 0x32c   :  { %3608 = vmatmul.mubr.bf16.vlgmr.msra.gmra.mrb[176].mxu0 %v16648_v1  ;;  %2566 = vmatprep.subr.bf16.mxu1 %v16683_v34 }
 0x32d   :  { %4251 = vmatpush1.bf16.msra.mxu0 %v18724_v12  ;;  %14263 = vmatprep.mubr.msk.bf16.mxu1 %vm1171_vm2, %v1018_v58 }
 0x32e   :  { %4252 = vmatprep.subr.bf16.mxu0 %v18738_v27  ;;  %1298 = vmatmul.mubr.bf16.gmra.mrb[68].mxu1 %v1017_v38 }
 0x32f   :  { %v968_v36 = vpop.f32.mrb[28].mxu1  ;;  %14499 = vmatprep.mubr.msk.bf16.mxu0 %vm823_vm0, %v16654_v32  ;;  %v19060_v19 = vpop.f32.mrb[72].mxu0 }
 0x330   :  { %22211 = vst [vmem:[#allocation47_spill] sm:$0xff] %v19060_v19  ;;  %v970_v59 = vpop.f32.mrb[29].mxu1  ;;  %v19062_v17 = vpop.f32.mrb[73].mxu0  ;;  %v16662_v19 = vld [vmem:[#allocation7 + $0x2c0] ss:$8 sps:$4 sm:$0xff]  }
 0x331   :  { %4253 = vmatpush1.bf16.msra.mxu0 %v18736_v26  ;;  %v972_v21 = vpop.f32.mrb[30].mxu1  ;;  %v19065_v1 = vpop.f32.mrb[74].mxu0 }
 0x332   :  { %22212 = vst [vmem:[#allocation48_spill] sm:$0xff] %v19065_v1  ;;  %v1019_v34 = vpack.c.bf16 %v972_v21, %v968_v36  ;;  %4254 = vmatprep.subr.bf16.mxu0 %v18750_v41  ;;  %v974_v58 = vpop.f32.mrb[31].mxu1  ;;  %v19070_v24 = vpop.f32.mrb[75].mxu0 }
 0x333   :  { %v1020_v32 = vpack.c.bf16 %v974_v58, %v970_v59 }
 0x334   :  { %3618 = vmatmul.mubr.bf16.gmra.mrb[180].mxu0 %v16656_v61 }
 0x335   :  { %4255 = vmatpush1.bf16.msra.mxu0 %v18748_v40  ;;  %14264 = vmatprep.mubr.msk.bf16.mxu1 %vm1171_vm2, %v1020_v32 }
 0x336   :  { %4256 = vmatprep.subr.bf16.mxu0 %v18762_v57  ;;  %1308 = vmatmul.mubr.bf16.gmra.mrb[72].mxu1 %v1019_v34  ;;  %v16666_v57 = vld [vmem:[#allocation7 + $0x2d4] ss:$8 sps:$4 sm:$0xff]  }
 0x337   :  { %v978_v36 = vpop.f32.mrb[32].mxu1  ;;  %14500 = vmatprep.mubr.msk.bf16.mxu0 %vm823_vm0, %v16660_v53  ;;  %v19078_v21 = vpop.f32.mrb[76].mxu0 }
 0x338   :  { %22213 = vst [vmem:[#allocation49_spill] sm:$0xff] %v19078_v21  ;;  %v980_v38 = vpop.f32.mrb[33].mxu1  ;;  %v19080_v59 = vpop.f32.mrb[77].mxu0  ;;  %v16668_v21 = vld [vmem:[#allocation7 + $0x2d0] ss:$8 sps:$4 sm:$0xff]  }
 0x339   :  { %4257 = vmatpush1.bf16.msra.mxu0 %v18760_v56  ;;  %v982_v58 = vpop.f32.mrb[34].mxu1  ;;  %v19083_v61 = vpop.f32.mrb[78].mxu0 }
 0x33a   :  { %22214 = vst [vmem:[#allocation50_spill] sm:$0xff] %v19083_v61  ;;  %v1021_v54 = vpack.c.bf16 %v982_v58, %v978_v36  ;;  %4258 = vmatprep.subr.bf16.mxu0 %v18774_v14  ;;  %v984_v32 = vpop.f32.mrb[35].mxu1  ;;  %v19088_v1 = vpop.f32.mrb[79].mxu0 }
 0x33b   :  { %v1022_v53 = vpack.c.bf16 %v984_v32, %v980_v38 }
 0x33c   :  { %3628 = vmatmul.mubr.bf16.gmra.mrb[184].mxu0 %v16662_v19 }
 0x33d   :  { %4259 = vmatpush1.bf16.msra.mxu0 %v18772_v11  ;;  %14265 = vmatprep.mubr.msk.bf16.mxu1 %vm1171_vm2, %v1022_v53  ;;  %v16678_v11 = vld [vmem:[#allocation7 + $0x2f4] ss:$8 sps:$4 sm:$0xff]  }
 0x33e   :  { %4260 = vmatprep.subr.bf16.mxu0 %v18786_v30  ;;  %1318 = vmatmul.mubr.bf16.gmra.mrb[76].mxu1 %v1021_v54  ;;  %v16672_v30 = vld [vmem:[#allocation7 + $0x2e4] ss:$8 sps:$4 sm:$0xff]  }
 0x33f   :  { %v988_v36 = vpop.f32.mrb[36].mxu1  ;;  %14501 = vmatprep.mubr.msk.bf16.mxu0 %vm823_vm0, %v16666_v57  ;;  %v19096_v58 = vpop.f32.mrb[80].mxu0 }
 0x340   :  { %22215 = vst [vmem:[#allocation51_spill] sm:$0xff] %v19096_v58  ;;  %v990_v34 = vpop.f32.mrb[37].mxu1  ;;  %v19098_v38 = vpop.f32.mrb[81].mxu0  ;;  %v16674_v58 = vld [vmem:[#allocation7 + $0x2e0] ss:$8 sps:$4 sm:$0xff]  }
 0x341   :  { %4261 = vmatpush1.bf16.msra.mxu0 %v18784_v29  ;;  %v992_v32 = vpop.f32.mrb[38].mxu1  ;;  %v19101_v19 = vpop.f32.mrb[82].mxu0 }
 0x342   :  { %22216 = vst [vmem:[#allocation52_spill] sm:$0xff] %v19101_v19  ;;  %v1023_v40 = vpack.c.bf16 %v992_v32, %v988_v36  ;;  %4262 = vmatprep.subr.bf16.mxu0 %v18798_v46  ;;  %v994_v53 = vpop.f32.mrb[39].mxu1  ;;  %v19106_v61 = vpop.f32.mrb[83].mxu0 }
 0x343   :  { %v1024_v57 = vpack.c.bf16 %v994_v53, %v990_v34 }
 0x344   :  { %3638 = vmatmul.mubr.bf16.gmra.mrb[188].mxu0 %v16668_v21 }
 0x345   :  { %4263 = vmatpush1.bf16.msra.mxu0 %v18796_v45  ;;  %14266 = vmatprep.mubr.msk.bf16.mxu1 %vm1171_vm2, %v1024_v57 }
 0x346   :  { %4264 = vmatprep.subr.bf16.mxu0 %v18810_v5  ;;  %1328 = vmatmul.mubr.bf16.gmra.mrb[80].mxu1 %v1023_v40 }
 0x347   :  { %v998_v36 = vpop.f32.mrb[40].mxu1  ;;  %14502 = vmatprep.mubr.msk.bf16.mxu0 %vm823_vm0, %v16672_v30  ;;  %v19114_v32 = vpop.f32.mrb[84].mxu0  ;;  %v22217_v30 = vpack.c.bf16 %v18966_v2, %v18957_v51  ;;  %v16681_v51 = vld [vmem:[#allocation13 + $0x180] ss:$8 sps:$4 sm:$0xff]   ;;  %v16694_v2 = vld [vmem:[#allocation13 + $0x1a4] ss:$8 sps:$4 sm:$0xff]  }
 0x348   :  { %v1000_v54 = vpop.f32.mrb[41].mxu1  ;;  %v19116_v34 = vpop.f32.mrb[85].mxu0  ;;  %v1025_v40 = vpack.c.bf16 %v998_v36, %v998_v36 }
 0x349   :  { %v1026_v53 = vpack.c.bf16 %v1000_v54, %v1000_v54  ;;  %4265 = vmatpush1.bf16.msra.mxu0 %v18808_v4  ;;  %v1002_v21 = vpop.f32.mrb[42].mxu1  ;;  %v1688_v19 = vpop.f32.mrb[86].mxu0  ;;  %v16680_v54 = vld [vmem:[#allocation7 + $0x2f0] ss:$8 sps:$4 sm:$0xff]  }
 0x34a   :  { %4266 = vmatprep.subr.bf16.mxu0 %v18822_v23  ;;  %v1003_v57 = vpop.f32.mrb[43].mxu1  ;;  %v1689_v5 = vpop.f32.mrb[87].mxu0  ;;  %v16689_v21 = vld [vmem:[#allocation13 + $0x194] ss:$8 sps:$4 sm:$0xff]  }
 0x34b   :  { %14267 = vmatprep.mubr.msk.bf16.mxu1 %vm1171_vm2, %v1026_v53  ;;  %v22220_v57 = vpack.c.bf16 %v18960_v55, %v18955_v48  ;;  %v16695_v48 = vld [vmem:[#allocation7 + $0x310] ss:$8 sps:$4 sm:$0xff]  }
 0x34c   :  { %3648 = vmatmul.mubr.bf16.gmra.mrb[192].mxu0 %v16674_v58  ;;  %v16684_v58 = vld [vmem:[#allocation7 + $0x304] ss:$8 sps:$4 sm:$0xff]  }
 0x34d   :  { %4267 = vmatpush1.bf16.msra.mxu0 %v18820_v22  ;;  %14503 = vmatprep.mubr.msk.bf16.mxu0 %vm823_vm0, %v16678_v11 }
 0x34e   :  { %4268 = vmatprep.subr.bf16.mxu0 %v18834_v43  ;;  %1338 = vmatmul.mubr.bf16.gmra.mrb[84].mxu1 %v1025_v40  ;;  %v22221_v40 = vpack.c.bf16 %v18982_v33, %v18976_v20  ;;  %v16692_v20 = vld [vmem:[#allocation13 + $0x1a0] ss:$8 sps:$4 sm:$0xff]  }
 0x34f   :  { %14326 = vmatprep.mubr.msk.bf16.mxu1 %vm1171_vm2, %v22217_v30  ;;  %v19128_v19 = vpop.f32.mrb[88].mxu0  ;;  %v16687_v30 = vld [vmem:[#allocation13 + $0x190] ss:$8 sps:$4 sm:$0xff]  }
 0x350   :  { %22218 = vst [vmem:[#allocation53_spill] sm:$0xff] %v19128_v19  ;;  %v19130_v5 = vpop.f32.mrb[89].mxu0  ;;  %v16699_v33 = vld [vmem:[#allocation7 + $0x324] ss:$8 sps:$4 sm:$0xff]  }
 0x351   :  { %4269 = vmatpush1.bf16.msra.mxu0 %v18832_v42  ;;  %v19133_v36 = vpop.f32.mrb[90].mxu0 }
 0x352   :  { %22219 = vst [vmem:[#allocation54_spill] sm:$0xff] %v19133_v36  ;;  %14566 = vmatprep.subr.msk.bf16.mxu0 %vm857_vm1, %v18842_v0  ;;  %v19139_v53 = vpop.f32.mrb[91].mxu0 }
 0x354   :  { %3658 = vmatmul.mubr.bf16.gmra.mrb[196].mxu0 %v16680_v54  ;;  %v16686_v54 = vld [vmem:[#allocation7 + $0x300] ss:$8 sps:$4 sm:$0xff]  }
 0x355   :  { %4271 = vmatpush1.bf16.msra.mxu0 %v18845_v63  ;;  %14504 = vmatprep.mubr.msk.bf16.mxu0 %vm823_vm0, %v16684_v58  ;;  %v16690_v58 = vld [vmem:[#allocation7 + $0x314] ss:$8 sps:$4 sm:$0xff]  }
 0x356   :  { %4925 = vmatprep.subr.bf16.mxu0 %v18726_v13  ;;  %1924 = vmatmul.mubr.bf16.vlgmr.msra.gmra.mrb[44].mxu1 %v22220_v57  ;;  %v22223_v57 = vpack.c.bf16 %v18996_v10, %v18990_v52  ;;  %v16702_v52 = vld [vmem:[#allocation13 + $0x1c0] ss:$8 sps:$4 sm:$0xff]  }
 0x357   :  { %2567 = vmatpush1.bf16.msra.mxu1 %v16681_v51  ;;  %14327 = vmatprep.mubr.msk.bf16.mxu1 %vm1171_vm2, %v22221_v40  ;;  %v19153_v11 = vpop.f32.mrb[92].mxu0  ;;  %v16698_v51 = vld [vmem:[#allocation13 + $0x1b4] ss:$8 sps:$4 sm:$0xff]   ;;  %v16696_v40 = vld [vmem:[#allocation13 + $0x1b0] ss:$8 sps:$4 sm:$0xff]  }
 0x358   :  { %2568 = vmatprep.subr.bf16.mxu1 %v16689_v21  ;;  %v19155_v19 = vpop.f32.mrb[93].mxu0  ;;  %v22222_v21 = vpack.c.bf16 %v18978_v25, %v18974_v16  ;;  %v16701_v16 = vld [vmem:[#allocation7 + $0x320] ss:$8 sps:$4 sm:$0xff]   ;;  %v16705_v10 = vld [vmem:[#allocation7 + $0x334] ss:$8 sps:$4 sm:$0xff]  }
 0x359   :  { %v19157_v36 = vpop.f32.mrb[94].mxu0 }
 0x35a   :  { %v19161_v55 = vpop.f32.mrb[95].mxu0 }
 0x35b   :  { %2569 = vmatpush1.bf16.msra.mxu1 %v16687_v30 }
 0x35c   :  { %3668 = vmatmul.mubr.bf16.gmra.mrb[200].mxu0 %v16686_v54  ;;  %2570 = vmatprep.subr.bf16.mxu1 %v16694_v2  ;;  %v16704_v54 = vld [vmem:[#allocation13 + $0x1c4] ss:$8 sps:$4 sm:$0xff]  }
 0x35d   :  { %14505 = vmatprep.mubr.msk.bf16.mxu0 %vm823_vm0, %v16690_v58 }
 0x35e   :  { %1934 = vmatmul.mubr.bf16.gmra.mrb[48].mxu1 %v22222_v21  ;;  %v22225_v21 = vpack.c.bf16 %v19010_v62, %v19004_v37  ;;  %v16713_v37 = vld [vmem:[#allocation13 + $0x1e0] ss:$8 sps:$4 sm:$0xff]  }
 0x35f   :  { %14328 = vmatprep.mubr.msk.bf16.mxu1 %vm1171_vm2, %v22223_v57  ;;  %2571 = vmatpush1.bf16.msra.mxu1 %v16692_v20  ;;  %v19173_v30 = vpop.f32.mrb[96].mxu0  ;;  %v16710_v20 = vld [vmem:[#allocation13 + $0x1d4] ss:$8 sps:$4 sm:$0xff]   ;;  %v16708_v57 = vld [vmem:[#allocation13 + $0x1d0] ss:$8 sps:$4 sm:$0xff]  }
 0x360   :  { %2572 = vmatprep.subr.bf16.mxu1 %v16698_v51  ;;  %v19175_v2 = vpop.f32.mrb[97].mxu0  ;;  %v22224_v51 = vpack.c.bf16 %v18992_v3, %v18988_v44  ;;  %v16707_v62 = vld [vmem:[#allocation7 + $0x330] ss:$8 sps:$4 sm:$0xff]  }
 0x361   :  { %v19177_v58 = vpop.f32.mrb[98].mxu0 }
 0x362   :  { %v19181_v25 = vpop.f32.mrb[99].mxu0 }
 0x363   :  { %2573 = vmatpush1.bf16.msra.mxu1 %v16696_v40 }
 0x364   :  { %3678 = vmatmul.mubr.bf16.gmra.mrb[204].mxu0 %v16695_v48  ;;  %2574 = vmatprep.subr.bf16.mxu1 %v16704_v54  ;;  %v16715_v48 = vld [vmem:[#allocation13 + $0x1e4] ss:$8 sps:$4 sm:$0xff]  }
 0x365   :  { %14506 = vmatprep.mubr.msk.bf16.mxu0 %vm823_vm0, %v16699_v33 }
 0x366   :  { %1944 = vmatmul.mubr.bf16.gmra.mrb[52].mxu1 %v22224_v51  ;;  %v3445_v51 = vld [vmem:[#allocation7 + $0x340] sm:$0x11] }
 0x367   :  { %14329 = vmatprep.mubr.msk.bf16.mxu1 %vm1171_vm2, %v22225_v21  ;;  %2575 = vmatpush1.bf16.msra.mxu1 %v16702_v52  ;;  %v19193_v40 = vpop.f32.mrb[100].mxu0  ;;  %v16721_v52 = vld [vmem:[#allocation13 + $0x1f4] ss:$8 sps:$4 sm:$0xff]   ;;  %v22228_v21 = vpack.c.bf16 %v19024_v49, %v19018_v9  ;;  %v16725_v9 = vld [vmem:[#allocation13 + $0x200] ss:$8 sps:$4 sm:$0xff]  }
 0x368   :  { %22226 = vst [vmem:[#allocation55_spill] sm:$0xff] %v19193_v40  ;;  %2576 = vmatprep.subr.bf16.mxu1 %v16710_v20  ;;  %v19195_v54 = vpop.f32.mrb[101].mxu0  ;;  %v22227_v20 = vpack.c.bf16 %v19006_v47, %v19002_v28  ;;  %v14495_v28 = vcombine.low %v3445_v51, %v3445_v51  ;;  %v16718_v49 = vld [vmem:[#allocation7 + $0x34c] ss:$8 sps:$4 sm:$0xff]  }
 0x369   :  { %v19197_v33 = vpop.f32.mrb[102].mxu0 }
 0x36a   :  { %v19201_v3 = vpop.f32.mrb[103].mxu0 }
 0x36b   :  { %2577 = vmatpush1.bf16.msra.mxu1 %v16708_v57  ;;  %v16719_v57 = vld [vmem:[#allocation13 + $0x1f0] ss:$8 sps:$4 sm:$0xff]  }
 0x36c   :  { %3688 = vmatmul.mubr.bf16.gmra.mrb[208].mxu0 %v16701_v16  ;;  %2578 = vmatprep.subr.bf16.mxu1 %v16715_v48  ;;  %v16727_v16 = vld [vmem:[#allocation13 + $0x204] ss:$8 sps:$4 sm:$0xff]  }
 0x36d   :  { %14507 = vmatprep.mubr.msk.bf16.mxu0 %vm823_vm0, %v16705_v10  ;;  %v14496_v10 = vcombine.high %v3445_v51, %v3445_v51  ;;  %v16745_v51 = vld [vmem:[#allocation13 + $0x234] ss:$8 sps:$4 sm:$0xff]  }
 0x36e   :  { %1954 = vmatmul.mubr.bf16.gmra.mrb[56].mxu1 %v22227_v20  ;;  %v22230_v20 = vpack.c.bf16 %v19038_v6, %v19032_v31  ;;  %v16737_v31 = vld [vmem:[#allocation13 + $0x220] ss:$8 sps:$4 sm:$0xff]   ;;  %v22245_v6 = vld [vmem:[#allocation49_spill] sm:$0xff] }
 0x36f   :  { %14330 = vmatprep.mubr.msk.bf16.mxu1 %vm1171_vm2, %v22228_v21  ;;  %2579 = vmatpush1.bf16.msra.mxu1 %v16713_v37  ;;  %v19213_v44 = vpop.f32.mrb[104].mxu0  ;;  %v16733_v37 = vld [vmem:[#allocation13 + $0x214] ss:$8 sps:$4 sm:$0xff]   ;;  %v16731_v21 = vld [vmem:[#allocation13 + $0x210] ss:$8 sps:$4 sm:$0xff]  }
 0x370   :  { %2580 = vmatprep.subr.bf16.mxu1 %v16721_v52  ;;  %v19215_v48 = vpop.f32.mrb[105].mxu0  ;;  %v22229_v52 = vpack.c.bf16 %v19020_v15, %v19016_v60  ;;  %v16722_v60 = vld [vmem:[#allocation7 + $0x35c] ss:$8 sps:$4 sm:$0xff]  }
 0x371   :  { %v19217_v40 = vpop.f32.mrb[106].mxu0 }
 0x372   :  { %v19221_v47 = vpop.f32.mrb[107].mxu0 }
 0x373   :  { %2581 = vmatpush1.bf16.msra.mxu1 %v16719_v57 }
 0x374   :  { %3698 = vmatmul.mubr.bf16.gmra.mrb[212].mxu0 %v16707_v62  ;;  %2582 = vmatprep.subr.bf16.mxu1 %v16727_v16  ;;  %v16739_v62 = vld [vmem:[#allocation13 + $0x224] ss:$8 sps:$4 sm:$0xff]  }
 0x375   :  { %14508 = vmatprep.mubr.msk.bf16.mxu0 %vm823_vm0, %v14496_v10 }
 0x376   :  { %1964 = vmatmul.mubr.bf16.gmra.mrb[60].mxu1 %v22229_v52  ;;  %v16743_v52 = vld [vmem:[#allocation13 + $0x230] ss:$8 sps:$4 sm:$0xff]  }
 0x377   :  { %14331 = vmatprep.mubr.msk.bf16.mxu1 %vm1171_vm2, %v22230_v20  ;;  %2583 = vmatpush1.bf16.msra.mxu1 %v16725_v9  ;;  %v19233_v57 = vpop.f32.mrb[108].mxu0  ;;  %v22231_v9 = vpack.c.bf16 %v19034_v50, %v19030_v39  ;;  %v22240_v39 = vpack.c.bf16 %v19088_v1, %v19080_v59  ;;  %v22242_v59 = vld [vmem:[#allocation36_spill] sm:$0xff] }
 0x378   :  { %2584 = vmatprep.subr.bf16.mxu1 %v16733_v37  ;;  %v19235_v16 = vpop.f32.mrb[109].mxu0  ;;  %v22232_v37 = vpack.c.bf16 %v19052_v8, %v19046_v7  ;;  %v22233_v8 = vpack.c.bf16 %v19048_v18, %v19044_v35  ;;  %v16730_v7 = vld [vmem:[#allocation7 + $0x368] ss:$8 sps:$4 sm:$0xff]  }
 0x379   :  { %v19237_v10 = vpop.f32.mrb[110].mxu0 }
 0x37a   :  { %v19241_v15 = vpop.f32.mrb[111].mxu0 }
 0x37b   :  { %2585 = vmatpush1.bf16.msra.mxu1 %v16731_v21  ;;  %v16716_v21 = vld [vmem:[#allocation7 + $0x348] ss:$8 sps:$4 sm:$0xff]  }
 0x37c   :  { %3708 = vmatmul.mubr.bf16.gmra.mrb[216].mxu0 %v14495_v28  ;;  %2586 = vmatprep.subr.bf16.mxu1 %v16739_v62  ;;  %v16751_v28 = vld [vmem:[#allocation13 + $0x244] ss:$8 sps:$4 sm:$0xff]  }
 0x37d   :  { %14567 = vmatprep.mubr.msk.bf16.mxu0 %vm823_vm0, %v16718_v49 }
 0x37e   :  { %1974 = vmatmul.mubr.bf16.gmra.mrb[64].mxu1 %v22231_v9  ;;  %v16724_v9 = vld [vmem:[#allocation7 + $0x358] ss:$8 sps:$4 sm:$0xff]  }
 0x37f   :  { %14332 = vmatprep.mubr.msk.bf16.mxu1 %vm1171_vm2, %v22232_v37  ;;  %2587 = vmatpush1.bf16.msra.mxu1 %v16737_v31  ;;  %v19253_v20 = vpop.f32.mrb[112].mxu0  ;;  %v22234_v31 = vpack.c.bf16 %v19070_v24, %v19062_v17  ;;  %v22235_v17 = vld [vmem:[#allocation33_spill] sm:$0xff] }
 0x380   :  { %2588 = vmatprep.subr.bf16.mxu1 %v16745_v51  ;;  %v19255_v62 = vpop.f32.mrb[113].mxu0 }
 0x381   :  { %v19257_v49 = vpop.f32.mrb[114].mxu0 }
 0x382   :  { %v19261_v50 = vpop.f32.mrb[115].mxu0 }
 0x383   :  { %2589 = vmatpush1.bf16.msra.mxu1 %v16743_v52  ;;  %v16728_v52 = vld [vmem:[#allocation7 + $0x36c] ss:$8 sps:$4 sm:$0xff]  }
 0x384   :  { %4283 = vmatmul.mubr.bf16.vlgmr.msra.gmra.mrb[220].mxu0 %v16716_v21  ;;  %3241 = vmatprep.subr.bf16.mxu1 %v16751_v28  ;;  %v22236_v21 = vld [vmem:[#allocation35_spill] sm:$0xff]  ;;  %v22237_v28 = vld [vmem:[#allocation48_spill] sm:$0xff] }
 0x385   :  { %4926 = vmatpush1.bf16.msra.mxu0 %v18724_v12  ;;  %14568 = vmatprep.mubr.msk.bf16.mxu0 %vm823_vm0, %v16722_v60 }
 0x386   :  { %4927 = vmatprep.subr.bf16.mxu0 %v18738_v27  ;;  %1984 = vmatmul.mubr.bf16.gmra.mrb[68].mxu1 %v22233_v8  ;;  %v22238_v8 = vld [vmem:[#allocation47_spill] sm:$0xff] }
 0x387   :  { %14333 = vmatprep.mubr.msk.bf16.mxu1 %vm1171_vm2, %v22234_v31  ;;  %v19275_v51 = vpop.f32.mrb[116].mxu0  ;;  %v22239_v31 = vpack.c.bf16 %v22237_v28, %v22238_v8 }
 0x388   :  { %v19277_v37 = vpop.f32.mrb[117].mxu0 }
 0x389   :  { %4928 = vmatpush1.bf16.msra.mxu0 %v18736_v26  ;;  %v19280_v60 = vpop.f32.mrb[118].mxu0 }
 0x38a   :  { %4929 = vmatprep.subr.bf16.mxu0 %v18750_v41  ;;  %v19285_v18 = vpop.f32.mrb[119].mxu0 }
 0x38c   :  { %4293 = vmatmul.mubr.bf16.gmra.mrb[224].mxu0 %v16724_v9  ;;  %v16734_v9 = vld [vmem:[#allocation7 + $0x37c] ss:$8 sps:$4 sm:$0xff]  }
 0x38d   :  { %4930 = vmatpush1.bf16.msra.mxu0 %v22235_v17  ;;  %14569 = vmatprep.mubr.msk.bf16.mxu0 %vm823_vm0, %v16728_v52 }
 0x38e   :  { %4931 = vmatprep.subr.bf16.mxu0 %v22236_v21  ;;  %1994 = vmatmul.mubr.bf16.gmra.mrb[72].mxu1 %v22239_v31  ;;  %v22244_v31 = vld [vmem:[#allocation50_spill] sm:$0xff] }
 0x38f   :  { %14334 = vmatprep.mubr.msk.bf16.mxu1 %vm1171_vm2, %v22240_v39  ;;  %v19299_v35 = vpop.f32.mrb[120].mxu0  ;;  %v22243_v39 = vld [vmem:[#allocation39_spill] sm:$0xff] }
 0x390   :  { %22241 = vst [vmem:[#allocation33_spill] sm:$0xff] %v19299_v35  ;;  %v19301_v24 = vpop.f32.mrb[121].mxu0  ;;  %v16736_v35 = vld [vmem:[#allocation7 + $0x378] ss:$8 sps:$4 sm:$0xff]  }
 0x391   :  { %4932 = vmatpush1.bf16.msra.mxu0 %v18760_v56  ;;  %v19304_v52 = vpop.f32.mrb[122].mxu0  ;;  %v22246_v56 = vpack.c.bf16 %v22244_v31, %v22245_v6  ;;  %v22251_v31 = vld [vmem:[#allocation52_spill] sm:$0xff] }
 0x392   :  { %4933 = vmatprep.subr.bf16.mxu0 %v18774_v14  ;;  %v19309_v8 = vpop.f32.mrb[123].mxu0  ;;  %v22247_v14 = vpack.c.bf16 %v19106_v61, %v19098_v38  ;;  %v22250_v38 = vld [vmem:[#allocation41_spill] sm:$0xff] }
 0x394   :  { %4303 = vmatmul.mubr.bf16.gmra.mrb[228].mxu0 %v16730_v7  ;;  %v16740_v7 = vld [vmem:[#allocation7 + $0x38c] ss:$8 sps:$4 sm:$0xff]  }
 0x395   :  { %4934 = vmatpush1.bf16.msra.mxu0 %v22242_v59  ;;  %14570 = vmatprep.mubr.msk.bf16.mxu0 %vm823_vm0, %v16734_v9 }
 0x396   :  { %4935 = vmatprep.subr.bf16.mxu0 %v22243_v39  ;;  %2004 = vmatmul.mubr.bf16.gmra.mrb[76].mxu1 %v22246_v56 }
 0x397   :  { %14335 = vmatprep.mubr.msk.bf16.mxu1 %vm1171_vm2, %v22247_v14  ;;  %v19323_v28 = vpop.f32.mrb[124].mxu0  ;;  %v1712_v14 = vpack.c.bf16 %v19116_v34, %v19116_v34 }
 0x398   :  { %22248 = vst [vmem:[#allocation35_spill] sm:$0xff] %v19323_v28  ;;  %v19325_v1 = vpop.f32.mrb[125].mxu0  ;;  %v16742_v28 = vld [vmem:[#allocation7 + $0x388] ss:$8 sps:$4 sm:$0xff]  }
 0x399   :  { %4936 = vmatpush1.bf16.msra.mxu0 %v18784_v29  ;;  %v19328_v9 = vpop.f32.mrb[126].mxu0 }
 0x39a   :  { %22249 = vst [vmem:[#allocation48_spill] sm:$0xff] %v19328_v9  ;;  %4937 = vmatprep.subr.bf16.mxu0 %v18798_v46  ;;  %v19333_v6 = vpop.f32.mrb[127].mxu0  ;;  %v22252_v46 = vld [vmem:[#allocation51_spill] sm:$0xff]  ;;  %v1711_v9 = vpack.c.bf16 %v19114_v32, %v19114_v32 }
 0x39b   :  { %v22253_v29 = vpack.c.bf16 %v22251_v31, %v22252_v46  ;;  %v16752_v32 = vld [vmem:[#allocation7 + $0x3ac] ss:$8 sps:$4 sm:$0xff]  }
 0x39c   :  { %4313 = vmatmul.mubr.bf16.gmra.mrb[232].mxu0 %v16736_v35  ;;  %v16746_v35 = vld [vmem:[#allocation7 + $0x39c] ss:$8 sps:$4 sm:$0xff]  }
 0x39d   :  { %4938 = vmatpush1.bf16.msra.mxu0 %v18796_v45  ;;  %14571 = vmatprep.mubr.msk.bf16.mxu0 %vm823_vm0, %v16740_v7 }
 0x39e   :  { %4939 = vmatprep.subr.bf16.mxu0 %v22250_v38  ;;  %2014 = vmatmul.mubr.bf16.gmra.mrb[80].mxu1 %v22253_v29  ;;  %v22254_v29 = vpack.c.bf16 %v19139_v53, %v19130_v5  ;;  %v16749_v5 = vld [vmem:[#allocation13 + $0x240] ss:$8 sps:$4 sm:$0xff]  }
 0x39f   :  { %14336 = vmatprep.mubr.msk.bf16.mxu1 %vm1171_vm2, %v1712_v14  ;;  %v19346_v56 = vpop.f32.mrb[128].mxu0  ;;  %v16748_v14 = vld [vmem:[#allocation7 + $0x398] ss:$8 sps:$4 sm:$0xff]  }
 0x3a0   :  { %v19348_v34 = vpop.f32.mrb[129].mxu0 }
 0x3a1   :  { %4940 = vmatpush1.bf16.msra.mxu0 %v18808_v4  ;;  %v2363_v61 = vpop.f32.mrb[130].mxu0 }
 0x3a2   :  { %4941 = vmatprep.subr.bf16.mxu0 %v18822_v23  ;;  %v2364_v7 = vpop.f32.mrb[131].mxu0 }
 0x3a3   :  { %v22257_v7 = vld [vmem:[#allocation54_spill] sm:$0xff] }
 0x3a4   :  { %4323 = vmatmul.mubr.bf16.gmra.mrb[236].mxu0 %v16742_v28 }
 0x3a5   :  { %4942 = vmatpush1.bf16.msra.mxu0 %v18820_v22  ;;  %14572 = vmatprep.mubr.msk.bf16.mxu0 %vm823_vm0, %v16746_v35  ;;  %v16757_v35 = vld [vmem:[#allocation13 + $0x254] ss:$8 sps:$4 sm:$0xff]  }
 0x3a6   :  { %4943 = vmatprep.subr.bf16.mxu0 %v18834_v43  ;;  %2024 = vmatmul.mubr.bf16.gmra.mrb[84].mxu1 %v1711_v9  ;;  %v22260_v9 = vpack.c.bf16 %v19161_v55, %v19155_v19  ;;  %v16760_v19 = vld [vmem:[#allocation13 + $0x260] ss:$8 sps:$4 sm:$0xff]  }
 0x3a7   :  { %14395 = vmatprep.mubr.msk.bf16.mxu1 %vm1171_vm2, %v22254_v29  ;;  %v19361_v46 = vpop.f32.mrb[132].mxu0  ;;  %v22258_v29 = vld [vmem:[#allocation53_spill] sm:$0xff]  ;;  %v16767_v55 = vld [vmem:[#allocation7 + $0x3cc] ss:$8 sps:$4 sm:$0xff]  }
 0x3a8   :  { %22255 = vst [vmem:[#allocation47_spill] sm:$0xff] %v19361_v46  ;;  %v19363_v61 = vpop.f32.mrb[133].mxu0  ;;  %v16755_v46 = vld [vmem:[#allocation13 + $0x250] ss:$8 sps:$4 sm:$0xff]  }
 0x3a9   :  { %4944 = vmatpush1.bf16.msra.mxu0 %v18832_v42  ;;  %v19366_v28 = vpop.f32.mrb[134].mxu0 }
 0x3aa   :  { %22256 = vst [vmem:[#allocation36_spill] sm:$0xff] %v19366_v28  ;;  %14635 = vmatprep.subr.msk.bf16.mxu0 %vm857_vm1, %v18842_v0  ;;  %v19372_v31 = vpop.f32.mrb[135].mxu0  ;;  %v22259_v0 = vpack.c.bf16 %v22257_v7, %v22258_v29  ;;  %v16762_v28 = vld [vmem:[#allocation13 + $0x264] ss:$8 sps:$4 sm:$0xff]   ;;  %v22262_v7 = vpack.c.bf16 %v19181_v25, %v19175_v2  ;;  %v16770_v2 = vld [vmem:[#allocation13 + $0x280] ss:$8 sps:$4 sm:$0xff]  }
 0x3ab   :  { %v16775_v25 = vld [vmem:[#allocation7 + $0x3dc] ss:$8 sps:$4 sm:$0xff]  }
 0x3ac   :  { %4333 = vmatmul.mubr.bf16.gmra.mrb[240].mxu0 %v16748_v14  ;;  %v16754_v14 = vld [vmem:[#allocation7 + $0x3a8] ss:$8 sps:$4 sm:$0xff]  }
 0x3ad   :  { %4946 = vmatpush1.bf16.msra.mxu0 %v18845_v63  ;;  %14573 = vmatprep.mubr.msk.bf16.mxu0 %vm823_vm0, %v16752_v32  ;;  %v16758_v32 = vld [vmem:[#allocation7 + $0x3bc] ss:$8 sps:$4 sm:$0xff]  }
 0x3ae   :  { %5600 = vmatprep.subr.bf16.mxu0 %v18726_v13  ;;  %2599 = vmatmul.mubr.bf16.vlgmr.msra.gmra.mrb[44].mxu1 %v22259_v0  ;;  %v16763_v0 = vld [vmem:[#allocation7 + $0x3b8] ss:$8 sps:$4 sm:$0xff]  }
 0x3af   :  { %3242 = vmatpush1.bf16.msra.mxu1 %v16749_v5  ;;  %14396 = vmatprep.mubr.msk.bf16.mxu1 %vm1171_vm2, %v22260_v9  ;;  %v19386_v53 = vpop.f32.mrb[136].mxu0  ;;  %v16766_v9 = vld [vmem:[#allocation13 + $0x274] ss:$8 sps:$4 sm:$0xff]  }
 0x3b0   :  { %3243 = vmatprep.subr.bf16.mxu1 %v16757_v35  ;;  %v19388_v63 = vpop.f32.mrb[137].mxu0  ;;  %v22261_v35 = vpack.c.bf16 %v19157_v36, %v19153_v11  ;;  %v16769_v36 = vld [vmem:[#allocation7 + $0x3c8] ss:$8 sps:$4 sm:$0xff]  }
 0x3b1   :  { %v19390_v13 = vpop.f32.mrb[138].mxu0 }
 0x3b2   :  { %v19394_v5 = vpop.f32.mrb[139].mxu0 }
 0x3b3   :  { %3244 = vmatpush1.bf16.msra.mxu1 %v16755_v46  ;;  %v16764_v46 = vld [vmem:[#allocation13 + $0x270] ss:$8 sps:$4 sm:$0xff]  }
 0x3b4   :  { %4343 = vmatmul.mubr.bf16.gmra.mrb[244].mxu0 %v16754_v14  ;;  %3245 = vmatprep.subr.bf16.mxu1 %v16762_v28  ;;  %v16772_v14 = vld [vmem:[#allocation13 + $0x284] ss:$8 sps:$4 sm:$0xff]  }
 0x3b5   :  { %14574 = vmatprep.mubr.msk.bf16.mxu0 %vm823_vm0, %v16758_v32 }
 0x3b6   :  { %2609 = vmatmul.mubr.bf16.gmra.mrb[48].mxu1 %v22261_v35  ;;  %v22264_v35 = vpack.c.bf16 %v19201_v3, %v19195_v54  ;;  %v16781_v54 = vld [vmem:[#allocation13 + $0x2a0] ss:$8 sps:$4 sm:$0xff]  }
 0x3b7   :  { %14397 = vmatprep.mubr.msk.bf16.mxu1 %vm1171_vm2, %v22262_v7  ;;  %3246 = vmatpush1.bf16.msra.mxu1 %v16760_v19  ;;  %v19406_v29 = vpop.f32.mrb[140].mxu0  ;;  %v16778_v19 = vld [vmem:[#allocation13 + $0x294] ss:$8 sps:$4 sm:$0xff]   ;;  %v16776_v7 = vld [vmem:[#allocation13 + $0x290] ss:$8 sps:$4 sm:$0xff]  }
 0x3b8   :  { %3247 = vmatprep.subr.bf16.mxu1 %v16766_v9  ;;  %v19408_v28 = vpop.f32.mrb[141].mxu0  ;;  %v22263_v9 = vpack.c.bf16 %v19177_v58, %v19173_v30  ;;  %v22269_v30 = vpack.c.bf16 %v19221_v47, %v19215_v48  ;;  %v16773_v3 = vld [vmem:[#allocation7 + $0x3d8] ss:$8 sps:$4 sm:$0xff]   ;;  %v16786_v47 = vld [vmem:[#allocation7 + $0x3f4] ss:$8 sps:$4 sm:$0xff]  }
 0x3b9   :  { %v19410_v32 = vpop.f32.mrb[142].mxu0  ;;  %v16793_v48 = vld [vmem:[#allocation13 + $0x2c0] ss:$8 sps:$4 sm:$0xff]  }
 0x3ba   :  { %v19414_v11 = vpop.f32.mrb[143].mxu0 }
 0x3bb   :  { %3248 = vmatpush1.bf16.msra.mxu1 %v16764_v46 }
 0x3bc   :  { %4353 = vmatmul.mubr.bf16.gmra.mrb[248].mxu0 %v16763_v0  ;;  %3249 = vmatprep.subr.bf16.mxu1 %v16772_v14  ;;  %v16783_v0 = vld [vmem:[#allocation13 + $0x2a4] ss:$8 sps:$4 sm:$0xff]  }
 0x3bd   :  { %14575 = vmatprep.mubr.msk.bf16.mxu0 %vm823_vm0, %v16767_v55 }
 0x3be   :  { %2619 = vmatmul.mubr.bf16.gmra.mrb[52].mxu1 %v22263_v9 }
 0x3bf   :  { %14398 = vmatprep.mubr.msk.bf16.mxu1 %vm1171_vm2, %v22264_v35  ;;  %3250 = vmatpush1.bf16.msra.mxu1 %v16770_v2  ;;  %v19426_v46 = vpop.f32.mrb[144].mxu0  ;;  %v16789_v2 = vld [vmem:[#allocation13 + $0x2b4] ss:$8 sps:$4 sm:$0xff]  }
 0x3c0   :  { %22265 = vst [vmem:[#allocation39_spill] sm:$0xff] %v19426_v46  ;;  %3251 = vmatprep.subr.bf16.mxu1 %v16778_v19  ;;  %v19428_v14 = vpop.f32.mrb[145].mxu0  ;;  %v22267_v19 = vld [vmem:[#allocation55_spill] sm:$0xff]  ;;  %v4120_v35 = vld [vmem:[#allocation7 + $0x3e8] sm:$0x11] }
 0x3c1   :  { %v19430_v55 = vpop.f32.mrb[146].mxu0  ;;  %v22268_v9 = vpack.c.bf16 %v19197_v33, %v22267_v19  ;;  %v14564_v19 = vcombine.low %v4120_v35, %v4120_v35 }
 0x3c2   :  { %22266 = vst [vmem:[#allocation50_spill] sm:$0xff] %v19430_v55  ;;  %v19434_v58 = vpop.f32.mrb[147].mxu0 }
 0x3c3   :  { %3252 = vmatpush1.bf16.msra.mxu1 %v16776_v7  ;;  %v16787_v7 = vld [vmem:[#allocation13 + $0x2b0] ss:$8 sps:$4 sm:$0xff]  }
 0x3c4   :  { %4363 = vmatmul.mubr.bf16.gmra.mrb[252].mxu0 %v16769_v36  ;;  %3253 = vmatprep.subr.bf16.mxu1 %v16783_v0  ;;  %v16795_v36 = vld [vmem:[#allocation13 + $0x2c4] ss:$8 sps:$4 sm:$0xff]  }
 0x3c5   :  { %14576 = vmatprep.mubr.msk.bf16.mxu0 %vm823_vm0, %v16775_v25  ;;  %v14565_v25 = vcombine.high %v4120_v35, %v4120_v35  ;;  %v22273_v35 = vpack.c.bf16 %v19237_v10, %v19233_v57  ;;  %v16802_v57 = vld [vmem:[#allocation7 + $0x420] ss:$8 sps:$4 sm:$0xff]  }
 0x3c6   :  { %2629 = vmatmul.mubr.bf16.gmra.mrb[56].mxu1 %v22268_v9  ;;  %v16799_v9 = vld [vmem:[#allocation13 + $0x2d0] ss:$8 sps:$4 sm:$0xff]  }
 0x3c7   :  { %14399 = vmatprep.mubr.msk.bf16.mxu1 %vm1171_vm2, %v22269_v30  ;;  %3254 = vmatpush1.bf16.msra.mxu1 %v16781_v54  ;;  %v19446_v46 = vpop.f32.mrb[148].mxu0  ;;  %v16801_v30 = vld [vmem:[#allocation13 + $0x2d4] ss:$8 sps:$4 sm:$0xff]   ;;  %v22271_v54 = vpack.c.bf16 %v19217_v40, %v19213_v44  ;;  %v16805_v44 = vld [vmem:[#allocation13 + $0x2e0] ss:$8 sps:$4 sm:$0xff]   ;;  %v22287_v40 = vld [vmem:[#allocation40_spill] sm:$0xff] }
 0x3c8   :  { %22270 = vst [vmem:[#allocation49_spill] sm:$0xff] %v19446_v46  ;;  %3255 = vmatprep.subr.bf16.mxu1 %v16789_v2  ;;  %v19448_v0 = vpop.f32.mrb[149].mxu0  ;;  %v22272_v2 = vpack.c.bf16 %v19241_v15, %v19235_v16  ;;  %v16813_v15 = vld [vmem:[#allocation13 + $0x2f4] ss:$8 sps:$4 sm:$0xff]  }
 0x3c9   :  { %v19450_v55 = vpop.f32.mrb[150].mxu0 }
 0x3ca   :  { %v19452_v33 = vpop.f32.mrb[151].mxu0 }
 0x3cb   :  { %3256 = vmatpush1.bf16.msra.mxu1 %v16787_v7 }
 0x3cc   :  { %4373 = vmatmul.mubr.bf16.gmra.mrb[0].mxu0 %v16773_v3  ;;  %3257 = vmatprep.subr.bf16.mxu1 %v16795_v36  ;;  %v16807_v3 = vld [vmem:[#allocation13 + $0x2e4] ss:$8 sps:$4 sm:$0xff]  }
 0x3cd   :  { %14577 = vmatprep.mubr.msk.bf16.mxu0 %vm823_vm0, %v14565_v25 }
 0x3ce   :  { %2639 = vmatmul.mubr.bf16.gmra.mrb[60].mxu1 %v22271_v54 }
 0x3cf   :  { %14400 = vmatprep.mubr.msk.bf16.mxu1 %vm1171_vm2, %v22272_v2  ;;  %3258 = vmatpush1.bf16.msra.mxu1 %v16793_v48  ;;  %v19466_v7 = vpop.f32.mrb[152].mxu0  ;;  %v22274_v48 = vpack.c.bf16 %v19261_v50, %v19255_v62  ;;  %v16784_v2 = vld [vmem:[#allocation7 + $0x3f0] ss:$8 sps:$4 sm:$0xff]   ;;  %v22275_v50 = vpack.c.bf16 %v19257_v49, %v19253_v20  ;;  %v16804_v20 = vld [vmem:[#allocation7 + $0x424] ss:$8 sps:$4 sm:$0xff]  }
 0x3d0   :  { %3259 = vmatprep.subr.bf16.mxu1 %v16801_v30  ;;  %v19468_v36 = vpop.f32.mrb[153].mxu0  ;;  %v16811_v30 = vld [vmem:[#allocation13 + $0x2f0] ss:$8 sps:$4 sm:$0xff]  }
 0x3d1   :  { %v19470_v25 = vpop.f32.mrb[154].mxu0  ;;  %v16810_v62 = vld [vmem:[#allocation7 + $0x434] ss:$8 sps:$4 sm:$0xff]  }
 0x3d2   :  { %v19472_v46 = vpop.f32.mrb[155].mxu0 }
 0x3d3   :  { %3260 = vmatpush1.bf16.msra.mxu1 %v16799_v9 }
 0x3d4   :  { %4383 = vmatmul.mubr.bf16.gmra.mrb[4].mxu0 %v14564_v19  ;;  %3261 = vmatprep.subr.bf16.mxu1 %v16807_v3  ;;  %v16819_v19 = vld [vmem:[#allocation13 + $0x304] ss:$8 sps:$4 sm:$0xff]   ;;  %v16792_v3 = vld [vmem:[#allocation7 + $0x404] ss:$8 sps:$4 sm:$0xff]  }
 0x3d5   :  { %14636 = vmatprep.mubr.msk.bf16.mxu0 %vm823_vm0, %v16786_v47 }
 0x3d6   :  { %2649 = vmatmul.mubr.bf16.gmra.mrb[64].mxu1 %v22273_v35  ;;  %v16790_v35 = vld [vmem:[#allocation7 + $0x400] ss:$8 sps:$4 sm:$0xff]  }
 0x3d7   :  { %14401 = vmatprep.mubr.msk.bf16.mxu1 %vm1171_vm2, %v22274_v48  ;;  %3262 = vmatpush1.bf16.msra.mxu1 %v16805_v44  ;;  %v19486_v54 = vpop.f32.mrb[156].mxu0  ;;  %v22276_v44 = vpack.c.bf16 %v19285_v18, %v19277_v37  ;;  %v22277_v18 = vpack.c.bf16 %v19280_v60, %v19275_v51  ;;  %v22280_v37 = vld [vmem:[#allocation37_spill] sm:$0xff] }
 0x3d8   :  { %3263 = vmatprep.subr.bf16.mxu1 %v16813_v15  ;;  %v19488_v9 = vpop.f32.mrb[157].mxu0 }
 0x3d9   :  { %v19490_v47 = vpop.f32.mrb[158].mxu0 }
 0x3da   :  { %v19494_v10 = vpop.f32.mrb[159].mxu0 }
 0x3db   :  { %3264 = vmatpush1.bf16.msra.mxu1 %v16811_v30  ;;  %v16798_v30 = vld [vmem:[#allocation7 + $0x414] ss:$8 sps:$4 sm:$0xff]  }
 0x3dc   :  { %4958 = vmatmul.mubr.bf16.vlgmr.msra.gmra.mrb[8].mxu0 %v16784_v2  ;;  %3916 = vmatprep.subr.bf16.mxu1 %v16819_v19  ;;  %v22278_v19 = vpack.c.bf16 %v19309_v8, %v19301_v24  ;;  %v22281_v8 = vld [vmem:[#allocation33_spill] sm:$0xff] }
 0x3dd   :  { %5601 = vmatpush1.bf16.msra.mxu0 %v18724_v12  ;;  %14637 = vmatprep.mubr.msk.bf16.mxu0 %vm823_vm0, %v16792_v3 }
 0x3de   :  { %5602 = vmatprep.subr.bf16.mxu0 %v18738_v27  ;;  %2659 = vmatmul.mubr.bf16.gmra.mrb[68].mxu1 %v22275_v50  ;;  %v16796_v50 = vld [vmem:[#allocation7 + $0x410] ss:$8 sps:$4 sm:$0xff]  }
 0x3df   :  { %14402 = vmatprep.mubr.msk.bf16.mxu1 %vm1171_vm2, %v22276_v44  ;;  %v19508_v15 = vpop.f32.mrb[160].mxu0 }
 0x3e0   :  { %v19510_v48 = vpop.f32.mrb[161].mxu0 }
 0x3e1   :  { %5603 = vmatpush1.bf16.msra.mxu0 %v18736_v26  ;;  %v19513_v2 = vpop.f32.mrb[162].mxu0 }
 0x3e2   :  { %5604 = vmatprep.subr.bf16.mxu0 %v18750_v41  ;;  %v19518_v49 = vpop.f32.mrb[163].mxu0 }
 0x3e4   :  { %4968 = vmatmul.mubr.bf16.gmra.mrb[12].mxu0 %v16790_v35  ;;  %v22279_v35 = vld [vmem:[#allocation34_spill] sm:$0xff] }
 0x3e5   :  { %5605 = vmatpush1.bf16.msra.mxu0 %v22235_v17  ;;  %14638 = vmatprep.mubr.msk.bf16.mxu0 %vm823_vm0, %v16798_v30 }
 0x3e6   :  { %5606 = vmatprep.subr.bf16.mxu0 %v22236_v21  ;;  %2669 = vmatmul.mubr.bf16.gmra.mrb[72].mxu1 %v22277_v18  ;;  %v22282_v18 = vpack.c.bf16 %v19304_v52, %v22281_v8 }
 0x3e7   :  { %14403 = vmatprep.mubr.msk.bf16.mxu1 %vm1171_vm2, %v22278_v19  ;;  %v19532_v3 = vpop.f32.mrb[164].mxu0  ;;  %v22283_v19 = vpack.c.bf16 %v19333_v6, %v19325_v1  ;;  %v2387_v1 = vpack.c.bf16 %v19348_v34, %v19348_v34 }
 0x3e8   :  { %v19534_v44 = vpop.f32.mrb[165].mxu0 }
 0x3e9   :  { %5607 = vmatpush1.bf16.msra.mxu0 %v22279_v35  ;;  %v19537_v30 = vpop.f32.mrb[166].mxu0 }
 0x3ea   :  { %5608 = vmatprep.subr.bf16.mxu0 %v22280_v37  ;;  %v19542_v60 = vpop.f32.mrb[167].mxu0 }
 0x3ec   :  { %4978 = vmatmul.mubr.bf16.gmra.mrb[16].mxu0 %v16796_v50  ;;  %v22285_v50 = vld [vmem:[#allocation38_spill] sm:$0xff] }
 0x3ed   :  { %5609 = vmatpush1.bf16.msra.mxu0 %v22242_v59  ;;  %14639 = vmatprep.mubr.msk.bf16.mxu0 %vm823_vm0, %v16804_v20 }
 0x3ee   :  { %5610 = vmatprep.subr.bf16.mxu0 %v22243_v39  ;;  %2679 = vmatmul.mubr.bf16.gmra.mrb[76].mxu1 %v22282_v18  ;;  %v22288_v18 = vld [vmem:[#allocation48_spill] sm:$0xff] }
 0x3ef   :  { %14404 = vmatprep.mubr.msk.bf16.mxu1 %vm1171_vm2, %v22283_v19  ;;  %v19556_v51 = vpop.f32.mrb[168].mxu0  ;;  %v22289_v19 = vld [vmem:[#allocation35_spill] sm:$0xff] }
 0x3f0   :  { %22284 = vst [vmem:[#allocation41_spill] sm:$0xff] %v19556_v51  ;;  %v19558_v24 = vpop.f32.mrb[169].mxu0  ;;  %v22290_v16 = vpack.c.bf16 %v22288_v18, %v22289_v19  ;;  %v16808_v51 = vld [vmem:[#allocation7 + $0x430] ss:$8 sps:$4 sm:$0xff]   ;;  %v22294_v19 = vld [vmem:[#allocation45_spill] sm:$0xff] }
 0x3f1   :  { %5611 = vmatpush1.bf16.msra.mxu0 %v22285_v50  ;;  %v19561_v20 = vpop.f32.mrb[170].mxu0 }
 0x3f2   :  { %22286 = vst [vmem:[#allocation52_spill] sm:$0xff] %v19561_v20  ;;  %5612 = vmatprep.subr.bf16.mxu0 %v22287_v40  ;;  %v19566_v8 = vpop.f32.mrb[171].mxu0  ;;  %v2386_v20 = vpack.c.bf16 %v19346_v56, %v19346_v56  ;;  %v16822_v56 = vld [vmem:[#allocation7 + $0x454] ss:$8 sps:$4 sm:$0xff]  }
 0x3f4   :  { %4988 = vmatmul.mubr.bf16.gmra.mrb[20].mxu0 %v16802_v57  ;;  %v16816_v57 = vld [vmem:[#allocation7 + $0x444] ss:$8 sps:$4 sm:$0xff]  }
 0x3f5   :  { %5613 = vmatpush1.bf16.msra.mxu0 %v18796_v45  ;;  %14640 = vmatprep.mubr.msk.bf16.mxu0 %vm823_vm0, %v16810_v62 }
 0x3f6   :  { %5614 = vmatprep.subr.bf16.mxu0 %v22250_v38  ;;  %2689 = vmatmul.mubr.bf16.gmra.mrb[80].mxu1 %v22290_v16  ;;  %v22291_v16 = vpack.c.bf16 %v19372_v31, %v19363_v61  ;;  %v16817_v61 = vld [vmem:[#allocation13 + $0x300] ss:$8 sps:$4 sm:$0xff]  }
 0x3f7   :  { %14405 = vmatprep.mubr.msk.bf16.mxu1 %vm1171_vm2, %v2387_v1  ;;  %v19579_v52 = vpop.f32.mrb[172].mxu0 }
 0x3f8   :  { %v19581_v34 = vpop.f32.mrb[173].mxu0 }
 0x3f9   :  { %5615 = vmatpush1.bf16.msra.mxu0 %v18808_v4  ;;  %v3038_v6 = vpop.f32.mrb[174].mxu0 }
 0x3fa   :  { %5616 = vmatprep.subr.bf16.mxu0 %v18822_v23  ;;  %v3039_v62 = vpop.f32.mrb[175].mxu0  ;;  %v16814_v6 = vld [vmem:[#allocation7 + $0x440] ss:$8 sps:$4 sm:$0xff]  }
 0x3fb   :  { %v16825_v62 = vld [vmem:[#allocation13 + $0x314] ss:$8 sps:$4 sm:$0xff]  }
 0x3fc   :  { %4998 = vmatmul.mubr.bf16.gmra.mrb[24].mxu0 %v16808_v51 }
 0x3fd   :  { %5617 = vmatpush1.bf16.msra.mxu0 %v18820_v22  ;;  %14641 = vmatprep.mubr.msk.bf16.mxu0 %vm823_vm0, %v16816_v57  ;;  %v22298_v22 = vld [vmem:[#allocation47_spill] sm:$0xff] }
 0x3fe   :  { %5618 = vmatprep.subr.bf16.mxu0 %v18834_v43  ;;  %2699 = vmatmul.mubr.bf16.gmra.mrb[84].mxu1 %v2386_v20  ;;  %v22297_v43 = vld [vmem:[#allocation36_spill] sm:$0xff]  ;;  %v22300_v20 = vpack.c.bf16 %v19394_v5, %v19388_v63  ;;  %v16829_v63 = vld [vmem:[#allocation13 + $0x320] ss:$8 sps:$4 sm:$0xff]  }
 0x3ff   :  { %14464 = vmatprep.mubr.msk.bf16.mxu1 %vm1171_vm2, %v22291_v16  ;;  %v19594_v1 = vpop.f32.mrb[176].mxu0  ;;  %v22295_v16 = vld [vmem:[#allocation46_spill] sm:$0xff]  ;;  %v16837_v5 = vld [vmem:[#allocation7 + $0x474] ss:$8 sps:$4 sm:$0xff]  }
 0x400   :  { %22292 = vst [vmem:[#allocation51_spill] sm:$0xff] %v19594_v1  ;;  %v19596_v18 = vpop.f32.mrb[177].mxu0  ;;  %v16823_v1 = vld [vmem:[#allocation13 + $0x310] ss:$8 sps:$4 sm:$0xff]  }
 0x401   :  { %5619 = vmatpush1.bf16.msra.mxu0 %v18832_v42  ;;  %v19599_v51 = vpop.f32.mrb[178].mxu0  ;;  %v22296_v42 = vld [vmem:[#allocation32_spill] sm:$0xff] }
 0x402   :  { %22293 = vst [vmem:[#allocation54_spill] sm:$0xff] %v19599_v51  ;;  %14704 = vmatprep.subr.msk.bf16.mxu0 %vm857_vm1, %v22294_v19  ;;  %v19605_v57 = vpop.f32.mrb[179].mxu0  ;;  %v22299_v19 = vpack.c.bf16 %v22297_v43, %v22298_v22  ;;  %v16831_v51 = vld [vmem:[#allocation13 + $0x324] ss:$8 sps:$4 sm:$0xff]   ;;  %v16826_v22 = vld [vmem:[#allocation7 + $0x460] ss:$8 sps:$4 sm:$0xff]  }
 0x404   :  { %5008 = vmatmul.mubr.bf16.gmra.mrb[28].mxu0 %v16814_v6  ;;  %v16820_v6 = vld [vmem:[#allocation7 + $0x450] ss:$8 sps:$4 sm:$0xff]  }
 0x405   :  { %5621 = vmatpush1.bf16.msra.mxu0 %v22295_v16  ;;  %14642 = vmatprep.mubr.msk.bf16.mxu0 %vm823_vm0, %v16822_v56  ;;  %v16828_v56 = vld [vmem:[#allocation7 + $0x464] ss:$8 sps:$4 sm:$0xff]  }
 0x406   :  { %6275 = vmatprep.subr.bf16.mxu0 %v22296_v42  ;;  %3274 = vmatmul.mubr.bf16.vlgmr.msra.gmra.mrb[44].mxu1 %v22299_v19  ;;  %v16834_v19 = vld [vmem:[#allocation13 + $0x334] ss:$8 sps:$4 sm:$0xff]  }
 0x407   :  { %3917 = vmatpush1.bf16.msra.mxu1 %v16817_v61  ;;  %14465 = vmatprep.mubr.msk.bf16.mxu1 %vm1171_vm2, %v22300_v20  ;;  %v19619_v31 = vpop.f32.mrb[180].mxu0  ;;  %v22301_v20 = vpack.c.bf16 %v19390_v13, %v19386_v53  ;;  %v22302_v61 = vpack.c.bf16 %v19414_v11, %v19408_v28  ;;  %v16838_v28 = vld [vmem:[#allocation13 + $0x340] ss:$8 sps:$4 sm:$0xff]  }
 0x408   :  { %3918 = vmatprep.subr.bf16.mxu1 %v16825_v62  ;;  %v19621_v16 = vpop.f32.mrb[181].mxu0  ;;  %v16835_v13 = vld [vmem:[#allocation7 + $0x470] ss:$8 sps:$4 sm:$0xff]   ;;  %v16843_v11 = vld [vmem:[#allocation7 + $0x484] ss:$8 sps:$4 sm:$0xff]  }
 0x409   :  { %v19623_v42 = vpop.f32.mrb[182].mxu0 }
 0x40a   :  { %v19627_v43 = vpop.f32.mrb[183].mxu0 }
 0x40b   :  { %3919 = vmatpush1.bf16.msra.mxu1 %v16823_v1  ;;  %v16832_v1 = vld [vmem:[#allocation13 + $0x330] ss:$8 sps:$4 sm:$0xff]  }
 0x40c   :  { %5018 = vmatmul.mubr.bf16.gmra.mrb[32].mxu0 %v16820_v6  ;;  %3920 = vmatprep.subr.bf16.mxu1 %v16831_v51  ;;  %v16840_v6 = vld [vmem:[#allocation13 + $0x344] ss:$8 sps:$4 sm:$0xff]  }
 0x40d   :  { %14643 = vmatprep.mubr.msk.bf16.mxu0 %vm823_vm0, %v16828_v56 }
 0x40e   :  { %3284 = vmatmul.mubr.bf16.gmra.mrb[48].mxu1 %v22301_v20  ;;  %v22305_v20 = vpack.c.bf16 %v19434_v58, %v19428_v14  ;;  %v16849_v14 = vld [vmem:[#allocation13 + $0x360] ss:$8 sps:$4 sm:$0xff]   ;;  %v16841_v58 = vld [vmem:[#allocation7 + $0x480] ss:$8 sps:$4 sm:$0xff]  }
 0x40f   :  { %14466 = vmatprep.mubr.msk.bf16.mxu1 %vm1171_vm2, %v22302_v61  ;;  %3921 = vmatpush1.bf16.msra.mxu1 %v16829_v63  ;;  %v19639_v62 = vpop.f32.mrb[184].mxu0  ;;  %v16846_v63 = vld [vmem:[#allocation13 + $0x354] ss:$8 sps:$4 sm:$0xff]   ;;  %v16844_v61 = vld [vmem:[#allocation13 + $0x350] ss:$8 sps:$4 sm:$0xff]  }
 0x410   :  { %22303 = vst [vmem:[#allocation53_spill] sm:$0xff] %v19639_v62  ;;  %3922 = vmatprep.subr.bf16.mxu1 %v16834_v19  ;;  %v19641_v51 = vpop.f32.mrb[185].mxu0  ;;  %v22304_v19 = vpack.c.bf16 %v19410_v32, %v19406_v29  ;;  %v4795_v62 = vld [vmem:[#allocation7 + $0x490] sm:$0x11]  ;;  %v22311_v29 = vpack.c.bf16 %v19452_v33, %v19448_v0  ;;  %v16854_v33 = vld [vmem:[#allocation7 + $0x49c] ss:$8 sps:$4 sm:$0xff]  }
 0x411   :  { %v19643_v56 = vpop.f32.mrb[186].mxu0  ;;  %v16858_v0 = vld [vmem:[#allocation13 + $0x380] ss:$8 sps:$4 sm:$0xff]  }
 0x412   :  { %v19647_v53 = vpop.f32.mrb[187].mxu0 }
 0x413   :  { %3923 = vmatpush1.bf16.msra.mxu1 %v16832_v1 }
 0x414   :  { %5028 = vmatmul.mubr.bf16.gmra.mrb[36].mxu0 %v16826_v22  ;;  %3924 = vmatprep.subr.bf16.mxu1 %v16840_v6  ;;  %v16851_v22 = vld [vmem:[#allocation13 + $0x364] ss:$8 sps:$4 sm:$0xff]  }
 0x415   :  { %14644 = vmatprep.mubr.msk.bf16.mxu0 %vm823_vm0, %v16837_v5 }
 0x416   :  { %3294 = vmatmul.mubr.bf16.gmra.mrb[52].mxu1 %v22304_v19  ;;  %v22309_v19 = vld [vmem:[#allocation39_spill] sm:$0xff] }
 0x417   :  { %14467 = vmatprep.mubr.msk.bf16.mxu1 %vm1171_vm2, %v22305_v20  ;;  %3925 = vmatpush1.bf16.msra.mxu1 %v16838_v28  ;;  %v19659_v1 = vpop.f32.mrb[188].mxu0  ;;  %v16857_v28 = vld [vmem:[#allocation13 + $0x374] ss:$8 sps:$4 sm:$0xff]  }
 0x418   :  { %22306 = vst [vmem:[#allocation55_spill] sm:$0xff] %v19659_v1  ;;  %3926 = vmatprep.subr.bf16.mxu1 %v16846_v63  ;;  %v19661_v6 = vpop.f32.mrb[189].mxu0  ;;  %v22308_v63 = vld [vmem:[#allocation50_spill] sm:$0xff] }
 0x419   :  { %v19663_v5 = vpop.f32.mrb[190].mxu0  ;;  %v22310_v20 = vpack.c.bf16 %v22308_v63, %v22309_v19 }
 0x41a   :  { %22307 = vst [vmem:[#allocation34_spill] sm:$0xff] %v19663_v5  ;;  %v19667_v32 = vpop.f32.mrb[191].mxu0 }
 0x41b   :  { %3927 = vmatpush1.bf16.msra.mxu1 %v16844_v61  ;;  %v16855_v61 = vld [vmem:[#allocation13 + $0x370] ss:$8 sps:$4 sm:$0xff]  }
 0x41c   :  { %5038 = vmatmul.mubr.bf16.gmra.mrb[40].mxu0 %v16835_v13  ;;  %3928 = vmatprep.subr.bf16.mxu1 %v16851_v22  ;;  %v16860_v13 = vld [vmem:[#allocation13 + $0x384] ss:$8 sps:$4 sm:$0xff]  }
 0x41d   :  { %14645 = vmatprep.mubr.msk.bf16.mxu0 %vm823_vm0, %v16843_v11  ;;  %v14634_v11 = vcombine.high %v4795_v62, %v4795_v62 }
 0x41e   :  { %3304 = vmatmul.mubr.bf16.gmra.mrb[56].mxu1 %v22310_v20  ;;  %v22315_v20 = vpack.c.bf16 %v19472_v46, %v19468_v36  ;;  %v16864_v46 = vld [vmem:[#allocation13 + $0x3a0] ss:$8 sps:$4 sm:$0xff]  }
 0x41f   :  { %14468 = vmatprep.mubr.msk.bf16.mxu1 %vm1171_vm2, %v22311_v29  ;;  %3929 = vmatpush1.bf16.msra.mxu1 %v16849_v14  ;;  %v19679_v1 = vpop.f32.mrb[192].mxu0  ;;  %v16863_v29 = vld [vmem:[#allocation13 + $0x394] ss:$8 sps:$4 sm:$0xff]  }
 0x420   :  { %22312 = vst [vmem:[#allocation37_spill] sm:$0xff] %v19679_v1  ;;  %3930 = vmatprep.subr.bf16.mxu1 %v16857_v28  ;;  %v19681_v22 = vpop.f32.mrb[193].mxu0  ;;  %v22313_v14 = vld [vmem:[#allocation49_spill] sm:$0xff]  ;;  %v14633_v1 = vcombine.low %v4795_v62, %v4795_v62 }
 0x421   :  { %v19683_v5 = vpop.f32.mrb[194].mxu0  ;;  %v22314_v28 = vpack.c.bf16 %v19450_v55, %v22313_v14  ;;  %v16869_v62 = vld [vmem:[#allocation13 + $0x3b4] ss:$8 sps:$4 sm:$0xff]  }
 0x422   :  { %v19687_v19 = vpop.f32.mrb[195].mxu0 }
 0x423   :  { %3931 = vmatpush1.bf16.msra.mxu1 %v16855_v61  ;;  %v16861_v61 = vld [vmem:[#allocation13 + $0x390] ss:$8 sps:$4 sm:$0xff]  }
 0x424   :  { %5048 = vmatmul.mubr.bf16.gmra.mrb[44].mxu0 %v16841_v58  ;;  %3932 = vmatprep.subr.bf16.mxu1 %v16860_v13  ;;  %v16866_v58 = vld [vmem:[#allocation13 + $0x3a4] ss:$8 sps:$4 sm:$0xff]  }
 0x425   :  { %14646 = vmatprep.mubr.msk.bf16.mxu0 %vm823_vm0, %v14634_v11 }
 0x426   :  { %3314 = vmatmul.mubr.bf16.gmra.mrb[60].mxu1 %v22314_v28  ;;  %v16867_v28 = vld [vmem:[#allocation13 + $0x3b0] ss:$8 sps:$4 sm:$0xff]  }
 0x427   :  { %14469 = vmatprep.mubr.msk.bf16.mxu1 %vm1171_vm2, %v22315_v20  ;;  %3933 = vmatpush1.bf16.msra.mxu1 %v16858_v0  ;;  %v19699_v63 = vpop.f32.mrb[196].mxu0  ;;  %v22316_v0 = vpack.c.bf16 %v19470_v25, %v19466_v7 }
 0x428   :  { %3934 = vmatprep.subr.bf16.mxu1 %v16863_v29  ;;  %v19701_v13 = vpop.f32.mrb[197].mxu0  ;;  %v22317_v29 = vpack.c.bf16 %v19494_v10, %v19488_v9  ;;  %v22318_v10 = vpack.c.bf16 %v19490_v47, %v19486_v54 }
 0x429   :  { %v19703_v11 = vpop.f32.mrb[198].mxu0 }
 0x42a   :  { %v19707_v14 = vpop.f32.mrb[199].mxu0 }
 0x42b   :  { %3935 = vmatpush1.bf16.msra.mxu1 %v16861_v61  ;;  %v3727_v36 = vpack.c.bf16 %v19707_v14, %v19701_v13  ;;  %v16852_v61 = vld [vmem:[#allocation7 + $0x498] ss:$8 sps:$4 sm:$0xff]  }
 0x42c   :  { %5058 = vmatmul.mubr.bf16.gmra.mrb[48].mxu0 %v14633_v1  ;;  %3936 = vmatprep.subr.bf16.mxu1 %v16866_v58  ;;  %v16872_v1 = vld [vmem:[#allocation13 + $0x3c4] ss:$8 sps:$4 sm:$0xff]   ;;  %v16909_v13 = vld [vmem:[#allocation13 + $0x460] ss:$8 sps:$4 sm:$0xff]  }
 0x42d   :  { %14705 = vmatprep.mubr.msk.bf16.mxu0 %vm823_vm0, %v16854_v33  ;;  %v16893_v33 = vld [vmem:[#allocation7 + $0x4ac] ss:$8 sps:$4 sm:$0xff]  }
 0x42e   :  { %3324 = vmatmul.mubr.bf16.gmra.mrb[64].mxu1 %v22316_v0 }
 0x42f   :  { %14470 = vmatprep.mubr.msk.bf16.mxu1 %vm1171_vm2, %v22317_v29  ;;  %3937 = vmatpush1.bf16.msra.mxu1 %v16864_v46  ;;  %v19719_v20 = vpop.f32.mrb[200].mxu0  ;;  %v22319_v46 = vpack.c.bf16 %v19518_v49, %v19510_v48  ;;  %v16891_v29 = vld [vmem:[#allocation7 + $0x4a8] ss:$8 sps:$4 sm:$0xff]  }
 0x430   :  { %3938 = vmatprep.subr.bf16.mxu1 %v16869_v62  ;;  %v19721_v58 = vpop.f32.mrb[201].mxu0 }
 0x431   :  { %v19723_v55 = vpop.f32.mrb[202].mxu0 }
 0x432   :  { %v3728_v7 = vpack.c.bf16 %v19723_v55, %v19719_v20  ;;  %v19727_v25 = vpop.f32.mrb[203].mxu0 }
 0x433   :  { %3939 = vmatpush1.bf16.msra.mxu1 %v16867_v28  ;;  %v3729_v9 = vpack.c.bf16 %v19727_v25, %v19721_v58  ;;  %v16902_v28 = vld [vmem:[#allocation7 + $0x4bc] ss:$8 sps:$4 sm:$0xff]   ;;  %v18030_v25 = vld [vmem:[#allocation2] ss:$8 sps:$4 sm:$0xff]  }
 0x434   :  { %5633 = vmatmul.mubr.bf16.vlgmr.msra.gmra.mrb[52].mxu0 %v16852_v61  ;;  %4591 = vmatprep.subr.bf16.mxu1 %v16872_v1  ;;  %v16900_v61 = vld [vmem:[#allocation7 + $0x4b8] ss:$8 sps:$4 sm:$0xff]   ;;  %v16908_v1 = vld [vmem:[#allocation7 + $0x4cc] ss:$8 sps:$4 sm:$0xff]  }
 0x435   :  { %6276 = vmatpush1.bf16.msra.mxu0 %v18724_v12  ;;  %14706 = vmatprep.mubr.msk.bf16.mxu0 %vm823_vm0, %v16893_v33  ;;  %v16906_v33 = vld [vmem:[#allocation7 + $0x4c8] ss:$8 sps:$4 sm:$0xff]  }
 0x436   :  { %6277 = vmatprep.subr.bf16.mxu0 %v18738_v27  ;;  %3334 = vmatmul.mubr.bf16.gmra.mrb[68].mxu1 %v22318_v10  ;;  %v16914_v10 = vld [vmem:[#allocation7 + $0x4dc] ss:$8 sps:$4 sm:$0xff]  }
 0x437   :  { %14471 = vmatprep.mubr.msk.bf16.mxu1 %vm1171_vm2, %v22319_v46  ;;  %v19741_v62 = vpop.f32.mrb[204].mxu0 }
 0x438   :  { %v19743_v0 = vpop.f32.mrb[205].mxu0 }
 0x439   :  { %6278 = vmatpush1.bf16.msra.mxu0 %v18736_v26  ;;  %v19746_v12 = vpop.f32.mrb[206].mxu0  ;;  %v22320_v26 = vpack.c.bf16 %v19513_v2, %v19508_v15 }
 0x43a   :  { %6279 = vmatprep.subr.bf16.mxu0 %v18750_v41  ;;  %v3730_v27 = vpack.c.bf16 %v19746_v12, %v19741_v62  ;;  %v19751_v54 = vpop.f32.mrb[207].mxu0  ;;  %v22321_v41 = vpack.c.bf16 %v19542_v60, %v19534_v44  ;;  %v22322_v44 = vpack.c.bf16 %v19537_v30, %v19532_v3  ;;  %v3062_v30 = vpack.c.bf16 %v19581_v34, %v19581_v34  ;;  %v16912_v34 = vld [vmem:[#allocation7 + $0x4d8] ss:$8 sps:$4 sm:$0xff]   ;;  %v17000_v62 = vld [vmem:[#allocation7 + $0x5b4] ss:$8 sps:$4 sm:$0xff]  }
 0x43b   :  { %v3731_v47 = vpack.c.bf16 %v19751_v54, %v19743_v0  ;;  %v18034_v54 = vld [vmem:[#allocation2 + $0x20] ss:$8 sps:$4 sm:$0xff]  }
 0x43c   :  { %5643 = vmatmul.mubr.bf16.gmra.mrb[56].mxu0 %v16891_v29 }
 0x43d   :  { %6280 = vmatpush1.bf16.msra.mxu0 %v22235_v17  ;;  %14707 = vmatprep.mubr.msk.bf16.mxu0 %vm823_vm0, %v16902_v28 }
 0x43e   :  { %6281 = vmatprep.subr.bf16.mxu0 %v22236_v21  ;;  %3344 = vmatmul.mubr.bf16.gmra.mrb[72].mxu1 %v22320_v26  ;;  %v16920_v26 = vld [vmem:[#allocation7 + $0x4ec] ss:$8 sps:$4 sm:$0xff]  }
 0x43f   :  { %14472 = vmatprep.mubr.msk.bf16.mxu1 %vm1171_vm2, %v22321_v41  ;;  %v19765_v48 = vpop.f32.mrb[208].mxu0  ;;  %v22327_v41 = vld [vmem:[#allocation42_spill] sm:$0xff] }
 0x440   :  { %v19767_v49 = vpop.f32.mrb[209].mxu0 }
 0x441   :  { %6282 = vmatpush1.bf16.msra.mxu0 %v22279_v35  ;;  %v19770_v17 = vpop.f32.mrb[210].mxu0 }
 0x442   :  { %6283 = vmatprep.subr.bf16.mxu0 %v22280_v37  ;;  %v3732_v21 = vpack.c.bf16 %v19770_v17, %v19765_v48  ;;  %v19775_v15 = vpop.f32.mrb[211].mxu0  ;;  %v22323_v37 = vpack.c.bf16 %v19566_v8, %v19558_v24  ;;  %v18045_v48 = vld [vmem:[#allocation2 + $0x84] ss:$8 sps:$4 sm:$0xff]  }
 0x443   :  { %v3733_v2 = vpack.c.bf16 %v19775_v15, %v19767_v49  ;;  %v18038_v15 = vld [vmem:[#allocation2 + $0x40] ss:$8 sps:$4 sm:$0xff]  }
 0x444   :  { %5653 = vmatmul.mubr.bf16.gmra.mrb[60].mxu0 %v16900_v61  ;;  %v22328_v61 = vld [vmem:[#allocation44_spill] sm:$0xff] }
 0x445   :  { %6284 = vmatpush1.bf16.msra.mxu0 %v22242_v59  ;;  %14708 = vmatprep.mubr.msk.bf16.mxu0 %vm823_vm0, %v16908_v1  ;;  %v22329_v1 = vpack.c.bf16 %v19605_v57, %v19596_v18  ;;  %v16870_v18 = vld [vmem:[#allocation13 + $0x3c0] ss:$8 sps:$4 sm:$0xff]  }
 0x446   :  { %6285 = vmatprep.subr.bf16.mxu0 %v22243_v39  ;;  %3354 = vmatmul.mubr.bf16.gmra.mrb[76].mxu1 %v22322_v44  ;;  %v16918_v44 = vld [vmem:[#allocation7 + $0x4e8] ss:$8 sps:$4 sm:$0xff]  }
 0x447   :  { %14473 = vmatprep.mubr.msk.bf16.mxu1 %vm1171_vm2, %v22323_v37  ;;  %v19789_v35 = vpop.f32.mrb[212].mxu0  ;;  %v22330_v37 = vld [vmem:[#allocation43_spill] sm:$0xff] }
 0x448   :  { %v19791_v60 = vpop.f32.mrb[213].mxu0 }
 0x449   :  { %6286 = vmatpush1.bf16.msra.mxu0 %v22285_v50  ;;  %v19794_v59 = vpop.f32.mrb[214].mxu0  ;;  %v22324_v50 = vld [vmem:[#allocation52_spill] sm:$0xff] }
 0x44a   :  { %6287 = vmatprep.subr.bf16.mxu0 %v22287_v40  ;;  %v3734_v39 = vpack.c.bf16 %v19794_v59, %v19789_v35  ;;  %v19799_v3 = vpop.f32.mrb[215].mxu0  ;;  %v22325_v40 = vld [vmem:[#allocation41_spill] sm:$0xff] }
 0x44b   :  { %v3735_v24 = vpack.c.bf16 %v19799_v3, %v19791_v60  ;;  %v22326_v8 = vpack.c.bf16 %v22324_v50, %v22325_v40  ;;  %v16875_v40 = vld [vmem:[#allocation13 + $0x3d4] ss:$8 sps:$4 sm:$0xff]  }
 0x44c   :  { %5663 = vmatmul.mubr.bf16.gmra.mrb[64].mxu0 %v16906_v33  ;;  %v16926_v33 = vld [vmem:[#allocation7 + $0x4fc] ss:$8 sps:$4 sm:$0xff]   ;;  %v18046_v59 = vld [vmem:[#allocation2 + $0x80] ss:$8 sps:$4 sm:$0xff]  }
 0x44d   :  { %6288 = vmatpush1.bf16.msra.mxu0 %v18796_v45  ;;  %14709 = vmatprep.mubr.msk.bf16.mxu0 %vm823_vm0, %v16914_v10  ;;  %v22331_v10 = vld [vmem:[#allocation45_spill] sm:$0xff] }
 0x44e   :  { %6289 = vmatprep.subr.bf16.mxu0 %v22250_v38  ;;  %3364 = vmatmul.mubr.bf16.gmra.mrb[80].mxu1 %v22326_v8  ;;  %v3061_v38 = vpack.c.bf16 %v19579_v52, %v19579_v52  ;;  %v22332_v8 = vld [vmem:[#allocation46_spill] sm:$0xff] }
 0x44f   :  { %14474 = vmatprep.mubr.msk.bf16.mxu1 %vm1171_vm2, %v3062_v30  ;;  %v19812_v46 = vpop.f32.mrb[216].mxu0 }
 0x450   :  { %v19814_v29 = vpop.f32.mrb[217].mxu0  ;;  %v3736_v35 = vpack.c.bf16 %v19812_v46, %v19812_v46  ;;  %v16994_v46 = vld [vmem:[#allocation7 + $0x5a4] ss:$8 sps:$4 sm:$0xff]  }
 0x451   :  { %6290 = vmatpush1.bf16.msra.mxu0 %v18808_v4  ;;  %v3713_v28 = vpop.f32.mrb[218].mxu0  ;;  %v3737_v60 = vpack.c.bf16 %v19814_v29, %v19814_v29  ;;  %v16980_v29 = vld [vmem:[#allocation7 + $0x580] ss:$8 sps:$4 sm:$0xff]  }
 0x452   :  { %6291 = vmatprep.subr.bf16.mxu0 %v18822_v23  ;;  %v3714_v45 = vpop.f32.mrb[219].mxu0  ;;  %v22334_v28 = vld [vmem:[#allocation51_spill] sm:$0xff] }
 0x453   :  { %v18029_v45 = vld [vmem:[#allocation2 + $0x4] ss:$8 sps:$4 sm:$0xff]  }
 0x454   :  { %5673 = vmatmul.mubr.bf16.gmra.mrb[68].mxu0 %v16912_v34  ;;  %v22333_v34 = vld [vmem:[#allocation54_spill] sm:$0xff] }
 0x455   :  { %6292 = vmatpush1.bf16.msra.mxu0 %v22327_v41  ;;  %14710 = vmatprep.mubr.msk.bf16.mxu0 %vm823_vm0, %v16920_v26  ;;  %v22335_v26 = vpack.c.bf16 %v22333_v34, %v22334_v28  ;;  %v16873_v41 = vld [vmem:[#allocation13 + $0x3d0] ss:$8 sps:$4 sm:$0xff]   ;;  %v16881_v34 = vld [vmem:[#allocation13 + $0x3f4] ss:$8 sps:$4 sm:$0xff]   ;;  %v22338_v28 = vpack.c.bf16 %v19647_v53, %v19641_v51  ;;  %v16882_v51 = vld [vmem:[#allocation13 + $0x400] ss:$8 sps:$4 sm:$0xff]  }
 0x456   :  { %6293 = vmatprep.subr.bf16.mxu0 %v22328_v61  ;;  %3374 = vmatmul.mubr.bf16.gmra.mrb[84].mxu1 %v3061_v38  ;;  %v22336_v38 = vpack.c.bf16 %v19627_v43, %v19621_v16  ;;  %v16876_v16 = vld [vmem:[#allocation13 + $0x3e0] ss:$8 sps:$4 sm:$0xff]   ;;  %v16890_v53 = vld [vmem:[#allocation13 + $0x424] ss:$8 sps:$4 sm:$0xff]  }
 0x457   :  { %14533 = vmatprep.mubr.msk.bf16.mxu1 %vm1171_vm2, %v22329_v1  ;;  %v19827_v4 = vpop.f32.mrb[220].mxu0  ;;  %v16878_v1 = vld [vmem:[#allocation13 + $0x3e4] ss:$8 sps:$4 sm:$0xff]  }
 0x458   :  { %v19829_v23 = vpop.f32.mrb[221].mxu0  ;;  %v5470_v43 = vld [vmem:[#allocation7 + $0x538] sm:$0x11] }
 0x459   :  { %6294 = vmatpush1.bf16.msra.mxu0 %v22330_v37  ;;  %v19832_v52 = vpop.f32.mrb[222].mxu0  ;;  %v16924_v37 = vld [vmem:[#allocation7 + $0x4f8] ss:$8 sps:$4 sm:$0xff]   ;;  %v14703_v57 = vcombine.high %v5470_v43, %v5470_v43 }
 0x45a   :  { %14773 = vmatprep.subr.msk.bf16.mxu0 %vm857_vm1, %v22331_v10  ;;  %v19838_v50 = vpop.f32.mrb[223].mxu0  ;;  %v16932_v10 = vld [vmem:[#allocation7 + $0x50c] ss:$8 sps:$4 sm:$0xff]  }
 0x45c   :  { %5683 = vmatmul.mubr.bf16.gmra.mrb[72].mxu0 %v16918_v44 }
 0x45d   :  { %6296 = vmatpush1.bf16.msra.mxu0 %v22332_v8  ;;  %14711 = vmatprep.mubr.msk.bf16.mxu0 %vm823_vm0, %v16926_v33 }
 0x45e   :  { %3949 = vmatmul.mubr.bf16.vlgmr.msra.gmra.mrb[44].mxu1 %v22335_v26  ;;  %6899 = vmatprep.subr.bf16.mxu0 %v18029_v45  ;;  %v16879_v26 = vld [vmem:[#allocation13 + $0x3f0] ss:$8 sps:$4 sm:$0xff]  }
 0x45f   :  { %4592 = vmatpush1.bf16.msra.mxu1 %v16870_v18  ;;  %14534 = vmatprep.mubr.msk.bf16.mxu1 %vm1171_vm2, %v22336_v38  ;;  %v19851_v61 = vpop.f32.mrb[224].mxu0  ;;  %v16884_v38 = vld [vmem:[#allocation13 + $0x404] ss:$8 sps:$4 sm:$0xff]  }
 0x460   :  { %4593 = vmatprep.subr.bf16.mxu1 %v16875_v40  ;;  %v19853_v44 = vpop.f32.mrb[225].mxu0  ;;  %v22337_v40 = vpack.c.bf16 %v19623_v42, %v19619_v31 }
 0x461   :  { %v19855_v33 = vpop.f32.mrb[226].mxu0 }
 0x462   :  { %v19859_v18 = vpop.f32.mrb[227].mxu0 }
 0x463   :  { %4594 = vmatpush1.bf16.msra.mxu1 %v16873_v41 }
 0x464   :  { %4595 = vmatprep.subr.bf16.mxu1 %v16878_v1  ;;  %5693 = vmatmul.mubr.bf16.gmra.mrb[76].mxu0 %v16924_v37  ;;  %v16930_v1 = vld [vmem:[#allocation7 + $0x508] ss:$8 sps:$4 sm:$0xff]  }
 0x465   :  { %14712 = vmatprep.mubr.msk.bf16.mxu0 %vm823_vm0, %v16932_v10  ;;  %v16938_v10 = vld [vmem:[#allocation7 + $0x51c] ss:$8 sps:$4 sm:$0xff]  }
 0x466   :  { %3959 = vmatmul.mubr.bf16.gmra.mrb[48].mxu1 %v22337_v40 }
 0x467   :  { %14535 = vmatprep.mubr.msk.bf16.mxu1 %vm1171_vm2, %v22338_v28  ;;  %4596 = vmatpush1.bf16.msra.mxu1 %v16876_v16  ;;  %v19871_v45 = vpop.f32.mrb[228].mxu0  ;;  %v16887_v16 = vld [vmem:[#allocation13 + $0x414] ss:$8 sps:$4 sm:$0xff]   ;;  %v22341_v28 = vpack.c.bf16 %v19667_v32, %v19661_v6  ;;  %v16888_v6 = vld [vmem:[#allocation13 + $0x420] ss:$8 sps:$4 sm:$0xff]  }
 0x468   :  { %4597 = vmatprep.subr.bf16.mxu1 %v16881_v34  ;;  %v19873_v41 = vpop.f32.mrb[229].mxu0  ;;  %v22339_v34 = vld [vmem:[#allocation53_spill] sm:$0xff] }
 0x469   :  { %v19875_v37 = vpop.f32.mrb[230].mxu0  ;;  %v22340_v40 = vpack.c.bf16 %v19643_v56, %v22339_v34  ;;  %v22345_v56 = vpack.c.bf16 %v19687_v19, %v19681_v22  ;;  %v16897_v22 = vld [vmem:[#allocation13 + $0x440] ss:$8 sps:$4 sm:$0xff]  }
 0x46a   :  { %v19879_v42 = vpop.f32.mrb[231].mxu0 }
 0x46b   :  { %4598 = vmatpush1.bf16.msra.mxu1 %v16879_v26  ;;  %v16885_v26 = vld [vmem:[#allocation13 + $0x410] ss:$8 sps:$4 sm:$0xff]  }
 0x46c   :  { %4599 = vmatprep.subr.bf16.mxu1 %v16884_v38  ;;  %5703 = vmatmul.mubr.bf16.gmra.mrb[80].mxu0 %v16930_v1  ;;  %v16936_v1 = vld [vmem:[#allocation7 + $0x518] ss:$8 sps:$4 sm:$0xff]  }
 0x46d   :  { %14713 = vmatprep.mubr.msk.bf16.mxu0 %vm823_vm0, %v16938_v10  ;;  %v16944_v10 = vld [vmem:[#allocation7 + $0x52c] ss:$8 sps:$4 sm:$0xff]  }
 0x46e   :  { %3969 = vmatmul.mubr.bf16.gmra.mrb[52].mxu1 %v22340_v40  ;;  %v22343_v40 = vld [vmem:[#allocation55_spill] sm:$0xff] }
 0x46f   :  { %14536 = vmatprep.mubr.msk.bf16.mxu1 %vm1171_vm2, %v22341_v28  ;;  %4600 = vmatpush1.bf16.msra.mxu1 %v16882_v51  ;;  %v19891_v31 = vpop.f32.mrb[232].mxu0  ;;  %v16896_v51 = vld [vmem:[#allocation13 + $0x434] ss:$8 sps:$4 sm:$0xff]  }
 0x470   :  { %4601 = vmatprep.subr.bf16.mxu1 %v16887_v16  ;;  %v19893_v38 = vpop.f32.mrb[233].mxu0  ;;  %v22342_v16 = vld [vmem:[#allocation34_spill] sm:$0xff] }
 0x471   :  { %v19895_v8 = vpop.f32.mrb[234].mxu0  ;;  %v22344_v28 = vpack.c.bf16 %v22342_v16, %v22343_v40  ;;  %v16911_v16 = vld [vmem:[#allocation13 + $0x464] ss:$8 sps:$4 sm:$0xff]  }
 0x472   :  { %v19899_v34 = vpop.f32.mrb[235].mxu0 }
 0x473   :  { %4602 = vmatpush1.bf16.msra.mxu1 %v16885_v26  ;;  %v16894_v26 = vld [vmem:[#allocation13 + $0x430] ss:$8 sps:$4 sm:$0xff]  }
 0x474   :  { %4603 = vmatprep.subr.bf16.mxu1 %v16890_v53  ;;  %5713 = vmatmul.mubr.bf16.gmra.mrb[84].mxu0 %v16936_v1  ;;  %v16899_v53 = vld [vmem:[#allocation13 + $0x444] ss:$8 sps:$4 sm:$0xff]  }
 0x475   :  { %14714 = vmatprep.mubr.msk.bf16.mxu0 %vm823_vm0, %v16944_v10  ;;  %v16942_v1 = vld [vmem:[#allocation7 + $0x528] ss:$8 sps:$4 sm:$0xff]  }
 0x476   :  { %3979 = vmatmul.mubr.bf16.gmra.mrb[56].mxu1 %v22344_v28  ;;  %v16903_v28 = vld [vmem:[#allocation13 + $0x450] ss:$8 sps:$4 sm:$0xff]  }
 0x477   :  { %14537 = vmatprep.mubr.msk.bf16.mxu1 %vm1171_vm2, %v22345_v56  ;;  %4604 = vmatpush1.bf16.msra.mxu1 %v16888_v6  ;;  %v19911_v30 = vpop.f32.mrb[236].mxu0  ;;  %v16905_v56 = vld [vmem:[#allocation13 + $0x454] ss:$8 sps:$4 sm:$0xff]  }
 0x478   :  { %4605 = vmatprep.subr.bf16.mxu1 %v16896_v51  ;;  %v19913_v32 = vpop.f32.mrb[237].mxu0  ;;  %v22346_v6 = vld [vmem:[#allocation37_spill] sm:$0xff] }
 0x479   :  { %v19915_v10 = vpop.f32.mrb[238].mxu0  ;;  %v22347_v51 = vpack.c.bf16 %v19683_v5, %v22346_v6 }
 0x47a   :  { %v19919_v40 = vpop.f32.mrb[239].mxu0 }
 0x47b   :  { %4606 = vmatpush1.bf16.msra.mxu1 %v16894_v26 }
 0x47c   :  { %4607 = vmatprep.subr.bf16.mxu1 %v16899_v53  ;;  %5723 = vmatmul.mubr.bf16.gmra.mrb[88].mxu0 %v16942_v1  ;;  %v14702_v1 = vcombine.low %v5470_v43, %v5470_v43  ;;  %v22348_v43 = vpack.c.bf16 %v19703_v11, %v19699_v63 }
 0x47d   :  { %14715 = vmatprep.mubr.msk.bf16.mxu0 %vm823_vm0, %v14703_v57  ;;  %v16955_v57 = vld [vmem:[#allocation7 + $0x544] ss:$8 sps:$4 sm:$0xff]  }
 0x47e   :  { %3989 = vmatmul.mubr.bf16.gmra.mrb[60].mxu1 %v22347_v51  ;;  %v16923_v51 = vld [vmem:[#allocation13 + $0x484] ss:$8 sps:$4 sm:$0xff]  }
 0x47f   :  { %14538 = vmatprep.mubr.msk.bf16.mxu1 %vm1171_vm2, %v3727_v36  ;;  %4608 = vmatpush1.bf16.msra.mxu1 %v16897_v22  ;;  %v19931_v26 = vpop.f32.mrb[240].mxu0  ;;  %v16917_v36 = vld [vmem:[#allocation13 + $0x474] ss:$8 sps:$4 sm:$0xff]   ;;  %v16915_v22 = vld [vmem:[#allocation13 + $0x470] ss:$8 sps:$4 sm:$0xff]  }
 0x480   :  { %4609 = vmatprep.subr.bf16.mxu1 %v16905_v56  ;;  %v19933_v53 = vpop.f32.mrb[241].mxu0 }
 0x481   :  { %v19935_v19 = vpop.f32.mrb[242].mxu0 }
 0x482   :  { %v4401_v5 = vpack.c.bf16 %v19935_v19, %v19931_v26  ;;  %v19939_v6 = vpop.f32.mrb[243].mxu0 }
 0x483   :  { %4610 = vmatpush1.bf16.msra.mxu1 %v16903_v28  ;;  %v4402_v14 = vpack.c.bf16 %v19939_v6, %v19933_v53  ;;  %v16953_v28 = vld [vmem:[#allocation7 + $0x540] ss:$8 sps:$4 sm:$0xff]   ;;  %v16977_v53 = vld [vmem:[#allocation13 + $0x520] ss:$8 sps:$4 sm:$0xff]  }
 0x484   :  { %4611 = vmatprep.subr.bf16.mxu1 %v16911_v16  ;;  %5733 = vmatmul.mubr.bf16.gmra.mrb[92].mxu0 %v14702_v1 }
 0x485   :  { %14774 = vmatprep.mubr.msk.bf16.mxu0 %vm823_vm0, %v16955_v57  ;;  %v16961_v57 = vld [vmem:[#allocation7 + $0x554] ss:$8 sps:$4 sm:$0xff]  }
 0x486   :  { %3999 = vmatmul.mubr.bf16.gmra.mrb[64].mxu1 %v22348_v43  ;;  %v16959_v43 = vld [vmem:[#allocation7 + $0x550] ss:$8 sps:$4 sm:$0xff]  }
 0x487   :  { %14539 = vmatprep.mubr.msk.bf16.mxu1 %vm1171_vm2, %v3729_v9  ;;  %4612 = vmatpush1.bf16.msra.mxu1 %v16909_v13  ;;  %v19951_v56 = vpop.f32.mrb[244].mxu0  ;;  %v18031_v9 = vld [vmem:[#allocation2 + $0x14] ss:$8 sps:$4 sm:$0xff]  }
 0x488   :  { %4613 = vmatprep.subr.bf16.mxu1 %v16917_v36  ;;  %v19953_v16 = vpop.f32.mrb[245].mxu0 }
 0x489   :  { %v19955_v1 = vpop.f32.mrb[246].mxu0 }
 0x48a   :  { %v4403_v63 = vpack.c.bf16 %v19955_v1, %v19951_v56  ;;  %v19959_v11 = vpop.f32.mrb[247].mxu0 }
 0x48b   :  { %4614 = vmatpush1.bf16.msra.mxu1 %v16915_v22  ;;  %v4404_v58 = vpack.c.bf16 %v19959_v11, %v19953_v16 }
 0x48c   :  { %5266 = vmatprep.subr.bf16.mxu1 %v16923_v51  ;;  %6308 = vmatmul.mubr.bf16.vlgmr.msra.gmra.mrb[96].mxu0 %v16953_v28  ;;  %v16970_v51 = vld [vmem:[#allocation7 + $0x564] ss:$8 sps:$4 sm:$0xff]   ;;  %v18032_v28 = vld [vmem:[#allocation2 + $0x10] ss:$8 sps:$4 sm:$0xff]  }
 0x48d   :  { %14775 = vmatprep.mubr.msk.bf16.mxu0 %vm823_vm0, %v16961_v57  ;;  %6900 = vmatpush1.bf16.msra.mxu0 %v18030_v25 }
 0x48e   :  { %4009 = vmatmul.mubr.bf16.gmra.mrb[68].mxu1 %v3728_v7  ;;  %6901 = vmatprep.subr.bf16.mxu0 %v18031_v9  ;;  %v18033_v7 = vld [vmem:[#allocation2 + $0x24] ss:$8 sps:$4 sm:$0xff]   ;;  %v16968_v9 = vld [vmem:[#allocation7 + $0x560] ss:$8 sps:$4 sm:$0xff]  }
 0x48f   :  { %14540 = vmatprep.mubr.msk.bf16.mxu1 %vm1171_vm2, %v3731_v47  ;;  %v19971_v13 = vpop.f32.mrb[248].mxu0  ;;  %v18035_v47 = vld [vmem:[#allocation2 + $0x34] ss:$8 sps:$4 sm:$0xff]  }
 0x490   :  { %v19973_v36 = vpop.f32.mrb[249].mxu0 }
 0x491   :  { %v19975_v22 = vpop.f32.mrb[250].mxu0  ;;  %6902 = vmatpush1.bf16.msra.mxu0 %v18032_v28  ;;  %v18036_v28 = vld [vmem:[#allocation2 + $0x30] ss:$8 sps:$4 sm:$0xff]  }
 0x492   :  { %v4405_v55 = vpack.c.bf16 %v19975_v22, %v19971_v13  ;;  %v19979_v20 = vpop.f32.mrb[251].mxu0  ;;  %6903 = vmatprep.subr.bf16.mxu0 %v18033_v7 }
 0x493   :  { %v4406_v0 = vpack.c.bf16 %v19979_v20, %v19973_v36 }
 0x494   :  { %6318 = vmatmul.mubr.bf16.gmra.mrb[100].mxu0 %v16959_v43 }
 0x495   :  { %14776 = vmatprep.mubr.msk.bf16.mxu0 %vm823_vm0, %v16970_v51  ;;  %6904 = vmatpush1.bf16.msra.mxu0 %v18034_v54  ;;  %v16976_v51 = vld [vmem:[#allocation7 + $0x574] ss:$8 sps:$4 sm:$0xff]  }
 0x496   :  { %4019 = vmatmul.mubr.bf16.gmra.mrb[72].mxu1 %v3730_v27  ;;  %6905 = vmatprep.subr.bf16.mxu0 %v18035_v47  ;;  %v18037_v27 = vld [vmem:[#allocation2 + $0x44] ss:$8 sps:$4 sm:$0xff]   ;;  %v16974_v47 = vld [vmem:[#allocation7 + $0x570] ss:$8 sps:$4 sm:$0xff]  }
 0x497   :  { %14541 = vmatprep.mubr.msk.bf16.mxu1 %vm1171_vm2, %v3733_v2  ;;  %v19991_v57 = vpop.f32.mrb[252].mxu0  ;;  %v18039_v2 = vld [vmem:[#allocation2 + $0x54] ss:$8 sps:$4 sm:$0xff]  }
 0x498   :  { %v19993_v25 = vpop.f32.mrb[253].mxu0 }
 0x499   :  { %v19995_v43 = vpop.f32.mrb[254].mxu0  ;;  %6906 = vmatpush1.bf16.msra.mxu0 %v18036_v28  ;;  %v18040_v28 = vld [vmem:[#allocation2 + $0x50] ss:$8 sps:$4 sm:$0xff]  }
 0x49a   :  { %v19999_v12 = vpop.f32.mrb[255].mxu0  ;;  %6907 = vmatprep.subr.bf16.mxu0 %v18037_v27  ;;  %v18043_v27 = vld [vmem:[#allocation2 + $0x74] ss:$8 sps:$4 sm:$0xff]   ;;  %v22363_v22 = vpack.c.bf16 %v19995_v43, %v19991_v57 }
 0x49b   :  { %v22362_v1 = vpack.c.bf16 %v19999_v12, %v19993_v25 }
 0x49c   :  { %6328 = vmatmul.mubr.bf16.gmra.mrb[104].mxu0 %v16968_v9 }
 0x49d   :  { %14777 = vmatprep.mubr.msk.bf16.mxu0 %vm823_vm0, %v16976_v51  ;;  %6908 = vmatpush1.bf16.msra.mxu0 %v18038_v15  ;;  %v16982_v51 = vld [vmem:[#allocation7 + $0x584] ss:$8 sps:$4 sm:$0xff]  }
 0x49e   :  { %4029 = vmatmul.mubr.bf16.gmra.mrb[76].mxu1 %v3732_v21  ;;  %6909 = vmatprep.subr.bf16.mxu0 %v18039_v2  ;;  %v18041_v21 = vld [vmem:[#allocation2 + $0x64] ss:$8 sps:$4 sm:$0xff]  }
 0x49f   :  { %14542 = vmatprep.mubr.msk.bf16.mxu1 %vm1171_vm2, %v3735_v24  ;;  %v20011_v7 = vpop.f32.mrb[0].mxu0  ;;  %v18042_v24 = vld [vmem:[#allocation2 + $0x60] ss:$8 sps:$4 sm:$0xff]  }
 0x4a0   :  { %v20013_v54 = vpop.f32.mrb[1].mxu0 }
 0x4a1   :  { %v20015_v9 = vpop.f32.mrb[2].mxu0  ;;  %6910 = vmatpush1.bf16.msra.mxu0 %v18040_v28 }
 0x4a2   :  { %v20019_v17 = vpop.f32.mrb[3].mxu0  ;;  %6911 = vmatprep.subr.bf16.mxu0 %v18041_v21  ;;  %v16988_v21 = vld [vmem:[#allocation7 + $0x594] ss:$8 sps:$4 sm:$0xff]  }
 0x4a4   :  { %6338 = vmatmul.mubr.bf16.gmra.mrb[108].mxu0 %v16974_v47  ;;  %v18044_v47 = vld [vmem:[#allocation2 + $0x70] ss:$8 sps:$4 sm:$0xff]  }
 0x4a5   :  { %14778 = vmatprep.mubr.msk.bf16.mxu0 %vm823_vm0, %v16982_v51  ;;  %6912 = vmatpush1.bf16.msra.mxu0 %v18042_v24 }
 0x4a6   :  { %4039 = vmatmul.mubr.bf16.gmra.mrb[80].mxu1 %v3734_v39  ;;  %6913 = vmatprep.subr.bf16.mxu0 %v18043_v27  ;;  %v18047_v39 = vld [vmem:[#allocation2 + $0x94] ss:$8 sps:$4 sm:$0xff]  }
 0x4a7   :  { %14543 = vmatprep.mubr.msk.bf16.mxu1 %vm1171_vm2, %v3737_v60  ;;  %v20030_v15 = vpop.f32.mrb[4].mxu0  ;;  %v22349_v60 = vpack.c.bf16 %v19838_v50, %v19829_v23  ;;  %v22352_v50 = vld [vmem:[#allocation27_spill] sm:$0xff] }
 0x4a8   :  { %v20032_v2 = vpop.f32.mrb[5].mxu0 }
 0x4a9   :  { %v4388_v28 = vpop.f32.mrb[6].mxu0  ;;  %6914 = vmatpush1.bf16.msra.mxu0 %v18044_v47  ;;  %v4412_v57 = vpack.c.bf16 %v20032_v2, %v20032_v2 }
 0x4aa   :  { %v4389_v51 = vpop.f32.mrb[7].mxu0  ;;  %6915 = vmatprep.subr.bf16.mxu0 %v18045_v48  ;;  %v16986_v48 = vld [vmem:[#allocation7 + $0x590] ss:$8 sps:$4 sm:$0xff]  }
 0x4ac   :  { %6348 = vmatmul.mubr.bf16.gmra.mrb[112].mxu0 %v16980_v29  ;;  %v18048_v29 = vld [vmem:[#allocation2 + $0x90] ss:$8 sps:$4 sm:$0xff]  }
 0x4ad   :  { %14779 = vmatprep.mubr.msk.bf16.mxu0 %vm823_vm0, %v16988_v21  ;;  %6916 = vmatpush1.bf16.msra.mxu0 %v18046_v59  ;;  %v22350_v21 = vld [vmem:[#allocation28_spill] sm:$0xff] }
 0x4ae   :  { %4049 = vmatmul.mubr.bf16.gmra.mrb[84].mxu1 %v3736_v35  ;;  %6917 = vmatprep.subr.bf16.mxu0 %v18047_v39  ;;  %v20049_v47 = vsel %vm857_vm1, %v22350_v21, 0  ;;  %v16921_v35 = vld [vmem:[#allocation13 + $0x480] ss:$8 sps:$4 sm:$0xff]   ;;  %v16929_v39 = vld [vmem:[#allocation13 + $0x494] ss:$8 sps:$4 sm:$0xff]  }
 0x4af   :  { %14602 = vmatprep.mubr.msk.bf16.mxu1 %vm1171_vm2, %v22349_v60  ;;  %v20041_v24 = vpop.f32.mrb[8].mxu0  ;;  %22351 = vst [vmem:[#allocation33_spill] sm:$0xff] %v20049_v47  ;;  %v22353_v60 = vpack.c.bf16 %v19832_v52, %v19827_v4  ;;  %v16927_v21 = vld [vmem:[#allocation13 + $0x490] ss:$8 sps:$4 sm:$0xff]   ;;  %v16935_v59 = vld [vmem:[#allocation13 + $0x4a4] ss:$8 sps:$4 sm:$0xff]  }
 0x4b0   :  { %v20043_v27 = vpop.f32.mrb[9].mxu0  ;;  %v16947_v4 = vld [vmem:[#allocation13 + $0x4c4] ss:$8 sps:$4 sm:$0xff]  }
 0x4b1   :  { %v20045_v28 = vpop.f32.mrb[10].mxu0  ;;  %6918 = vmatpush1.bf16.msra.mxu0 %v18048_v29  ;;  %v22354_v29 = vpack.c.bf16 %v19859_v18, %v19853_v44  ;;  %v16933_v44 = vld [vmem:[#allocation13 + $0x4a0] ss:$8 sps:$4 sm:$0xff]  }
 0x4b2   :  { %v20053_v23 = vpop.f32.mrb[11].mxu0  ;;  %14824 = vmatprep.subr.msk.bf16.mxu0 %vm857_vm1, %v22352_v50 }
 0x4b3   :  { %v22366_v2 = vpack.c.bf16 %v20053_v23, %v20043_v27  ;;  %v22367_v27 = vpack.c.bf16 %v20045_v28, %v20041_v24  ;;  %v17001_v28 = vld [vmem:[#allocation13 + $0x560] ss:$8 sps:$4 sm:$0xff]  }
 0x4b4   :  { %6358 = vmatmul.mubr.bf16.gmra.mrb[116].mxu0 %v16986_v48 }
 0x4b5   :  { %14780 = vmatprep.mubr.msk.bf16.mxu0 %vm823_vm0, %v16994_v46  ;;  %6920 = vmatpush1.bf16.msra.mxu0 %v20049_v47  ;;  %v16992_v46 = vld [vmem:[#allocation7 + $0x5a0] ss:$8 sps:$4 sm:$0xff]  }
 0x4b6   :  { %4624 = vmatmul.mubr.bf16.vlgmr.msra.gmra.mrb[44].mxu1 %v22353_v60  ;;  %v22356_v60 = vpack.c.bf16 %v19879_v42, %v19873_v41  ;;  %v16945_v41 = vld [vmem:[#allocation13 + $0x4c0] ss:$8 sps:$4 sm:$0xff]  }
 0x4b7   :  { %5267 = vmatpush1.bf16.msra.mxu1 %v16921_v35  ;;  %14603 = vmatprep.mubr.msk.bf16.mxu1 %vm1171_vm2, %v22354_v29  ;;  %v20068_v51 = vpop.f32.mrb[12].mxu0  ;;  %v16941_v35 = vld [vmem:[#allocation13 + $0x4b4] ss:$8 sps:$4 sm:$0xff]   ;;  %v16939_v29 = vld [vmem:[#allocation13 + $0x4b0] ss:$8 sps:$4 sm:$0xff]  }
 0x4b8   :  { %5268 = vmatprep.subr.bf16.mxu1 %v16929_v39  ;;  %v20070_v48 = vpop.f32.mrb[13].mxu0  ;;  %v22355_v39 = vpack.c.bf16 %v19855_v33, %v19851_v61  ;;  %v16958_v61 = vld [vmem:[#allocation13 + $0x4e4] ss:$8 sps:$4 sm:$0xff]  }
 0x4b9   :  { %v20072_v3 = vpop.f32.mrb[14].mxu0 }
 0x4ba   :  { %v20076_v52 = vpop.f32.mrb[15].mxu0 }
 0x4bb   :  { %5269 = vmatpush1.bf16.msra.mxu1 %v16927_v21  ;;  %v22368_v23 = vpack.c.bf16 %v20076_v52, %v20070_v48  ;;  %v17009_v52 = vld [vmem:[#allocation13 + $0x574] ss:$8 sps:$4 sm:$0xff]  }
 0x4bc   :  { %5270 = vmatprep.subr.bf16.mxu1 %v16935_v59  ;;  %6368 = vmatmul.mubr.bf16.gmra.mrb[120].mxu0 %v16992_v46  ;;  %v16998_v46 = vld [vmem:[#allocation7 + $0x5b0] ss:$8 sps:$4 sm:$0xff]  }
 0x4bd   :  { %14781 = vmatprep.mubr.msk.bf16.mxu0 %vm823_vm0, %v17000_v62  ;;  %v17006_v62 = vld [vmem:[#allocation7 + $0x5c4] ss:$8 sps:$4 sm:$0xff]  }
 0x4be   :  { %4634 = vmatmul.mubr.bf16.gmra.mrb[48].mxu1 %v22355_v39  ;;  %v22358_v39 = vpack.c.bf16 %v19899_v34, %v19893_v38  ;;  %v16956_v38 = vld [vmem:[#allocation13 + $0x4e0] ss:$8 sps:$4 sm:$0xff]  }
 0x4bf   :  { %14604 = vmatprep.mubr.msk.bf16.mxu1 %vm1171_vm2, %v22356_v60  ;;  %5271 = vmatpush1.bf16.msra.mxu1 %v16933_v44  ;;  %v20088_v21 = vpop.f32.mrb[16].mxu0  ;;  %v16952_v44 = vld [vmem:[#allocation13 + $0x4d4] ss:$8 sps:$4 sm:$0xff]   ;;  %v16950_v60 = vld [vmem:[#allocation13 + $0x4d0] ss:$8 sps:$4 sm:$0xff]  }
 0x4c0   :  { %5272 = vmatprep.subr.bf16.mxu1 %v16941_v35  ;;  %v20090_v59 = vpop.f32.mrb[17].mxu0  ;;  %v22357_v35 = vpack.c.bf16 %v19875_v37, %v19871_v45 }
 0x4c1   :  { %v20092_v18 = vpop.f32.mrb[18].mxu0 }
 0x4c2   :  { %v20096_v33 = vpop.f32.mrb[19].mxu0 }
 0x4c3   :  { %5273 = vmatpush1.bf16.msra.mxu1 %v16939_v29 }
 0x4c4   :  { %5274 = vmatprep.subr.bf16.mxu1 %v16947_v4  ;;  %6378 = vmatmul.mubr.bf16.gmra.mrb[124].mxu0 %v16998_v46  ;;  %v17004_v46 = vld [vmem:[#allocation7 + $0x5c0] ss:$8 sps:$4 sm:$0xff]  }
 0x4c5   :  { %14782 = vmatprep.mubr.msk.bf16.mxu0 %vm823_vm0, %v17006_v62  ;;  %v17012_v62 = vld [vmem:[#allocation7 + $0x5d4] ss:$8 sps:$4 sm:$0xff]  }
 0x4c6   :  { %4644 = vmatmul.mubr.bf16.gmra.mrb[52].mxu1 %v22357_v35  ;;  %v6145_v35 = vld [vmem:[#allocation7 + $0x5e0] sm:$0x11] }
 0x4c7   :  { %14605 = vmatprep.mubr.msk.bf16.mxu1 %vm1171_vm2, %v22358_v39  ;;  %5275 = vmatpush1.bf16.msra.mxu1 %v16945_v41  ;;  %v20108_v29 = vpop.f32.mrb[20].mxu0  ;;  %v16964_v41 = vld [vmem:[#allocation13 + $0x4f4] ss:$8 sps:$4 sm:$0xff]   ;;  %v22360_v39 = vpack.c.bf16 %v19919_v40, %v19913_v32  ;;  %v14772_v49 = vcombine.high %v6145_v35, %v6145_v35  ;;  %v16965_v32 = vld [vmem:[#allocation13 + $0x500] ss:$8 sps:$4 sm:$0xff]  }
 0x4c8   :  { %5276 = vmatprep.subr.bf16.mxu1 %v16952_v44  ;;  %v20110_v4 = vpop.f32.mrb[21].mxu0  ;;  %v22359_v44 = vpack.c.bf16 %v19895_v8, %v19891_v31 }
 0x4c9   :  { %v20112_v42 = vpop.f32.mrb[22].mxu0 }
 0x4ca   :  { %v20116_v37 = vpop.f32.mrb[23].mxu0 }
 0x4cb   :  { %5277 = vmatpush1.bf16.msra.mxu1 %v16950_v60  ;;  %v16962_v60 = vld [vmem:[#allocation13 + $0x4f0] ss:$8 sps:$4 sm:$0xff]  }
 0x4cc   :  { %5278 = vmatprep.subr.bf16.mxu1 %v16958_v61  ;;  %6388 = vmatmul.mubr.bf16.gmra.mrb[128].mxu0 %v17004_v46  ;;  %v16967_v61 = vld [vmem:[#allocation13 + $0x504] ss:$8 sps:$4 sm:$0xff]  }
 0x4cd   :  { %14783 = vmatprep.mubr.msk.bf16.mxu0 %vm823_vm0, %v17012_v62  ;;  %v17010_v46 = vld [vmem:[#allocation7 + $0x5d0] ss:$8 sps:$4 sm:$0xff]  }
 0x4ce   :  { %4654 = vmatmul.mubr.bf16.gmra.mrb[56].mxu1 %v22359_v44  ;;  %v16971_v44 = vld [vmem:[#allocation13 + $0x510] ss:$8 sps:$4 sm:$0xff]  }
 0x4cf   :  { %14606 = vmatprep.mubr.msk.bf16.mxu1 %vm1171_vm2, %v22360_v39  ;;  %5279 = vmatpush1.bf16.msra.mxu1 %v16956_v38  ;;  %v20128_v45 = vpop.f32.mrb[24].mxu0  ;;  %v16973_v38 = vld [vmem:[#allocation13 + $0x514] ss:$8 sps:$4 sm:$0xff]  }
 0x4d0   :  { %5280 = vmatprep.subr.bf16.mxu1 %v16964_v41  ;;  %v20130_v34 = vpop.f32.mrb[25].mxu0  ;;  %v22361_v41 = vpack.c.bf16 %v19915_v10, %v19911_v30 }
 0x4d1   :  { %v20132_v62 = vpop.f32.mrb[26].mxu0 }
 0x4d2   :  { %v20136_v31 = vpop.f32.mrb[27].mxu0 }
 0x4d3   :  { %5281 = vmatpush1.bf16.msra.mxu1 %v16962_v60  ;;  %v5075_v40 = vpack.c.bf16 %v20136_v31, %v20130_v34  ;;  %v16979_v60 = vld [vmem:[#allocation13 + $0x524] ss:$8 sps:$4 sm:$0xff]   ;;  %v17032_v31 = vld [vmem:[#allocation13 + $0x5d4] ss:$8 sps:$4 sm:$0xff]  }
 0x4d4   :  { %5282 = vmatprep.subr.bf16.mxu1 %v16967_v61  ;;  %6398 = vmatmul.mubr.bf16.gmra.mrb[132].mxu0 %v17010_v46  ;;  %v14771_v46 = vcombine.low %v6145_v35, %v6145_v35 }
 0x4d5   :  { %14784 = vmatprep.mubr.msk.bf16.mxu0 %vm823_vm0, %v14772_v49  ;;  %v16983_v49 = vld [vmem:[#allocation13 + $0x530] ss:$8 sps:$4 sm:$0xff]  }
 0x4d6   :  { %4664 = vmatmul.mubr.bf16.gmra.mrb[60].mxu1 %v22361_v41 }
 0x4d7   :  { %14607 = vmatprep.mubr.msk.bf16.mxu1 %vm1171_vm2, %v4402_v14  ;;  %5283 = vmatpush1.bf16.msra.mxu1 %v16965_v32  ;;  %v20148_v39 = vpop.f32.mrb[28].mxu0  ;;  %v16985_v14 = vld [vmem:[#allocation13 + $0x534] ss:$8 sps:$4 sm:$0xff]   ;;  %v16991_v32 = vld [vmem:[#allocation13 + $0x544] ss:$8 sps:$4 sm:$0xff]  }
 0x4d8   :  { %5284 = vmatprep.subr.bf16.mxu1 %v16973_v38  ;;  %v20150_v61 = vpop.f32.mrb[29].mxu0 }
 0x4d9   :  { %v20152_v8 = vpop.f32.mrb[30].mxu0 }
 0x4da   :  { %v5076_v30 = vpack.c.bf16 %v20152_v8, %v20148_v39  ;;  %v20156_v10 = vpop.f32.mrb[31].mxu0 }
 0x4db   :  { %5285 = vmatpush1.bf16.msra.mxu1 %v16971_v44  ;;  %v5077_v6 = vpack.c.bf16 %v20156_v10, %v20150_v61  ;;  %v17038_v10 = vld [vmem:[#allocation13 + $0x5f4] ss:$8 sps:$4 sm:$0xff]  }
 0x4dc   :  { %5286 = vmatprep.subr.bf16.mxu1 %v16979_v60  ;;  %6408 = vmatmul.mubr.bf16.gmra.mrb[136].mxu0 %v14771_v46 }
 0x4de   :  { %4674 = vmatmul.mubr.bf16.gmra.mrb[64].mxu1 %v4401_v5 }
 0x4df   :  { %14608 = vmatprep.mubr.msk.bf16.mxu1 %vm1171_vm2, %v4404_v58  ;;  %5287 = vmatpush1.bf16.msra.mxu1 %v16977_v53  ;;  %v20167_v35 = vpop.f32.mrb[32].mxu0 }
 0x4e0   :  { %5288 = vmatprep.subr.bf16.mxu1 %v16985_v14  ;;  %v20169_v38 = vpop.f32.mrb[33].mxu0 }
 0x4e1   :  { %v20171_v41 = vpop.f32.mrb[34].mxu0 }
 0x4e2   :  { %v5078_v44 = vpack.c.bf16 %v20171_v41, %v20167_v35  ;;  %v20175_v19 = vpop.f32.mrb[35].mxu0 }
 0x4e3   :  { %5289 = vmatpush1.bf16.msra.mxu1 %v16983_v49  ;;  %v5079_v26 = vpack.c.bf16 %v20175_v19, %v20169_v38 }
 0x4e4   :  { %5941 = vmatprep.subr.bf16.mxu1 %v16991_v32 }
 0x4e6   :  { %4684 = vmatmul.mubr.bf16.gmra.mrb[68].mxu1 %v4403_v63 }
 0x4e7   :  { %14609 = vmatprep.mubr.msk.bf16.mxu1 %vm1171_vm2, %v4406_v0  ;;  %v20186_v5 = vpop.f32.mrb[36].mxu0 }
 0x4e8   :  { %v20188_v16 = vpop.f32.mrb[37].mxu0 }
 0x4e9   :  { %v20190_v11 = vpop.f32.mrb[38].mxu0 }
 0x4ea   :  { %v5080_v58 = vpack.c.bf16 %v20190_v11, %v20186_v5  ;;  %v20194_v60 = vpop.f32.mrb[39].mxu0 }
 0x4eb   :  { %v5081_v56 = vpack.c.bf16 %v20194_v60, %v20188_v16 }
 0x4ee   :  { %4694 = vmatmul.mubr.bf16.gmra.mrb[72].mxu1 %v4405_v55  ;;  %v22364_v55 = vpack.c.bf16 %v20019_v17, %v20013_v54  ;;  %v22365_v54 = vpack.c.bf16 %v20015_v9, %v20011_v7 }
 0x4ef   :  { %14610 = vmatprep.mubr.msk.bf16.mxu1 %vm1171_vm2, %v22362_v1  ;;  %v20205_v63 = vpop.f32.mrb[40].mxu0 }
 0x4f0   :  { %v20207_v36 = vpop.f32.mrb[41].mxu0 }
 0x4f1   :  { %v20209_v20 = vpop.f32.mrb[42].mxu0 }
 0x4f2   :  { %v20213_v46 = vpop.f32.mrb[43].mxu0  ;;  %v22376_v11 = vpack.c.bf16 %v20209_v20, %v20205_v63 }
 0x4f3   :  { %v22375_v41 = vpack.c.bf16 %v20213_v46, %v20207_v36 }
 0x4f6   :  { %4704 = vmatmul.mubr.bf16.gmra.mrb[76].mxu1 %v22363_v22 }
 0x4f7   :  { %14611 = vmatprep.mubr.msk.bf16.mxu1 %vm1171_vm2, %v22364_v55  ;;  %v20224_v25 = vpop.f32.mrb[44].mxu0  ;;  %v4411_v55 = vpack.c.bf16 %v20030_v15, %v20030_v15 }
 0x4f8   :  { %v20226_v12 = vpop.f32.mrb[45].mxu0 }
 0x4f9   :  { %v20228_v53 = vpop.f32.mrb[46].mxu0 }
 0x4fa   :  { %v20232_v49 = vpop.f32.mrb[47].mxu0 }
 0x4fe   :  { %4714 = vmatmul.mubr.bf16.gmra.mrb[80].mxu1 %v22365_v54 }
 0x4ff   :  { %14612 = vmatprep.mubr.msk.bf16.mxu1 %vm1171_vm2, %v4412_v57  ;;  %v20242_v17 = vpop.f32.mrb[48].mxu0  ;;  %v17003_v57 = vld [vmem:[#allocation13 + $0x564] ss:$8 sps:$4 sm:$0xff]  }
 0x500   :  { %v20244_v32 = vpop.f32.mrb[49].mxu0 }
 0x501   :  { %v5063_v1 = vpop.f32.mrb[50].mxu0  ;;  %v5087_v63 = vpack.c.bf16 %v20244_v32, %v20244_v32 }
 0x502   :  { %v5064_v22 = vpop.f32.mrb[51].mxu0  ;;  %v16989_v1 = vld [vmem:[#allocation13 + $0x540] ss:$8 sps:$4 sm:$0xff]  }
 0x503   :  { %v16997_v22 = vld [vmem:[#allocation13 + $0x554] ss:$8 sps:$4 sm:$0xff]  }
 0x506   :  { %4724 = vmatmul.mubr.bf16.gmra.mrb[84].mxu1 %v4411_v55  ;;  %v16995_v55 = vld [vmem:[#allocation13 + $0x550] ss:$8 sps:$4 sm:$0xff]  }
 0x507   :  { %14671 = vmatprep.mubr.msk.bf16.mxu1 %vm1171_vm2, %v22366_v2  ;;  %v20252_v14 = vpop.f32.mrb[52].mxu0 }
 0x508   :  { %v20254_v7 = vpop.f32.mrb[53].mxu0 }
 0x509   :  { %v20256_v9 = vpop.f32.mrb[54].mxu0 }
 0x50a   :  { %v20260_v54 = vpop.f32.mrb[55].mxu0 }
 0x50b   :  { %v22379_v32 = vpack.c.bf16 %v20260_v54, %v20254_v7  ;;  %v22380_v7 = vpack.c.bf16 %v20256_v9, %v20252_v14  ;;  %v17045_v9 = vld [vmem:[#allocation13 + $0x620] ss:$8 sps:$4 sm:$0xff]  }
 0x50e   :  { %5299 = vmatmul.mubr.bf16.vlgmr.msra.gmra.mrb[44].mxu1 %v22367_v27  ;;  %v17007_v27 = vld [vmem:[#allocation13 + $0x570] ss:$8 sps:$4 sm:$0xff]  }
 0x50f   :  { %5942 = vmatpush1.bf16.msra.mxu1 %v16989_v1  ;;  %14672 = vmatprep.mubr.msk.bf16.mxu1 %vm1171_vm2, %v22368_v23  ;;  %v20271_v2 = vpop.f32.mrb[56].mxu0  ;;  %v22369_v1 = vpack.c.bf16 %v20072_v3, %v20068_v51  ;;  %v17013_v51 = vld [vmem:[#allocation13 + $0x580] ss:$8 sps:$4 sm:$0xff]  }
 0x510   :  { %5943 = vmatprep.subr.bf16.mxu1 %v16997_v22  ;;  %v20273_v43 = vpop.f32.mrb[57].mxu0  ;;  %v22370_v22 = vpack.c.bf16 %v20096_v33, %v20090_v59  ;;  %v17018_v33 = vld [vmem:[#allocation13 + $0x594] ss:$8 sps:$4 sm:$0xff]   ;;  %v17023_v59 = vld [vmem:[#allocation13 + $0x5a4] ss:$8 sps:$4 sm:$0xff]  }
 0x511   :  { %v20275_v0 = vpop.f32.mrb[58].mxu0 }
 0x512   :  { %v20279_v24 = vpop.f32.mrb[59].mxu0 }
 0x513   :  { %5944 = vmatpush1.bf16.msra.mxu1 %v16995_v55  ;;  %v17015_v55 = vld [vmem:[#allocation13 + $0x584] ss:$8 sps:$4 sm:$0xff]   ;;  %v22381_v54 = vpack.c.bf16 %v20279_v24, %v20273_v43  ;;  %v17050_v24 = vld [vmem:[#allocation13 + $0x634] ss:$8 sps:$4 sm:$0xff]  }
 0x514   :  { %5945 = vmatprep.subr.bf16.mxu1 %v17003_v57 }
 0x516   :  { %5309 = vmatmul.mubr.bf16.gmra.mrb[48].mxu1 %v22369_v1  ;;  %v22372_v1 = vpack.c.bf16 %v20116_v37, %v20110_v4  ;;  %v17021_v4 = vld [vmem:[#allocation13 + $0x5a0] ss:$8 sps:$4 sm:$0xff]  }
 0x517   :  { %14673 = vmatprep.mubr.msk.bf16.mxu1 %vm1171_vm2, %v22370_v22  ;;  %5946 = vmatpush1.bf16.msra.mxu1 %v17001_v28  ;;  %v20290_v23 = vpop.f32.mrb[60].mxu0  ;;  %v22371_v28 = vpack.c.bf16 %v20092_v18, %v20088_v21  ;;  %v17016_v22 = vld [vmem:[#allocation13 + $0x590] ss:$8 sps:$4 sm:$0xff]  }
 0x518   :  { %5947 = vmatprep.subr.bf16.mxu1 %v17009_v52  ;;  %v20292_v15 = vpop.f32.mrb[61].mxu0  ;;  %v17066_v52 = vld [vmem:[#allocation5] ss:$8 sps:$4 sm:$0xff]  }
 0x519   :  { %v20294_v48 = vpop.f32.mrb[62].mxu0 }
 0x51a   :  { %v20298_v3 = vpop.f32.mrb[63].mxu0 }
 0x51b   :  { %5948 = vmatpush1.bf16.msra.mxu1 %v17007_v27  ;;  %v20311_v27 = vld [vmem:[#allocation5 + $0x4] ss:$8 sps:$4 sm:$0xff]  }
 0x51c   :  { %5949 = vmatprep.subr.bf16.mxu1 %v17015_v55  ;;  %14825 = vmatprep.mubr.msk.bf16.mxu0 %vm823_vm0, %v20311_v27 }
 0x51d   :  { %6932 = vmatmul.mubr.bf16.vlgmr.msra.gmra.mrb[140].mxu0 %v17066_v52  ;;  %v17029_v52 = vld [vmem:[#allocation13 + $0x5c4] ss:$8 sps:$4 sm:$0xff]  }
 0x51e   :  { %5319 = vmatmul.mubr.bf16.gmra.mrb[52].mxu1 %v22371_v28  ;;  %v17024_v28 = vld [vmem:[#allocation13 + $0x5b0] ss:$8 sps:$4 sm:$0xff]  }
 0x51f   :  { %14674 = vmatprep.mubr.msk.bf16.mxu1 %vm1171_vm2, %v22372_v1  ;;  %5950 = vmatpush1.bf16.msra.mxu1 %v17013_v51  ;;  %v20309_v57 = vpop.f32.mrb[64].mxu0  ;;  %v17026_v51 = vld [vmem:[#allocation13 + $0x5b4] ss:$8 sps:$4 sm:$0xff]  }
 0x520   :  { %5951 = vmatprep.subr.bf16.mxu1 %v17018_v33  ;;  %v20313_v55 = vpop.f32.mrb[65].mxu0  ;;  %v22373_v33 = vpack.c.bf16 %v20112_v42, %v20108_v29  ;;  %v17027_v29 = vld [vmem:[#allocation13 + $0x5c0] ss:$8 sps:$4 sm:$0xff]  }
 0x521   :  { %v20315_v13 = vpop.f32.mrb[66].mxu0 }
 0x522   :  { %v20321_v21 = vpop.f32.mrb[67].mxu0 }
 0x523   :  { %5952 = vmatpush1.bf16.msra.mxu1 %v17016_v22  ;;  %v5748_v37 = vpack.c.bf16 %v20321_v21, %v20313_v55  ;;  %v17062_v21 = vld [vmem:[#allocation13 + $0x674] ss:$8 sps:$4 sm:$0xff]  }
 0x524   :  { %5953 = vmatprep.subr.bf16.mxu1 %v17023_v59 }
 0x526   :  { %5329 = vmatmul.mubr.bf16.gmra.mrb[56].mxu1 %v22373_v33  ;;  %v17035_v33 = vld [vmem:[#allocation13 + $0x5e4] ss:$8 sps:$4 sm:$0xff]  }
 0x527   :  { %14675 = vmatprep.mubr.msk.bf16.mxu1 %vm1171_vm2, %v5075_v40  ;;  %5954 = vmatpush1.bf16.msra.mxu1 %v17021_v4  ;;  %v20332_v1 = vpop.f32.mrb[68].mxu0  ;;  %v22374_v40 = vpack.c.bf16 %v20132_v62, %v20128_v45  ;;  %v17030_v4 = vld [vmem:[#allocation13 + $0x5d0] ss:$8 sps:$4 sm:$0xff]   ;;  %v17033_v62 = vld [vmem:[#allocation13 + $0x5e0] ss:$8 sps:$4 sm:$0xff]  }
 0x528   :  { %5955 = vmatprep.subr.bf16.mxu1 %v17026_v51  ;;  %v20334_v22 = vpop.f32.mrb[69].mxu0 }
 0x529   :  { %v20336_v18 = vpop.f32.mrb[70].mxu0 }
 0x52a   :  { %v20340_v42 = vpop.f32.mrb[71].mxu0 }
 0x52b   :  { %5956 = vmatpush1.bf16.msra.mxu1 %v17024_v28  ;;  %v5750_v34 = vpack.c.bf16 %v20340_v42, %v20334_v22  ;;  %v17071_v42 = vld [vmem:[#allocation13 + $0x694] ss:$8 sps:$4 sm:$0xff]  }
 0x52c   :  { %5957 = vmatprep.subr.bf16.mxu1 %v17029_v52 }
 0x52e   :  { %5339 = vmatmul.mubr.bf16.gmra.mrb[60].mxu1 %v22374_v40  ;;  %v17080_v40 = vld [vmem:[#allocation5 + $0x14] ss:$8 sps:$4 sm:$0xff]  }
 0x52f   :  { %14676 = vmatprep.mubr.msk.bf16.mxu1 %vm1171_vm2, %v5077_v6  ;;  %5958 = vmatpush1.bf16.msra.mxu1 %v17027_v29  ;;  %v20351_v51 = vpop.f32.mrb[72].mxu0  ;;  %v17078_v6 = vld [vmem:[#allocation5 + $0x10] ss:$8 sps:$4 sm:$0xff]   ;;  %v17036_v29 = vld [vmem:[#allocation13 + $0x5f0] ss:$8 sps:$4 sm:$0xff]  }
 0x530   :  { %5959 = vmatprep.subr.bf16.mxu1 %v17032_v31  ;;  %v20353_v28 = vpop.f32.mrb[73].mxu0  ;;  %14826 = vmatprep.mubr.msk.bf16.mxu0 %vm823_vm0, %v17080_v40  ;;  %v5086_v40 = vpack.c.bf16 %v20242_v17, %v20242_v17 }
 0x531   :  { %v20355_v59 = vpop.f32.mrb[74].mxu0  ;;  %6942 = vmatmul.mubr.bf16.gmra.mrb[144].mxu0 %v17078_v6 }
 0x532   :  { %v20359_v45 = vpop.f32.mrb[75].mxu0 }
 0x533   :  { %5960 = vmatpush1.bf16.msra.mxu1 %v17030_v4  ;;  %v5752_v61 = vpack.c.bf16 %v20359_v45, %v20353_v28  ;;  %v17041_v4 = vld [vmem:[#allocation13 + $0x604] ss:$8 sps:$4 sm:$0xff]   ;;  %v17077_v45 = vld [vmem:[#allocation13 + $0x6b4] ss:$8 sps:$4 sm:$0xff]  }
 0x534   :  { %5961 = vmatprep.subr.bf16.mxu1 %v17035_v33 }
 0x536   :  { %5349 = vmatmul.mubr.bf16.gmra.mrb[64].mxu1 %v5076_v30 }
 0x537   :  { %14677 = vmatprep.mubr.msk.bf16.mxu1 %vm1171_vm2, %v5079_v26  ;;  %5962 = vmatpush1.bf16.msra.mxu1 %v17033_v62  ;;  %v20370_v31 = vpop.f32.mrb[76].mxu0 }
 0x538   :  { %5963 = vmatprep.subr.bf16.mxu1 %v17038_v10  ;;  %v20372_v52 = vpop.f32.mrb[77].mxu0 }
 0x539   :  { %v20374_v33 = vpop.f32.mrb[78].mxu0 }
 0x53a   :  { %v5753_v8 = vpack.c.bf16 %v20374_v33, %v20370_v31  ;;  %v20379_v39 = vpop.f32.mrb[79].mxu0  ;;  %v17095_v33 = vld [vmem:[#allocation8 + $0x64] ss:$12 sps:$4 sm:$0xff]  }
 0x53b   :  { %5964 = vmatpush1.bf16.msra.mxu1 %v17036_v29  ;;  %v5754_v30 = vpack.c.bf16 %v20379_v39, %v20372_v52  ;;  %v17089_v52 = vld [vmem:[#allocation8 + $0x34] ss:$12 sps:$4 sm:$0xff]  }
 0x53c   :  { %6616 = vmatprep.subr.bf16.mxu1 %v17041_v4 }
 0x53e   :  { %5359 = vmatmul.mubr.bf16.gmra.mrb[68].mxu1 %v5078_v44 }
 0x53f   :  { %14678 = vmatprep.mubr.msk.bf16.mxu1 %vm1171_vm2, %v5081_v56  ;;  %v20390_v38 = vpop.f32.mrb[80].mxu0 }
 0x540   :  { %v20392_v19 = vpop.f32.mrb[81].mxu0 }
 0x541   :  { %v20394_v26 = vpop.f32.mrb[82].mxu0 }
 0x542   :  { %v5755_v62 = vpack.c.bf16 %v20394_v26, %v20390_v38  ;;  %v20398_v10 = vpop.f32.mrb[83].mxu0  ;;  %v17101_v26 = vld [vmem:[#allocation8 + $0x94] ss:$12 sps:$4 sm:$0xff]  }
 0x543   :  { %v5756_v35 = vpack.c.bf16 %v20398_v10, %v20392_v19  ;;  %v17093_v19 = vld [vmem:[#allocation8 + $0x60] ss:$12 sps:$4 sm:$0xff]   ;;  %v17098_v10 = vld [vmem:[#allocation8 + $0x7c] ss:$12 sps:$4 sm:$0xff]  }
 0x546   :  { %5369 = vmatmul.mubr.bf16.gmra.mrb[72].mxu1 %v5080_v58  ;;  %v22377_v58 = vpack.c.bf16 %v20232_v49, %v20226_v12  ;;  %v22378_v12 = vpack.c.bf16 %v20228_v53, %v20224_v25 }
 0x547   :  { %14679 = vmatprep.mubr.msk.bf16.mxu1 %vm1171_vm2, %v22375_v41  ;;  %v20409_v44 = vpop.f32.mrb[84].mxu0 }
 0x548   :  { %v20411_v16 = vpop.f32.mrb[85].mxu0 }
 0x549   :  { %v20413_v60 = vpop.f32.mrb[86].mxu0 }
 0x54a   :  { %v20417_v6 = vpop.f32.mrb[87].mxu0 }
 0x54e   :  { %5379 = vmatmul.mubr.bf16.gmra.mrb[76].mxu1 %v22376_v11 }
 0x54f   :  { %14680 = vmatprep.mubr.msk.bf16.mxu1 %vm1171_vm2, %v22377_v58  ;;  %v20428_v36 = vpop.f32.mrb[88].mxu0 }
 0x550   :  { %v20430_v46 = vpop.f32.mrb[89].mxu0 }
 0x551   :  { %v20432_v29 = vpop.f32.mrb[90].mxu0 }
 0x552   :  { %v20436_v4 = vpop.f32.mrb[91].mxu0 }
 0x556   :  { %5389 = vmatmul.mubr.bf16.gmra.mrb[80].mxu1 %v22378_v12 }
 0x557   :  { %14681 = vmatprep.mubr.msk.bf16.mxu1 %vm1171_vm2, %v5087_v63  ;;  %v20446_v49 = vpop.f32.mrb[92].mxu0  ;;  %v17047_v63 = vld [vmem:[#allocation13 + $0x624] ss:$8 sps:$4 sm:$0xff]  }
 0x558   :  { %v20448_v41 = vpop.f32.mrb[93].mxu0 }
 0x559   :  { %v5738_v11 = vpop.f32.mrb[94].mxu0 }
 0x55a   :  { %v5739_v58 = vpop.f32.mrb[95].mxu0  ;;  %v17039_v11 = vld [vmem:[#allocation13 + $0x600] ss:$8 sps:$4 sm:$0xff]  }
 0x55b   :  { %v17042_v58 = vld [vmem:[#allocation13 + $0x610] ss:$8 sps:$4 sm:$0xff]  }
 0x55e   :  { %5399 = vmatmul.mubr.bf16.gmra.mrb[84].mxu1 %v5086_v40  ;;  %v17044_v40 = vld [vmem:[#allocation13 + $0x614] ss:$8 sps:$4 sm:$0xff]  }
 0x55f   :  { %14740 = vmatprep.mubr.msk.bf16.mxu1 %vm1171_vm2, %v22379_v32  ;;  %v20456_v20 = vpop.f32.mrb[96].mxu0 }
 0x560   :  { %v20458_v25 = vpop.f32.mrb[97].mxu0 }
 0x561   :  { %v20460_v53 = vpop.f32.mrb[98].mxu0 }
 0x562   :  { %v20464_v12 = vpop.f32.mrb[99].mxu0 }
 0x566   :  { %5974 = vmatmul.mubr.bf16.vlgmr.msra.gmra.mrb[44].mxu1 %v22380_v7  ;;  %v17048_v7 = vld [vmem:[#allocation13 + $0x630] ss:$8 sps:$4 sm:$0xff]  }
 0x567   :  { %6617 = vmatpush1.bf16.msra.mxu1 %v17039_v11  ;;  %14741 = vmatprep.mubr.msk.bf16.mxu1 %vm1171_vm2, %v22381_v54  ;;  %v20475_v32 = vpop.f32.mrb[100].mxu0  ;;  %v22382_v11 = vpack.c.bf16 %v20275_v0, %v20271_v2  ;;  %v17051_v2 = vld [vmem:[#allocation13 + $0x640] ss:$8 sps:$4 sm:$0xff]  }
 0x568   :  { %6618 = vmatprep.subr.bf16.mxu1 %v17044_v40  ;;  %v20477_v56 = vpop.f32.mrb[101].mxu0  ;;  %v22383_v40 = vpack.c.bf16 %v20298_v3, %v20292_v15  ;;  %v17056_v3 = vld [vmem:[#allocation13 + $0x654] ss:$8 sps:$4 sm:$0xff]  }
 0x569   :  { %v20479_v5 = vpop.f32.mrb[102].mxu0 }
 0x56a   :  { %v20483_v14 = vpop.f32.mrb[103].mxu0 }
 0x56b   :  { %6619 = vmatpush1.bf16.msra.mxu1 %v17042_v58  ;;  %v17053_v58 = vld [vmem:[#allocation13 + $0x644] ss:$8 sps:$4 sm:$0xff]  }
 0x56c   :  { %6620 = vmatprep.subr.bf16.mxu1 %v17047_v63 }
 0x56e   :  { %5984 = vmatmul.mubr.bf16.gmra.mrb[48].mxu1 %v22382_v11 }
 0x56f   :  { %14742 = vmatprep.mubr.msk.bf16.mxu1 %vm1171_vm2, %v22383_v40  ;;  %6621 = vmatpush1.bf16.msra.mxu1 %v17045_v9  ;;  %v20494_v54 = vpop.f32.mrb[104].mxu0  ;;  %v22384_v9 = vpack.c.bf16 %v20294_v48, %v20290_v23  ;;  %v17059_v40 = vld [vmem:[#allocation13 + $0x664] ss:$8 sps:$4 sm:$0xff]   ;;  %v17057_v23 = vld [vmem:[#allocation13 + $0x660] ss:$8 sps:$4 sm:$0xff]  }
 0x570   :  { %6622 = vmatprep.subr.bf16.mxu1 %v17050_v24  ;;  %v20496_v17 = vpop.f32.mrb[105].mxu0  ;;  %v17054_v24 = vld [vmem:[#allocation13 + $0x650] ss:$8 sps:$4 sm:$0xff]  }
 0x571   :  { %v20498_v43 = vpop.f32.mrb[106].mxu0 }
 0x572   :  { %v20502_v0 = vpop.f32.mrb[107].mxu0 }
 0x573   :  { %6623 = vmatpush1.bf16.msra.mxu1 %v17048_v7  ;;  %v6421_v15 = vpack.c.bf16 %v20502_v0, %v20496_v17 }
 0x574   :  { %6624 = vmatprep.subr.bf16.mxu1 %v17053_v58 }
 0x576   :  { %5994 = vmatmul.mubr.bf16.gmra.mrb[52].mxu1 %v22384_v9  ;;  %v17065_v9 = vld [vmem:[#allocation13 + $0x684] ss:$8 sps:$4 sm:$0xff]  }
 0x577   :  { %14743 = vmatprep.mubr.msk.bf16.mxu1 %vm1171_vm2, %v5748_v37  ;;  %6625 = vmatpush1.bf16.msra.mxu1 %v17051_v2  ;;  %v20513_v11 = vpop.f32.mrb[108].mxu0  ;;  %v22385_v37 = vpack.c.bf16 %v20315_v13, %v20309_v57  ;;  %v17060_v2 = vld [vmem:[#allocation13 + $0x670] ss:$8 sps:$4 sm:$0xff]   ;;  %v17063_v57 = vld [vmem:[#allocation13 + $0x680] ss:$8 sps:$4 sm:$0xff]  }
 0x578   :  { %6626 = vmatprep.subr.bf16.mxu1 %v17056_v3  ;;  %v20515_v7 = vpop.f32.mrb[109].mxu0 }
 0x579   :  { %v20517_v63 = vpop.f32.mrb[110].mxu0 }
 0x57a   :  { %v20521_v48 = vpop.f32.mrb[111].mxu0 }
 0x57b   :  { %6627 = vmatpush1.bf16.msra.mxu1 %v17054_v24  ;;  %v6423_v55 = vpack.c.bf16 %v20521_v48, %v20515_v7 }
 0x57c   :  { %6628 = vmatprep.subr.bf16.mxu1 %v17059_v40 }
 0x57e   :  { %6004 = vmatmul.mubr.bf16.gmra.mrb[56].mxu1 %v22385_v37  ;;  %v17074_v37 = vld [vmem:[#allocation13 + $0x6a4] ss:$8 sps:$4 sm:$0xff]  }
 0x57f   :  { %14744 = vmatprep.mubr.msk.bf16.mxu1 %vm1171_vm2, %v5750_v34  ;;  %6629 = vmatpush1.bf16.msra.mxu1 %v17057_v23  ;;  %v20532_v3 = vpop.f32.mrb[112].mxu0  ;;  %v22386_v34 = vpack.c.bf16 %v20336_v18, %v20332_v1  ;;  %v17069_v23 = vld [vmem:[#allocation13 + $0x690] ss:$8 sps:$4 sm:$0xff]   ;;  %v17072_v1 = vld [vmem:[#allocation13 + $0x6a0] ss:$8 sps:$4 sm:$0xff]  }
 0x580   :  { %6630 = vmatprep.subr.bf16.mxu1 %v17062_v21  ;;  %v20534_v24 = vpop.f32.mrb[113].mxu0 }
 0x581   :  { %v20536_v58 = vpop.f32.mrb[114].mxu0 }
 0x582   :  { %v20540_v13 = vpop.f32.mrb[115].mxu0  ;;  %v22398_v17 = vpack.c.bf16 %v20536_v58, %v20532_v3  ;;  %v17131_v3 = vld [vmem:[#allocation8 + $0xe0] ss:$12 sps:$4 sm:$0xff]  }
 0x583   :  { %6631 = vmatpush1.bf16.msra.mxu1 %v17060_v2  ;;  %v6425_v22 = vpack.c.bf16 %v20540_v13, %v20534_v24  ;;  %v17132_v24 = vld [vmem:[#allocation8 + $0x20] ss:$12 sps:$4 sm:$0xff]   ;;  %v17133_v13 = vld [vmem:[#allocation8 + $0xf8] ss:$12 sps:$4 sm:$0xff]  }
 0x584   :  { %6632 = vmatprep.subr.bf16.mxu1 %v17065_v9  ;;  %v17086_v9 = vld [vmem:[#allocation8 + $0x1c] ss:$12 sps:$4 sm:$0xff]  }
 0x586   :  { %6014 = vmatmul.mubr.bf16.gmra.mrb[60].mxu1 %v22386_v34  ;;  %v17075_v34 = vld [vmem:[#allocation13 + $0x6b0] ss:$8 sps:$4 sm:$0xff]  }
 0x587   :  { %14745 = vmatprep.mubr.msk.bf16.mxu1 %vm1171_vm2, %v5752_v61  ;;  %6633 = vmatpush1.bf16.msra.mxu1 %v17063_v57  ;;  %v20551_v21 = vpop.f32.mrb[116].mxu0  ;;  %v22387_v61 = vpack.c.bf16 %v20355_v59, %v20351_v51  ;;  %v17081_v57 = vld [vmem:[#allocation8] ss:$12 sps:$4 sm:$0xff]   ;;  %v17084_v59 = vld [vmem:[#allocation8 + $0x18] ss:$12 sps:$4 sm:$0xff]  }
 0x588   :  { %6634 = vmatprep.subr.bf16.mxu1 %v17071_v42  ;;  %v20553_v2 = vpop.f32.mrb[117].mxu0  ;;  %v17083_v42 = vld [vmem:[#allocation8 + $0x4] ss:$12 sps:$4 sm:$0xff]  }
 0x589   :  { %v20555_v40 = vpop.f32.mrb[118].mxu0  ;;  %7276 = vmatprep.subr.bf16.mxu0 %v17083_v42  ;;  %v17090_v42 = vld [vmem:[#allocation8 + $0x48] ss:$12 sps:$4 sm:$0xff]  }
 0x58a   :  { %v20559_v18 = vpop.f32.mrb[119].mxu0  ;;  %7277 = vmatpush1.bf16.msra.mxu0 %v17081_v57 }
 0x58b   :  { %6635 = vmatpush1.bf16.msra.mxu1 %v17069_v23  ;;  %7278 = vmatprep.subr.bf16.mxu0 %v17086_v9 }
 0x58c   :  { %6636 = vmatprep.subr.bf16.mxu1 %v17074_v37 }
 0x58e   :  { %6024 = vmatmul.mubr.bf16.gmra.mrb[64].mxu1 %v22387_v61  ;;  %7279 = vmatpush1.bf16.msra.mxu0 %v17084_v59 }
 0x58f   :  { %14746 = vmatprep.mubr.msk.bf16.mxu1 %vm1171_vm2, %v5754_v30  ;;  %6637 = vmatpush1.bf16.msra.mxu1 %v17072_v1  ;;  %v20570_v23 = vpop.f32.mrb[120].mxu0  ;;  %v17087_v30 = vld [vmem:[#allocation8 + $0x30] ss:$12 sps:$4 sm:$0xff]   ;;  %v17092_v1 = vld [vmem:[#allocation8 + $0x4c] ss:$12 sps:$4 sm:$0xff]  }
 0x590   :  { %6638 = vmatprep.subr.bf16.mxu1 %v17077_v45  ;;  %v20572_v28 = vpop.f32.mrb[121].mxu0  ;;  %7280 = vmatprep.subr.bf16.mxu0 %v17089_v52 }
 0x591   :  { %v20574_v37 = vpop.f32.mrb[122].mxu0 }
 0x592   :  { %v6428_v51 = vpack.c.bf16 %v20574_v37, %v20570_v23  ;;  %v20578_v61 = vpop.f32.mrb[123].mxu0  ;;  %7281 = vmatpush1.bf16.msra.mxu0 %v17087_v30  ;;  %v17137_v37 = vld [vmem:[#allocation8 + $0x128] ss:$12 sps:$4 sm:$0xff]  }
 0x593   :  { %6639 = vmatpush1.bf16.msra.mxu1 %v17075_v34  ;;  %v6429_v39 = vpack.c.bf16 %v20578_v61, %v20572_v28  ;;  %7282 = vmatprep.subr.bf16.mxu0 %v17092_v1  ;;  %v17096_v1 = vld [vmem:[#allocation8 + $0x78] ss:$12 sps:$4 sm:$0xff]   ;;  %v17136_v28 = vld [vmem:[#allocation8 + $0x50] ss:$12 sps:$4 sm:$0xff]   ;;  %v17139_v61 = vld [vmem:[#allocation8 + $0x140] ss:$12 sps:$4 sm:$0xff]  }
 0x596   :  { %6034 = vmatmul.mubr.bf16.gmra.mrb[68].mxu1 %v5753_v8  ;;  %7283 = vmatpush1.bf16.msra.mxu0 %v17090_v42 }
 0x597   :  { %14747 = vmatprep.mubr.msk.bf16.mxu1 %vm1171_vm2, %v5756_v35  ;;  %v20589_v45 = vpop.f32.mrb[124].mxu0  ;;  %7284 = vmatprep.subr.bf16.mxu0 %v17095_v33  ;;  %v22388_v35 = vpack.c.bf16 %v20417_v6, %v20411_v16  ;;  %v17099_v16 = vld [vmem:[#allocation8 + $0x90] ss:$12 sps:$4 sm:$0xff]   ;;  %v22389_v6 = vpack.c.bf16 %v20413_v60, %v20409_v44  ;;  %v17104_v33 = vld [vmem:[#allocation8 + $0xac] ss:$12 sps:$4 sm:$0xff]  }
 0x598   :  { %v20591_v9 = vpop.f32.mrb[125].mxu0  ;;  %v17107_v60 = vld [vmem:[#allocation8 + $0xc4] ss:$12 sps:$4 sm:$0xff]  }
 0x599   :  { %v20593_v57 = vpop.f32.mrb[126].mxu0 }
 0x59a   :  { %v20597_v31 = vpop.f32.mrb[127].mxu0  ;;  %7285 = vmatpush1.bf16.msra.mxu0 %v17093_v19  ;;  %v22390_v19 = vpack.c.bf16 %v20436_v4, %v20430_v46  ;;  %v5762_v46 = vpack.c.bf16 %v20448_v41, %v20448_v41  ;;  %v17108_v41 = vld [vmem:[#allocation8 + $0xd8] ss:$12 sps:$4 sm:$0xff]   ;;  %v17113_v4 = vld [vmem:[#allocation8 + $0xf4] ss:$12 sps:$4 sm:$0xff]  }
 0x59b   :  { %v6431_v8 = vpack.c.bf16 %v20597_v31, %v20591_v9  ;;  %7286 = vmatprep.subr.bf16.mxu0 %v17098_v10  ;;  %v17140_v9 = vld [vmem:[#allocation8 + $0x80] ss:$12 sps:$4 sm:$0xff]  }
 0x59e   :  { %6044 = vmatmul.mubr.bf16.gmra.mrb[72].mxu1 %v5755_v62  ;;  %7287 = vmatpush1.bf16.msra.mxu0 %v17096_v1  ;;  %v17102_v1 = vld [vmem:[#allocation8 + $0xa8] ss:$12 sps:$4 sm:$0xff]  }
 0x59f   :  { %14748 = vmatprep.mubr.msk.bf16.mxu1 %vm1171_vm2, %v22388_v35  ;;  %v20608_v59 = vpop.f32.mrb[128].mxu0  ;;  %7288 = vmatprep.subr.bf16.mxu0 %v17101_v26  ;;  %v17105_v26 = vld [vmem:[#allocation8 + $0xc0] ss:$12 sps:$4 sm:$0xff]  }
 0x5a0   :  { %v20610_v52 = vpop.f32.mrb[129].mxu0 }
 0x5a1   :  { %v20612_v30 = vpop.f32.mrb[130].mxu0 }
 0x5a2   :  { %v20616_v38 = vpop.f32.mrb[131].mxu0  ;;  %7289 = vmatpush1.bf16.msra.mxu0 %v17099_v16  ;;  %v17110_v16 = vld [vmem:[#allocation8 + $0xdc] ss:$12 sps:$4 sm:$0xff]  }
 0x5a3   :  { %7290 = vmatprep.subr.bf16.mxu0 %v17104_v33 }
 0x5a6   :  { %6054 = vmatmul.mubr.bf16.gmra.mrb[76].mxu1 %v22389_v6  ;;  %7291 = vmatpush1.bf16.msra.mxu0 %v17102_v1  ;;  %v22391_v6 = vpack.c.bf16 %v20432_v29, %v20428_v36  ;;  %v5761_v1 = vpack.c.bf16 %v20446_v49, %v20446_v49  ;;  %v17111_v36 = vld [vmem:[#allocation8 + $0xf0] ss:$12 sps:$4 sm:$0xff]   ;;  %v17116_v29 = vld [vmem:[#allocation8 + $0x10c] ss:$12 sps:$4 sm:$0xff]  }
 0x5a7   :  { %14749 = vmatprep.mubr.msk.bf16.mxu1 %vm1171_vm2, %v22390_v19  ;;  %v20627_v35 = vpop.f32.mrb[132].mxu0  ;;  %7292 = vmatprep.subr.bf16.mxu0 %v17107_v60  ;;  %v22392_v60 = vpack.c.bf16 %v20464_v12, %v20458_v25  ;;  %v17122_v49 = vld [vmem:[#allocation8 + $0x13c] ss:$12 sps:$4 sm:$0xff]   ;;  %v17120_v25 = vld [vmem:[#allocation8 + $0x138] ss:$12 sps:$4 sm:$0xff]  }
 0x5a8   :  { %v20629_v10 = vpop.f32.mrb[133].mxu0  ;;  %v17125_v12 = vld [vmem:[#allocation8 + $0x154] ss:$12 sps:$4 sm:$0xff]  }
 0x5a9   :  { %v20631_v42 = vpop.f32.mrb[134].mxu0 }
 0x5aa   :  { %v20635_v44 = vpop.f32.mrb[135].mxu0  ;;  %7293 = vmatpush1.bf16.msra.mxu0 %v17105_v26  ;;  %v22393_v26 = vpack.c.bf16 %v20460_v53, %v20456_v20  ;;  %v17128_v20 = vld [vmem:[#allocation8 + $0x16c] ss:$12 sps:$4 sm:$0xff]   ;;  %v17129_v53 = vld [vmem:[#allocation8 + $0xc8] ss:$12 sps:$4 sm:$0xff]   ;;  %v22405_v23 = vpack.c.bf16 %v20631_v42, %v20627_v35 }
 0x5ab   :  { %7294 = vmatprep.subr.bf16.mxu0 %v17110_v16  ;;  %v22395_v16 = vpack.c.bf16 %v20479_v5, %v20475_v32  ;;  %v22397_v5 = vpack.c.bf16 %v20517_v63, %v20513_v11  ;;  %v22399_v32 = vpack.c.bf16 %v20559_v18, %v20553_v2  ;;  %v22401_v63 = vpack.c.bf16 %v20593_v57, %v20589_v45  ;;  %v17135_v2 = vld [vmem:[#allocation8 + $0x110] ss:$12 sps:$4 sm:$0xff]   ;;  %v17142_v42 = vld [vmem:[#allocation8 + $0x98] ss:$12 sps:$4 sm:$0xff]  }
 0x5ac   :  { %v17144_v35 = vld [vmem:[#allocation8 + $0xb0] ss:$12 sps:$4 sm:$0xff]  }
 0x5ae   :  { %6064 = vmatmul.mubr.bf16.gmra.mrb[80].mxu1 %v22391_v6  ;;  %7295 = vmatpush1.bf16.msra.mxu0 %v17108_v41  ;;  %v17123_v6 = vld [vmem:[#allocation8 + $0x150] ss:$12 sps:$4 sm:$0xff]  }
 0x5af   :  { %14750 = vmatprep.mubr.msk.bf16.mxu1 %vm1171_vm2, %v5762_v46  ;;  %v20645_v19 = vpop.f32.mrb[136].mxu0  ;;  %7296 = vmatprep.subr.bf16.mxu0 %v17113_v4  ;;  %v17119_v46 = vld [vmem:[#allocation8 + $0x124] ss:$12 sps:$4 sm:$0xff]   ;;  %v22394_v4 = vpack.c.bf16 %v20483_v14, %v20477_v56  ;;  %v17126_v56 = vld [vmem:[#allocation8 + $0x168] ss:$12 sps:$4 sm:$0xff]   ;;  %v22396_v14 = vpack.c.bf16 %v20498_v43, %v20494_v54  ;;  %v22400_v43 = vpack.c.bf16 %v20555_v40, %v20551_v21 }
 0x5b0   :  { %v20647_v33 = vpop.f32.mrb[137].mxu0  ;;  %v22403_v40 = vpack.c.bf16 %v20612_v30, %v20608_v59  ;;  %v17134_v21 = vld [vmem:[#allocation8 + $0x38] ss:$12 sps:$4 sm:$0xff]  }
 0x5b1   :  { %v6413_v62 = vpop.f32.mrb[138].mxu0  ;;  %v6437_v18 = vpack.c.bf16 %v20647_v33, %v20647_v33  ;;  %v17141_v30 = vld [vmem:[#allocation8 + $0x158] ss:$12 sps:$4 sm:$0xff]   ;;  %v22407_v33 = vld [vmem:[#allocation31_spill] sm:$0xff] }
 0x5b2   :  { %v6414_v34 = vpop.f32.mrb[139].mxu0  ;;  %7297 = vmatpush1.bf16.msra.mxu0 %v17111_v36  ;;  %v17114_v62 = vld [vmem:[#allocation8 + $0x108] ss:$12 sps:$4 sm:$0xff]  }
 0x5b3   :  { %7298 = vmatprep.subr.bf16.mxu0 %v17116_v29  ;;  %v17117_v34 = vld [vmem:[#allocation8 + $0x120] ss:$12 sps:$4 sm:$0xff]  }
 0x5b6   :  { %6074 = vmatmul.mubr.bf16.gmra.mrb[84].mxu1 %v5761_v1  ;;  %7299 = vmatpush1.bf16.msra.mxu0 %v17114_v62 }
 0x5b7   :  { %14809 = vmatprep.mubr.msk.bf16.mxu1 %vm1171_vm2, %v22392_v60  ;;  %7300 = vmatprep.subr.bf16.mxu0 %v17119_v46 }
 0x5ba   :  { %7301 = vmatpush1.bf16.msra.mxu0 %v17117_v34 }
 0x5bb   :  { %7302 = vmatprep.subr.bf16.mxu0 %v17122_v49 }
 0x5be   :  { %6649 = vmatmul.mubr.bf16.vlgmr.msra.gmra.mrb[44].mxu1 %v22393_v26  ;;  %7303 = vmatpush1.bf16.msra.mxu0 %v17120_v25 }
 0x5bf   :  { %14810 = vmatprep.mubr.msk.bf16.mxu1 %vm1171_vm2, %v22394_v4  ;;  %7304 = vmatprep.subr.bf16.mxu0 %v17125_v12 }
 0x5c2   :  { %7305 = vmatpush1.bf16.msra.mxu0 %v17123_v6 }
 0x5c3   :  { %7306 = vmatprep.subr.bf16.mxu0 %v17128_v20 }
 0x5c6   :  { %6659 = vmatmul.mubr.bf16.gmra.mrb[48].mxu1 %v22395_v16  ;;  %7307 = vmatpush1.bf16.msra.mxu0 %v17126_v56 }
 0x5c7   :  { %14811 = vmatprep.mubr.msk.bf16.mxu1 %vm1171_vm2, %v6421_v15  ;;  %15576 = vmatprep.subr.bf16.mxu0 %v17129_v53  ;;  %v22402_v15 = vpack.c.bf16 %v20616_v38, %v20610_v52  ;;  %v17143_v38 = vld [vmem:[#allocation8 + $0x170] ss:$12 sps:$4 sm:$0xff]  }
 0x5ce   :  { %6669 = vmatmul.mubr.bf16.gmra.mrb[52].mxu1 %v22396_v14 }
 0x5cf   :  { %14812 = vmatprep.mubr.msk.bf16.mxu1 %vm1171_vm2, %v6423_v55  ;;  %v17130_v55 = vld [vmem:[#allocation8 + $0x8] ss:$12 sps:$4 sm:$0xff]  }
 0x5d6   :  { %6679 = vmatmul.mubr.bf16.gmra.mrb[56].mxu1 %v22397_v5 }
 0x5d7   :  { %14813 = vmatprep.mubr.msk.bf16.mxu1 %vm1171_vm2, %v6425_v22  ;;  %v22404_v22 = vpack.c.bf16 %v20635_v44, %v20629_v10  ;;  %v705_v10 = vld [vmem:[#allocation14] sm:$0x3] }
 0x5d8   :  { %v22406_v44 = vld [vmem:[#allocation30_spill] sm:$0xff]  ;;  %v20756_v41 = vrot.slane %v705_v10, %v22407_v33 }
 0x5d9   :  { %v17181_v33 = vld [vmem:[#allocation8 + $0x198] ss:$12 sps:$4 sm:$0xff]  }
 0x5de   :  { %6689 = vmatmul.mubr.bf16.gmra.mrb[60].mxu1 %v22398_v17 }
 0x5df   :  { %14814 = vmatprep.mubr.msk.bf16.mxu1 %vm1171_vm2, %v22399_v32 }
 0x5e6   :  { %6699 = vmatmul.mubr.bf16.gmra.mrb[64].mxu1 %v22400_v43 }
 0x5e7   :  { %14815 = vmatprep.mubr.msk.bf16.mxu1 %vm1171_vm2, %v6429_v39  ;;  %v6436_v39 = vpack.c.bf16 %v20645_v19, %v20645_v19  ;;  %v20753_v19 = vrot.slane %v705_v10, %v22406_v44  ;;  %v17189_v44 = vld [vmem:[#allocation8 + $0x1b4] ss:$12 sps:$4 sm:$0xff]  }
 0x5ee   :  { %6709 = vmatmul.mubr.bf16.gmra.mrb[68].mxu1 %v6428_v51  ;;  %v17138_v51 = vld [vmem:[#allocation8 + $0x68] ss:$12 sps:$4 sm:$0xff]  }
 0x5ef   :  { %14816 = vmatprep.mubr.msk.bf16.mxu1 %vm1171_vm2, %v6431_v8 }
 0x5f0   :  { %v20704_v54 = vpop.f32.mrb[140].mxu0 }
 0x5f1   :  { %v20709_v0 = vpop.f32.mrb[141].mxu0 }
 0x5f2   :  { %v20715_v11 = vpop.f32.mrb[142].mxu0 }
 0x5f3   :  { %v6952_v7 = vpack.c.bf16 %v20715_v11, %v20704_v54  ;;  %v20719_v58 = vpop.f32.mrb[143].mxu0 }
 0x5f4   :  { %v6953_v48 = vpack.c.bf16 %v20719_v58, %v20709_v0 }
 0x5f6   :  { %6719 = vmatmul.mubr.bf16.gmra.mrb[72].mxu1 %v22401_v63  ;;  %7308 = vmatprep.mubr.bf16.mxu0 %v6953_v48 }
 0x5f7   :  { %14817 = vmatprep.mubr.msk.bf16.mxu1 %vm1171_vm2, %v22402_v15  ;;  %7309 = vmatmul.mubr.bf16.vlgmr.msra.gmra.mrb[148].mxu0 %v6952_v7 }
 0x5f8   :  { %15577 = vmatpush3.bf16.msra.mxu0 %v17130_v55 }
 0x5f9   :  { %15578 = vmatprep.subr.bf16.mxu0 %v17131_v3 }
 0x5fc   :  { %15579 = vmatpush3.bf16.msra.mxu0 %v17132_v24  ;;  %v17151_v24 = vld [vmem:[#allocation16] ss:$8 sps:$4 sm:$0xff]  }
 0x5fd   :  { %15580 = vmatprep.subr.bf16.mxu0 %v17133_v13 }
 0x5fe   :  { %6729 = vmatmul.mubr.bf16.gmra.mrb[76].mxu1 %v22403_v40 }
 0x5ff   :  { %14818 = vmatprep.mubr.msk.bf16.mxu1 %vm1171_vm2, %v22404_v22  ;;  %v17153_v22 = vld [vmem:[#allocation16 + $0x4] ss:$8 sps:$4 sm:$0xff]  }
 0x600   :  { %15581 = vmatpush3.bf16.msra.mxu0 %v17134_v21  ;;  %7619 = vmatprep.subr.bf16.mxu1 %v17153_v22  ;;  %v17171_v22 = vld [vmem:[#allocation16 + $0x64] ss:$8 sps:$4 sm:$0xff]  }
 0x601   :  { %15582 = vmatprep.subr.bf16.mxu0 %v17135_v2  ;;  %7620 = vmatpush1.bf16.msra.mxu1 %v17151_v24  ;;  %v17166_v24 = vld [vmem:[#allocation16 + $0x50] ss:$8 sps:$4 sm:$0xff]  }
 0x604   :  { %15583 = vmatpush3.bf16.msra.mxu0 %v17136_v28  ;;  %v20738_v45 = vpop.f32.mrb[144].mxu0 }
 0x605   :  { %15584 = vmatprep.subr.bf16.mxu0 %v17137_v37  ;;  %v20740_v57 = vpop.f32.mrb[145].mxu0 }
 0x606   :  { %6739 = vmatmul.mubr.bf16.gmra.mrb[80].mxu1 %v22405_v23  ;;  %v20742_v31 = vpop.f32.mrb[146].mxu0 }
 0x607   :  { %14819 = vmatprep.mubr.msk.bf16.mxu1 %vm1171_vm2, %v6437_v18  ;;  %v6954_v8 = vpack.c.bf16 %v20742_v31, %v20738_v45  ;;  %v20746_v59 = vpop.f32.mrb[147].mxu0  ;;  %v17156_v18 = vld [vmem:[#allocation16 + $0x14] ss:$8 sps:$4 sm:$0xff]  }
 0x608   :  { %15585 = vmatpush3.bf16.msra.mxu0 %v17138_v51  ;;  %v6955_v52 = vpack.c.bf16 %v20746_v59, %v20740_v57  ;;  %v17154_v51 = vld [vmem:[#allocation16 + $0x10] ss:$8 sps:$4 sm:$0xff]   ;;  %7621 = vmatprep.subr.bf16.mxu1 %v17156_v18 }
 0x609   :  { %15586 = vmatprep.subr.bf16.mxu0 %v17139_v61  ;;  %7622 = vmatpush1.bf16.msra.mxu1 %v17154_v51 }
 0x60a   :  { %7318 = vmatprep.mubr.bf16.mxu0 %v6955_v52 }
 0x60b   :  { %7319 = vmatmul.mubr.bf16.gmra.mrb[152].mxu0 %v6954_v8 }
 0x60c   :  { %15587 = vmatpush3.bf16.msra.mxu0 %v17140_v9  ;;  %7361 = vmatprep.mubr.bf16.mxu0 %v6953_v48  ;;  %v17159_v9 = vld [vmem:[#allocation16 + $0x24] ss:$8 sps:$4 sm:$0xff]  }
 0x60d   :  { %15588 = vmatprep.subr.bf16.mxu0 %v17141_v30  ;;  %7623 = vmatprep.subr.bf16.mxu1 %v17159_v9 }
 0x60e   :  { %6749 = vmatmul.mubr.bf16.gmra.mrb[84].mxu1 %v6436_v39 }
 0x610   :  { %15589 = vmatpush3.bf16.msra.mxu0 %v17142_v42 }
 0x611   :  { %15590 = vmatprep.subr.bf16.mxu0 %v17143_v38 }
 0x614   :  { %15591 = vmatpush3.bf16.msra.mxu0 %v17144_v35  ;;  %v17157_v35 = vld [vmem:[#allocation16 + $0x20] ss:$8 sps:$4 sm:$0xff]  }
 0x615   :  { %7624 = vmatpush1.bf16.msra.mxu1 %v17157_v35 }
 0x617   :  { %7362 = vmatmul.mubr.bf16.vlgmr.msra.gmra.mrb[156].mxu0 %v6952_v7 }
 0x618   :  { %7369 = vmatprep.mubr.bf16.mxu0 %v6955_v52 }
 0x61f   :  { %7370 = vmatmul.mubr.bf16.gmra.mrb[160].mxu0 %v6954_v8 }
 0x620   :  { %14876 = vmatprep.mubr.msk.bf16.mxu0 %vm823_vm0, %v20311_v27 }
 0x691   :  { %v6650_v1 = vpop.f32.mrb[44].mxu1 }
 0x692   :  { %v15828_v36 = vadd.f32 %v6650_v1, %v20753_v19  ;;  %v6652_v29 = vpop.f32.mrb[45].mxu1 }
 0x693   :  { %v15829_v60 = vadd.f32 %v6652_v29, %v20756_v41  ;;  %v6654_v62 = vpop.f32.mrb[46].mxu1 }
 0x694   :  { %v15830_v46 = vadd.f32 %v6654_v62, %v20753_v19  ;;  %v6656_v34 = vpop.f32.mrb[47].mxu1  ;;  %v6799_v27 = vmax.f32 %v15828_v36, 0.0  ;;  %v17162_v36 = vld [vmem:[#allocation16 + $0x34] ss:$8 sps:$4 sm:$0xff]  }
 0x695   :  { %v15831_v26 = vadd.f32 %v6656_v34, %v20756_v41  ;;  %v6800_v4 = vmax.f32 %v15829_v60, 0.0  ;;  %7625 = vmatprep.subr.bf16.mxu1 %v17162_v36 }
 0x696   :  { %v6801_v49 = vmax.f32 %v15830_v46, 0.0 }
 0x697   :  { %v6802_v25 = vmax.f32 %v15831_v26, 0.0  ;;  %v17160_v26 = vld [vmem:[#allocation16 + $0x30] ss:$8 sps:$4 sm:$0xff]  }
 0x698   :  { %v20762_v12 = vpack.c.bf16 %v6801_v49, %v6799_v27  ;;  %7626 = vmatpush1.bf16.msra.mxu1 %v17160_v26 }
 0x699   :  { %v20764_v6 = vpack.c.bf16 %v6802_v25, %v6800_v4  ;;  %v6660_v16 = vpop.f32.mrb[48].mxu1  ;;  %v17165_v4 = vld [vmem:[#allocation16 + $0x44] ss:$8 sps:$4 sm:$0xff]  }
 0x69a   :  { %v15832_v20 = vadd.f32 %v6660_v16, %v20753_v19  ;;  %v6662_v56 = vpop.f32.mrb[49].mxu1  ;;  %7627 = vmatprep.subr.bf16.mxu1 %v17165_v4 }
 0x69b   :  { %v15833_v53 = vadd.f32 %v6662_v56, %v20756_v41  ;;  %v6664_v14 = vpop.f32.mrb[50].mxu1  ;;  %7412 = vmatprep.subr.bf16.mxu0 %v20764_v6 }
 0x69c   :  { %v15834_v5 = vadd.f32 %v6664_v14, %v20753_v19  ;;  %v6666_v17 = vpop.f32.mrb[51].mxu1  ;;  %7413 = vmatpush1.bf16.msra.mxu0 %v20762_v12  ;;  %v6803_v43 = vmax.f32 %v15832_v20, 0.0  ;;  %v17163_v14 = vld [vmem:[#allocation16 + $0x40] ss:$8 sps:$4 sm:$0xff]  }
 0x69d   :  { %v15835_v32 = vadd.f32 %v6666_v17, %v20756_v41  ;;  %v6804_v15 = vmax.f32 %v15833_v53, 0.0  ;;  %7628 = vmatpush1.bf16.msra.mxu1 %v17163_v14 }
 0x69e   :  { %v6805_v63 = vmax.f32 %v15834_v5, 0.0 }
 0x69f   :  { %v6806_v7 = vmax.f32 %v15835_v32, 0.0  ;;  %v17168_v32 = vld [vmem:[#allocation16 + $0x54] ss:$8 sps:$4 sm:$0xff]  }
 0x6a0   :  { %v20772_v48 = vpack.c.bf16 %v6805_v63, %v6803_v43  ;;  %7629 = vmatprep.subr.bf16.mxu1 %v17168_v32  ;;  %v17184_v32 = vld [vmem:[#allocation16 + $0x90] ss:$8 sps:$4 sm:$0xff]  }
 0x6a1   :  { %v20774_v55 = vpack.c.bf16 %v6806_v7, %v6804_v15  ;;  %v6670_v3 = vpop.f32.mrb[52].mxu1  ;;  %7630 = vmatpush1.bf16.msra.mxu1 %v17166_v24 }
 0x6a2   :  { %v15836_v40 = vadd.f32 %v6670_v3, %v20753_v19  ;;  %v6672_v13 = vpop.f32.mrb[53].mxu1  ;;  %7631 = vmatprep.subr.bf16.mxu1 %v17171_v22  ;;  %v17190_v22 = vld [vmem:[#allocation16 + $0xa0] ss:$8 sps:$4 sm:$0xff]  }
 0x6a3   :  { %v15837_v21 = vadd.f32 %v6672_v13, %v20756_v41  ;;  %v6674_v2 = vpop.f32.mrb[54].mxu1  ;;  %7414 = vmatprep.subr.bf16.mxu0 %v20774_v55 }
 0x6a4   :  { %v15838_v28 = vadd.f32 %v6674_v2, %v20753_v19  ;;  %v6676_v23 = vpop.f32.mrb[55].mxu1  ;;  %7415 = vmatpush1.bf16.msra.mxu0 %v20772_v48  ;;  %v6807_v61 = vmax.f32 %v15836_v40, 0.0 }
 0x6a5   :  { %v15839_v37 = vadd.f32 %v6676_v23, %v20756_v41  ;;  %v6808_v8 = vmax.f32 %v15837_v21, 0.0 }
 0x6a6   :  { %v6809_v39 = vmax.f32 %v15838_v28, 0.0 }
 0x6a7   :  { %v6810_v52 = vmax.f32 %v15839_v37, 0.0  ;;  %v17169_v37 = vld [vmem:[#allocation16 + $0x60] ss:$8 sps:$4 sm:$0xff]  }
 0x6a8   :  { %v20782_v30 = vpack.c.bf16 %v6809_v39, %v6807_v61  ;;  %v17174_v39 = vld [vmem:[#allocation16 + $0x74] ss:$8 sps:$4 sm:$0xff]   ;;  %7632 = vmatpush1.bf16.msra.mxu1 %v17169_v37 }
 0x6a9   :  { %v20784_v42 = vpack.c.bf16 %v6810_v52, %v6808_v8  ;;  %v6680_v38 = vpop.f32.mrb[56].mxu1  ;;  %7633 = vmatprep.subr.bf16.mxu1 %v17174_v39 }
 0x6aa   :  { %v15840_v10 = vadd.f32 %v6680_v38, %v20753_v19  ;;  %v6682_v1 = vpop.f32.mrb[57].mxu1 }
 0x6ab   :  { %v15841_v29 = vadd.f32 %v6682_v1, %v20756_v41  ;;  %v6684_v60 = vpop.f32.mrb[58].mxu1  ;;  %7416 = vmatprep.subr.bf16.mxu0 %v20784_v42 }
 0x6ac   :  { %v15842_v62 = vadd.f32 %v6684_v60, %v20753_v19  ;;  %v6686_v46 = vpop.f32.mrb[59].mxu1  ;;  %7417 = vmatpush1.bf16.msra.mxu0 %v20782_v30  ;;  %v6811_v27 = vmax.f32 %v15840_v10, 0.0  ;;  %v17172_v10 = vld [vmem:[#allocation16 + $0x70] ss:$8 sps:$4 sm:$0xff]  }
 0x6ad   :  { %v15843_v34 = vadd.f32 %v6686_v46, %v20756_v41  ;;  %v6812_v25 = vmax.f32 %v15841_v29, 0.0  ;;  %v17180_v29 = vld [vmem:[#allocation16 + $0x84] ss:$8 sps:$4 sm:$0xff]   ;;  %7634 = vmatpush1.bf16.msra.mxu1 %v17172_v10 }
 0x6ae   :  { %v6813_v49 = vmax.f32 %v15842_v62, 0.0  ;;  %7635 = vmatprep.subr.bf16.mxu1 %v17180_v29 }
 0x6af   :  { %v6814_v16 = vmax.f32 %v15843_v34, 0.0 }
 0x6b0   :  { %v20792_v20 = vpack.c.bf16 %v6813_v49, %v6811_v27  ;;  %v17178_v27 = vld [vmem:[#allocation16 + $0x80] ss:$8 sps:$4 sm:$0xff]  }
 0x6b1   :  { %v20794_v56 = vpack.c.bf16 %v6814_v16, %v6812_v25  ;;  %v6690_v53 = vpop.f32.mrb[60].mxu1  ;;  %v17186_v25 = vld [vmem:[#allocation16 + $0x94] ss:$8 sps:$4 sm:$0xff]   ;;  %7636 = vmatpush1.bf16.msra.mxu1 %v17178_v27 }
 0x6b2   :  { %22408 = vst [vmem:[#allocation38_spill] sm:$0xff] %v20792_v20  ;;  %v15844_v5 = vadd.f32 %v6690_v53, %v20753_v19  ;;  %v6692_v17 = vpop.f32.mrb[61].mxu1  ;;  %7637 = vmatprep.subr.bf16.mxu1 %v17186_v25 }
 0x6b3   :  { %22409 = vst [vmem:[#allocation40_spill] sm:$0xff] %v20794_v56  ;;  %v15845_v43 = vadd.f32 %v6692_v17, %v20756_v41  ;;  %v6694_v63 = vpop.f32.mrb[62].mxu1  ;;  %7418 = vmatprep.subr.bf16.mxu0 %v20794_v56 }
 0x6b4   :  { %v15846_v15 = vadd.f32 %v6694_v63, %v20753_v19  ;;  %v6696_v7 = vpop.f32.mrb[63].mxu1  ;;  %7419 = vmatpush1.bf16.msra.mxu0 %v20792_v20  ;;  %v6815_v40 = vmax.f32 %v15844_v5, 0.0 }
 0x6b5   :  { %v15847_v3 = vadd.f32 %v6696_v7, %v20756_v41  ;;  %v6816_v21 = vmax.f32 %v15845_v43, 0.0  ;;  %7638 = vmatpush1.bf16.msra.mxu1 %v17184_v32 }
 0x6b6   :  { %v6817_v13 = vmax.f32 %v15846_v15, 0.0  ;;  %v17192_v15 = vld [vmem:[#allocation16 + $0xa4] ss:$8 sps:$4 sm:$0xff]  }
 0x6b7   :  { %v6818_v2 = vmax.f32 %v15847_v3, 0.0  ;;  %7639 = vmatprep.subr.bf16.mxu1 %v17192_v15 }
 0x6b8   :  { %v20802_v18 = vpack.c.bf16 %v6817_v13, %v6815_v40 }
 0x6b9   :  { %v20804_v28 = vpack.c.bf16 %v6818_v2, %v6816_v21  ;;  %v6700_v23 = vpop.f32.mrb[64].mxu1  ;;  %7640 = vmatpush1.bf16.msra.mxu1 %v17190_v22 }
 0x6ba   :  { %22410 = vst [vmem:[#allocation48_spill] sm:$0xff] %v20802_v18  ;;  %v15848_v51 = vadd.f32 %v6700_v23, %v20753_v19  ;;  %v6702_v61 = vpop.f32.mrb[65].mxu1 }
 0x6bb   :  { %22411 = vst [vmem:[#allocation35_spill] sm:$0xff] %v20804_v28  ;;  %v15849_v9 = vadd.f32 %v6702_v61, %v20756_v41  ;;  %v6704_v8 = vpop.f32.mrb[66].mxu1  ;;  %7420 = vmatprep.subr.bf16.mxu0 %v20804_v28 }
 0x6bc   :  { %v15850_v52 = vadd.f32 %v6704_v8, %v20753_v19  ;;  %v6706_v38 = vpop.f32.mrb[67].mxu1  ;;  %7421 = vmatpush1.bf16.msra.mxu0 %v20802_v18  ;;  %v6819_v1 = vmax.f32 %v15848_v51, 0.0 }
 0x6bd   :  { %v15851_v35 = vadd.f32 %v6706_v38, %v20756_v41  ;;  %v6820_v60 = vmax.f32 %v15849_v9, 0.0 }
 0x6be   :  { %v6821_v36 = vmax.f32 %v15850_v52, 0.0 }
 0x6bf   :  { %v6822_v62 = vmax.f32 %v15851_v35, 0.0 }
 0x6c0   :  { %v20812_v46 = vpack.c.bf16 %v6821_v36, %v6819_v1 }
 0x6c1   :  { %v20814_v34 = vpack.c.bf16 %v6822_v62, %v6820_v60  ;;  %v6710_v26 = vpop.f32.mrb[68].mxu1 }
 0x6c2   :  { %22412 = vst [vmem:[#allocation32_spill] sm:$0xff] %v20812_v46  ;;  %v15852_v49 = vadd.f32 %v6710_v26, %v20753_v19  ;;  %v6712_v4 = vpop.f32.mrb[69].mxu1 }
 0x6c3   :  { %22413 = vst [vmem:[#allocation36_spill] sm:$0xff] %v20814_v34  ;;  %v15853_v16 = vadd.f32 %v6712_v4, %v20756_v41  ;;  %v6714_v53 = vpop.f32.mrb[70].mxu1  ;;  %7422 = vmatprep.subr.bf16.mxu0 %v20814_v34 }
 0x6c4   :  { %v15854_v14 = vadd.f32 %v6714_v53, %v20753_v19  ;;  %v6716_v5 = vpop.f32.mrb[71].mxu1  ;;  %7423 = vmatpush1.bf16.msra.mxu0 %v20812_v46  ;;  %v6823_v43 = vmax.f32 %v15852_v49, 0.0 }
 0x6c5   :  { %v15855_v17 = vadd.f32 %v6716_v5, %v20756_v41  ;;  %v6824_v7 = vmax.f32 %v15853_v16, 0.0 }
 0x6c6   :  { %v6825_v63 = vmax.f32 %v15854_v14, 0.0 }
 0x6c7   :  { %v6826_v3 = vmax.f32 %v15855_v17, 0.0 }
 0x6c8   :  { %v20822_v24 = vpack.c.bf16 %v6825_v63, %v6823_v43 }
 0x6c9   :  { %v20824_v40 = vpack.c.bf16 %v6826_v3, %v6824_v7  ;;  %v6720_v13 = vpop.f32.mrb[72].mxu1 }
 0x6ca   :  { %22414 = vst [vmem:[#allocation47_spill] sm:$0xff] %v20822_v24  ;;  %v15856_v21 = vadd.f32 %v6720_v13, %v20753_v19  ;;  %v6722_v2 = vpop.f32.mrb[73].mxu1 }
 0x6cb   :  { %22415 = vst [vmem:[#allocation50_spill] sm:$0xff] %v20824_v40  ;;  %v15857_v23 = vadd.f32 %v6722_v2, %v20756_v41  ;;  %v6724_v37 = vpop.f32.mrb[74].mxu1  ;;  %7424 = vmatprep.subr.bf16.mxu0 %v20824_v40 }
 0x6cc   :  { %v15858_v51 = vadd.f32 %v6724_v37, %v20753_v19  ;;  %v6726_v61 = vpop.f32.mrb[75].mxu1  ;;  %7425 = vmatpush1.bf16.msra.mxu0 %v20822_v24  ;;  %v6827_v9 = vmax.f32 %v15856_v21, 0.0 }
 0x6cd   :  { %v15859_v39 = vadd.f32 %v6726_v61, %v20756_v41  ;;  %v6828_v52 = vmax.f32 %v15857_v23, 0.0 }
 0x6ce   :  { %v6829_v8 = vmax.f32 %v15858_v51, 0.0 }
 0x6cf   :  { %v6830_v38 = vmax.f32 %v15859_v39, 0.0 }
 0x6d0   :  { %v20832_v35 = vpack.c.bf16 %v6829_v8, %v6827_v9 }
 0x6d1   :  { %v20834_v10 = vpack.c.bf16 %v6830_v38, %v6828_v52  ;;  %v6730_v1 = vpop.f32.mrb[76].mxu1 }
 0x6d2   :  { %22416 = vst [vmem:[#allocation39_spill] sm:$0xff] %v20832_v35  ;;  %v15860_v36 = vadd.f32 %v6730_v1, %v20753_v19  ;;  %v6732_v29 = vpop.f32.mrb[77].mxu1 }
 0x6d3   :  { %22417 = vst [vmem:[#allocation49_spill] sm:$0xff] %v20834_v10  ;;  %v15861_v60 = vadd.f32 %v6732_v29, %v20756_v41  ;;  %v6734_v62 = vpop.f32.mrb[78].mxu1  ;;  %7426 = vmatprep.subr.bf16.mxu0 %v20834_v10 }
 0x6d4   :  { %v15862_v26 = vadd.f32 %v6734_v62, %v20753_v19  ;;  %v6736_v27 = vpop.f32.mrb[79].mxu1  ;;  %7427 = vmatpush1.bf16.msra.mxu0 %v20832_v35  ;;  %v6831_v4 = vmax.f32 %v15860_v36, 0.0 }
 0x6d5   :  { %v15863_v49 = vadd.f32 %v6736_v27, %v20756_v41  ;;  %v6832_v16 = vmax.f32 %v15861_v60, 0.0  ;;  %v18052_v27 = vld [vmem:[#allocation5 + $0x14] ss:$8 sps:$4 sm:$0xff]  }
 0x6d6   :  { %v6833_v25 = vmax.f32 %v15862_v26, 0.0  ;;  %v20871_v26 = vld [vmem:[#allocation2] ss:$8 sps:$4 sm:$0xff]  }
 0x6d7   :  { %v6834_v53 = vmax.f32 %v15863_v49, 0.0  ;;  %v20875_v49 = vld [vmem:[#allocation2 + $0x14] ss:$8 sps:$4 sm:$0xff]  }
 0x6d8   :  { %v20842_v14 = vpack.c.bf16 %v6833_v25, %v6831_v4 }
 0x6d9   :  { %v20844_v5 = vpack.c.bf16 %v6834_v53, %v6832_v16  ;;  %v6740_v17 = vpop.f32.mrb[80].mxu1 }
 0x6da   :  { %22418 = vst [vmem:[#allocation52_spill] sm:$0xff] %v20842_v14  ;;  %v15864_v32 = vadd.f32 %v6740_v17, %v20753_v19  ;;  %v6742_v43 = vpop.f32.mrb[81].mxu1  ;;  %v20880_v17 = vld [vmem:[#allocation2 + $0x10] ss:$8 sps:$4 sm:$0xff]  }
 0x6db   :  { %22419 = vst [vmem:[#allocation41_spill] sm:$0xff] %v20844_v5  ;;  %v15865_v63 = vadd.f32 %v6742_v43, %v20756_v41  ;;  %v6744_v15 = vpop.f32.mrb[82].mxu1  ;;  %7428 = vmatprep.subr.bf16.mxu0 %v20844_v5 }
 0x6dc   :  { %v15866_v7 = vadd.f32 %v6744_v15, %v20753_v19  ;;  %v6746_v3 = vpop.f32.mrb[83].mxu1  ;;  %7429 = vmatpush1.bf16.msra.mxu0 %v20842_v14  ;;  %v6835_v22 = vmax.f32 %v15864_v32, 0.0  ;;  %v20883_v32 = vld [vmem:[#allocation5 + $0x24] ss:$8 sps:$4 sm:$0xff]  }
 0x6dd   :  { %v15867_v13 = vadd.f32 %v6746_v3, %v20756_v41  ;;  %v6836_v2 = vmax.f32 %v15865_v63, 0.0  ;;  %v20885_v63 = vld [vmem:[#allocation2 + $0x24] ss:$8 sps:$4 sm:$0xff]   ;;  %v20890_v3 = vld [vmem:[#allocation2 + $0x20] ss:$8 sps:$4 sm:$0xff]  }
 0x6de   :  { %v6837_v21 = vmax.f32 %v15866_v7, 0.0  ;;  %v18056_v7 = vld [vmem:[#allocation5 + $0x10] ss:$8 sps:$4 sm:$0xff]  }
 0x6df   :  { %v6838_v23 = vmax.f32 %v15867_v13, 0.0  ;;  %v20895_v13 = vld [vmem:[#allocation2 + $0x34] ss:$8 sps:$4 sm:$0xff]  }
 0x6e0   :  { %v20852_v37 = vpack.c.bf16 %v6837_v21, %v6835_v22 }
 0x6e1   :  { %v20854_v51 = vpack.c.bf16 %v6838_v23, %v6836_v2  ;;  %v6750_v61 = vpop.f32.mrb[84].mxu1 }
 0x6e2   :  { %22420 = vst [vmem:[#allocation42_spill] sm:$0xff] %v20852_v37  ;;  %v15868_v39 = vadd.f32 %v6750_v61, %v20753_v19  ;;  %v6752_v9 = vpop.f32.mrb[85].mxu1  ;;  %v20868_v19 = vld [vmem:[#allocation2 + $0x4] ss:$8 sps:$4 sm:$0xff]   ;;  %v20900_v61 = vld [vmem:[#allocation2 + $0x30] ss:$8 sps:$4 sm:$0xff]  }
 0x6e3   :  { %22421 = vst [vmem:[#allocation44_spill] sm:$0xff] %v20854_v51  ;;  %v15869_v8 = vadd.f32 %v6752_v9, %v20756_v41  ;;  %v6754_v52 = vpop.f32.mrb[86].mxu1  ;;  %7430 = vmatprep.subr.bf16.mxu0 %v20854_v51  ;;  %22424 = vst [vmem:[#allocation46_spill] sm:$0xff] %v20868_v19  ;;  %v18050_v41 = vld [vmem:[#allocation5] ss:$8 sps:$4 sm:$0xff]  }
 0x6e4   :  { %v6839_v38 = vmax.f32 %v15868_v39, 0.0  ;;  %v6755_v1 = vpop.f32.mrb[87].mxu1  ;;  %7431 = vmatpush1.bf16.msra.mxu0 %v20852_v37  ;;  %v20903_v9 = vld [vmem:[#allocation2 + $0x44] ss:$8 sps:$4 sm:$0xff]   ;;  %v20908_v52 = vld [vmem:[#allocation2 + $0x40] ss:$8 sps:$4 sm:$0xff]  }
 0x6e5   :  { %v6840_v36 = vmax.f32 %v15869_v8, 0.0  ;;  %v20914_v1 = vld [vmem:[#allocation2 + $0x50] ss:$8 sps:$4 sm:$0xff]  }
 0x6e6   :  { %v6861_v29 = vpack.c.bf16 %v6839_v38, %v6839_v38  ;;  %v20911_v38 = vld [vmem:[#allocation2 + $0x54] ss:$8 sps:$4 sm:$0xff]  }
 0x6e7   :  { %v20860_v60 = vpack.c.bf16 %v6840_v36, %v6840_v36  ;;  %v20917_v36 = vld [vmem:[#allocation2 + $0x64] ss:$8 sps:$4 sm:$0xff]  }
 0x6e8   :  { %v20863_v62 = vsel %vm857_vm1, %v6861_v29, 0  ;;  %v20920_v29 = vld [vmem:[#allocation2 + $0x60] ss:$8 sps:$4 sm:$0xff]  }
 0x6e9   :  { %22422 = vst [vmem:[#allocation43_spill] sm:$0xff] %v20860_v60  ;;  %22423 = vst [vmem:[#allocation45_spill] sm:$0xff] %v20863_v62  ;;  %14875 = vmatprep.subr.msk.bf16.mxu0 %vm857_vm1, %v20860_v60  ;;  %v17216_v60 = vld [vmem:[#allocation8 + $0x1b8] ss:$12 sps:$4 sm:$0xff]  }
 0x6ea   :  { %7433 = vmatpush1.bf16.msra.mxu0 %v20863_v62  ;;  %v15592_v4 = vpop.f32.mrb[156].mxu0  ;;  %v17219_v62 = vld [vmem:[#allocation8 + $0x244] ss:$12 sps:$4 sm:$0xff]  }
 0x6eb   :  { %7720 = vmatprep.subr.bf16.mxu0 %v20868_v19  ;;  %v15593_v25 = vpop.f32.mrb[157].mxu0 }
 0x6ec   :  { %v20878_v16 = vadd.f32 %v15593_v25, %v15592_v4  ;;  %v15595_v53 = vpop.f32.mrb[158].mxu0  ;;  %v20929_v4 = vld [vmem:[#allocation2 + $0x84] ss:$8 sps:$4 sm:$0xff]   ;;  %v20932_v25 = vld [vmem:[#allocation2 + $0x80] ss:$8 sps:$4 sm:$0xff]  }
 0x6ed   :  { %7445 = vmatmul.mubr.bf16.vlgmr.msra.gmra.mrb[164].mxu0 %v18050_v41  ;;  %v15596_v43 = vpop.f32.mrb[159].mxu0  ;;  %v20923_v41 = vld [vmem:[#allocation2 + $0x74] ss:$8 sps:$4 sm:$0xff]  }
 0x6ee   :  { %7721 = vmatpush1.bf16.msra.mxu0 %v20871_v26  ;;  %14877 = vmatprep.mubr.msk.bf16.mxu0 %vm823_vm0, %v18052_v27  ;;  %22425 = vst [vmem:[#allocation54_spill] sm:$0xff] %v20878_v16  ;;  %v20888_v15 = vadd.f32 %v15596_v43, %v15595_v53  ;;  %v20926_v27 = vld [vmem:[#allocation2 + $0x70] ss:$8 sps:$4 sm:$0xff]   ;;  %v20935_v53 = vld [vmem:[#allocation2 + $0x94] ss:$8 sps:$4 sm:$0xff]  }
 0x6ef   :  { %7722 = vmatprep.subr.bf16.mxu0 %v20875_v49  ;;  %v20938_v43 = vld [vmem:[#allocation2 + $0x90] ss:$8 sps:$4 sm:$0xff]   ;;  %v17198_v16 = vld [vmem:[#allocation16 + $0xb4] ss:$8 sps:$4 sm:$0xff]  }
 0x6f0   :  { %22426 = vst [vmem:[#allocation51_spill] sm:$0xff] %v20888_v15  ;;  %22429 = vst [vmem:[#allocation55_spill] sm:$0xff] %v20938_v43  ;;  %v17195_v15 = vld [vmem:[#allocation8 + $0x1cc] ss:$12 sps:$4 sm:$0xff]   ;;  %7641 = vmatprep.subr.bf16.mxu1 %v17198_v16  ;;  %v17224_v16 = vld [vmem:[#allocation8 + $0x25c] ss:$12 sps:$4 sm:$0xff]  }
 0x6f2   :  { %7723 = vmatpush1.bf16.msra.mxu0 %v20880_v17  ;;  %v15598_v22 = vpop.f32.mrb[160].mxu0 }
 0x6f3   :  { %7724 = vmatprep.subr.bf16.mxu0 %v20885_v63  ;;  %v15599_v21 = vpop.f32.mrb[161].mxu0 }
 0x6f4   :  { %v20898_v2 = vadd.f32 %v15599_v21, %v15598_v22  ;;  %v15601_v23 = vpop.f32.mrb[162].mxu0  ;;  %v20943_v22 = vld [vmem:[#allocation5 + $0x20] ss:$8 sps:$4 sm:$0xff]   ;;  %v20946_v21 = vld [vmem:[#allocation5 + $0x34] ss:$8 sps:$4 sm:$0xff]  }
 0x6f5   :  { %7455 = vmatmul.mubr.bf16.gmra.mrb[168].mxu0 %v18056_v7  ;;  %v15602_v39 = vpop.f32.mrb[163].mxu0  ;;  %v17177_v7 = vld [vmem:[#allocation8 + $0x184] ss:$12 sps:$4 sm:$0xff]   ;;  %22430 = vst [vmem:[#allocation37_spill] sm:$0xff] %v20943_v22  ;;  %22431 = vst [vmem:[#allocation28_spill] sm:$0xff] %v20946_v21 }
 0x6f6   :  { %7725 = vmatpush1.bf16.msra.mxu0 %v20890_v3  ;;  %14909 = vmatprep.mubr.msk.bf16.mxu0 %vm823_vm0, %v20883_v32  ;;  %22427 = vst [vmem:[#allocation53_spill] sm:$0xff] %v20898_v2  ;;  %v20906_v8 = vadd.f32 %v15602_v39, %v15601_v23  ;;  %v17175_v23 = vld [vmem:[#allocation8 + $0x180] ss:$12 sps:$4 sm:$0xff]   ;;  %v17183_v39 = vld [vmem:[#allocation8 + $0x19c] ss:$12 sps:$4 sm:$0xff]  }
 0x6f7   :  { %7726 = vmatprep.subr.bf16.mxu0 %v20895_v13  ;;  %v17187_v2 = vld [vmem:[#allocation8 + $0x1b0] ss:$12 sps:$4 sm:$0xff]  }
 0x6f8   :  { %22428 = vst [vmem:[#allocation34_spill] sm:$0xff] %v20906_v8  ;;  %v20951_v8 = vld [vmem:[#allocation5 + $0x30] ss:$8 sps:$4 sm:$0xff]  }
 0x6f9   :  { %22432 = vst [vmem:[#allocation56_spill] sm:$0xff] %v20951_v8 }
 0x6fa   :  { %7727 = vmatpush1.bf16.msra.mxu0 %v20900_v61 }
 0x6fb   :  { %7728 = vmatprep.subr.bf16.mxu0 %v20903_v9 }
 0x6fe   :  { %7729 = vmatpush1.bf16.msra.mxu0 %v20908_v52 }
 0x6ff   :  { %7730 = vmatprep.subr.bf16.mxu0 %v20911_v38 }
 0x702   :  { %7731 = vmatpush1.bf16.msra.mxu0 %v20914_v1 }
 0x703   :  { %7732 = vmatprep.subr.bf16.mxu0 %v20917_v36 }
 0x706   :  { %7733 = vmatpush1.bf16.msra.mxu0 %v20920_v29 }
 0x707   :  { %7734 = vmatprep.subr.bf16.mxu0 %v20923_v41 }
 0x70a   :  { %7735 = vmatpush1.bf16.msra.mxu0 %v20926_v27 }
 0x70b   :  { %7736 = vmatprep.subr.bf16.mxu0 %v20929_v4 }
 0x70e   :  { %7737 = vmatpush1.bf16.msra.mxu0 %v20932_v25 }
 0x70f   :  { %7738 = vmatprep.subr.bf16.mxu0 %v20935_v53 }
 0x712   :  { %7739 = vmatpush1.bf16.msra.mxu0 %v20938_v43 }
 0x713   :  { %14908 = vmatprep.subr.msk.bf16.mxu0 %vm857_vm1, %v22352_v50  ;;  %v17210_v50 = vld [vmem:[#allocation8 + $0x260] ss:$12 sps:$4 sm:$0xff]  }
 0x716   :  { %7741 = vmatpush1.bf16.msra.mxu0 %v20049_v47  ;;  %v17196_v47 = vld [vmem:[#allocation16 + $0xb0] ss:$8 sps:$4 sm:$0xff]  }
 0x717   :  { %8098 = vmatprep.subr.bf16.mxu0 %v17177_v7  ;;  %v17193_v7 = vld [vmem:[#allocation8 + $0x1c8] ss:$12 sps:$4 sm:$0xff]   ;;  %7642 = vmatpush1.bf16.msra.mxu1 %v17196_v47  ;;  %v17222_v47 = vld [vmem:[#allocation8 + $0x258] ss:$12 sps:$4 sm:$0xff]  }
 0x719   :  { %7753 = vmatmul.mubr.bf16.vlgmr.msra.gmra.mrb[172].mxu0 %v20943_v22  ;;  %v17201_v22 = vld [vmem:[#allocation8 + $0x1e4] ss:$12 sps:$4 sm:$0xff]  }
 0x71a   :  { %14910 = vmatprep.mubr.msk.bf16.mxu0 %vm823_vm0, %v20946_v21  ;;  %8099 = vmatpush1.bf16.msra.mxu0 %v17175_v23  ;;  %v17199_v21 = vld [vmem:[#allocation8 + $0x1e0] ss:$12 sps:$4 sm:$0xff]   ;;  %v17204_v23 = vld [vmem:[#allocation8 + $0x1fc] ss:$12 sps:$4 sm:$0xff]  }
 0x71b   :  { %8100 = vmatprep.subr.bf16.mxu0 %v17183_v39  ;;  %v17205_v39 = vld [vmem:[#allocation8 + $0x248] ss:$12 sps:$4 sm:$0xff]  }
 0x71c   :  { %15604 = vmatprep.subr.bf16.mxu1 %v17205_v39  ;;  %v17234_v39 = vld [vmem:[#allocation8 + $0x28c] ss:$12 sps:$4 sm:$0xff]  }
 0x71e   :  { %8101 = vmatpush1.bf16.msra.mxu0 %v17181_v33  ;;  %v17202_v33 = vld [vmem:[#allocation8 + $0x1f8] ss:$12 sps:$4 sm:$0xff]  }
 0x71f   :  { %8102 = vmatprep.subr.bf16.mxu0 %v17189_v44  ;;  %v17207_v44 = vld [vmem:[#allocation8 + $0x210] ss:$12 sps:$4 sm:$0xff]  }
 0x721   :  { %7763 = vmatmul.mubr.bf16.gmra.mrb[176].mxu0 %v20951_v8  ;;  %v17209_v8 = vld [vmem:[#allocation8 + $0x214] ss:$12 sps:$4 sm:$0xff]  }
 0x722   :  { %8103 = vmatpush1.bf16.msra.mxu0 %v17187_v2  ;;  %v17214_v2 = vld [vmem:[#allocation8 + $0x22c] ss:$12 sps:$4 sm:$0xff]  }
 0x723   :  { %8104 = vmatprep.subr.bf16.mxu0 %v17195_v15  ;;  %v17212_v15 = vld [vmem:[#allocation8 + $0x228] ss:$12 sps:$4 sm:$0xff]  }
 0x726   :  { %8105 = vmatpush1.bf16.msra.mxu0 %v17193_v7  ;;  %v17217_v7 = vld [vmem:[#allocation8 + $0x240] ss:$12 sps:$4 sm:$0xff]  }
 0x727   :  { %8106 = vmatprep.subr.bf16.mxu0 %v17201_v22  ;;  %v17227_v22 = vld [vmem:[#allocation8 + $0x270] ss:$12 sps:$4 sm:$0xff]  }
 0x72a   :  { %8107 = vmatpush1.bf16.msra.mxu0 %v17199_v21  ;;  %v17229_v21 = vld [vmem:[#allocation8 + $0x274] ss:$12 sps:$4 sm:$0xff]  }
 0x72b   :  { %8108 = vmatprep.subr.bf16.mxu0 %v17204_v23  ;;  %v17232_v23 = vld [vmem:[#allocation8 + $0x288] ss:$12 sps:$4 sm:$0xff]  }
 0x72e   :  { %8109 = vmatpush1.bf16.msra.mxu0 %v17202_v33  ;;  %v17239_v33 = vld [vmem:[#allocation8 + $0x2a4] ss:$12 sps:$4 sm:$0xff]  }
 0x72f   :  { %8110 = vmatprep.subr.bf16.mxu0 %v17209_v8  ;;  %v17237_v8 = vld [vmem:[#allocation8 + $0x2a0] ss:$12 sps:$4 sm:$0xff]  }
 0x732   :  { %8111 = vmatpush1.bf16.msra.mxu0 %v17207_v44  ;;  %v17242_v44 = vld [vmem:[#allocation8 + $0x2b8] ss:$12 sps:$4 sm:$0xff]  }
 0x733   :  { %8112 = vmatprep.subr.bf16.mxu0 %v17214_v2  ;;  %v17245_v2 = vld [vmem:[#allocation8 + $0x2d0] ss:$12 sps:$4 sm:$0xff]  }
 0x736   :  { %8113 = vmatpush1.bf16.msra.mxu0 %v17212_v15  ;;  %v17244_v15 = vld [vmem:[#allocation8 + $0x2bc] ss:$12 sps:$4 sm:$0xff]  }
 0x737   :  { %8114 = vmatprep.subr.bf16.mxu0 %v17219_v62  ;;  %v17247_v62 = vld [vmem:[#allocation8 + $0x2d4] ss:$12 sps:$4 sm:$0xff]  }
 0x73a   :  { %8115 = vmatpush1.bf16.msra.mxu0 %v17217_v7  ;;  %v17250_v7 = vld [vmem:[#allocation8 + $0x2ec] ss:$12 sps:$4 sm:$0xff]  }
 0x73b   :  { %8116 = vmatprep.subr.bf16.mxu0 %v17224_v16 }
 0x73e   :  { %8117 = vmatpush1.bf16.msra.mxu0 %v17222_v47  ;;  %v17248_v47 = vld [vmem:[#allocation8 + $0x2e8] ss:$12 sps:$4 sm:$0xff]  }
 0x73f   :  { %8118 = vmatprep.subr.bf16.mxu0 %v17229_v21 }
 0x742   :  { %8119 = vmatpush1.bf16.msra.mxu0 %v17227_v22 }
 0x743   :  { %8120 = vmatprep.subr.bf16.mxu0 %v17234_v39 }
 0x746   :  { %8121 = vmatpush1.bf16.msra.mxu0 %v17232_v23 }
 0x747   :  { %8122 = vmatprep.subr.bf16.mxu0 %v17239_v33  ;;  %v17206_v33 = vld [vmem:[#allocation8 + $0x188] ss:$12 sps:$4 sm:$0xff]  }
 0x74a   :  { %8123 = vmatpush1.bf16.msra.mxu0 %v17237_v8 }
 0x74b   :  { %8124 = vmatprep.subr.bf16.mxu0 %v17244_v15 }
 0x74e   :  { %8125 = vmatpush1.bf16.msra.mxu0 %v17242_v44  ;;  %v17211_v44 = vld [vmem:[#allocation8 + $0x1a0] ss:$12 sps:$4 sm:$0xff]  }
 0x74f   :  { %8126 = vmatprep.subr.bf16.mxu0 %v17247_v62  ;;  %v17215_v62 = vld [vmem:[#allocation8 + $0x278] ss:$12 sps:$4 sm:$0xff]  }
 0x752   :  { %8127 = vmatpush1.bf16.msra.mxu0 %v17245_v2 }
 0x753   :  { %8128 = vmatprep.subr.bf16.mxu0 %v17250_v7 }
 0x756   :  { %8129 = vmatpush1.bf16.msra.mxu0 %v17248_v47 }
 0x757   :  { %8518 = vmatprep.subr.bf16.mxu0 %v20868_v19 }
 0x7c0   :  { %v7446_v16 = vpop.f32.mrb[164].mxu0 }
 0x7c1   :  { %v7448_v22 = vpop.f32.mrb[165].mxu0 }
 0x7c2   :  { %v7450_v21 = vpop.f32.mrb[166].mxu0 }
 0x7c3   :  { %v7465_v23 = vpack.c.bf16 %v7450_v21, %v7446_v16  ;;  %v7452_v39 = vpop.f32.mrb[167].mxu0  ;;  %v17220_v16 = vld [vmem:[#allocation8 + $0x290] ss:$12 sps:$4 sm:$0xff]   ;;  %v17225_v21 = vld [vmem:[#allocation8 + $0x2a8] ss:$12 sps:$4 sm:$0xff]  }
 0x7c4   :  { %v7466_v8 = vpack.c.bf16 %v7452_v39, %v7448_v22  ;;  %v17221_v22 = vld [vmem:[#allocation8 + $0x1d0] ss:$12 sps:$4 sm:$0xff]   ;;  %v17231_v39 = vld [vmem:[#allocation8 + $0x200] ss:$12 sps:$4 sm:$0xff]  }
 0x7c6   :  { %14902 = vmatprep.mubr.msk.bf16.mxu1 %vm1171_vm2, %v7466_v8  ;;  %v17235_v8 = vld [vmem:[#allocation8 + $0x2d8] ss:$12 sps:$4 sm:$0xff]  }
 0x7c7   :  { %7652 = vmatmul.mubr.bf16.vlgmr.msra.gmra.mrb[88].mxu1 %v7465_v23  ;;  %v17226_v23 = vld [vmem:[#allocation8 + $0x1e8] ss:$12 sps:$4 sm:$0xff]  }
 0x7c8   :  { %15605 = vmatpush3.bf16.msra.mxu1 %v17206_v33  ;;  %v7456_v15 = vpop.f32.mrb[168].mxu0  ;;  %v17236_v33 = vld [vmem:[#allocation8 + $0x218] ss:$12 sps:$4 sm:$0xff]  }
 0x7c9   :  { %15606 = vmatprep.subr.bf16.mxu1 %v17210_v50  ;;  %v7458_v2 = vpop.f32.mrb[169].mxu0  ;;  %v17230_v50 = vld [vmem:[#allocation8 + $0x2c0] ss:$12 sps:$4 sm:$0xff]  }
 0x7ca   :  { %v7460_v7 = vpop.f32.mrb[170].mxu0 }
 0x7cb   :  { %v7467_v47 = vpack.c.bf16 %v7460_v7, %v7456_v15  ;;  %v7462_v19 = vpop.f32.mrb[171].mxu0  ;;  %v22439_v7 = vld [vmem:[#allocation33_spill] sm:$0xff] }
 0x7cc   :  { %15607 = vmatpush3.bf16.msra.mxu1 %v17211_v44  ;;  %v7468_v43 = vpack.c.bf16 %v7462_v19, %v7458_v2  ;;  %v17240_v19 = vld [vmem:[#allocation8 + $0x2f0] ss:$12 sps:$4 sm:$0xff]  }
 0x7cd   :  { %15608 = vmatprep.subr.bf16.mxu1 %v17215_v62  ;;  %v17241_v44 = vld [vmem:[#allocation8 + $0x230] ss:$12 sps:$4 sm:$0xff]   ;;  %v21050_v62 = vld [vmem:[#allocation5 + $0x54] ss:$8 sps:$4 sm:$0xff]  }
 0x7ce   :  { %14903 = vmatprep.mubr.msk.bf16.mxu1 %vm1171_vm2, %v7468_v43  ;;  %22440 = vst [vmem:[#allocation58_spill] sm:$0xff] %v21050_v62  ;;  %v17257_v43 = vld [vmem:[#allocation8 + $0x300] ss:$12 sps:$4 sm:$0xff]  }
 0x7cf   :  { %7662 = vmatmul.mubr.bf16.gmra.mrb[92].mxu1 %v7467_v47 }
 0x7d0   :  { %15609 = vmatpush3.bf16.msra.mxu1 %v17216_v60 }
 0x7d1   :  { %15610 = vmatprep.subr.bf16.mxu1 %v17220_v16 }
 0x7d4   :  { %15611 = vmatpush3.bf16.msra.mxu1 %v17221_v22  ;;  %v22438_v22 = vld [vmem:[#allocation45_spill] sm:$0xff] }
 0x7d5   :  { %15612 = vmatprep.subr.bf16.mxu1 %v17225_v21 }
 0x7d8   :  { %15613 = vmatpush3.bf16.msra.mxu1 %v17226_v23 }
 0x7d9   :  { %15614 = vmatprep.subr.bf16.mxu1 %v17230_v50 }
 0x7dc   :  { %15615 = vmatpush3.bf16.msra.mxu1 %v17231_v39 }
 0x7dd   :  { %15616 = vmatprep.subr.bf16.mxu1 %v17235_v8  ;;  %v21046_v8 = vld [vmem:[#allocation5 + $0x40] ss:$8 sps:$4 sm:$0xff]  }
 0x7e0   :  { %15617 = vmatpush3.bf16.msra.mxu1 %v17236_v33 }
 0x7e1   :  { %15618 = vmatprep.subr.bf16.mxu1 %v17240_v19  ;;  %v21006_v19 = vld [vmem:[#allocation5 + $0x44] ss:$8 sps:$4 sm:$0xff]  }
 0x7e2   :  { %22433 = vst [vmem:[#allocation57_spill] sm:$0xff] %v21006_v19 }
 0x7e4   :  { %15619 = vmatpush3.bf16.msra.mxu1 %v17241_v44 }
 0x7e5   :  { %8212 = vmatprep.subr.bf16.mxu1 %v20764_v6 }
 0x7ec   :  { %v20958_v60 = vpop.f32.mrb[172].mxu0 }
 0x7ed   :  { %v20962_v15 = vpop.f32.mrb[173].mxu0 }
 0x7ee   :  { %v20966_v2 = vpop.f32.mrb[174].mxu0 }
 0x7ef   :  { %v7773_v47 = vpack.c.bf16 %v20966_v2, %v20958_v60  ;;  %v20972_v16 = vpop.f32.mrb[175].mxu0 }
 0x7f0   :  { %v7774_v21 = vpack.c.bf16 %v20972_v16, %v20962_v15 }
 0x7f2   :  { %8130 = vmatprep.mubr.bf16.mxu0 %v7774_v21  ;;  %8183 = vmatprep.mubr.bf16.mxu1 %v7774_v21  ;;  %v17259_v21 = vld [vmem:[#allocation8 + $0x304] ss:$12 sps:$4 sm:$0xff]  }
 0x7f3   :  { %8131 = vmatmul.mubr.bf16.vlgmr.msra.gmra.mrb[148].mxu0 %v7773_v47  ;;  %8184 = vmatmul.mubr.bf16.vlgmr.msra.gmra.mrb[96].mxu1 %v7773_v47 }
 0x7f4   :  { %8213 = vmatpush1.bf16.msra.mxu1 %v20762_v12  ;;  %8519 = vmatpush1.bf16.msra.mxu0 %v20871_v26  ;;  %v20980_v23 = vpop.f32.mrb[176].mxu0 }
 0x7f5   :  { %8214 = vmatprep.subr.bf16.mxu1 %v20774_v55  ;;  %v20985_v39 = vpop.f32.mrb[177].mxu0  ;;  %8520 = vmatprep.subr.bf16.mxu0 %v20875_v49 }
 0x7f6   :  { %v20990_v33 = vpop.f32.mrb[178].mxu0 }
 0x7f7   :  { %v7775_v44 = vpack.c.bf16 %v20990_v33, %v20980_v23  ;;  %v20996_v47 = vpop.f32.mrb[179].mxu0 }
 0x7f8   :  { %v7776_v50 = vpack.c.bf16 %v20996_v47, %v20985_v39  ;;  %8215 = vmatpush1.bf16.msra.mxu1 %v20772_v48  ;;  %8521 = vmatpush1.bf16.msra.mxu0 %v20880_v17 }
 0x7f9   :  { %8216 = vmatprep.subr.bf16.mxu1 %v20784_v42  ;;  %8522 = vmatprep.subr.bf16.mxu0 %v20885_v63 }
 0x7fa   :  { %8191 = vmatprep.mubr.bf16.mxu1 %v7776_v50  ;;  %8140 = vmatprep.mubr.bf16.mxu0 %v7776_v50  ;;  %v22435_v50 = vld [vmem:[#allocation43_spill] sm:$0xff] }
 0x7fb   :  { %8192 = vmatmul.mubr.bf16.gmra.mrb[100].mxu1 %v7775_v44  ;;  %8141 = vmatmul.mubr.bf16.gmra.mrb[152].mxu0 %v7775_v44  ;;  %v22436_v44 = vld [vmem:[#allocation27_spill] sm:$0xff] }
 0x7fc   :  { %8217 = vmatpush1.bf16.msra.mxu1 %v20782_v30  ;;  %8523 = vmatpush1.bf16.msra.mxu0 %v20890_v3 }
 0x7fd   :  { %8218 = vmatprep.subr.bf16.mxu1 %v20794_v56  ;;  %8524 = vmatprep.subr.bf16.mxu0 %v20895_v13 }
 0x7fe   :  { %14960 = vmatprep.mubr.msk.bf16.mxu1 %vm823_vm0, %v20883_v32  ;;  %14993 = vmatprep.mubr.msk.bf16.mxu0 %vm823_vm0, %v21006_v19  ;;  %v22434_v32 = vld [vmem:[#allocation55_spill] sm:$0xff] }
 0x7ff   :  { %22437 = vst [vmem:[#allocation55_spill] sm:$0xff] %v21046_v8 }
 0x800   :  { %8219 = vmatpush1.bf16.msra.mxu1 %v20792_v20  ;;  %8525 = vmatpush1.bf16.msra.mxu0 %v20900_v61  ;;  %v22449_v20 = vld [vmem:[#allocation53_spill] sm:$0xff] }
 0x801   :  { %8220 = vmatprep.subr.bf16.mxu1 %v20804_v28  ;;  %8526 = vmatprep.subr.bf16.mxu0 %v20903_v9  ;;  %v22448_v28 = vld [vmem:[#allocation51_spill] sm:$0xff] }
 0x804   :  { %8221 = vmatpush1.bf16.msra.mxu1 %v20802_v18  ;;  %8527 = vmatpush1.bf16.msra.mxu0 %v20908_v52 }
 0x805   :  { %8222 = vmatprep.subr.bf16.mxu1 %v20814_v34  ;;  %8528 = vmatprep.subr.bf16.mxu0 %v20911_v38 }
 0x808   :  { %8223 = vmatpush1.bf16.msra.mxu1 %v20812_v46  ;;  %8529 = vmatpush1.bf16.msra.mxu0 %v20914_v1 }
 0x809   :  { %8224 = vmatprep.subr.bf16.mxu1 %v20824_v40  ;;  %8530 = vmatprep.subr.bf16.mxu0 %v20917_v36  ;;  %v17304_v40 = vld [vmem:[#allocation8 + $0x3dc] ss:$12 sps:$4 sm:$0xff]  }
 0x80c   :  { %8225 = vmatpush1.bf16.msra.mxu1 %v20822_v24  ;;  %8531 = vmatpush1.bf16.msra.mxu0 %v20920_v29  ;;  %v17278_v24 = vld [vmem:[#allocation8 + $0x378] ss:$12 sps:$4 sm:$0xff]  }
 0x80d   :  { %8226 = vmatprep.subr.bf16.mxu1 %v20834_v10  ;;  %8532 = vmatprep.subr.bf16.mxu0 %v20923_v41  ;;  %v22444_v10 = vld [vmem:[#allocation56_spill] sm:$0xff] }
 0x810   :  { %8227 = vmatpush1.bf16.msra.mxu1 %v20832_v35  ;;  %8533 = vmatpush1.bf16.msra.mxu0 %v20926_v27  ;;  %v17263_v35 = vld [vmem:[#allocation8 + $0x330] ss:$12 sps:$4 sm:$0xff]  }
 0x811   :  { %8228 = vmatprep.subr.bf16.mxu1 %v20844_v5  ;;  %8534 = vmatprep.subr.bf16.mxu0 %v20929_v4  ;;  %v21058_v5 = vld [vmem:[#allocation5 + $0x50] ss:$8 sps:$4 sm:$0xff]  }
 0x814   :  { %8229 = vmatpush1.bf16.msra.mxu1 %v20842_v14  ;;  %8535 = vmatpush1.bf16.msra.mxu0 %v20932_v25  ;;  %v17260_v14 = vld [vmem:[#allocation8 + $0x318] ss:$12 sps:$4 sm:$0xff]  }
 0x815   :  { %8230 = vmatprep.subr.bf16.mxu1 %v20854_v51  ;;  %8536 = vmatprep.subr.bf16.mxu0 %v20935_v53  ;;  %v22441_v51 = vld [vmem:[#allocation37_spill] sm:$0xff] }
 0x816   :  { %22443 = vst [vmem:[#allocation37_spill] sm:$0xff] %v21058_v5 }
 0x818   :  { %8231 = vmatpush1.bf16.msra.mxu1 %v20852_v37  ;;  %8537 = vmatpush1.bf16.msra.mxu0 %v22434_v32  ;;  %v17262_v37 = vld [vmem:[#allocation8 + $0x31c] ss:$12 sps:$4 sm:$0xff]  }
 0x819   :  { %14959 = vmatprep.subr.msk.bf16.mxu1 %vm857_vm1, %v22435_v50  ;;  %14992 = vmatprep.subr.msk.bf16.mxu0 %vm857_vm1, %v22436_v44  ;;  %v22442_v50 = vld [vmem:[#allocation28_spill] sm:$0xff] }
 0x81c   :  { %8233 = vmatpush1.bf16.msra.mxu1 %v22438_v22  ;;  %8539 = vmatpush1.bf16.msra.mxu0 %v22439_v7  ;;  %v17265_v22 = vld [vmem:[#allocation8 + $0x334] ss:$12 sps:$4 sm:$0xff]  }
 0x81d   :  { %8896 = vmatprep.subr.bf16.mxu0 %v17259_v21  ;;  %v17268_v21 = vld [vmem:[#allocation8 + $0x34c] ss:$12 sps:$4 sm:$0xff]   ;;  %v22450_v7 = vld [vmem:[#allocation34_spill] sm:$0xff] }
 0x81f   :  { %8245 = vmatmul.mubr.bf16.vlgmr.msra.gmra.mrb[104].mxu1 %v22441_v51  ;;  %8551 = vmatmul.mubr.bf16.vlgmr.msra.gmra.mrb[180].mxu0 %v21046_v8  ;;  %v17266_v51 = vld [vmem:[#allocation8 + $0x348] ss:$12 sps:$4 sm:$0xff]   ;;  %v17272_v8 = vld [vmem:[#allocation8 + $0x360] ss:$12 sps:$4 sm:$0xff]  }
 0x820   :  { %14961 = vmatprep.mubr.msk.bf16.mxu1 %vm823_vm0, %v22442_v50  ;;  %14994 = vmatprep.mubr.msk.bf16.mxu0 %vm823_vm0, %v21050_v62  ;;  %v17271_v50 = vld [vmem:[#allocation16 + $0xc4] ss:$8 sps:$4 sm:$0xff]   ;;  %v17274_v62 = vld [vmem:[#allocation8 + $0x364] ss:$12 sps:$4 sm:$0xff]  }
 0x821   :  { %8897 = vmatpush1.bf16.msra.mxu0 %v17257_v43  ;;  %v17269_v43 = vld [vmem:[#allocation16 + $0xc0] ss:$8 sps:$4 sm:$0xff]   ;;  %8420 = vmatprep.subr.bf16.mxu1 %v17271_v50  ;;  %v17289_v50 = vld [vmem:[#allocation16 + $0xf4] ss:$8 sps:$4 sm:$0xff]  }
 0x822   :  { %8898 = vmatprep.subr.bf16.mxu0 %v17262_v37  ;;  %8421 = vmatpush1.bf16.msra.mxu1 %v17269_v43  ;;  %v17280_v37 = vld [vmem:[#allocation8 + $0x37c] ss:$12 sps:$4 sm:$0xff]   ;;  %v17287_v43 = vld [vmem:[#allocation16 + $0xf0] ss:$8 sps:$4 sm:$0xff]  }
 0x825   :  { %8899 = vmatpush1.bf16.msra.mxu0 %v17260_v14  ;;  %v17277_v14 = vld [vmem:[#allocation16 + $0xd4] ss:$8 sps:$4 sm:$0xff]  }
 0x826   :  { %8900 = vmatprep.subr.bf16.mxu0 %v17265_v22  ;;  %v17275_v22 = vld [vmem:[#allocation16 + $0xd0] ss:$8 sps:$4 sm:$0xff]   ;;  %8422 = vmatprep.subr.bf16.mxu1 %v17277_v14  ;;  %v17293_v14 = vld [vmem:[#allocation16 + $0x100] ss:$8 sps:$4 sm:$0xff]  }
 0x827   :  { %8255 = vmatmul.mubr.bf16.gmra.mrb[108].mxu1 %v22444_v10  ;;  %8561 = vmatmul.mubr.bf16.gmra.mrb[184].mxu0 %v21058_v5  ;;  %v17286_v10 = vld [vmem:[#allocation8 + $0x394] ss:$12 sps:$4 sm:$0xff]  }
 0x828   :  { %8423 = vmatpush1.bf16.msra.mxu1 %v17275_v22  ;;  %v17295_v5 = vld [vmem:[#allocation16 + $0x104] ss:$8 sps:$4 sm:$0xff]   ;;  %v17301_v22 = vld [vmem:[#allocation16 + $0x114] ss:$8 sps:$4 sm:$0xff]  }
 0x829   :  { %8901 = vmatpush1.bf16.msra.mxu0 %v17263_v35  ;;  %v17283_v35 = vld [vmem:[#allocation16 + $0xe4] ss:$8 sps:$4 sm:$0xff]  }
 0x82a   :  { %8902 = vmatprep.subr.bf16.mxu0 %v17268_v21  ;;  %v17281_v21 = vld [vmem:[#allocation16 + $0xe0] ss:$8 sps:$4 sm:$0xff]   ;;  %8424 = vmatprep.subr.bf16.mxu1 %v17283_v35  ;;  %v17299_v35 = vld [vmem:[#allocation16 + $0x110] ss:$8 sps:$4 sm:$0xff]  }
 0x82c   :  { %8425 = vmatpush1.bf16.msra.mxu1 %v17281_v21  ;;  %v17307_v21 = vld [vmem:[#allocation16 + $0x124] ss:$8 sps:$4 sm:$0xff]  }
 0x82d   :  { %8903 = vmatpush1.bf16.msra.mxu0 %v17266_v51  ;;  %v17284_v51 = vld [vmem:[#allocation8 + $0x390] ss:$12 sps:$4 sm:$0xff]   ;;  %8426 = vmatprep.subr.bf16.mxu1 %v17289_v50 }
 0x82e   :  { %8904 = vmatprep.subr.bf16.mxu0 %v17274_v62  ;;  %v17292_v62 = vld [vmem:[#allocation8 + $0x3ac] ss:$12 sps:$4 sm:$0xff]   ;;  %v17305_v50 = vld [vmem:[#allocation16 + $0x120] ss:$8 sps:$4 sm:$0xff]  }
 0x830   :  { %8427 = vmatpush1.bf16.msra.mxu1 %v17287_v43  ;;  %v17313_v43 = vld [vmem:[#allocation16 + $0x134] ss:$8 sps:$4 sm:$0xff]  }
 0x831   :  { %8905 = vmatpush1.bf16.msra.mxu0 %v17272_v8  ;;  %v17290_v8 = vld [vmem:[#allocation8 + $0x3a8] ss:$12 sps:$4 sm:$0xff]   ;;  %8428 = vmatprep.subr.bf16.mxu1 %v17295_v5  ;;  %v17311_v5 = vld [vmem:[#allocation16 + $0x130] ss:$8 sps:$4 sm:$0xff]  }
 0x832   :  { %8906 = vmatprep.subr.bf16.mxu0 %v17280_v37  ;;  %v17296_v37 = vld [vmem:[#allocation8 + $0x3c0] ss:$12 sps:$4 sm:$0xff]  }
 0x834   :  { %8429 = vmatpush1.bf16.msra.mxu1 %v17293_v14  ;;  %v17319_v14 = vld [vmem:[#allocation16 + $0x144] ss:$8 sps:$4 sm:$0xff]  }
 0x835   :  { %8907 = vmatpush1.bf16.msra.mxu0 %v17278_v24  ;;  %v17298_v24 = vld [vmem:[#allocation8 + $0x3c4] ss:$12 sps:$4 sm:$0xff]   ;;  %8430 = vmatprep.subr.bf16.mxu1 %v17301_v22  ;;  %v17320_v22 = vld [vmem:[#allocation8 + $0x420] ss:$12 sps:$4 sm:$0xff]  }
 0x836   :  { %8908 = vmatprep.subr.bf16.mxu0 %v17286_v10  ;;  %v17302_v10 = vld [vmem:[#allocation8 + $0x3d8] ss:$12 sps:$4 sm:$0xff]  }
 0x838   :  { %8431 = vmatpush1.bf16.msra.mxu1 %v17299_v35  ;;  %v17325_v35 = vld [vmem:[#allocation16 + $0x154] ss:$8 sps:$4 sm:$0xff]  }
 0x839   :  { %8909 = vmatpush1.bf16.msra.mxu0 %v17284_v51  ;;  %v17310_v51 = vld [vmem:[#allocation8 + $0x3f4] ss:$12 sps:$4 sm:$0xff]   ;;  %8432 = vmatprep.subr.bf16.mxu1 %v17307_v21 }
 0x83a   :  { %8910 = vmatprep.subr.bf16.mxu0 %v17292_v62  ;;  %v17308_v62 = vld [vmem:[#allocation8 + $0x3f0] ss:$12 sps:$4 sm:$0xff]   ;;  %v17323_v21 = vld [vmem:[#allocation16 + $0x150] ss:$8 sps:$4 sm:$0xff]  }
 0x83c   :  { %8433 = vmatpush1.bf16.msra.mxu1 %v17305_v50  ;;  %v17331_v50 = vld [vmem:[#allocation16 + $0x164] ss:$8 sps:$4 sm:$0xff]  }
 0x83d   :  { %8911 = vmatpush1.bf16.msra.mxu0 %v17290_v8  ;;  %v17316_v8 = vld [vmem:[#allocation8 + $0x40c] ss:$12 sps:$4 sm:$0xff]   ;;  %8434 = vmatprep.subr.bf16.mxu1 %v17313_v43  ;;  %v17329_v43 = vld [vmem:[#allocation16 + $0x160] ss:$8 sps:$4 sm:$0xff]  }
 0x83e   :  { %8912 = vmatprep.subr.bf16.mxu0 %v17298_v24  ;;  %v17314_v24 = vld [vmem:[#allocation8 + $0x408] ss:$12 sps:$4 sm:$0xff]  }
 0x840   :  { %8435 = vmatpush1.bf16.msra.mxu1 %v17311_v5  ;;  %v17337_v5 = vld [vmem:[#allocation16 + $0x174] ss:$8 sps:$4 sm:$0xff]  }
 0x841   :  { %8913 = vmatpush1.bf16.msra.mxu0 %v17296_v37  ;;  %v17322_v37 = vld [vmem:[#allocation8 + $0x424] ss:$12 sps:$4 sm:$0xff]   ;;  %8436 = vmatprep.subr.bf16.mxu1 %v17319_v14  ;;  %v17335_v14 = vld [vmem:[#allocation16 + $0x170] ss:$8 sps:$4 sm:$0xff]  }
 0x842   :  { %8914 = vmatprep.subr.bf16.mxu0 %v17304_v40  ;;  %v17317_v40 = vld [vmem:[#allocation16 + $0x140] ss:$8 sps:$4 sm:$0xff]  }
 0x844   :  { %8437 = vmatpush1.bf16.msra.mxu1 %v17317_v40  ;;  %v17341_v40 = vld [vmem:[#allocation8 + $0x3c8] ss:$12 sps:$4 sm:$0xff]  }
 0x845   :  { %8915 = vmatpush1.bf16.msra.mxu0 %v17302_v10  ;;  %v17328_v10 = vld [vmem:[#allocation8 + $0x43c] ss:$12 sps:$4 sm:$0xff]   ;;  %8438 = vmatprep.subr.bf16.mxu1 %v17325_v35 }
 0x846   :  { %8916 = vmatprep.subr.bf16.mxu0 %v17310_v51  ;;  %v17326_v51 = vld [vmem:[#allocation8 + $0x438] ss:$12 sps:$4 sm:$0xff]  }
 0x847   :  { %v22446_v35 = vld [vmem:[#allocation29_spill] sm:$0xff] }
 0x848   :  { %8439 = vmatpush1.bf16.msra.mxu1 %v17323_v21  ;;  %v6863_v21 = vld [vmem:[#allocation10] sm:$0x7] }
 0x849   :  { %8917 = vmatpush1.bf16.msra.mxu0 %v17308_v62  ;;  %v17334_v62 = vld [vmem:[#allocation8 + $0x454] ss:$12 sps:$4 sm:$0xff]   ;;  %8440 = vmatprep.subr.bf16.mxu1 %v17331_v50 }
 0x84a   :  { %8918 = vmatprep.subr.bf16.mxu0 %v17316_v8  ;;  %v17332_v8 = vld [vmem:[#allocation8 + $0x450] ss:$12 sps:$4 sm:$0xff]  }
 0x84c   :  { %8441 = vmatpush1.bf16.msra.mxu1 %v17329_v43  ;;  %v22447_v43 = vld [vmem:[#allocation54_spill] sm:$0xff] }
 0x84d   :  { %8919 = vmatpush1.bf16.msra.mxu0 %v17314_v24  ;;  %v17340_v24 = vld [vmem:[#allocation8 + $0x46c] ss:$12 sps:$4 sm:$0xff]   ;;  %8442 = vmatprep.subr.bf16.mxu1 %v17337_v5 }
 0x84e   :  { %8920 = vmatprep.subr.bf16.mxu0 %v17322_v37  ;;  %v17338_v37 = vld [vmem:[#allocation8 + $0x468] ss:$12 sps:$4 sm:$0xff]  }
 0x850   :  { %8443 = vmatpush1.bf16.msra.mxu1 %v17335_v14 }
 0x851   :  { %8921 = vmatpush1.bf16.msra.mxu0 %v17320_v22  ;;  %v22445_v22 = vld [vmem:[#allocation46_spill] sm:$0xff]  ;;  %15632 = vmatprep.subr.bf16.mxu1 %v17341_v40 }
 0x852   :  { %8922 = vmatprep.subr.bf16.mxu0 %v17328_v10  ;;  %v7389_v10 = vsub.s32 2, %v22446_v35 }
 0x855   :  { %8923 = vmatpush1.bf16.msra.mxu0 %v17326_v51  ;;  %v7390_v51 = vrot.slane %v6863_v21, %v7389_v10 }
 0x856   :  { %8924 = vmatprep.subr.bf16.mxu0 %v17334_v62 }
 0x857   :  { %v7399_v5 = vadd.f32 %v22448_v28, %v7390_v51  ;;  %v7402_v35 = vadd.f32 %v22449_v20, %v7390_v51  ;;  %v7405_v19 = vadd.f32 %v22450_v7, %v7390_v51  ;;  %v22452_v20 = vmax.f32 %v20709_v0, %v20962_v15  ;;  %v17342_v15 = vld [vmem:[#allocation8 + $0x308] ss:$12 sps:$4 sm:$0xff]  }
 0x859   :  { %8925 = vmatpush1.bf16.msra.mxu0 %v17332_v8  ;;  %v7396_v8 = vadd.f32 %v22447_v43, %v7390_v51 }
 0x85a   :  { %8926 = vmatprep.subr.bf16.mxu0 %v17340_v24 }
 0x85d   :  { %8927 = vmatpush1.bf16.msra.mxu0 %v17338_v37 }
 0x85e   :  { %9316 = vmatprep.subr.bf16.mxu0 %v22445_v22 }
 0x8c6   :  { %v15620_v50 = vpop.f32.mrb[96].mxu1 }
 0x8c7   :  { %v15621_v62 = vpop.f32.mrb[97].mxu1 }
 0x8c8   :  { %v15622_v46 = vadd.f32 %v15621_v62, %v15620_v50  ;;  %v15623_v34 = vpop.f32.mrb[98].mxu1 }
 0x8c9   :  { %v15624_v18 = vpop.f32.mrb[99].mxu1 }
 0x8ca   :  { %v21066_v24 = vadd.f32 %v15622_v46, %v7396_v8  ;;  %v15625_v14 = vadd.f32 %v15624_v18, %v15623_v34  ;;  %v22451_v18 = vmax.f32 %v20704_v54, %v20958_v60 }
 0x8cc   :  { %v21068_v37 = vadd.f32 %v15625_v14, %v7399_v5 }
 0x8ce   :  { %v15626_v22 = vpop.f32.mrb[100].mxu1 }
 0x8cf   :  { %v15627_v40 = vpop.f32.mrb[101].mxu1 }
 0x8d0   :  { %v15628_v56 = vadd.f32 %v15627_v40, %v15626_v22  ;;  %v15629_v10 = vpop.f32.mrb[102].mxu1 }
 0x8d1   :  { %v15630_v21 = vpop.f32.mrb[103].mxu1 }
 0x8d2   :  { %v21072_v43 = vadd.f32 %v15628_v56, %v7402_v35  ;;  %v15631_v50 = vadd.f32 %v15630_v21, %v15629_v10  ;;  %v22454_v10 = vmax.f32 %v20719_v58, %v20972_v16  ;;  %v22455_v58 = vmax.f32 %v20738_v45, %v20980_v23 }
 0x8d4   :  { %v21074_v62 = vadd.f32 %v15631_v50, %v7405_v19  ;;  %v22453_v19 = vmax.f32 %v20715_v11, %v20966_v2  ;;  %v17343_v50 = vld [vmem:[#allocation8 + $0x3e0] ss:$12 sps:$4 sm:$0xff]  }
 0x8f2   :  { %v8246_v28 = vpop.f32.mrb[104].mxu1  ;;  %v8552_v46 = vpop.f32.mrb[180].mxu0 }
 0x8f3   :  { %v21079_v34 = vmax.f32 %v22451_v18, %v8552_v46  ;;  %v8248_v8 = vpop.f32.mrb[105].mxu1  ;;  %v8554_v5 = vpop.f32.mrb[181].mxu0 }
 0x8f4   :  { %v21084_v14 = vmax.f32 %v22452_v20, %v8554_v5  ;;  %v8250_v7 = vpop.f32.mrb[106].mxu1  ;;  %v8556_v56 = vpop.f32.mrb[182].mxu0 }
 0x8f5   :  { %v8265_v51 = vpack.c.bf16 %v8250_v7, %v8246_v28  ;;  %v21089_v22 = vmax.f32 %v22453_v19, %v8556_v56  ;;  %v21091_v40 = vpack.c.bf16 %v8556_v56, %v8552_v46  ;;  %v8252_v54 = vpop.f32.mrb[107].mxu1  ;;  %v8558_v60 = vpop.f32.mrb[183].mxu0  ;;  %v17344_v28 = vld [vmem:[#allocation8 + $0x320] ss:$12 sps:$4 sm:$0xff]  }
 0x8f6   :  { %v8266_v35 = vpack.c.bf16 %v8252_v54, %v8248_v8  ;;  %v21096_v21 = vmax.f32 %v22454_v10, %v8558_v60  ;;  %v8572_v0 = vpack.c.bf16 %v8558_v60, %v8554_v5  ;;  %v17345_v8 = vld [vmem:[#allocation8 + $0x3f8] ss:$12 sps:$4 sm:$0xff]   ;;  %v22456_v5 = vmax.f32 %v20740_v57, %v20985_v39 }
 0x8f7   :  { %v17346_v39 = vld [vmem:[#allocation8 + $0x338] ss:$12 sps:$4 sm:$0xff]  }
 0x8f8   :  { %14986 = vmatprep.mubr.msk.bf16.mxu1 %vm1171_vm2, %v8266_v35  ;;  %8928 = vmatprep.mubr.bf16.mxu0 %v8572_v0  ;;  %v17353_v10 = vld [vmem:[#allocation8 + $0x458] ss:$12 sps:$4 sm:$0xff]  }
 0x8f9   :  { %8453 = vmatmul.mubr.bf16.vlgmr.msra.gmra.mrb[88].mxu1 %v8265_v51  ;;  %8929 = vmatmul.mubr.bf16.vlgmr.msra.gmra.mrb[148].mxu0 %v21091_v40  ;;  %v22457_v51 = vmax.f32 %v20742_v31, %v20990_v33  ;;  %v17347_v31 = vld [vmem:[#allocation8 + $0x410] ss:$12 sps:$4 sm:$0xff]  }
 0x8fa   :  { %15633 = vmatpush3.bf16.msra.mxu1 %v17342_v15  ;;  %9317 = vmatpush1.bf16.msra.mxu0 %v20871_v26  ;;  %v8256_v11 = vpop.f32.mrb[108].mxu1  ;;  %v8562_v2 = vpop.f32.mrb[184].mxu0  ;;  %v21125_v33 = vld [vmem:[#allocation5 + $0x64] ss:$8 sps:$4 sm:$0xff]   ;;  %v21167_v15 = vld [vmem:[#allocation5 + $0x70] ss:$8 sps:$4 sm:$0xff]  }
 0x8fb   :  { %v21104_v16 = vmax.f32 %v22455_v58, %v8562_v2  ;;  %v8258_v46 = vpop.f32.mrb[109].mxu1  ;;  %v8564_v18 = vpop.f32.mrb[185].mxu0  ;;  %15634 = vmatprep.subr.bf16.mxu1 %v17343_v50  ;;  %9318 = vmatprep.subr.bf16.mxu0 %v20875_v49  ;;  %v22458_v49 = vmax.f32 %v20746_v59, %v20996_v47  ;;  %v17348_v59 = vld [vmem:[#allocation8 + $0x350] ss:$12 sps:$4 sm:$0xff]   ;;  %v17349_v47 = vld [vmem:[#allocation8 + $0x428] ss:$12 sps:$4 sm:$0xff]  }
 0x8fc   :  { %v21110_v20 = vmax.f32 %v22456_v5, %v8564_v18  ;;  %v8260_v26 = vpop.f32.mrb[110].mxu1  ;;  %v8566_v7 = vpop.f32.mrb[186].mxu0  ;;  %v22465_v50 = vld [vmem:[#allocation36_spill] sm:$0xff]  ;;  %v22467_v58 = vld [vmem:[#allocation50_spill] sm:$0xff]  ;;  %v22469_v5 = vld [vmem:[#allocation49_spill] sm:$0xff] }
 0x8fd   :  { %v8267_v56 = vpack.c.bf16 %v8260_v26, %v8256_v11  ;;  %v21115_v45 = vmax.f32 %v22457_v51, %v8566_v7  ;;  %v8573_v23 = vpack.c.bf16 %v8566_v7, %v8562_v2  ;;  %v8262_v19 = vpop.f32.mrb[111].mxu1  ;;  %v8568_v54 = vpop.f32.mrb[187].mxu0  ;;  %v17369_v11 = vld [vmem:[#allocation8 + $0x4b0] ss:$12 sps:$4 sm:$0xff]   ;;  %v17374_v2 = vld [vmem:[#allocation8 + $0x4cc] ss:$12 sps:$4 sm:$0xff]  }
 0x8fe   :  { %v8268_v60 = vpack.c.bf16 %v8262_v19, %v8258_v46  ;;  %v21120_v35 = vmax.f32 %v22458_v49, %v8568_v54  ;;  %v8574_v57 = vpack.c.bf16 %v8568_v54, %v8564_v18  ;;  %15635 = vmatpush3.bf16.msra.mxu1 %v17344_v28  ;;  %9319 = vmatpush1.bf16.msra.mxu0 %v20880_v17  ;;  %v17350_v17 = vld [vmem:[#allocation8 + $0x368] ss:$12 sps:$4 sm:$0xff]   ;;  %v17377_v18 = vld [vmem:[#allocation8 + $0x4e4] ss:$12 sps:$4 sm:$0xff]   ;;  %v17375_v26 = vld [vmem:[#allocation8 + $0x4e0] ss:$12 sps:$4 sm:$0xff]  }
 0x8ff   :  { %15636 = vmatprep.subr.bf16.mxu1 %v17345_v8  ;;  %9320 = vmatprep.subr.bf16.mxu0 %v20885_v63  ;;  %v17351_v63 = vld [vmem:[#allocation8 + $0x440] ss:$12 sps:$4 sm:$0xff]   ;;  %v22466_v28 = vld [vmem:[#allocation32_spill] sm:$0xff]  ;;  %v17380_v7 = vld [vmem:[#allocation8 + $0x4fc] ss:$12 sps:$4 sm:$0xff]  }
 0x900   :  { %14987 = vmatprep.mubr.msk.bf16.mxu1 %vm1171_vm2, %v8268_v60  ;;  %8938 = vmatprep.mubr.bf16.mxu0 %v8574_v57  ;;  %v17372_v46 = vld [vmem:[#allocation8 + $0x4c8] ss:$12 sps:$4 sm:$0xff]   ;;  %v22471_v51 = vld [vmem:[#allocation41_spill] sm:$0xff] }
 0x901   :  { %8463 = vmatmul.mubr.bf16.gmra.mrb[92].mxu1 %v8267_v56  ;;  %8939 = vmatmul.mubr.bf16.gmra.mrb[152].mxu0 %v8573_v23  ;;  %v22468_v8 = vld [vmem:[#allocation47_spill] sm:$0xff]  ;;  %v17383_v19 = vld [vmem:[#allocation8 + $0x514] ss:$12 sps:$4 sm:$0xff]  }
 0x902   :  { %15637 = vmatpush3.bf16.msra.mxu1 %v17346_v39  ;;  %9321 = vmatpush1.bf16.msra.mxu0 %v20890_v3  ;;  %v17352_v3 = vld [vmem:[#allocation8 + $0x380] ss:$12 sps:$4 sm:$0xff]   ;;  %v22472_v54 = vld [vmem:[#allocation52_spill] sm:$0xff] }
 0x903   :  { %8981 = vmatprep.mubr.bf16.mxu1 %v8572_v0  ;;  %15638 = vmatprep.subr.bf16.mxu1 %v17347_v31  ;;  %v22464_v0 = vld [vmem:[#allocation48_spill] sm:$0xff]  ;;  %v22470_v56 = vld [vmem:[#allocation39_spill] sm:$0xff]  ;;  %v22474_v39 = vld [vmem:[#allocation42_spill] sm:$0xff] }
 0x904   :  { %9322 = vmatprep.subr.bf16.mxu0 %v20895_v13  ;;  %15077 = vmatprep.mubr.msk.bf16.mxu0 %vm823_vm0, %v21125_v33  ;;  %v17354_v13 = vld [vmem:[#allocation8 + $0x398] ss:$12 sps:$4 sm:$0xff]   ;;  %v17381_v49 = vld [vmem:[#allocation8 + $0x510] ss:$12 sps:$4 sm:$0xff]  }
 0x905   :  { %v22473_v60 = vld [vmem:[#allocation44_spill] sm:$0xff]  ;;  %v22475_v31 = vld [vmem:[#allocation43_spill] sm:$0xff] }
 0x906   :  { %15639 = vmatpush3.bf16.msra.mxu1 %v17348_v59  ;;  %9323 = vmatpush1.bf16.msra.mxu0 %v20900_v61  ;;  %v17355_v61 = vld [vmem:[#allocation8 + $0x470] ss:$12 sps:$4 sm:$0xff]   ;;  %v17384_v59 = vld [vmem:[#allocation8 + $0x528] ss:$12 sps:$4 sm:$0xff]  }
 0x907   :  { %15640 = vmatprep.subr.bf16.mxu1 %v17349_v47  ;;  %9324 = vmatprep.subr.bf16.mxu0 %v20903_v9  ;;  %v17356_v9 = vld [vmem:[#allocation8 + $0x3b0] ss:$12 sps:$4 sm:$0xff]  }
 0x908   :  { %v17389_v47 = vld [vmem:[#allocation8 + $0x544] ss:$12 sps:$4 sm:$0xff]  }
 0x90a   :  { %15641 = vmatpush3.bf16.msra.mxu1 %v17350_v17  ;;  %9325 = vmatpush1.bf16.msra.mxu0 %v20908_v52  ;;  %v17365_v52 = vld [vmem:[#allocation8 + $0x484] ss:$12 sps:$4 sm:$0xff]   ;;  %v22476_v17 = vld [vmem:[#allocation45_spill] sm:$0xff] }
 0x90b   :  { %15642 = vmatprep.subr.bf16.mxu1 %v17351_v63  ;;  %9326 = vmatprep.subr.bf16.mxu0 %v20911_v38  ;;  %v21153_v38 = vld [vmem:[#allocation5 + $0x60] ss:$8 sps:$4 sm:$0xff]  }
 0x90c   :  { %v17387_v63 = vld [vmem:[#allocation8 + $0x540] ss:$12 sps:$4 sm:$0xff]  }
 0x90e   :  { %15643 = vmatpush3.bf16.msra.mxu1 %v17352_v3  ;;  %9327 = vmatpush1.bf16.msra.mxu0 %v20914_v1  ;;  %v22459_v1 = vld [vmem:[#allocation57_spill] sm:$0xff]  ;;  %v22477_v3 = vld [vmem:[#allocation55_spill] sm:$0xff] }
 0x90f   :  { %15644 = vmatprep.subr.bf16.mxu1 %v17353_v10  ;;  %9328 = vmatprep.subr.bf16.mxu0 %v20917_v36  ;;  %v22460_v36 = vld [vmem:[#allocation33_spill] sm:$0xff] }
 0x910   :  { %v17392_v10 = vld [vmem:[#allocation8 + $0x55c] ss:$12 sps:$4 sm:$0xff]  }
 0x912   :  { %15645 = vmatpush3.bf16.msra.mxu1 %v17354_v13  ;;  %9329 = vmatpush1.bf16.msra.mxu0 %v20920_v29  ;;  %v22461_v29 = vld [vmem:[#allocation40_spill] sm:$0xff]  ;;  %v22478_v13 = vld [vmem:[#allocation58_spill] sm:$0xff] }
 0x913   :  { %15646 = vmatprep.subr.bf16.mxu1 %v17355_v61  ;;  %9330 = vmatprep.subr.bf16.mxu0 %v20923_v41  ;;  %v21159_v41 = vld [vmem:[#allocation5 + $0x74] ss:$8 sps:$4 sm:$0xff]   ;;  %v17390_v61 = vld [vmem:[#allocation8 + $0x558] ss:$12 sps:$4 sm:$0xff]  }
 0x916   :  { %15647 = vmatpush3.bf16.msra.mxu1 %v17356_v9  ;;  %9331 = vmatpush1.bf16.msra.mxu0 %v20926_v27  ;;  %v17363_v27 = vld [vmem:[#allocation8 + $0x480] ss:$12 sps:$4 sm:$0xff]  }
 0x917   :  { %9010 = vmatprep.subr.bf16.mxu1 %v20764_v6  ;;  %9332 = vmatprep.subr.bf16.mxu0 %v20929_v4  ;;  %v17368_v4 = vld [vmem:[#allocation8 + $0x49c] ss:$12 sps:$4 sm:$0xff]   ;;  %v17395_v9 = vld [vmem:[#allocation8 + $0x574] ss:$12 sps:$4 sm:$0xff]  }
 0x919   :  { %8982 = vmatmul.mubr.bf16.vlgmr.msra.gmra.mrb[112].mxu1 %v21091_v40  ;;  %v17371_v40 = vld [vmem:[#allocation8 + $0x4b4] ss:$12 sps:$4 sm:$0xff]  }
 0x91a   :  { %8989 = vmatprep.mubr.bf16.mxu1 %v8574_v57  ;;  %9011 = vmatpush1.bf16.msra.mxu1 %v20762_v12  ;;  %v17386_v57 = vld [vmem:[#allocation8 + $0x52c] ss:$12 sps:$4 sm:$0xff]  }
 0x91b   :  { %9333 = vmatpush1.bf16.msra.mxu0 %v20932_v25  ;;  %9012 = vmatprep.subr.bf16.mxu1 %v20774_v55  ;;  %v22462_v25 = vld [vmem:[#allocation38_spill] sm:$0xff] }
 0x91c   :  { %9334 = vmatprep.subr.bf16.mxu0 %v20935_v53  ;;  %v22463_v53 = vld [vmem:[#allocation35_spill] sm:$0xff] }
 0x91e   :  { %9013 = vmatpush1.bf16.msra.mxu1 %v20772_v48 }
 0x91f   :  { %9335 = vmatpush1.bf16.msra.mxu0 %v22434_v32  ;;  %9014 = vmatprep.subr.bf16.mxu1 %v20784_v42  ;;  %v17366_v32 = vld [vmem:[#allocation8 + $0x498] ss:$12 sps:$4 sm:$0xff]  }
 0x920   :  { %15076 = vmatprep.subr.msk.bf16.mxu0 %vm857_vm1, %v22436_v44 }
 0x921   :  { %8990 = vmatmul.mubr.bf16.gmra.mrb[116].mxu1 %v8573_v23  ;;  %v17378_v23 = vld [vmem:[#allocation8 + $0x4f8] ss:$12 sps:$4 sm:$0xff]  }
 0x922   :  { %9015 = vmatpush1.bf16.msra.mxu1 %v20782_v30  ;;  %15044 = vmatprep.mubr.msk.bf16.mxu1 %vm823_vm0, %v22459_v1  ;;  %v22479_v1 = vld [vmem:[#allocation37_spill] sm:$0xff] }
 0x923   :  { %9337 = vmatpush1.bf16.msra.mxu0 %v22460_v36  ;;  %9016 = vmatprep.subr.bf16.mxu1 %v22461_v29 }
 0x924   :  { %9694 = vmatprep.subr.bf16.mxu0 %v17365_v52  ;;  %v17393_v52 = vld [vmem:[#allocation8 + $0x570] ss:$12 sps:$4 sm:$0xff]  }
 0x926   :  { %9349 = vmatmul.mubr.bf16.vlgmr.msra.gmra.mrb[188].mxu0 %v21153_v38  ;;  %9017 = vmatpush1.bf16.msra.mxu1 %v22462_v25 }
 0x927   :  { %9018 = vmatprep.subr.bf16.mxu1 %v22463_v53  ;;  %15078 = vmatprep.mubr.msk.bf16.mxu0 %vm823_vm0, %v21159_v41 }
 0x928   :  { %9695 = vmatpush1.bf16.msra.mxu0 %v17363_v27  ;;  %v17398_v27 = vld [vmem:[#allocation8 + $0x58c] ss:$12 sps:$4 sm:$0xff]  }
 0x929   :  { %9696 = vmatprep.subr.bf16.mxu0 %v17368_v4  ;;  %v17396_v4 = vld [vmem:[#allocation8 + $0x588] ss:$12 sps:$4 sm:$0xff]  }
 0x92a   :  { %9019 = vmatpush1.bf16.msra.mxu1 %v22464_v0 }
 0x92b   :  { %9020 = vmatprep.subr.bf16.mxu1 %v22465_v50 }
 0x92c   :  { %9697 = vmatpush1.bf16.msra.mxu0 %v17366_v32  ;;  %v17401_v32 = vld [vmem:[#allocation16 + $0x184] ss:$8 sps:$4 sm:$0xff]  }
 0x92d   :  { %9698 = vmatprep.subr.bf16.mxu0 %v17371_v40  ;;  %v17404_v40 = vld [vmem:[#allocation8 + $0x5a4] ss:$12 sps:$4 sm:$0xff]  }
 0x92e   :  { %9359 = vmatmul.mubr.bf16.gmra.mrb[192].mxu0 %v21167_v15  ;;  %9021 = vmatpush1.bf16.msra.mxu1 %v22466_v28 }
 0x92f   :  { %9022 = vmatprep.subr.bf16.mxu1 %v22467_v58 }
 0x930   :  { %9699 = vmatpush1.bf16.msra.mxu0 %v17369_v11  ;;  %v17399_v11 = vld [vmem:[#allocation16 + $0x180] ss:$8 sps:$4 sm:$0xff]  }
 0x931   :  { %9700 = vmatprep.subr.bf16.mxu0 %v17374_v2  ;;  %v17402_v2 = vld [vmem:[#allocation8 + $0x5a0] ss:$12 sps:$4 sm:$0xff]  }
 0x932   :  { %9023 = vmatpush1.bf16.msra.mxu1 %v22468_v8 }
 0x933   :  { %9024 = vmatprep.subr.bf16.mxu1 %v22469_v5 }
 0x934   :  { %9701 = vmatpush1.bf16.msra.mxu0 %v17372_v46  ;;  %v17407_v46 = vld [vmem:[#allocation16 + $0x194] ss:$8 sps:$4 sm:$0xff]  }
 0x935   :  { %9702 = vmatprep.subr.bf16.mxu0 %v17377_v18  ;;  %v17410_v18 = vld [vmem:[#allocation8 + $0x5bc] ss:$12 sps:$4 sm:$0xff]  }
 0x936   :  { %9025 = vmatpush1.bf16.msra.mxu1 %v22470_v56 }
 0x937   :  { %9026 = vmatprep.subr.bf16.mxu1 %v22471_v51 }
 0x938   :  { %9703 = vmatpush1.bf16.msra.mxu0 %v17375_v26  ;;  %v17405_v26 = vld [vmem:[#allocation16 + $0x190] ss:$8 sps:$4 sm:$0xff]  }
 0x939   :  { %9704 = vmatprep.subr.bf16.mxu0 %v17380_v7  ;;  %v17408_v7 = vld [vmem:[#allocation8 + $0x5b8] ss:$12 sps:$4 sm:$0xff]  }
 0x93a   :  { %9027 = vmatpush1.bf16.msra.mxu1 %v22472_v54 }
 0x93b   :  { %9028 = vmatprep.subr.bf16.mxu1 %v22473_v60 }
 0x93c   :  { %9705 = vmatpush1.bf16.msra.mxu0 %v17378_v23  ;;  %v17413_v23 = vld [vmem:[#allocation16 + $0x1a4] ss:$8 sps:$4 sm:$0xff]  }
 0x93d   :  { %9706 = vmatprep.subr.bf16.mxu0 %v17383_v19  ;;  %v17416_v19 = vld [vmem:[#allocation8 + $0x5d4] ss:$12 sps:$4 sm:$0xff]  }
 0x93e   :  { %9029 = vmatpush1.bf16.msra.mxu1 %v22474_v39 }
 0x93f   :  { %15043 = vmatprep.subr.msk.bf16.mxu1 %vm857_vm1, %v22475_v31 }
 0x940   :  { %9707 = vmatpush1.bf16.msra.mxu0 %v17381_v49  ;;  %v17411_v49 = vld [vmem:[#allocation16 + $0x1a0] ss:$8 sps:$4 sm:$0xff]  }
 0x941   :  { %9708 = vmatprep.subr.bf16.mxu0 %v17386_v57  ;;  %v17414_v57 = vld [vmem:[#allocation8 + $0x5d0] ss:$12 sps:$4 sm:$0xff]  }
 0x942   :  { %9031 = vmatpush1.bf16.msra.mxu1 %v22476_v17 }
 0x943   :  { %9218 = vmatprep.subr.bf16.mxu1 %v17401_v32  ;;  %v17434_v32 = vld [vmem:[#allocation16 + $0x1f4] ss:$8 sps:$4 sm:$0xff]  }
 0x944   :  { %9709 = vmatpush1.bf16.msra.mxu0 %v17384_v59  ;;  %v17419_v59 = vld [vmem:[#allocation16 + $0x1b4] ss:$8 sps:$4 sm:$0xff]  }
 0x945   :  { %9043 = vmatmul.mubr.bf16.vlgmr.msra.gmra.mrb[120].mxu1 %v22477_v3  ;;  %9710 = vmatprep.subr.bf16.mxu0 %v17389_v47  ;;  %v17422_v47 = vld [vmem:[#allocation8 + $0x5ec] ss:$12 sps:$4 sm:$0xff]   ;;  %v17420_v3 = vld [vmem:[#allocation8 + $0x5e8] ss:$12 sps:$4 sm:$0xff]  }
 0x946   :  { %15045 = vmatprep.mubr.msk.bf16.mxu1 %vm823_vm0, %v22478_v13  ;;  %9219 = vmatpush1.bf16.msra.mxu1 %v17399_v11  ;;  %v17425_v13 = vld [vmem:[#allocation16 + $0x1c4] ss:$8 sps:$4 sm:$0xff]  }
 0x947   :  { %9220 = vmatprep.subr.bf16.mxu1 %v17407_v46  ;;  %v17437_v11 = vld [vmem:[#allocation16 + $0x204] ss:$8 sps:$4 sm:$0xff]   ;;  %v17440_v46 = vld [vmem:[#allocation16 + $0x214] ss:$8 sps:$4 sm:$0xff]  }
 0x948   :  { %9711 = vmatpush1.bf16.msra.mxu0 %v17387_v63  ;;  %v17417_v63 = vld [vmem:[#allocation16 + $0x1b0] ss:$8 sps:$4 sm:$0xff]  }
 0x949   :  { %9712 = vmatprep.subr.bf16.mxu0 %v17392_v10  ;;  %v17423_v10 = vld [vmem:[#allocation16 + $0x1c0] ss:$8 sps:$4 sm:$0xff]  }
 0x94a   :  { %9221 = vmatpush1.bf16.msra.mxu1 %v17405_v26  ;;  %v17443_v26 = vld [vmem:[#allocation16 + $0x224] ss:$8 sps:$4 sm:$0xff]  }
 0x94b   :  { %9222 = vmatprep.subr.bf16.mxu1 %v17413_v23  ;;  %v17444_v23 = vld [vmem:[#allocation16 + $0x230] ss:$8 sps:$4 sm:$0xff]  }
 0x94c   :  { %9713 = vmatpush1.bf16.msra.mxu0 %v17390_v61  ;;  %v21187_v61 = vld [vmem:[#allocation2 + $0x4] ss:$8 sps:$4 sm:$0xff]  }
 0x94d   :  { %9053 = vmatmul.mubr.bf16.gmra.mrb[124].mxu1 %v22479_v1  ;;  %9714 = vmatprep.subr.bf16.mxu0 %v17395_v9  ;;  %v17428_v9 = vld [vmem:[#allocation16 + $0x1d4] ss:$8 sps:$4 sm:$0xff]   ;;  %v17429_v1 = vld [vmem:[#allocation16 + $0x1e0] ss:$8 sps:$4 sm:$0xff]  }
 0x94e   :  { %9223 = vmatpush1.bf16.msra.mxu1 %v17411_v49 }
 0x94f   :  { %9224 = vmatprep.subr.bf16.mxu1 %v17419_v59 }
 0x950   :  { %9715 = vmatpush1.bf16.msra.mxu0 %v17393_v52  ;;  %v17426_v52 = vld [vmem:[#allocation16 + $0x1d0] ss:$8 sps:$4 sm:$0xff]  }
 0x951   :  { %9716 = vmatprep.subr.bf16.mxu0 %v17398_v27  ;;  %v17431_v27 = vld [vmem:[#allocation16 + $0x1e4] ss:$8 sps:$4 sm:$0xff]  }
 0x952   :  { %9225 = vmatpush1.bf16.msra.mxu1 %v17417_v63 }
 0x953   :  { %9226 = vmatprep.subr.bf16.mxu1 %v17425_v13 }
 0x954   :  { %9717 = vmatpush1.bf16.msra.mxu0 %v17396_v4  ;;  %v17432_v4 = vld [vmem:[#allocation16 + $0x1f0] ss:$8 sps:$4 sm:$0xff]  }
 0x955   :  { %9718 = vmatprep.subr.bf16.mxu0 %v17404_v40  ;;  %v17435_v40 = vld [vmem:[#allocation16 + $0x200] ss:$8 sps:$4 sm:$0xff]  }
 0x956   :  { %9227 = vmatpush1.bf16.msra.mxu1 %v17423_v10 }
 0x957   :  { %9228 = vmatprep.subr.bf16.mxu1 %v17428_v9 }
 0x958   :  { %9719 = vmatpush1.bf16.msra.mxu0 %v17402_v2  ;;  %v17438_v2 = vld [vmem:[#allocation16 + $0x210] ss:$8 sps:$4 sm:$0xff]  }
 0x959   :  { %9720 = vmatprep.subr.bf16.mxu0 %v17410_v18  ;;  %v17441_v18 = vld [vmem:[#allocation16 + $0x220] ss:$8 sps:$4 sm:$0xff]  }
 0x95a   :  { %9229 = vmatpush1.bf16.msra.mxu1 %v17426_v52 }
 0x95b   :  { %9230 = vmatprep.subr.bf16.mxu1 %v17431_v27 }
 0x95c   :  { %9721 = vmatpush1.bf16.msra.mxu0 %v17408_v7  ;;  %v17446_v7 = vld [vmem:[#allocation16 + $0x234] ss:$8 sps:$4 sm:$0xff]  }
 0x95d   :  { %9722 = vmatprep.subr.bf16.mxu0 %v17416_v19  ;;  %v17447_v19 = vld [vmem:[#allocation8 + $0x548] ss:$12 sps:$4 sm:$0xff]  }
 0x95e   :  { %9231 = vmatpush1.bf16.msra.mxu1 %v17429_v1 }
 0x95f   :  { %9232 = vmatprep.subr.bf16.mxu1 %v17434_v32 }
 0x960   :  { %9723 = vmatpush1.bf16.msra.mxu0 %v17414_v57 }
 0x961   :  { %9724 = vmatprep.subr.bf16.mxu0 %v17422_v47 }
 0x962   :  { %9233 = vmatpush1.bf16.msra.mxu1 %v17432_v4 }
 0x963   :  { %9234 = vmatprep.subr.bf16.mxu1 %v17437_v11 }
 0x964   :  { %9725 = vmatpush1.bf16.msra.mxu0 %v17420_v3 }
 0x965   :  { %10114 = vmatprep.subr.bf16.mxu0 %v21187_v61 }
 0x966   :  { %9235 = vmatpush1.bf16.msra.mxu1 %v17435_v40 }
 0x967   :  { %9236 = vmatprep.subr.bf16.mxu1 %v17440_v46 }
 0x96a   :  { %9237 = vmatpush1.bf16.msra.mxu1 %v17438_v2 }
 0x96b   :  { %9238 = vmatprep.subr.bf16.mxu1 %v17443_v26 }
 0x96e   :  { %9239 = vmatpush1.bf16.msra.mxu1 %v17441_v18 }
 0x96f   :  { %9240 = vmatprep.subr.bf16.mxu1 %v17446_v7 }
 0x972   :  { %9241 = vmatpush1.bf16.msra.mxu1 %v17444_v23 }
 0x973   :  { %15660 = vmatprep.subr.bf16.mxu1 %v17447_v19  ;;  %v21228_v19 = vld [vmem:[#allocation2] ss:$8 sps:$4 sm:$0xff]  }
 0x9ec   :  { %v15648_v49 = vpop.f32.mrb[112].mxu1 }
 0x9ed   :  { %v15649_v57 = vpop.f32.mrb[113].mxu1 }
 0x9ee   :  { %v15650_v59 = vadd.f32 %v15649_v57, %v15648_v49  ;;  %v15651_v47 = vpop.f32.mrb[114].mxu1  ;;  %v21268_v57 = vld [vmem:[#allocation2 + $0x20] ss:$8 sps:$4 sm:$0xff]  }
 0x9ef   :  { %v15652_v63 = vpop.f32.mrb[115].mxu1  ;;  %22488 = vst [vmem:[#allocation57_spill] sm:$0xff] %v21268_v57 }
 0x9f0   :  { %v21191_v3 = vadd.f32 %v15650_v59, %v21066_v24  ;;  %v15653_v10 = vadd.f32 %v15652_v63, %v15651_v47  ;;  %v21237_v47 = vld [vmem:[#allocation2 + $0x14] ss:$8 sps:$4 sm:$0xff]  }
 0x9f1   :  { %v21261_v63 = vld [vmem:[#allocation5 + $0x84] ss:$8 sps:$4 sm:$0xff]  }
 0x9f2   :  { %22480 = vst [vmem:[#allocation28_spill] sm:$0xff] %v21191_v3  ;;  %v21194_v13 = vadd.f32 %v15653_v10, %v21068_v37  ;;  %22486 = vst [vmem:[#allocation53_spill] sm:$0xff] %v21261_v63  ;;  %v21282_v37 = vld [vmem:[#allocation2 + $0x40] ss:$8 sps:$4 sm:$0xff]   ;;  %v21285_v24 = vld [vmem:[#allocation2 + $0x54] ss:$8 sps:$4 sm:$0xff]  }
 0x9f3   :  { %22492 = vst [vmem:[#allocation48_spill] sm:$0xff] %v21282_v37  ;;  %22493 = vst [vmem:[#allocation36_spill] sm:$0xff] %v21285_v24 }
 0x9f4   :  { %22481 = vst [vmem:[#allocation56_spill] sm:$0xff] %v21194_v13  ;;  %v15654_v9 = vpop.f32.mrb[116].mxu1  ;;  %v21294_v13 = vld [vmem:[#allocation2 + $0x60] ss:$8 sps:$4 sm:$0xff]  }
 0x9f5   :  { %v15655_v52 = vpop.f32.mrb[117].mxu1  ;;  %22496 = vst [vmem:[#allocation47_spill] sm:$0xff] %v21294_v13 }
 0x9f6   :  { %v15656_v1 = vadd.f32 %v15655_v52, %v15654_v9  ;;  %v15657_v27 = vpop.f32.mrb[118].mxu1  ;;  %v21263_v9 = vld [vmem:[#allocation2 + $0x24] ss:$8 sps:$4 sm:$0xff]  }
 0x9f7   :  { %v15658_v4 = vpop.f32.mrb[119].mxu1  ;;  %22487 = vst [vmem:[#allocation34_spill] sm:$0xff] %v21263_v9 }
 0x9f8   :  { %v21197_v32 = vadd.f32 %v15656_v1, %v21072_v43  ;;  %v15659_v40 = vadd.f32 %v15658_v4, %v15657_v27  ;;  %v21273_v27 = vld [vmem:[#allocation2 + $0x34] ss:$8 sps:$4 sm:$0xff]   ;;  %v21279_v43 = vld [vmem:[#allocation2 + $0x44] ss:$8 sps:$4 sm:$0xff]  }
 0x9f9   :  { %v21199_v11 = vpop.f32.mrb[188].mxu0  ;;  %22489 = vst [vmem:[#allocation40_spill] sm:$0xff] %v21273_v27  ;;  %22491 = vst [vmem:[#allocation35_spill] sm:$0xff] %v21279_v43 }
 0x9fa   :  { %22482 = vst [vmem:[#allocation46_spill] sm:$0xff] %v21197_v32  ;;  %v21202_v2 = vadd.f32 %v15659_v40, %v21074_v62  ;;  %v21206_v46 = vpop.f32.mrb[189].mxu0  ;;  %v21258_v40 = vld [vmem:[#allocation2 + $0x10] ss:$8 sps:$4 sm:$0xff]  }
 0x9fb   :  { %v21210_v18 = vpop.f32.mrb[190].mxu0  ;;  %22485 = vst [vmem:[#allocation51_spill] sm:$0xff] %v21258_v40  ;;  %v21276_v62 = vld [vmem:[#allocation2 + $0x30] ss:$8 sps:$4 sm:$0xff]  }
 0x9fc   :  { %22483 = vst [vmem:[#allocation29_spill] sm:$0xff] %v21202_v2  ;;  %v21216_v26 = vpack.c.bf16 %v21210_v18, %v21199_v11  ;;  %v21218_v7 = vpop.f32.mrb[191].mxu0  ;;  %22490 = vst [vmem:[#allocation38_spill] sm:$0xff] %v21276_v62  ;;  %v21291_v2 = vld [vmem:[#allocation2 + $0x64] ss:$8 sps:$4 sm:$0xff]  }
 0x9fd   :  { %v21224_v23 = vpack.c.bf16 %v21218_v7, %v21206_v46  ;;  %22495 = vst [vmem:[#allocation50_spill] sm:$0xff] %v21291_v2 }
 0x9ff   :  { %9726 = vmatprep.mubr.bf16.mxu0 %v21224_v23 }
 0xa00   :  { %9727 = vmatmul.mubr.bf16.vlgmr.msra.gmra.mrb[148].mxu0 %v21216_v26 }
 0xa01   :  { %10115 = vmatpush1.bf16.msra.mxu0 %v21228_v19  ;;  %v21231_v49 = vpop.f32.mrb[192].mxu0 }
 0xa02   :  { %v21235_v59 = vpop.f32.mrb[193].mxu0  ;;  %10116 = vmatprep.subr.bf16.mxu0 %v21237_v47 }
 0xa03   :  { %v21242_v10 = vpop.f32.mrb[194].mxu0 }
 0xa04   :  { %v21248_v52 = vpack.c.bf16 %v21242_v10, %v21231_v49  ;;  %v21250_v1 = vpop.f32.mrb[195].mxu0 }
 0xa05   :  { %22484 = vst [vmem:[#allocation54_spill] sm:$0xff] %v21250_v1  ;;  %v21256_v4 = vpack.c.bf16 %v21250_v1, %v21235_v59  ;;  %10117 = vmatpush1.bf16.msra.mxu0 %v21258_v40  ;;  %v17450_v40 = vld [vmem:[#allocation8 + $0x4a0] ss:$12 sps:$4 sm:$0xff]  }
 0xa06   :  { %10118 = vmatprep.subr.bf16.mxu0 %v21263_v9  ;;  %v21304_v9 = vld [vmem:[#allocation2 + $0x84] ss:$8 sps:$4 sm:$0xff]  }
 0xa07   :  { %9736 = vmatprep.mubr.bf16.mxu0 %v21256_v4  ;;  %22499 = vst [vmem:[#allocation41_spill] sm:$0xff] %v21304_v9 }
 0xa08   :  { %9737 = vmatmul.mubr.bf16.gmra.mrb[152].mxu0 %v21248_v52 }
 0xa09   :  { %10119 = vmatpush1.bf16.msra.mxu0 %v21268_v57  ;;  %15161 = vmatprep.mubr.msk.bf16.mxu0 %vm823_vm0, %v21261_v63  ;;  %v21288_v63 = vld [vmem:[#allocation2 + $0x50] ss:$8 sps:$4 sm:$0xff]  }
 0xa0a   :  { %10120 = vmatprep.subr.bf16.mxu0 %v21273_v27  ;;  %22494 = vst [vmem:[#allocation32_spill] sm:$0xff] %v21288_v63  ;;  %v17448_v57 = vld [vmem:[#allocation8 + $0x488] ss:$12 sps:$4 sm:$0xff]  }
 0xa0d   :  { %10121 = vmatpush1.bf16.msra.mxu0 %v21276_v62 }
 0xa0e   :  { %10122 = vmatprep.subr.bf16.mxu0 %v21279_v43 }
 0xa11   :  { %10123 = vmatpush1.bf16.msra.mxu0 %v21282_v37  ;;  %v21297_v37 = vld [vmem:[#allocation2 + $0x74] ss:$8 sps:$4 sm:$0xff]  }
 0xa12   :  { %10124 = vmatprep.subr.bf16.mxu0 %v21285_v24  ;;  %22497 = vst [vmem:[#allocation49_spill] sm:$0xff] %v21297_v37 }
 0xa15   :  { %10125 = vmatpush1.bf16.msra.mxu0 %v21288_v63  ;;  %v21300_v63 = vld [vmem:[#allocation2 + $0x70] ss:$8 sps:$4 sm:$0xff]  }
 0xa16   :  { %10126 = vmatprep.subr.bf16.mxu0 %v21291_v2  ;;  %22498 = vst [vmem:[#allocation39_spill] sm:$0xff] %v21300_v63  ;;  %v17449_v2 = vld [vmem:[#allocation8 + $0x560] ss:$12 sps:$4 sm:$0xff]  }
 0xa18   :  { %v9044_v32 = vpop.f32.mrb[120].mxu1 }
 0xa19   :  { %10127 = vmatpush1.bf16.msra.mxu0 %v21294_v13  ;;  %v9046_v3 = vpop.f32.mrb[121].mxu1 }
 0xa1a   :  { %v9048_v43 = vpop.f32.mrb[122].mxu1  ;;  %10128 = vmatprep.subr.bf16.mxu0 %v21297_v37  ;;  %v21307_v37 = vld [vmem:[#allocation2 + $0x80] ss:$8 sps:$4 sm:$0xff]  }
 0xa1b   :  { %v9063_v24 = vpack.c.bf16 %v9048_v43, %v9044_v32  ;;  %v9050_v62 = vpop.f32.mrb[123].mxu1  ;;  %22500 = vst [vmem:[#allocation55_spill] sm:$0xff] %v21307_v37  ;;  %v17451_v32 = vld [vmem:[#allocation8 + $0x578] ss:$12 sps:$4 sm:$0xff]  }
 0xa1c   :  { %v9064_v27 = vpack.c.bf16 %v9050_v62, %v9046_v3  ;;  %v21310_v62 = vld [vmem:[#allocation2 + $0x94] ss:$8 sps:$4 sm:$0xff]  }
 0xa1d   :  { %10129 = vmatpush1.bf16.msra.mxu0 %v21300_v63  ;;  %22501 = vst [vmem:[#allocation58_spill] sm:$0xff] %v21310_v62 }
 0xa1e   :  { %15070 = vmatprep.mubr.msk.bf16.mxu1 %vm1171_vm2, %v9064_v27  ;;  %10130 = vmatprep.subr.bf16.mxu0 %v21304_v9  ;;  %v17456_v9 = vld [vmem:[#allocation8 + $0x590] ss:$12 sps:$4 sm:$0xff]  }
 0xa1f   :  { %9251 = vmatmul.mubr.bf16.vlgmr.msra.gmra.mrb[88].mxu1 %v9063_v24  ;;  %v17452_v24 = vld [vmem:[#allocation8 + $0x4b8] ss:$12 sps:$4 sm:$0xff]  }
 0xa20   :  { %15661 = vmatpush3.bf16.msra.mxu1 %v17448_v57  ;;  %v9054_v13 = vpop.f32.mrb[124].mxu1  ;;  %v21313_v57 = vld [vmem:[#allocation2 + $0x90] ss:$8 sps:$4 sm:$0xff]  }
 0xa21   :  { %10131 = vmatpush1.bf16.msra.mxu0 %v21307_v37  ;;  %v9056_v3 = vpop.f32.mrb[125].mxu1  ;;  %15662 = vmatprep.subr.bf16.mxu1 %v17449_v2  ;;  %22502 = vst [vmem:[#allocation37_spill] sm:$0xff] %v21313_v57  ;;  %v17471_v2 = vld [vmem:[#allocation8 + $0x604] ss:$12 sps:$4 sm:$0xff]  }
 0xa22   :  { %v9058_v43 = vpop.f32.mrb[126].mxu1  ;;  %10132 = vmatprep.subr.bf16.mxu0 %v21310_v62 }
 0xa23   :  { %v9065_v27 = vpack.c.bf16 %v9058_v43, %v9054_v13  ;;  %v9060_v63 = vpop.f32.mrb[127].mxu1  ;;  %v21320_v13 = vld [vmem:[#allocation5 + $0x80] ss:$8 sps:$4 sm:$0xff]   ;;  %v17459_v43 = vld [vmem:[#allocation8 + $0x4e8] ss:$12 sps:$4 sm:$0xff]  }
 0xa24   :  { %v9066_v1 = vpack.c.bf16 %v9060_v63, %v9056_v3  ;;  %15663 = vmatpush3.bf16.msra.mxu1 %v17450_v40  ;;  %v17457_v63 = vld [vmem:[#allocation8 + $0x4d0] ss:$12 sps:$4 sm:$0xff]   ;;  %v17458_v40 = vld [vmem:[#allocation8 + $0x5a8] ss:$12 sps:$4 sm:$0xff]  }
 0xa25   :  { %10133 = vmatpush1.bf16.msra.mxu0 %v21313_v57  ;;  %15664 = vmatprep.subr.bf16.mxu1 %v17451_v32  ;;  %v21323_v3 = vld [vmem:[#allocation5 + $0x94] ss:$8 sps:$4 sm:$0xff]  }
 0xa26   :  { %15071 = vmatprep.mubr.msk.bf16.mxu1 %vm1171_vm2, %v9066_v1  ;;  %15160 = vmatprep.subr.msk.bf16.mxu0 %vm857_vm1, %v22436_v44  ;;  %22503 = vst [vmem:[#allocation59_spill] sm:$0xff] %v21323_v3  ;;  %v17469_v32 = vld [vmem:[#allocation8 + $0x600] ss:$12 sps:$4 sm:$0xff]   ;;  %v17474_v1 = vld [vmem:[#allocation8 + $0x61c] ss:$12 sps:$4 sm:$0xff]  }
 0xa27   :  { %9261 = vmatmul.mubr.bf16.gmra.mrb[92].mxu1 %v9065_v27  ;;  %v17472_v27 = vld [vmem:[#allocation8 + $0x618] ss:$12 sps:$4 sm:$0xff]   ;;  %v17475_v44 = vld [vmem:[#allocation8 + $0x630] ss:$12 sps:$4 sm:$0xff]  }
 0xa28   :  { %15665 = vmatpush3.bf16.msra.mxu1 %v17452_v24  ;;  %9779 = vmatprep.mubr.bf16.mxu1 %v21224_v23  ;;  %v17463_v23 = vld [vmem:[#allocation8 + $0x5c0] ss:$12 sps:$4 sm:$0xff]  }
 0xa29   :  { %10135 = vmatpush1.bf16.msra.mxu0 %v22460_v36  ;;  %15666 = vmatprep.subr.bf16.mxu1 %v17456_v9  ;;  %v17477_v24 = vld [vmem:[#allocation8 + $0x634] ss:$12 sps:$4 sm:$0xff]   ;;  %v21328_v9 = vld [vmem:[#allocation5 + $0x90] ss:$8 sps:$4 sm:$0xff]  }
 0xa2a   :  { %10492 = vmatprep.subr.bf16.mxu0 %v17471_v2  ;;  %v17464_v36 = vld [vmem:[#allocation8 + $0x500] ss:$12 sps:$4 sm:$0xff]   ;;  %v17465_v2 = vld [vmem:[#allocation8 + $0x5d8] ss:$12 sps:$4 sm:$0xff]  }
 0xa2c   :  { %10147 = vmatmul.mubr.bf16.vlgmr.msra.gmra.mrb[196].mxu0 %v21320_v13  ;;  %15667 = vmatpush3.bf16.msra.mxu1 %v17457_v63  ;;  %v17480_v63 = vld [vmem:[#allocation8 + $0x64c] ss:$12 sps:$4 sm:$0xff]  }
 0xa2d   :  { %15668 = vmatprep.subr.bf16.mxu1 %v17458_v40  ;;  %15162 = vmatprep.mubr.msk.bf16.mxu0 %vm823_vm0, %v21323_v3  ;;  %v17466_v40 = vld [vmem:[#allocation8 + $0x518] ss:$12 sps:$4 sm:$0xff]   ;;  %v17467_v3 = vld [vmem:[#allocation8 + $0x5f0] ss:$12 sps:$4 sm:$0xff]  }
 0xa2e   :  { %10493 = vmatpush1.bf16.msra.mxu0 %v17469_v32  ;;  %v17478_v32 = vld [vmem:[#allocation8 + $0x648] ss:$12 sps:$4 sm:$0xff]  }
 0xa2f   :  { %10494 = vmatprep.subr.bf16.mxu0 %v17474_v1  ;;  %v17483_v1 = vld [vmem:[#allocation8 + $0x664] ss:$12 sps:$4 sm:$0xff]  }
 0xa30   :  { %15669 = vmatpush3.bf16.msra.mxu1 %v17459_v43  ;;  %v17468_v43 = vld [vmem:[#allocation8 + $0x530] ss:$12 sps:$4 sm:$0xff]  }
 0xa31   :  { %15670 = vmatprep.subr.bf16.mxu1 %v17463_v23  ;;  %v17481_v23 = vld [vmem:[#allocation8 + $0x660] ss:$12 sps:$4 sm:$0xff]  }
 0xa32   :  { %10495 = vmatpush1.bf16.msra.mxu0 %v17472_v27  ;;  %v17486_v27 = vld [vmem:[#allocation8 + $0x67c] ss:$12 sps:$4 sm:$0xff]  }
 0xa33   :  { %10496 = vmatprep.subr.bf16.mxu0 %v17477_v24  ;;  %v17484_v24 = vld [vmem:[#allocation8 + $0x678] ss:$12 sps:$4 sm:$0xff]  }
 0xa34   :  { %10157 = vmatmul.mubr.bf16.gmra.mrb[200].mxu0 %v21328_v9  ;;  %15671 = vmatpush3.bf16.msra.mxu1 %v17464_v36  ;;  %v17489_v36 = vld [vmem:[#allocation8 + $0x694] ss:$12 sps:$4 sm:$0xff]  }
 0xa35   :  { %15672 = vmatprep.subr.bf16.mxu1 %v17465_v2  ;;  %v17490_v2 = vld [vmem:[#allocation8 + $0x6a8] ss:$12 sps:$4 sm:$0xff]  }
 0xa36   :  { %10497 = vmatpush1.bf16.msra.mxu0 %v17475_v44  ;;  %v17487_v44 = vld [vmem:[#allocation8 + $0x690] ss:$12 sps:$4 sm:$0xff]  }
 0xa37   :  { %10498 = vmatprep.subr.bf16.mxu0 %v17480_v63  ;;  %v17498_v63 = vld [vmem:[#allocation8 + $0x6dc] ss:$12 sps:$4 sm:$0xff]  }
 0xa38   :  { %15673 = vmatpush3.bf16.msra.mxu1 %v17466_v40  ;;  %v17496_v40 = vld [vmem:[#allocation8 + $0x6d8] ss:$12 sps:$4 sm:$0xff]  }
 0xa39   :  { %15674 = vmatprep.subr.bf16.mxu1 %v17467_v3  ;;  %v17492_v3 = vld [vmem:[#allocation8 + $0x6ac] ss:$12 sps:$4 sm:$0xff]  }
 0xa3a   :  { %10499 = vmatpush1.bf16.msra.mxu0 %v17478_v32  ;;  %v17504_v32 = vld [vmem:[#allocation8 + $0x70c] ss:$12 sps:$4 sm:$0xff]  }
 0xa3b   :  { %10500 = vmatprep.subr.bf16.mxu0 %v17483_v1  ;;  %v17502_v1 = vld [vmem:[#allocation8 + $0x708] ss:$12 sps:$4 sm:$0xff]  }
 0xa3c   :  { %15675 = vmatpush3.bf16.msra.mxu1 %v17468_v43  ;;  %v17507_v43 = vld [vmem:[#allocation8 + $0x724] ss:$12 sps:$4 sm:$0xff]  }
 0xa3d   :  { %9808 = vmatprep.subr.bf16.mxu1 %v20764_v6 }
 0xa3e   :  { %10501 = vmatpush1.bf16.msra.mxu0 %v17481_v23  ;;  %v17505_v23 = vld [vmem:[#allocation8 + $0x720] ss:$12 sps:$4 sm:$0xff]  }
 0xa3f   :  { %9780 = vmatmul.mubr.bf16.vlgmr.msra.gmra.mrb[128].mxu1 %v21216_v26  ;;  %10502 = vmatprep.subr.bf16.mxu0 %v17486_v27  ;;  %v17495_v26 = vld [vmem:[#allocation8 + $0x6c4] ss:$12 sps:$4 sm:$0xff]   ;;  %v17510_v27 = vld [vmem:[#allocation8 + $0x73c] ss:$12 sps:$4 sm:$0xff]  }
 0xa40   :  { %9787 = vmatprep.mubr.bf16.mxu1 %v21256_v4  ;;  %9809 = vmatpush1.bf16.msra.mxu1 %v20762_v12  ;;  %v17493_v4 = vld [vmem:[#allocation8 + $0x6c0] ss:$12 sps:$4 sm:$0xff]  }
 0xa41   :  { %9810 = vmatprep.subr.bf16.mxu1 %v20774_v55 }
 0xa42   :  { %10503 = vmatpush1.bf16.msra.mxu0 %v17484_v24  ;;  %v17508_v24 = vld [vmem:[#allocation8 + $0x738] ss:$12 sps:$4 sm:$0xff]  }
 0xa43   :  { %10504 = vmatprep.subr.bf16.mxu0 %v17489_v36  ;;  %v17513_v36 = vld [vmem:[#allocation8 + $0x754] ss:$12 sps:$4 sm:$0xff]  }
 0xa44   :  { %9811 = vmatpush1.bf16.msra.mxu1 %v20772_v48 }
 0xa45   :  { %9812 = vmatprep.subr.bf16.mxu1 %v20784_v42 }
 0xa46   :  { %10505 = vmatpush1.bf16.msra.mxu0 %v17487_v44  ;;  %v17511_v44 = vld [vmem:[#allocation8 + $0x750] ss:$12 sps:$4 sm:$0xff]  }
 0xa47   :  { %9788 = vmatmul.mubr.bf16.gmra.mrb[132].mxu1 %v21248_v52  ;;  %10506 = vmatprep.subr.bf16.mxu0 %v17492_v3  ;;  %v17501_v52 = vld [vmem:[#allocation8 + $0x6f4] ss:$12 sps:$4 sm:$0xff]   ;;  %v17516_v3 = vld [vmem:[#allocation8 + $0x76c] ss:$12 sps:$4 sm:$0xff]  }
 0xa48   :  { %9813 = vmatpush1.bf16.msra.mxu1 %v20782_v30  ;;  %15128 = vmatprep.mubr.msk.bf16.mxu1 %vm823_vm0, %v21125_v33  ;;  %v17499_v33 = vld [vmem:[#allocation8 + $0x6f0] ss:$12 sps:$4 sm:$0xff]  }
 0xa49   :  { %9814 = vmatprep.subr.bf16.mxu1 %v22461_v29 }
 0xa4a   :  { %10507 = vmatpush1.bf16.msra.mxu0 %v17490_v2  ;;  %v17514_v2 = vld [vmem:[#allocation8 + $0x768] ss:$12 sps:$4 sm:$0xff]  }
 0xa4b   :  { %10508 = vmatprep.subr.bf16.mxu0 %v17495_v26  ;;  %v17519_v26 = vld [vmem:[#allocation16 + $0x244] ss:$8 sps:$4 sm:$0xff]  }
 0xa4c   :  { %9815 = vmatpush1.bf16.msra.mxu1 %v22462_v25 }
 0xa4d   :  { %9816 = vmatprep.subr.bf16.mxu1 %v22463_v53 }
 0xa4e   :  { %10509 = vmatpush1.bf16.msra.mxu0 %v17493_v4  ;;  %v17517_v4 = vld [vmem:[#allocation16 + $0x240] ss:$8 sps:$4 sm:$0xff]  }
 0xa4f   :  { %10510 = vmatprep.subr.bf16.mxu0 %v17498_v63  ;;  %v17520_v63 = vld [vmem:[#allocation16 + $0x250] ss:$8 sps:$4 sm:$0xff]  }
 0xa50   :  { %9817 = vmatpush1.bf16.msra.mxu1 %v22464_v0 }
 0xa51   :  { %9818 = vmatprep.subr.bf16.mxu1 %v22465_v50 }
 0xa52   :  { %10511 = vmatpush1.bf16.msra.mxu0 %v17496_v40  ;;  %v17522_v40 = vld [vmem:[#allocation16 + $0x254] ss:$8 sps:$4 sm:$0xff]  }
 0xa53   :  { %10512 = vmatprep.subr.bf16.mxu0 %v17501_v52  ;;  %v17523_v52 = vld [vmem:[#allocation16 + $0x260] ss:$8 sps:$4 sm:$0xff]  }
 0xa54   :  { %9819 = vmatpush1.bf16.msra.mxu1 %v22466_v28 }
 0xa55   :  { %9820 = vmatprep.subr.bf16.mxu1 %v22467_v58 }
 0xa56   :  { %10513 = vmatpush1.bf16.msra.mxu0 %v17499_v33  ;;  %v17529_v33 = vld [vmem:[#allocation16 + $0x280] ss:$8 sps:$4 sm:$0xff]  }
 0xa57   :  { %10514 = vmatprep.subr.bf16.mxu0 %v17504_v32  ;;  %v17531_v32 = vld [vmem:[#allocation16 + $0x284] ss:$8 sps:$4 sm:$0xff]  }
 0xa58   :  { %9821 = vmatpush1.bf16.msra.mxu1 %v22468_v8 }
 0xa59   :  { %9822 = vmatprep.subr.bf16.mxu1 %v22469_v5 }
 0xa5a   :  { %10515 = vmatpush1.bf16.msra.mxu0 %v17502_v1  ;;  %v17532_v1 = vld [vmem:[#allocation16 + $0x290] ss:$8 sps:$4 sm:$0xff]  }
 0xa5b   :  { %10516 = vmatprep.subr.bf16.mxu0 %v17507_v43  ;;  %v17534_v43 = vld [vmem:[#allocation16 + $0x294] ss:$8 sps:$4 sm:$0xff]  }
 0xa5c   :  { %9823 = vmatpush1.bf16.msra.mxu1 %v22470_v56 }
 0xa5d   :  { %9824 = vmatprep.subr.bf16.mxu1 %v22471_v51 }
 0xa5e   :  { %10517 = vmatpush1.bf16.msra.mxu0 %v17505_v23  ;;  %v17535_v23 = vld [vmem:[#allocation16 + $0x2a0] ss:$8 sps:$4 sm:$0xff]  }
 0xa5f   :  { %10518 = vmatprep.subr.bf16.mxu0 %v17510_v27  ;;  %v17537_v27 = vld [vmem:[#allocation16 + $0x2a4] ss:$8 sps:$4 sm:$0xff]  }
 0xa60   :  { %9825 = vmatpush1.bf16.msra.mxu1 %v22472_v54 }
 0xa61   :  { %9826 = vmatprep.subr.bf16.mxu1 %v22473_v60 }
 0xa62   :  { %10519 = vmatpush1.bf16.msra.mxu0 %v17508_v24  ;;  %v17541_v24 = vld [vmem:[#allocation16 + $0x2b0] ss:$8 sps:$4 sm:$0xff]  }
 0xa63   :  { %10520 = vmatprep.subr.bf16.mxu0 %v17513_v36  ;;  %v17543_v36 = vld [vmem:[#allocation16 + $0x2b4] ss:$8 sps:$4 sm:$0xff]  }
 0xa64   :  { %9827 = vmatpush1.bf16.msra.mxu1 %v22474_v39 }
 0xa65   :  { %15127 = vmatprep.subr.msk.bf16.mxu1 %vm857_vm1, %v22475_v31 }
 0xa66   :  { %10521 = vmatpush1.bf16.msra.mxu0 %v17511_v44  ;;  %v17546_v44 = vld [vmem:[#allocation16 + $0x2c4] ss:$8 sps:$4 sm:$0xff]  }
 0xa67   :  { %10522 = vmatprep.subr.bf16.mxu0 %v17516_v3  ;;  %v17544_v3 = vld [vmem:[#allocation16 + $0x2c0] ss:$8 sps:$4 sm:$0xff]  }
 0xa68   :  { %9829 = vmatpush1.bf16.msra.mxu1 %v22476_v17 }
 0xa69   :  { %10016 = vmatprep.subr.bf16.mxu1 %v17519_v26  ;;  %v17550_v26 = vld [vmem:[#allocation16 + $0x2d0] ss:$8 sps:$4 sm:$0xff]  }
 0xa6a   :  { %10523 = vmatpush1.bf16.msra.mxu0 %v17514_v2  ;;  %v17552_v2 = vld [vmem:[#allocation16 + $0x2d4] ss:$8 sps:$4 sm:$0xff]  }
 0xa6b   :  { %9841 = vmatmul.mubr.bf16.vlgmr.msra.gmra.mrb[136].mxu1 %v21153_v38  ;;  %10912 = vmatprep.subr.bf16.mxu0 %v21187_v61  ;;  %v17525_v38 = vld [vmem:[#allocation16 + $0x264] ss:$8 sps:$4 sm:$0xff]  }
 0xa6c   :  { %15129 = vmatprep.mubr.msk.bf16.mxu1 %vm823_vm0, %v21159_v41  ;;  %10017 = vmatpush1.bf16.msra.mxu1 %v17517_v4  ;;  %v17526_v41 = vld [vmem:[#allocation16 + $0x270] ss:$8 sps:$4 sm:$0xff]   ;;  %v17555_v4 = vld [vmem:[#allocation16 + $0x2e4] ss:$8 sps:$4 sm:$0xff]  }
 0xa6d   :  { %10018 = vmatprep.subr.bf16.mxu1 %v17522_v40  ;;  %v17558_v40 = vld [vmem:[#allocation16 + $0x2f4] ss:$8 sps:$4 sm:$0xff]  }
 0xa70   :  { %10019 = vmatpush1.bf16.msra.mxu1 %v17520_v63  ;;  %v17553_v63 = vld [vmem:[#allocation16 + $0x2e0] ss:$8 sps:$4 sm:$0xff]  }
 0xa71   :  { %10020 = vmatprep.subr.bf16.mxu1 %v17525_v38  ;;  %v17556_v38 = vld [vmem:[#allocation16 + $0x2f0] ss:$8 sps:$4 sm:$0xff]  }
 0xa73   :  { %9851 = vmatmul.mubr.bf16.gmra.mrb[140].mxu1 %v21167_v15  ;;  %v17528_v15 = vld [vmem:[#allocation16 + $0x274] ss:$8 sps:$4 sm:$0xff]  }
 0xa74   :  { %10021 = vmatpush1.bf16.msra.mxu1 %v17523_v52  ;;  %v17559_v52 = vld [vmem:[#allocation8 + $0x6c8] ss:$12 sps:$4 sm:$0xff]  }
 0xa75   :  { %10022 = vmatprep.subr.bf16.mxu1 %v17528_v15  ;;  %v22504_v15 = vmax.f32 %v21079_v34, %v21199_v11  ;;  %v22507_v34 = vmax.f32 %v21096_v21, %v21218_v7  ;;  %v22509_v21 = vmax.f32 %v21110_v20, %v21235_v59  ;;  %v21417_v20 = vld [vmem:[#allocation5 + $0xa4] ss:$8 sps:$4 sm:$0xff]  }
 0xa76   :  { %v22515_v59 = vld [vmem:[#allocation34_spill] sm:$0xff] }
 0xa78   :  { %10023 = vmatpush1.bf16.msra.mxu1 %v17526_v41 }
 0xa79   :  { %10024 = vmatprep.subr.bf16.mxu1 %v17531_v32 }
 0xa7c   :  { %10025 = vmatpush1.bf16.msra.mxu1 %v17529_v33 }
 0xa7d   :  { %10026 = vmatprep.subr.bf16.mxu1 %v17534_v43 }
 0xa80   :  { %10027 = vmatpush1.bf16.msra.mxu1 %v17532_v1  ;;  %v22505_v1 = vmax.f32 %v21084_v14, %v21206_v46 }
 0xa81   :  { %10028 = vmatprep.subr.bf16.mxu1 %v17537_v27  ;;  %v22506_v27 = vmax.f32 %v21089_v22, %v21210_v18  ;;  %v22508_v22 = vmax.f32 %v21104_v16, %v21231_v49  ;;  %v22511_v16 = vld [vmem:[#allocation54_spill] sm:$0xff] }
 0xa82   :  { %v22512_v49 = vmax.f32 %v21120_v35, %v22511_v16  ;;  %22514 = vst [vmem:[#allocation54_spill] sm:$0xff] %v21417_v20  ;;  %v22517_v35 = vld [vmem:[#allocation40_spill] sm:$0xff] }
 0xa83   :  { %v22526_v16 = vld [vmem:[#allocation32_spill] sm:$0xff] }
 0xa84   :  { %10029 = vmatpush1.bf16.msra.mxu1 %v17535_v23 }
 0xa85   :  { %10030 = vmatprep.subr.bf16.mxu1 %v17543_v36 }
 0xa88   :  { %10031 = vmatpush1.bf16.msra.mxu1 %v17541_v24 }
 0xa89   :  { %10032 = vmatprep.subr.bf16.mxu1 %v17546_v44 }
 0xa8c   :  { %10033 = vmatpush1.bf16.msra.mxu1 %v17544_v3 }
 0xa8d   :  { %10034 = vmatprep.subr.bf16.mxu1 %v17552_v2 }
 0xa90   :  { %10035 = vmatpush1.bf16.msra.mxu1 %v17550_v26  ;;  %v22510_v26 = vmax.f32 %v21115_v45, %v21242_v10  ;;  %v22516_v45 = vld [vmem:[#allocation57_spill] sm:$0xff] }
 0xa91   :  { %10036 = vmatprep.subr.bf16.mxu1 %v17555_v4 }
 0xa94   :  { %10037 = vmatpush1.bf16.msra.mxu1 %v17553_v63 }
 0xa95   :  { %10038 = vmatprep.subr.bf16.mxu1 %v17558_v40 }
 0xa98   :  { %10039 = vmatpush1.bf16.msra.mxu1 %v17556_v38 }
 0xa99   :  { %15688 = vmatprep.subr.bf16.mxu1 %v17559_v52 }
 0xaff   :  { %v10148_v41 = vpop.f32.mrb[196].mxu0 }
 0xb00   :  { %v21367_v33 = vmax.f32 %v22504_v15, %v10148_v41  ;;  %v10150_v32 = vpop.f32.mrb[197].mxu0  ;;  %v22518_v15 = vld [vmem:[#allocation38_spill] sm:$0xff] }
 0xb01   :  { %v21372_v43 = vmax.f32 %v22505_v1, %v10150_v32  ;;  %v10152_v23 = vpop.f32.mrb[198].mxu0 }
 0xb02   :  { %v21377_v24 = vmax.f32 %v22506_v27, %v10152_v23  ;;  %v21379_v36 = vpack.c.bf16 %v10152_v23, %v10148_v41  ;;  %v10154_v44 = vpop.f32.mrb[199].mxu0  ;;  %v22513_v41 = vld [vmem:[#allocation51_spill] sm:$0xff] }
 0xb03   :  { %v21384_v11 = vmax.f32 %v22507_v34, %v10154_v44  ;;  %v21386_v3 = vpack.c.bf16 %v10154_v44, %v10150_v32  ;;  %v22519_v27 = vld [vmem:[#allocation35_spill] sm:$0xff]  ;;  %v22520_v34 = vld [vmem:[#allocation28_spill] sm:$0xff] }
 0xb05   :  { %10524 = vmatprep.mubr.bf16.mxu0 %v21386_v3 }
 0xb06   :  { %10525 = vmatmul.mubr.bf16.vlgmr.msra.gmra.mrb[148].mxu0 %v21379_v36 }
 0xb07   :  { %10913 = vmatpush1.bf16.msra.mxu0 %v21228_v19  ;;  %v10158_v14 = vpop.f32.mrb[200].mxu0 }
 0xb08   :  { %v21394_v46 = vmax.f32 %v22508_v22, %v10158_v14  ;;  %v10160_v18 = vpop.f32.mrb[201].mxu0  ;;  %10914 = vmatprep.subr.bf16.mxu0 %v21237_v47 }
 0xb09   :  { %v21400_v7 = vmax.f32 %v22509_v21, %v10160_v18  ;;  %v10162_v2 = vpop.f32.mrb[202].mxu0  ;;  %v22523_v21 = vld [vmem:[#allocation56_spill] sm:$0xff] }
 0xb0a   :  { %v21405_v4 = vmax.f32 %v22510_v26, %v10162_v2  ;;  %v21407_v63 = vpack.c.bf16 %v10162_v2, %v10158_v14  ;;  %v10164_v40 = vpop.f32.mrb[203].mxu0  ;;  %v22525_v26 = vld [vmem:[#allocation36_spill] sm:$0xff] }
 0xb0b   :  { %v21412_v38 = vmax.f32 %v22512_v49, %v10164_v40  ;;  %v21414_v52 = vpack.c.bf16 %v10164_v40, %v10160_v18  ;;  %10915 = vmatpush1.bf16.msra.mxu0 %v22513_v41  ;;  %v22522_v18 = vld [vmem:[#allocation48_spill] sm:$0xff] }
 0xb0c   :  { %10916 = vmatprep.subr.bf16.mxu0 %v22515_v59 }
 0xb0d   :  { %10534 = vmatprep.mubr.bf16.mxu0 %v21414_v52 }
 0xb0e   :  { %10535 = vmatmul.mubr.bf16.gmra.mrb[152].mxu0 %v21407_v63 }
 0xb0f   :  { %10917 = vmatpush1.bf16.msra.mxu0 %v22516_v45  ;;  %15245 = vmatprep.mubr.msk.bf16.mxu0 %vm823_vm0, %v21417_v20  ;;  %v22527_v20 = vld [vmem:[#allocation50_spill] sm:$0xff] }
 0xb10   :  { %10918 = vmatprep.subr.bf16.mxu0 %v22517_v35 }
 0xb12   :  { %v15676_v10 = vpop.f32.mrb[128].mxu1 }
 0xb13   :  { %10919 = vmatpush1.bf16.msra.mxu0 %v22518_v15  ;;  %v15677_v32 = vpop.f32.mrb[129].mxu1  ;;  %v22528_v15 = vld [vmem:[#allocation46_spill] sm:$0xff] }
 0xb14   :  { %v15678_v1 = vadd.f32 %v15677_v32, %v15676_v10  ;;  %v15679_v23 = vpop.f32.mrb[130].mxu1  ;;  %10920 = vmatprep.subr.bf16.mxu0 %v22519_v27 }
 0xb15   :  { %v15680_v44 = vpop.f32.mrb[131].mxu1 }
 0xb16   :  { %v21429_v14 = vadd.f32 %v15678_v1, %v22520_v34  ;;  %v15681_v22 = vadd.f32 %v15680_v44, %v15679_v23  ;;  %v22530_v44 = vld [vmem:[#allocation47_spill] sm:$0xff]  ;;  %v22531_v34 = vld [vmem:[#allocation29_spill] sm:$0xff] }
 0xb17   :  { %10921 = vmatpush1.bf16.msra.mxu0 %v22522_v18 }
 0xb18   :  { %22521 = vst [vmem:[#allocation51_spill] sm:$0xff] %v21429_v14  ;;  %v21433_v2 = vadd.f32 %v15681_v22, %v22523_v21  ;;  %10922 = vmatprep.subr.bf16.mxu0 %v22525_v26  ;;  %v22533_v21 = vld [vmem:[#allocation49_spill] sm:$0xff] }
 0xb19   :  { %v22535_v14 = vld [vmem:[#allocation41_spill] sm:$0xff] }
 0xb1a   :  { %22524 = vst [vmem:[#allocation34_spill] sm:$0xff] %v21433_v2  ;;  %v15682_v40 = vpop.f32.mrb[132].mxu1  ;;  %v22534_v2 = vld [vmem:[#allocation39_spill] sm:$0xff] }
 0xb1b   :  { %10923 = vmatpush1.bf16.msra.mxu0 %v22526_v16  ;;  %v15683_v49 = vpop.f32.mrb[133].mxu1 }
 0xb1c   :  { %v15684_v10 = vadd.f32 %v15683_v49, %v15682_v40  ;;  %v15685_v32 = vpop.f32.mrb[134].mxu1  ;;  %10924 = vmatprep.subr.bf16.mxu0 %v22527_v20  ;;  %v21453_v40 = vld [vmem:[#allocation5 + $0xa0] ss:$8 sps:$4 sm:$0xff]  }
 0xb1d   :  { %v15686_v27 = vpop.f32.mrb[135].mxu1  ;;  %22537 = vst [vmem:[#allocation28_spill] sm:$0xff] %v21453_v40  ;;  %v22538_v49 = vld [vmem:[#allocation33_spill] sm:$0xff] }
 0xb1e   :  { %v21439_v1 = vadd.f32 %v15684_v10, %v22528_v15  ;;  %v15687_v23 = vadd.f32 %v15686_v27, %v15685_v32  ;;  %v22536_v15 = vld [vmem:[#allocation27_spill] sm:$0xff]  ;;  %v17564_v20 = vld [vmem:[#allocation8 + $0x638] ss:$12 sps:$4 sm:$0xff]  }
 0xb1f   :  { %10925 = vmatpush1.bf16.msra.mxu0 %v22530_v44  ;;  %v17577_v27 = vld [vmem:[#allocation8 + $0x784] ss:$12 sps:$4 sm:$0xff]   ;;  %v21456_v10 = vld [vmem:[#allocation5 + $0xb4] ss:$8 sps:$4 sm:$0xff]  }
 0xb20   :  { %22529 = vst [vmem:[#allocation57_spill] sm:$0xff] %v21439_v1  ;;  %v21443_v22 = vadd.f32 %v15687_v23, %v22531_v34  ;;  %10926 = vmatprep.subr.bf16.mxu0 %v22533_v21  ;;  %22539 = vst [vmem:[#allocation48_spill] sm:$0xff] %v21456_v10  ;;  %v17575_v32 = vld [vmem:[#allocation8 + $0x780] ss:$12 sps:$4 sm:$0xff]   ;;  %v17580_v23 = vld [vmem:[#allocation8 + $0x79c] ss:$12 sps:$4 sm:$0xff]  }
 0xb21   :  { %v17578_v34 = vld [vmem:[#allocation8 + $0x798] ss:$12 sps:$4 sm:$0xff]   ;;  %v21461_v1 = vld [vmem:[#allocation5 + $0xb0] ss:$8 sps:$4 sm:$0xff]   ;;  %v17561_v21 = vld [vmem:[#allocation8 + $0x6e0] ss:$12 sps:$4 sm:$0xff]  }
 0xb22   :  { %22532 = vst [vmem:[#allocation40_spill] sm:$0xff] %v21443_v22  ;;  %v17583_v22 = vld [vmem:[#allocation8 + $0x7b4] ss:$12 sps:$4 sm:$0xff]   ;;  %22540 = vst [vmem:[#allocation56_spill] sm:$0xff] %v21461_v1  ;;  %v17563_v44 = vld [vmem:[#allocation8 + $0x6f8] ss:$12 sps:$4 sm:$0xff]  }
 0xb23   :  { %10927 = vmatpush1.bf16.msra.mxu0 %v22534_v2 }
 0xb24   :  { %10928 = vmatprep.subr.bf16.mxu0 %v22535_v14 }
 0xb27   :  { %10929 = vmatpush1.bf16.msra.mxu0 %v21307_v37 }
 0xb28   :  { %10930 = vmatprep.subr.bf16.mxu0 %v21310_v62 }
 0xb2b   :  { %10931 = vmatpush1.bf16.msra.mxu0 %v21313_v57  ;;  %v17589_v57 = vld [vmem:[#allocation8 + $0x7e4] ss:$12 sps:$4 sm:$0xff]  }
 0xb2c   :  { %15244 = vmatprep.subr.msk.bf16.mxu0 %vm857_vm1, %v22536_v15  ;;  %v17581_v15 = vld [vmem:[#allocation8 + $0x7b0] ss:$12 sps:$4 sm:$0xff]  }
 0xb2f   :  { %10933 = vmatpush1.bf16.msra.mxu0 %v22538_v49  ;;  %v17586_v49 = vld [vmem:[#allocation8 + $0x7cc] ss:$12 sps:$4 sm:$0xff]  }
 0xb30   :  { %11290 = vmatprep.subr.bf16.mxu0 %v17577_v27  ;;  %v17584_v27 = vld [vmem:[#allocation8 + $0x7c8] ss:$12 sps:$4 sm:$0xff]  }
 0xb32   :  { %10945 = vmatmul.mubr.bf16.vlgmr.msra.gmra.mrb[204].mxu0 %v21453_v40 }
 0xb33   :  { %15246 = vmatprep.mubr.msk.bf16.mxu0 %vm823_vm0, %v21456_v10  ;;  %11291 = vmatpush1.bf16.msra.mxu0 %v17575_v32  ;;  %v17587_v10 = vld [vmem:[#allocation8 + $0x7e0] ss:$12 sps:$4 sm:$0xff]  }
 0xb34   :  { %11292 = vmatprep.subr.bf16.mxu0 %v17580_v23  ;;  %v17592_v23 = vld [vmem:[#allocation8 + $0x7fc] ss:$12 sps:$4 sm:$0xff]  }
 0xb37   :  { %11293 = vmatpush1.bf16.msra.mxu0 %v17578_v34  ;;  %v17560_v34 = vld [vmem:[#allocation8 + $0x608] ss:$12 sps:$4 sm:$0xff]  }
 0xb38   :  { %11294 = vmatprep.subr.bf16.mxu0 %v17583_v22  ;;  %v17590_v22 = vld [vmem:[#allocation8 + $0x7f8] ss:$12 sps:$4 sm:$0xff]  }
 0xb3a   :  { %10955 = vmatmul.mubr.bf16.gmra.mrb[208].mxu0 %v21461_v1  ;;  %v17562_v1 = vld [vmem:[#allocation8 + $0x620] ss:$12 sps:$4 sm:$0xff]  }
 0xb3b   :  { %11295 = vmatpush1.bf16.msra.mxu0 %v17581_v15  ;;  %v17595_v15 = vld [vmem:[#allocation8 + $0x814] ss:$12 sps:$4 sm:$0xff]  }
 0xb3c   :  { %11296 = vmatprep.subr.bf16.mxu0 %v17586_v49 }
 0xb3e   :  { %v9842_v40 = vpop.f32.mrb[136].mxu1 }
 0xb3f   :  { %v9844_v62 = vpop.f32.mrb[137].mxu1  ;;  %11297 = vmatpush1.bf16.msra.mxu0 %v17584_v27 }
 0xb40   :  { %v9846_v32 = vpop.f32.mrb[138].mxu1  ;;  %11298 = vmatprep.subr.bf16.mxu0 %v17589_v57  ;;  %v17593_v57 = vld [vmem:[#allocation8 + $0x810] ss:$12 sps:$4 sm:$0xff]  }
 0xb41   :  { %v9861_v37 = vpack.c.bf16 %v9846_v32, %v9842_v40  ;;  %v9848_v14 = vpop.f32.mrb[139].mxu1 }
 0xb42   :  { %v9862_v2 = vpack.c.bf16 %v9848_v14, %v9844_v62  ;;  %v17598_v62 = vld [vmem:[#allocation8 + $0x82c] ss:$12 sps:$4 sm:$0xff]  }
 0xb43   :  { %11299 = vmatpush1.bf16.msra.mxu0 %v17587_v10 }
 0xb44   :  { %15154 = vmatprep.mubr.msk.bf16.mxu1 %vm1171_vm2, %v9862_v2  ;;  %11300 = vmatprep.subr.bf16.mxu0 %v17592_v23  ;;  %v17565_v2 = vld [vmem:[#allocation8 + $0x710] ss:$12 sps:$4 sm:$0xff]  }
 0xb45   :  { %10049 = vmatmul.mubr.bf16.vlgmr.msra.gmra.mrb[88].mxu1 %v9861_v37  ;;  %v17596_v37 = vld [vmem:[#allocation8 + $0x828] ss:$12 sps:$4 sm:$0xff]   ;;  %v17601_v23 = vld [vmem:[#allocation8 + $0x844] ss:$12 sps:$4 sm:$0xff]  }
 0xb46   :  { %15689 = vmatpush3.bf16.msra.mxu1 %v17560_v34  ;;  %v9852_v49 = vpop.f32.mrb[140].mxu1  ;;  %v17567_v34 = vld [vmem:[#allocation8 + $0x728] ss:$12 sps:$4 sm:$0xff]  }
 0xb47   :  { %v9854_v27 = vpop.f32.mrb[141].mxu1  ;;  %15690 = vmatprep.subr.bf16.mxu1 %v17561_v21  ;;  %11301 = vmatpush1.bf16.msra.mxu0 %v17590_v22  ;;  %v17566_v21 = vld [vmem:[#allocation8 + $0x650] ss:$12 sps:$4 sm:$0xff]   ;;  %v17599_v22 = vld [vmem:[#allocation8 + $0x840] ss:$12 sps:$4 sm:$0xff]  }
 0xb48   :  { %v9856_v40 = vpop.f32.mrb[142].mxu1  ;;  %11302 = vmatprep.subr.bf16.mxu0 %v17595_v15  ;;  %v17569_v15 = vld [vmem:[#allocation8 + $0x740] ss:$12 sps:$4 sm:$0xff]  }
 0xb49   :  { %v9863_v14 = vpack.c.bf16 %v9856_v40, %v9852_v49  ;;  %v9858_v32 = vpop.f32.mrb[143].mxu1  ;;  %v17602_v49 = vld [vmem:[#allocation8 + $0x858] ss:$12 sps:$4 sm:$0xff]  }
 0xb4a   :  { %v9864_v10 = vpack.c.bf16 %v9858_v32, %v9854_v27  ;;  %15691 = vmatpush3.bf16.msra.mxu1 %v17562_v1  ;;  %v17604_v1 = vld [vmem:[#allocation8 + $0x85c] ss:$12 sps:$4 sm:$0xff]   ;;  %v17607_v27 = vld [vmem:[#allocation8 + $0x874] ss:$12 sps:$4 sm:$0xff]   ;;  %v17610_v40 = vld [vmem:[#allocation8 + $0x88c] ss:$12 sps:$4 sm:$0xff]  }
 0xb4b   :  { %15692 = vmatprep.subr.bf16.mxu1 %v17563_v44  ;;  %11303 = vmatpush1.bf16.msra.mxu0 %v17593_v57  ;;  %v17568_v44 = vld [vmem:[#allocation8 + $0x668] ss:$12 sps:$4 sm:$0xff]   ;;  %v17570_v57 = vld [vmem:[#allocation8 + $0x680] ss:$12 sps:$4 sm:$0xff]  }
 0xb4c   :  { %15155 = vmatprep.mubr.msk.bf16.mxu1 %vm1171_vm2, %v9864_v10  ;;  %11304 = vmatprep.subr.bf16.mxu0 %v17598_v62  ;;  %v17572_v62 = vld [vmem:[#allocation8 + $0x698] ss:$12 sps:$4 sm:$0xff]   ;;  %v17608_v32 = vld [vmem:[#allocation8 + $0x888] ss:$12 sps:$4 sm:$0xff]  }
 0xb4d   :  { %10059 = vmatmul.mubr.bf16.gmra.mrb[92].mxu1 %v9863_v14  ;;  %v17573_v14 = vld [vmem:[#allocation8 + $0x770] ss:$12 sps:$4 sm:$0xff]  }
 0xb4e   :  { %15693 = vmatpush3.bf16.msra.mxu1 %v17564_v20  ;;  %10577 = vmatprep.mubr.bf16.mxu1 %v21386_v3  ;;  %v17571_v20 = vld [vmem:[#allocation8 + $0x758] ss:$12 sps:$4 sm:$0xff]   ;;  %v17605_v3 = vld [vmem:[#allocation8 + $0x870] ss:$12 sps:$4 sm:$0xff]  }
 0xb4f   :  { %15694 = vmatprep.subr.bf16.mxu1 %v17565_v2  ;;  %11305 = vmatpush1.bf16.msra.mxu0 %v17596_v37  ;;  %v17613_v10 = vld [vmem:[#allocation8 + $0x8a4] ss:$12 sps:$4 sm:$0xff]   ;;  %v17611_v37 = vld [vmem:[#allocation8 + $0x8a0] ss:$12 sps:$4 sm:$0xff]  }
 0xb50   :  { %11306 = vmatprep.subr.bf16.mxu0 %v17601_v23  ;;  %v17574_v2 = vld [vmem:[#allocation8 + $0x6b0] ss:$12 sps:$4 sm:$0xff]  }
 0xb51   :  { %v17616_v23 = vld [vmem:[#allocation8 + $0x8bc] ss:$12 sps:$4 sm:$0xff]  }
 0xb52   :  { %15695 = vmatpush3.bf16.msra.mxu1 %v17566_v21  ;;  %v17614_v21 = vld [vmem:[#allocation8 + $0x8b8] ss:$12 sps:$4 sm:$0xff]  }
 0xb53   :  { %15696 = vmatprep.subr.bf16.mxu1 %v17567_v34  ;;  %11307 = vmatpush1.bf16.msra.mxu0 %v17599_v22  ;;  %v17619_v34 = vld [vmem:[#allocation8 + $0x8d4] ss:$12 sps:$4 sm:$0xff]   ;;  %v17617_v22 = vld [vmem:[#allocation8 + $0x8d0] ss:$12 sps:$4 sm:$0xff]  }
 0xb54   :  { %11308 = vmatprep.subr.bf16.mxu0 %v17604_v1  ;;  %v22541_v1 = vld [vmem:[#allocation53_spill] sm:$0xff] }
 0xb56   :  { %15697 = vmatpush3.bf16.msra.mxu1 %v17568_v44  ;;  %v17631_v44 = vld [vmem:[#allocation16 + $0x304] ss:$8 sps:$4 sm:$0xff]  }
 0xb57   :  { %15698 = vmatprep.subr.bf16.mxu1 %v17569_v15  ;;  %11309 = vmatpush1.bf16.msra.mxu0 %v17602_v49  ;;  %v17629_v15 = vld [vmem:[#allocation16 + $0x300] ss:$8 sps:$4 sm:$0xff]   ;;  %v17638_v49 = vld [vmem:[#allocation16 + $0x310] ss:$8 sps:$4 sm:$0xff]  }
 0xb58   :  { %11310 = vmatprep.subr.bf16.mxu0 %v17607_v27  ;;  %v17646_v27 = vld [vmem:[#allocation16 + $0x324] ss:$8 sps:$4 sm:$0xff]  }
 0xb5a   :  { %15699 = vmatpush3.bf16.msra.mxu1 %v17570_v57  ;;  %v17644_v57 = vld [vmem:[#allocation16 + $0x320] ss:$8 sps:$4 sm:$0xff]  }
 0xb5b   :  { %15700 = vmatprep.subr.bf16.mxu1 %v17571_v20  ;;  %11311 = vmatpush1.bf16.msra.mxu0 %v17605_v3  ;;  %v17650_v20 = vld [vmem:[#allocation16 + $0x330] ss:$8 sps:$4 sm:$0xff]   ;;  %v17652_v3 = vld [vmem:[#allocation16 + $0x334] ss:$8 sps:$4 sm:$0xff]  }
 0xb5c   :  { %11312 = vmatprep.subr.bf16.mxu0 %v17610_v40  ;;  %v17658_v40 = vld [vmem:[#allocation16 + $0x344] ss:$8 sps:$4 sm:$0xff]  }
 0xb5e   :  { %15701 = vmatpush3.bf16.msra.mxu1 %v17572_v62  ;;  %v17664_v62 = vld [vmem:[#allocation16 + $0x354] ss:$8 sps:$4 sm:$0xff]  }
 0xb5f   :  { %15702 = vmatprep.subr.bf16.mxu1 %v17573_v14  ;;  %11313 = vmatpush1.bf16.msra.mxu0 %v17608_v32  ;;  %v17668_v14 = vld [vmem:[#allocation16 + $0x360] ss:$8 sps:$4 sm:$0xff]   ;;  %v17670_v32 = vld [vmem:[#allocation16 + $0x364] ss:$8 sps:$4 sm:$0xff]  }
 0xb60   :  { %11314 = vmatprep.subr.bf16.mxu0 %v17613_v10  ;;  %v17674_v10 = vld [vmem:[#allocation16 + $0x370] ss:$8 sps:$4 sm:$0xff]  }
 0xb62   :  { %15703 = vmatpush3.bf16.msra.mxu1 %v17574_v2  ;;  %v17676_v2 = vld [vmem:[#allocation16 + $0x374] ss:$8 sps:$4 sm:$0xff]  }
 0xb63   :  { %10606 = vmatprep.subr.bf16.mxu1 %v20764_v6  ;;  %11315 = vmatpush1.bf16.msra.mxu0 %v17611_v37  ;;  %v17680_v37 = vld [vmem:[#allocation16 + $0x380] ss:$8 sps:$4 sm:$0xff]  }
 0xb64   :  { %11316 = vmatprep.subr.bf16.mxu0 %v17616_v23  ;;  %v17682_v23 = vld [vmem:[#allocation16 + $0x384] ss:$8 sps:$4 sm:$0xff]  }
 0xb65   :  { %10578 = vmatmul.mubr.bf16.vlgmr.msra.gmra.mrb[144].mxu1 %v21379_v36  ;;  %v17622_v36 = vld [vmem:[#allocation8 + $0x8ec] ss:$12 sps:$4 sm:$0xff]  }
 0xb66   :  { %10585 = vmatprep.mubr.bf16.mxu1 %v21414_v52  ;;  %10607 = vmatpush1.bf16.msra.mxu1 %v20762_v12  ;;  %v22542_v52 = vld [vmem:[#allocation59_spill] sm:$0xff] }
 0xb67   :  { %10608 = vmatprep.subr.bf16.mxu1 %v20774_v55  ;;  %11317 = vmatpush1.bf16.msra.mxu0 %v17614_v21  ;;  %v17686_v21 = vld [vmem:[#allocation16 + $0x390] ss:$8 sps:$4 sm:$0xff]  }
 0xb68   :  { %11318 = vmatprep.subr.bf16.mxu0 %v17619_v34  ;;  %v17688_v34 = vld [vmem:[#allocation16 + $0x394] ss:$8 sps:$4 sm:$0xff]  }
 0xb6a   :  { %10609 = vmatpush1.bf16.msra.mxu1 %v20772_v48 }
 0xb6b   :  { %10610 = vmatprep.subr.bf16.mxu1 %v20784_v42  ;;  %11319 = vmatpush1.bf16.msra.mxu0 %v17617_v22  ;;  %v17692_v22 = vld [vmem:[#allocation16 + $0x3a0] ss:$8 sps:$4 sm:$0xff]  }
 0xb6c   :  { %11320 = vmatprep.subr.bf16.mxu0 %v17622_v36  ;;  %v17700_v36 = vld [vmem:[#allocation16 + $0x3b4] ss:$8 sps:$4 sm:$0xff]  }
 0xb6d   :  { %10586 = vmatmul.mubr.bf16.gmra.mrb[148].mxu1 %v21407_v63  ;;  %v17620_v63 = vld [vmem:[#allocation8 + $0x8e8] ss:$12 sps:$4 sm:$0xff]  }
 0xb6e   :  { %10611 = vmatpush1.bf16.msra.mxu1 %v20782_v30  ;;  %15212 = vmatprep.mubr.msk.bf16.mxu1 %vm823_vm0, %v22541_v1  ;;  %v17694_v1 = vld [vmem:[#allocation16 + $0x3a4] ss:$8 sps:$4 sm:$0xff]  }
 0xb6f   :  { %10612 = vmatprep.subr.bf16.mxu1 %v22461_v29  ;;  %11321 = vmatpush1.bf16.msra.mxu0 %v17620_v63  ;;  %v17698_v63 = vld [vmem:[#allocation16 + $0x3b0] ss:$8 sps:$4 sm:$0xff]  }
 0xb70   :  { %11710 = vmatprep.subr.bf16.mxu0 %v21187_v61  ;;  %v17640_v61 = vld [vmem:[#allocation16 + $0x314] ss:$8 sps:$4 sm:$0xff]  }
 0xb72   :  { %10613 = vmatpush1.bf16.msra.mxu1 %v22462_v25 }
 0xb73   :  { %10614 = vmatprep.subr.bf16.mxu1 %v22463_v53 }
 0xb76   :  { %10615 = vmatpush1.bf16.msra.mxu1 %v22464_v0 }
 0xb77   :  { %10616 = vmatprep.subr.bf16.mxu1 %v22465_v50 }
 0xb7a   :  { %10617 = vmatpush1.bf16.msra.mxu1 %v22466_v28 }
 0xb7b   :  { %10618 = vmatprep.subr.bf16.mxu1 %v22467_v58 }
 0xb7e   :  { %10619 = vmatpush1.bf16.msra.mxu1 %v22468_v8 }
 0xb7f   :  { %10620 = vmatprep.subr.bf16.mxu1 %v22469_v5 }
 0xb82   :  { %10621 = vmatpush1.bf16.msra.mxu1 %v22470_v56 }
 0xb83   :  { %10622 = vmatprep.subr.bf16.mxu1 %v22471_v51 }
 0xb86   :  { %10623 = vmatpush1.bf16.msra.mxu1 %v22472_v54 }
 0xb87   :  { %10624 = vmatprep.subr.bf16.mxu1 %v22473_v60 }
 0xb8a   :  { %10625 = vmatpush1.bf16.msra.mxu1 %v22474_v39 }
 0xb8b   :  { %15211 = vmatprep.subr.msk.bf16.mxu1 %vm857_vm1, %v22475_v31 }
 0xb8e   :  { %10627 = vmatpush1.bf16.msra.mxu1 %v22476_v17 }
 0xb8f   :  { %10814 = vmatprep.subr.bf16.mxu1 %v17631_v44 }
 0xb91   :  { %10639 = vmatmul.mubr.bf16.vlgmr.msra.gmra.mrb[152].mxu1 %v21320_v13  ;;  %v17656_v13 = vld [vmem:[#allocation16 + $0x340] ss:$8 sps:$4 sm:$0xff]  }
 0xb92   :  { %15213 = vmatprep.mubr.msk.bf16.mxu1 %vm823_vm0, %v22542_v52  ;;  %10815 = vmatpush1.bf16.msra.mxu1 %v17629_v15  ;;  %v17704_v52 = vld [vmem:[#allocation8 + $0x848] ss:$12 sps:$4 sm:$0xff]  }
 0xb93   :  { %10816 = vmatprep.subr.bf16.mxu1 %v17640_v61  ;;  %v17649_v61 = vld [vmem:[#allocation8 + $0x94c] ss:$12 sps:$4 sm:$0xff]  }
 0xb96   :  { %10817 = vmatpush1.bf16.msra.mxu1 %v17638_v49 }
 0xb97   :  { %10818 = vmatprep.subr.bf16.mxu1 %v17646_v27 }
 0xb99   :  { %10649 = vmatmul.mubr.bf16.gmra.mrb[156].mxu1 %v21328_v9  ;;  %v17662_v9 = vld [vmem:[#allocation16 + $0x350] ss:$8 sps:$4 sm:$0xff]  }
 0xb9a   :  { %10819 = vmatpush1.bf16.msra.mxu1 %v17644_v57  ;;  %v22557_v57 = vld [vmem:[#allocation34_spill] sm:$0xff] }
 0xb9b   :  { %10820 = vmatprep.subr.bf16.mxu1 %v17652_v3 }
 0xb9e   :  { %10821 = vmatpush1.bf16.msra.mxu1 %v17650_v20 }
 0xb9f   :  { %10822 = vmatprep.subr.bf16.mxu1 %v17658_v40 }
 0xba2   :  { %10823 = vmatpush1.bf16.msra.mxu1 %v17656_v13  ;;  %v17641_v13 = vld [vmem:[#allocation8 + $0x930] ss:$12 sps:$4 sm:$0xff]  }
 0xba3   :  { %10824 = vmatprep.subr.bf16.mxu1 %v17664_v62 }
 0xba6   :  { %10825 = vmatpush1.bf16.msra.mxu1 %v17662_v9 }
 0xba7   :  { %10826 = vmatprep.subr.bf16.mxu1 %v17670_v32 }
 0xbaa   :  { %10827 = vmatpush1.bf16.msra.mxu1 %v17668_v14 }
 0xbab   :  { %10828 = vmatprep.subr.bf16.mxu1 %v17676_v2  ;;  %v22555_v2 = vld [vmem:[#allocation51_spill] sm:$0xff] }
 0xbae   :  { %10829 = vmatpush1.bf16.msra.mxu1 %v17674_v10 }
 0xbaf   :  { %10830 = vmatprep.subr.bf16.mxu1 %v17682_v23 }
 0xbb2   :  { %10831 = vmatpush1.bf16.msra.mxu1 %v17680_v37 }
 0xbb3   :  { %10832 = vmatprep.subr.bf16.mxu1 %v17688_v34  ;;  %v22543_v34 = vld [vmem:[#allocation38_spill] sm:$0xff] }
 0xbb6   :  { %10833 = vmatpush1.bf16.msra.mxu1 %v17686_v21  ;;  %v21553_v21 = vld [vmem:[#allocation5 + $0xc4] ss:$8 sps:$4 sm:$0xff]  }
 0xbb7   :  { %10834 = vmatprep.subr.bf16.mxu1 %v17694_v1  ;;  %v22548_v1 = vld [vmem:[#allocation39_spill] sm:$0xff] }
 0xbba   :  { %10835 = vmatpush1.bf16.msra.mxu1 %v17692_v22  ;;  %v22544_v22 = vld [vmem:[#allocation35_spill] sm:$0xff] }
 0xbbb   :  { %10836 = vmatprep.subr.bf16.mxu1 %v17700_v36  ;;  %v22549_v36 = vld [vmem:[#allocation41_spill] sm:$0xff] }
 0xbbe   :  { %10837 = vmatpush1.bf16.msra.mxu1 %v17698_v63  ;;  %v22551_v63 = vld [vmem:[#allocation58_spill] sm:$0xff] }
 0xbbf   :  { %15716 = vmatprep.subr.bf16.mxu1 %v17704_v52  ;;  %v22552_v52 = vld [vmem:[#allocation37_spill] sm:$0xff] }
 0xc05   :  { %v21500_v44 = vpop.f32.mrb[204].mxu0 }
 0xc06   :  { %v21504_v49 = vpop.f32.mrb[205].mxu0 }
 0xc07   :  { %v21508_v27 = vpop.f32.mrb[206].mxu0 }
 0xc08   :  { %v21514_v20 = vpack.c.bf16 %v21508_v27, %v21500_v44  ;;  %v21516_v3 = vpop.f32.mrb[207].mxu0 }
 0xc09   :  { %v21522_v40 = vpack.c.bf16 %v21516_v3, %v21504_v49 }
 0xc0b   :  { %11322 = vmatprep.mubr.bf16.mxu0 %v21522_v40 }
 0xc0c   :  { %11323 = vmatmul.mubr.bf16.vlgmr.msra.gmra.mrb[148].mxu0 %v21514_v20 }
 0xc0d   :  { %11711 = vmatpush1.bf16.msra.mxu0 %v21228_v19  ;;  %v21527_v9 = vpop.f32.mrb[208].mxu0 }
 0xc0e   :  { %v21531_v14 = vpop.f32.mrb[209].mxu0  ;;  %11712 = vmatprep.subr.bf16.mxu0 %v21237_v47 }
 0xc0f   :  { %v21536_v10 = vpop.f32.mrb[210].mxu0 }
 0xc10   :  { %v21542_v19 = vpack.c.bf16 %v21536_v10, %v21527_v9  ;;  %v21544_v37 = vpop.f32.mrb[211].mxu0 }
 0xc11   :  { %v21550_v47 = vpack.c.bf16 %v21544_v37, %v21531_v14  ;;  %11713 = vmatpush1.bf16.msra.mxu0 %v22513_v41  ;;  %v22545_v41 = vld [vmem:[#allocation50_spill] sm:$0xff] }
 0xc12   :  { %11714 = vmatprep.subr.bf16.mxu0 %v22515_v59  ;;  %v22546_v59 = vld [vmem:[#allocation47_spill] sm:$0xff] }
 0xc13   :  { %11332 = vmatprep.mubr.bf16.mxu0 %v21550_v47 }
 0xc14   :  { %11333 = vmatmul.mubr.bf16.gmra.mrb[152].mxu0 %v21542_v19 }
 0xc15   :  { %11715 = vmatpush1.bf16.msra.mxu0 %v22516_v45  ;;  %15329 = vmatprep.mubr.msk.bf16.mxu0 %vm823_vm0, %v21553_v21  ;;  %v22547_v45 = vld [vmem:[#allocation49_spill] sm:$0xff] }
 0xc16   :  { %11716 = vmatprep.subr.bf16.mxu0 %v22517_v35  ;;  %v22550_v35 = vld [vmem:[#allocation55_spill] sm:$0xff] }
 0xc19   :  { %11717 = vmatpush1.bf16.msra.mxu0 %v22543_v34  ;;  %v22554_v34 = vld [vmem:[#allocation33_spill] sm:$0xff] }
 0xc1a   :  { %11718 = vmatprep.subr.bf16.mxu0 %v22544_v22  ;;  %v17626_v22 = vld [vmem:[#allocation8 + $0x900] ss:$12 sps:$4 sm:$0xff]  }
 0xc1d   :  { %11719 = vmatpush1.bf16.msra.mxu0 %v22522_v18  ;;  %v22553_v18 = vld [vmem:[#allocation27_spill] sm:$0xff] }
 0xc1e   :  { %11720 = vmatprep.subr.bf16.mxu0 %v22525_v26  ;;  %v17628_v26 = vld [vmem:[#allocation8 + $0x904] ss:$12 sps:$4 sm:$0xff]  }
 0xc21   :  { %11721 = vmatpush1.bf16.msra.mxu0 %v22526_v16  ;;  %v21577_v16 = vld [vmem:[#allocation5 + $0xc0] ss:$8 sps:$4 sm:$0xff]  }
 0xc22   :  { %11722 = vmatprep.subr.bf16.mxu0 %v22545_v41  ;;  %v21580_v41 = vld [vmem:[#allocation5 + $0xd4] ss:$8 sps:$4 sm:$0xff]  }
 0xc25   :  { %11723 = vmatpush1.bf16.msra.mxu0 %v22546_v59  ;;  %v17634_v59 = vld [vmem:[#allocation8 + $0x91c] ss:$12 sps:$4 sm:$0xff]  }
 0xc26   :  { %11724 = vmatprep.subr.bf16.mxu0 %v22547_v45 }
 0xc29   :  { %11725 = vmatpush1.bf16.msra.mxu0 %v22548_v1 }
 0xc2a   :  { %11726 = vmatprep.subr.bf16.mxu0 %v22549_v36  ;;  %v17632_v36 = vld [vmem:[#allocation8 + $0x918] ss:$12 sps:$4 sm:$0xff]  }
 0xc2d   :  { %11727 = vmatpush1.bf16.msra.mxu0 %v22550_v35 }
 0xc2e   :  { %11728 = vmatprep.subr.bf16.mxu0 %v22551_v63 }
 0xc31   :  { %11729 = vmatpush1.bf16.msra.mxu0 %v22552_v52  ;;  %v17643_v52 = vld [vmem:[#allocation8 + $0x934] ss:$12 sps:$4 sm:$0xff]  }
 0xc32   :  { %15328 = vmatprep.subr.msk.bf16.mxu0 %vm857_vm1, %v22553_v18  ;;  %v17661_v18 = vld [vmem:[#allocation8 + $0x97c] ss:$12 sps:$4 sm:$0xff]  }
 0xc35   :  { %11731 = vmatpush1.bf16.msra.mxu0 %v22554_v34 }
 0xc36   :  { %12088 = vmatprep.subr.bf16.mxu0 %v17628_v26  ;;  %v21588_v26 = vld [vmem:[#allocation5 + $0xd0] ss:$8 sps:$4 sm:$0xff]  }
 0xc38   :  { %11743 = vmatmul.mubr.bf16.vlgmr.msra.gmra.mrb[212].mxu0 %v21577_v16  ;;  %v15704_v45 = vpop.f32.mrb[144].mxu1 }
 0xc39   :  { %12089 = vmatpush1.bf16.msra.mxu0 %v17626_v22  ;;  %v15705_v1 = vpop.f32.mrb[145].mxu1  ;;  %15330 = vmatprep.mubr.msk.bf16.mxu0 %vm823_vm0, %v21580_v41 }
 0xc3a   :  { %v15706_v35 = vadd.f32 %v15705_v1, %v15704_v45  ;;  %v15707_v63 = vpop.f32.mrb[146].mxu1  ;;  %12090 = vmatprep.subr.bf16.mxu0 %v17634_v59  ;;  %v17647_v1 = vld [vmem:[#allocation8 + $0x948] ss:$12 sps:$4 sm:$0xff]  }
 0xc3b   :  { %v15708_v23 = vpop.f32.mrb[147].mxu1 }
 0xc3c   :  { %v21586_v32 = vadd.f32 %v15706_v35, %v22555_v2  ;;  %v15709_v62 = vadd.f32 %v15708_v23, %v15707_v63  ;;  %v17655_v2 = vld [vmem:[#allocation8 + $0x964] ss:$12 sps:$4 sm:$0xff]   ;;  %v22559_v35 = vld [vmem:[#allocation57_spill] sm:$0xff] }
 0xc3d   :  { %12091 = vmatpush1.bf16.msra.mxu0 %v17632_v36 }
 0xc3e   :  { %22556 = vst [vmem:[#allocation36_spill] sm:$0xff] %v21586_v32  ;;  %v21591_v22 = vadd.f32 %v15709_v62, %v22557_v57  ;;  %12092 = vmatprep.subr.bf16.mxu0 %v17643_v52  ;;  %v17653_v57 = vld [vmem:[#allocation8 + $0x960] ss:$12 sps:$4 sm:$0xff]   ;;  %v22561_v62 = vld [vmem:[#allocation40_spill] sm:$0xff] }
 0xc3f   :  { %v17718_v32 = vld [vmem:[#allocation8 + $0x7b8] ss:$12 sps:$4 sm:$0xff]  }
 0xc40   :  { %22558 = vst [vmem:[#allocation32_spill] sm:$0xff] %v21591_v22  ;;  %11753 = vmatmul.mubr.bf16.gmra.mrb[216].mxu0 %v21588_v26  ;;  %v15710_v45 = vpop.f32.mrb[148].mxu1  ;;  %v17667_v22 = vld [vmem:[#allocation8 + $0x994] ss:$12 sps:$4 sm:$0xff]  }
 0xc41   :  { %12093 = vmatpush1.bf16.msra.mxu0 %v17641_v13  ;;  %v15711_v59 = vpop.f32.mrb[149].mxu1  ;;  %v17659_v13 = vld [vmem:[#allocation8 + $0x978] ss:$12 sps:$4 sm:$0xff]  }
 0xc42   :  { %v15712_v15 = vadd.f32 %v15711_v59, %v15710_v45  ;;  %v15713_v34 = vpop.f32.mrb[150].mxu1  ;;  %12094 = vmatprep.subr.bf16.mxu0 %v17649_v61  ;;  %v17665_v45 = vld [vmem:[#allocation8 + $0x990] ss:$12 sps:$4 sm:$0xff]   ;;  %v17673_v61 = vld [vmem:[#allocation8 + $0x9ac] ss:$12 sps:$4 sm:$0xff]  }
 0xc43   :  { %v15714_v23 = vpop.f32.mrb[151].mxu1  ;;  %v17671_v59 = vld [vmem:[#allocation8 + $0x9a8] ss:$12 sps:$4 sm:$0xff]  }
 0xc44   :  { %v21595_v63 = vadd.f32 %v15712_v15, %v22559_v35  ;;  %v15715_v36 = vadd.f32 %v15714_v23, %v15713_v34  ;;  %v17679_v15 = vld [vmem:[#allocation8 + $0x9c4] ss:$12 sps:$4 sm:$0xff]   ;;  %v17677_v34 = vld [vmem:[#allocation8 + $0x9c0] ss:$12 sps:$4 sm:$0xff]  }
 0xc45   :  { %12095 = vmatpush1.bf16.msra.mxu0 %v17647_v1  ;;  %v17685_v1 = vld [vmem:[#allocation8 + $0x9dc] ss:$12 sps:$4 sm:$0xff]   ;;  %v17683_v23 = vld [vmem:[#allocation8 + $0x9d8] ss:$12 sps:$4 sm:$0xff]  }
 0xc46   :  { %22560 = vst [vmem:[#allocation46_spill] sm:$0xff] %v21595_v63  ;;  %v21598_v52 = vadd.f32 %v15715_v36, %v22561_v62  ;;  %12096 = vmatprep.subr.bf16.mxu0 %v17655_v2  ;;  %v17691_v2 = vld [vmem:[#allocation8 + $0x9f4] ss:$12 sps:$4 sm:$0xff]   ;;  %v17689_v35 = vld [vmem:[#allocation8 + $0x9f0] ss:$12 sps:$4 sm:$0xff]  }
 0xc47   :  { %v17695_v36 = vld [vmem:[#allocation8 + $0xa08] ss:$12 sps:$4 sm:$0xff]   ;;  %v17714_v63 = vld [vmem:[#allocation8 + $0x878] ss:$12 sps:$4 sm:$0xff]  }
 0xc48   :  { %22562 = vst [vmem:[#allocation29_spill] sm:$0xff] %v21598_v52  ;;  %v17709_v52 = vld [vmem:[#allocation8 + $0x860] ss:$12 sps:$4 sm:$0xff]  }
 0xc49   :  { %12097 = vmatpush1.bf16.msra.mxu0 %v17653_v57 }
 0xc4a   :  { %12098 = vmatprep.subr.bf16.mxu0 %v17661_v18  ;;  %v17697_v18 = vld [vmem:[#allocation8 + $0xa0c] ss:$12 sps:$4 sm:$0xff]  }
 0xc4d   :  { %12099 = vmatpush1.bf16.msra.mxu0 %v17659_v13  ;;  %v17701_v13 = vld [vmem:[#allocation8 + $0xa20] ss:$12 sps:$4 sm:$0xff]  }
 0xc4e   :  { %12100 = vmatprep.subr.bf16.mxu0 %v17667_v22  ;;  %v17703_v22 = vld [vmem:[#allocation8 + $0xa24] ss:$12 sps:$4 sm:$0xff]  }
 0xc51   :  { %12101 = vmatpush1.bf16.msra.mxu0 %v17665_v45 }
 0xc52   :  { %12102 = vmatprep.subr.bf16.mxu0 %v17673_v61  ;;  %v17707_v61 = vld [vmem:[#allocation8 + $0xa3c] ss:$12 sps:$4 sm:$0xff]  }
 0xc55   :  { %12103 = vmatpush1.bf16.msra.mxu0 %v17671_v59 }
 0xc56   :  { %12104 = vmatprep.subr.bf16.mxu0 %v17679_v15 }
 0xc59   :  { %12105 = vmatpush1.bf16.msra.mxu0 %v17677_v34 }
 0xc5a   :  { %12106 = vmatprep.subr.bf16.mxu0 %v17685_v1  ;;  %v17708_v1 = vld [vmem:[#allocation8 + $0x788] ss:$12 sps:$4 sm:$0xff]  }
 0xc5d   :  { %12107 = vmatpush1.bf16.msra.mxu0 %v17683_v23  ;;  %v17705_v23 = vld [vmem:[#allocation8 + $0xa38] ss:$12 sps:$4 sm:$0xff]  }
 0xc5e   :  { %12108 = vmatprep.subr.bf16.mxu0 %v17691_v2  ;;  %v17712_v2 = vld [vmem:[#allocation8 + $0xa54] ss:$12 sps:$4 sm:$0xff]  }
 0xc61   :  { %12109 = vmatpush1.bf16.msra.mxu0 %v17689_v35 }
 0xc62   :  { %12110 = vmatprep.subr.bf16.mxu0 %v17697_v18  ;;  %v17713_v18 = vld [vmem:[#allocation8 + $0x7a0] ss:$12 sps:$4 sm:$0xff]  }
 0xc64   :  { %v10640_v57 = vpop.f32.mrb[152].mxu1 }
 0xc65   :  { %12111 = vmatpush1.bf16.msra.mxu0 %v17695_v36  ;;  %v10642_v62 = vpop.f32.mrb[153].mxu1 }
 0xc66   :  { %v10644_v45 = vpop.f32.mrb[154].mxu1  ;;  %12112 = vmatprep.subr.bf16.mxu0 %v17703_v22  ;;  %v17710_v22 = vld [vmem:[#allocation8 + $0xa50] ss:$12 sps:$4 sm:$0xff]  }
 0xc67   :  { %v10659_v59 = vpack.c.bf16 %v10644_v45, %v10640_v57  ;;  %v10646_v15 = vpop.f32.mrb[155].mxu1 }
 0xc68   :  { %v10660_v34 = vpack.c.bf16 %v10646_v15, %v10642_v62  ;;  %v17717_v62 = vld [vmem:[#allocation8 + $0xa6c] ss:$12 sps:$4 sm:$0xff]  }
 0xc69   :  { %12113 = vmatpush1.bf16.msra.mxu0 %v17701_v13 }
 0xc6a   :  { %15238 = vmatprep.mubr.msk.bf16.mxu1 %vm1171_vm2, %v10660_v34  ;;  %12114 = vmatprep.subr.bf16.mxu0 %v17707_v61  ;;  %v17715_v61 = vld [vmem:[#allocation8 + $0xa68] ss:$12 sps:$4 sm:$0xff]  }
 0xc6b   :  { %10847 = vmatmul.mubr.bf16.vlgmr.msra.gmra.mrb[88].mxu1 %v10659_v59  ;;  %v17719_v59 = vld [vmem:[#allocation8 + $0x890] ss:$12 sps:$4 sm:$0xff]   ;;  %v17721_v34 = vld [vmem:[#allocation8 + $0x8a8] ss:$12 sps:$4 sm:$0xff]  }
 0xc6c   :  { %15717 = vmatpush3.bf16.msra.mxu1 %v17708_v1  ;;  %v10650_v35 = vpop.f32.mrb[156].mxu1  ;;  %v17722_v1 = vld [vmem:[#allocation8 + $0x7e8] ss:$12 sps:$4 sm:$0xff]  }
 0xc6d   :  { %12115 = vmatpush1.bf16.msra.mxu0 %v17705_v23  ;;  %v10652_v36 = vpop.f32.mrb[157].mxu1  ;;  %15718 = vmatprep.subr.bf16.mxu1 %v17709_v52  ;;  %v17720_v52 = vld [vmem:[#allocation8 + $0x7d0] ss:$12 sps:$4 sm:$0xff]   ;;  %v17723_v23 = vld [vmem:[#allocation8 + $0x8c0] ss:$12 sps:$4 sm:$0xff]  }
 0xc6e   :  { %v10654_v57 = vpop.f32.mrb[158].mxu1  ;;  %12116 = vmatprep.subr.bf16.mxu0 %v17712_v2  ;;  %v17725_v2 = vld [vmem:[#allocation8 + $0x8d8] ss:$12 sps:$4 sm:$0xff]  }
 0xc6f   :  { %v10661_v45 = vpack.c.bf16 %v10654_v57, %v10650_v35  ;;  %v10656_v13 = vpop.f32.mrb[159].mxu1  ;;  %v17726_v35 = vld [vmem:[#allocation8 + $0x818] ss:$12 sps:$4 sm:$0xff]  }
 0xc70   :  { %v10662_v15 = vpack.c.bf16 %v10656_v13, %v10652_v36  ;;  %15719 = vmatpush3.bf16.msra.mxu1 %v17713_v18  ;;  %v22563_v18 = vld [vmem:[#allocation54_spill] sm:$0xff]  ;;  %v17731_v36 = vld [vmem:[#allocation16 + $0x3c4] ss:$8 sps:$4 sm:$0xff]  }
 0xc71   :  { %12117 = vmatpush1.bf16.msra.mxu0 %v17710_v22  ;;  %15720 = vmatprep.subr.bf16.mxu1 %v17714_v63  ;;  %v17724_v63 = vld [vmem:[#allocation8 + $0x800] ss:$12 sps:$4 sm:$0xff]   ;;  %v17729_v22 = vld [vmem:[#allocation16 + $0x3c0] ss:$8 sps:$4 sm:$0xff]  }
 0xc72   :  { %15239 = vmatprep.mubr.msk.bf16.mxu1 %vm1171_vm2, %v10662_v15  ;;  %12118 = vmatprep.subr.bf16.mxu0 %v17717_v62  ;;  %v17732_v57 = vld [vmem:[#allocation16 + $0x3d0] ss:$8 sps:$4 sm:$0xff]   ;;  %v17734_v62 = vld [vmem:[#allocation16 + $0x3d4] ss:$8 sps:$4 sm:$0xff]   ;;  %v17738_v13 = vld [vmem:[#allocation16 + $0x3e0] ss:$8 sps:$4 sm:$0xff]  }
 0xc73   :  { %10857 = vmatmul.mubr.bf16.gmra.mrb[92].mxu1 %v10661_v45  ;;  %v17740_v45 = vld [vmem:[#allocation16 + $0x3e4] ss:$8 sps:$4 sm:$0xff]   ;;  %v17741_v15 = vld [vmem:[#allocation16 + $0x3f0] ss:$8 sps:$4 sm:$0xff]  }
 0xc74   :  { %15721 = vmatpush3.bf16.msra.mxu1 %v17718_v32  ;;  %11375 = vmatprep.mubr.bf16.mxu1 %v21522_v40  ;;  %v17727_v32 = vld [vmem:[#allocation8 + $0x8f0] ss:$12 sps:$4 sm:$0xff]  }
 0xc75   :  { %12119 = vmatpush1.bf16.msra.mxu0 %v17715_v61  ;;  %15722 = vmatprep.subr.bf16.mxu1 %v17719_v59  ;;  %v17728_v40 = vld [vmem:[#allocation8 + $0x830] ss:$12 sps:$4 sm:$0xff]   ;;  %v17749_v59 = vld [vmem:[#allocation16 + $0x404] ss:$8 sps:$4 sm:$0xff]  }
 0xc76   :  { %12202 = vmatprep.subr.bf16.mxu0 %v20764_v6  ;;  %v17743_v61 = vld [vmem:[#allocation16 + $0x3f4] ss:$8 sps:$4 sm:$0xff]  }
 0xc78   :  { %15723 = vmatpush3.bf16.msra.mxu1 %v17720_v52  ;;  %v17747_v52 = vld [vmem:[#allocation16 + $0x400] ss:$8 sps:$4 sm:$0xff]  }
 0xc79   :  { %15724 = vmatprep.subr.bf16.mxu1 %v17721_v34  ;;  %v17752_v34 = vld [vmem:[#allocation16 + $0x414] ss:$8 sps:$4 sm:$0xff]  }
 0xc7c   :  { %15725 = vmatpush3.bf16.msra.mxu1 %v17722_v1  ;;  %v17750_v1 = vld [vmem:[#allocation16 + $0x410] ss:$8 sps:$4 sm:$0xff]  }
 0xc7d   :  { %15726 = vmatprep.subr.bf16.mxu1 %v17723_v23  ;;  %v17755_v23 = vld [vmem:[#allocation16 + $0x424] ss:$8 sps:$4 sm:$0xff]  }
 0xc80   :  { %15727 = vmatpush3.bf16.msra.mxu1 %v17724_v63  ;;  %v17753_v63 = vld [vmem:[#allocation16 + $0x420] ss:$8 sps:$4 sm:$0xff]  }
 0xc81   :  { %15728 = vmatprep.subr.bf16.mxu1 %v17725_v2  ;;  %v17758_v2 = vld [vmem:[#allocation16 + $0x434] ss:$8 sps:$4 sm:$0xff]  }
 0xc84   :  { %15729 = vmatpush3.bf16.msra.mxu1 %v17726_v35  ;;  %v17756_v35 = vld [vmem:[#allocation16 + $0x430] ss:$8 sps:$4 sm:$0xff]  }
 0xc85   :  { %15730 = vmatprep.subr.bf16.mxu1 %v17727_v32  ;;  %v17761_v32 = vld [vmem:[#allocation16 + $0x444] ss:$8 sps:$4 sm:$0xff]  }
 0xc88   :  { %15731 = vmatpush3.bf16.msra.mxu1 %v17728_v40  ;;  %v17759_v40 = vld [vmem:[#allocation16 + $0x440] ss:$8 sps:$4 sm:$0xff]  }
 0xc89   :  { %11404 = vmatprep.subr.bf16.mxu1 %v20764_v6 }
 0xc8b   :  { %11376 = vmatmul.mubr.bf16.vlgmr.msra.gmra.mrb[160].mxu1 %v21514_v20  ;;  %v22564_v20 = vld [vmem:[#allocation28_spill] sm:$0xff] }
 0xc8c   :  { %11383 = vmatprep.mubr.bf16.mxu1 %v21550_v47  ;;  %11405 = vmatpush1.bf16.msra.mxu1 %v20762_v12  ;;  %v22566_v47 = vld [vmem:[#allocation56_spill] sm:$0xff] }
 0xc8d   :  { %11406 = vmatprep.subr.bf16.mxu1 %v20774_v55 }
 0xc90   :  { %11407 = vmatpush1.bf16.msra.mxu1 %v20772_v48 }
 0xc91   :  { %11408 = vmatprep.subr.bf16.mxu1 %v20784_v42 }
 0xc93   :  { %11384 = vmatmul.mubr.bf16.gmra.mrb[164].mxu1 %v21542_v19  ;;  %v22565_v19 = vld [vmem:[#allocation48_spill] sm:$0xff] }
 0xc94   :  { %11409 = vmatpush1.bf16.msra.mxu1 %v20782_v30  ;;  %15296 = vmatprep.mubr.msk.bf16.mxu1 %vm823_vm0, %v22563_v18  ;;  %v17764_v18 = vld [vmem:[#allocation16 + $0x454] ss:$8 sps:$4 sm:$0xff]  }
 0xc95   :  { %11410 = vmatprep.subr.bf16.mxu1 %v22461_v29 }
 0xc98   :  { %11411 = vmatpush1.bf16.msra.mxu1 %v22462_v25 }
 0xc99   :  { %11412 = vmatprep.subr.bf16.mxu1 %v22463_v53 }
 0xc9c   :  { %11413 = vmatpush1.bf16.msra.mxu1 %v22464_v0 }
 0xc9d   :  { %11414 = vmatprep.subr.bf16.mxu1 %v22465_v50 }
 0xca0   :  { %11415 = vmatpush1.bf16.msra.mxu1 %v22466_v28 }
 0xca1   :  { %11416 = vmatprep.subr.bf16.mxu1 %v22467_v58 }
 0xca4   :  { %11417 = vmatpush1.bf16.msra.mxu1 %v22468_v8 }
 0xca5   :  { %11418 = vmatprep.subr.bf16.mxu1 %v22469_v5 }
 0xca8   :  { %11419 = vmatpush1.bf16.msra.mxu1 %v22470_v56 }
 0xca9   :  { %11420 = vmatprep.subr.bf16.mxu1 %v22471_v51 }
 0xcac   :  { %11421 = vmatpush1.bf16.msra.mxu1 %v22472_v54 }
 0xcad   :  { %11422 = vmatprep.subr.bf16.mxu1 %v22473_v60 }
 0xcb0   :  { %11423 = vmatpush1.bf16.msra.mxu1 %v22474_v39 }
 0xcb1   :  { %15295 = vmatprep.subr.msk.bf16.mxu1 %vm857_vm1, %v22475_v31 }
 0xcb4   :  { %11425 = vmatpush1.bf16.msra.mxu1 %v22476_v17 }
 0xcb5   :  { %11612 = vmatprep.subr.bf16.mxu1 %v17731_v36 }
 0xcb7   :  { %11437 = vmatmul.mubr.bf16.vlgmr.msra.gmra.mrb[168].mxu1 %v22564_v20  ;;  %v17762_v20 = vld [vmem:[#allocation16 + $0x450] ss:$8 sps:$4 sm:$0xff]  }
 0xcb8   :  { %15297 = vmatprep.mubr.msk.bf16.mxu1 %vm823_vm0, %v22565_v19  ;;  %11613 = vmatpush1.bf16.msra.mxu1 %v17729_v22  ;;  %v17767_v19 = vld [vmem:[#allocation16 + $0x464] ss:$8 sps:$4 sm:$0xff]   ;;  %v22567_v22 = vmax.f32 %v21367_v33, %v21500_v44  ;;  %v22570_v33 = vmax.f32 %v21384_v11, %v21516_v3  ;;  %v22572_v3 = vmax.f32 %v21400_v7, %v21531_v14  ;;  %v21724_v14 = vld [vmem:[#allocation2 + $0x10] ss:$8 sps:$4 sm:$0xff]  }
 0xcb9   :  { %11614 = vmatprep.subr.bf16.mxu1 %v17734_v62  ;;  %v21712_v7 = vld [vmem:[#allocation2 + $0x4] ss:$8 sps:$4 sm:$0xff]  }
 0xcbc   :  { %11615 = vmatpush1.bf16.msra.mxu1 %v17732_v57 }
 0xcbd   :  { %11616 = vmatprep.subr.bf16.mxu1 %v17740_v45  ;;  %v17770_v45 = vld [vmem:[#allocation16 + $0x474] ss:$8 sps:$4 sm:$0xff]  }
 0xcbf   :  { %11447 = vmatmul.mubr.bf16.gmra.mrb[172].mxu1 %v22566_v47  ;;  %v17765_v47 = vld [vmem:[#allocation16 + $0x460] ss:$8 sps:$4 sm:$0xff]  }
 0xcc0   :  { %11617 = vmatpush1.bf16.msra.mxu1 %v17738_v13  ;;  %v22568_v13 = vmax.f32 %v21372_v43, %v21504_v49  ;;  %v17771_v43 = vld [vmem:[#allocation8 + $0x9c8] ss:$12 sps:$4 sm:$0xff]   ;;  %v22571_v49 = vmax.f32 %v21394_v46, %v21527_v9  ;;  %v22574_v46 = vmax.f32 %v21412_v38, %v21544_v37  ;;  %v21721_v38 = vld [vmem:[#allocation2 + $0x14] ss:$8 sps:$4 sm:$0xff]  }
 0xcc1   :  { %11618 = vmatprep.subr.bf16.mxu1 %v17743_v61  ;;  %v21729_v37 = vld [vmem:[#allocation2 + $0x24] ss:$8 sps:$4 sm:$0xff]  }
 0xcc4   :  { %11619 = vmatpush1.bf16.msra.mxu1 %v17741_v15 }
 0xcc5   :  { %11620 = vmatprep.subr.bf16.mxu1 %v17749_v59  ;;  %v17768_v59 = vld [vmem:[#allocation16 + $0x470] ss:$8 sps:$4 sm:$0xff]  }
 0xcc8   :  { %11621 = vmatpush1.bf16.msra.mxu1 %v17747_v52  ;;  %v22569_v52 = vmax.f32 %v21377_v24, %v21508_v27 }
 0xcc9   :  { %11622 = vmatprep.subr.bf16.mxu1 %v17752_v34 }
 0xccc   :  { %11623 = vmatpush1.bf16.msra.mxu1 %v17750_v1 }
 0xccd   :  { %11624 = vmatprep.subr.bf16.mxu1 %v17755_v23 }
 0xcd0   :  { %11625 = vmatpush1.bf16.msra.mxu1 %v17753_v63 }
 0xcd1   :  { %11626 = vmatprep.subr.bf16.mxu1 %v17758_v2 }
 0xcd4   :  { %11627 = vmatpush1.bf16.msra.mxu1 %v17756_v35 }
 0xcd5   :  { %11628 = vmatprep.subr.bf16.mxu1 %v17761_v32  ;;  %v22573_v32 = vmax.f32 %v21405_v4, %v21536_v10  ;;  %v21716_v4 = vld [vmem:[#allocation2] ss:$8 sps:$4 sm:$0xff]   ;;  %v21727_v10 = vld [vmem:[#allocation5 + $0xe4] ss:$8 sps:$4 sm:$0xff]  }
 0xcd8   :  { %11629 = vmatpush1.bf16.msra.mxu1 %v17759_v40 }
 0xcd9   :  { %11630 = vmatprep.subr.bf16.mxu1 %v17764_v18 }
 0xcdc   :  { %11631 = vmatpush1.bf16.msra.mxu1 %v17762_v20 }
 0xcdd   :  { %11632 = vmatprep.subr.bf16.mxu1 %v17767_v19 }
 0xce0   :  { %11633 = vmatpush1.bf16.msra.mxu1 %v17765_v47  ;;  %v21744_v47 = vld [vmem:[#allocation2 + $0x44] ss:$8 sps:$4 sm:$0xff]  }
 0xce1   :  { %11634 = vmatprep.subr.bf16.mxu1 %v17770_v45  ;;  %v21759_v45 = vld [vmem:[#allocation2 + $0x60] ss:$8 sps:$4 sm:$0xff]  }
 0xce4   :  { %11635 = vmatpush1.bf16.msra.mxu1 %v17768_v59  ;;  %v21768_v59 = vld [vmem:[#allocation2 + $0x84] ss:$8 sps:$4 sm:$0xff]  }
 0xce5   :  { %15744 = vmatprep.subr.bf16.mxu1 %v17771_v43 }
 0xd0b   :  { %v11744_v36 = vpop.f32.mrb[212].mxu0 }
 0xd0c   :  { %v21639_v57 = vmax.f32 %v22567_v22, %v11744_v36  ;;  %v11746_v62 = vpop.f32.mrb[213].mxu0  ;;  %v21753_v22 = vld [vmem:[#allocation2 + $0x50] ss:$8 sps:$4 sm:$0xff]  }
 0xd0d   :  { %v21644_v15 = vmax.f32 %v22568_v13, %v11746_v62  ;;  %v11748_v61 = vpop.f32.mrb[214].mxu0  ;;  %v21762_v13 = vld [vmem:[#allocation2 + $0x74] ss:$8 sps:$4 sm:$0xff]  }
 0xd0e   :  { %v21649_v34 = vmax.f32 %v22569_v52, %v11748_v61  ;;  %v21651_v1 = vpack.c.bf16 %v11748_v61, %v11744_v36  ;;  %v11750_v23 = vpop.f32.mrb[215].mxu0  ;;  %v21750_v36 = vld [vmem:[#allocation2 + $0x54] ss:$8 sps:$4 sm:$0xff]   ;;  %v21765_v61 = vld [vmem:[#allocation2 + $0x70] ss:$8 sps:$4 sm:$0xff]  }
 0xd0f   :  { %v21656_v44 = vmax.f32 %v22570_v33, %v11750_v23  ;;  %v21658_v63 = vpack.c.bf16 %v11750_v23, %v11746_v62  ;;  %v21756_v62 = vld [vmem:[#allocation2 + $0x64] ss:$8 sps:$4 sm:$0xff]   ;;  %v21771_v23 = vld [vmem:[#allocation2 + $0x80] ss:$8 sps:$4 sm:$0xff]  }
 0xd10   :  { %22575 = vst [vmem:[#allocation53_spill] sm:$0xff] %v21771_v23 }
 0xd11   :  { %12120 = vmatprep.mubr.bf16.mxu0 %v21658_v63 }
 0xd12   :  { %12121 = vmatmul.mubr.bf16.vlgmr.msra.gmra.mrb[148].mxu0 %v21651_v1 }
 0xd13   :  { %12203 = vmatpush1.bf16.msra.mxu0 %v20762_v12  ;;  %v11754_v24 = vpop.f32.mrb[216].mxu0 }
 0xd14   :  { %v21666_v27 = vmax.f32 %v22571_v49, %v11754_v24  ;;  %12204 = vmatprep.subr.bf16.mxu0 %v20774_v55  ;;  %v11756_v11 = vpop.f32.mrb[217].mxu0  ;;  %v21774_v49 = vld [vmem:[#allocation2 + $0x94] ss:$8 sps:$4 sm:$0xff]  }
 0xd15   :  { %v21672_v2 = vmax.f32 %v22572_v3, %v11756_v11  ;;  %v11758_v35 = vpop.f32.mrb[218].mxu0  ;;  %22576 = vst [vmem:[#allocation59_spill] sm:$0xff] %v21774_v49  ;;  %v22577_v3 = vld [vmem:[#allocation36_spill] sm:$0xff] }
 0xd16   :  { %v21677_v40 = vmax.f32 %v22573_v32, %v11758_v35  ;;  %v21679_v18 = vpack.c.bf16 %v11758_v35, %v11754_v24  ;;  %v11760_v20 = vpop.f32.mrb[219].mxu0 }
 0xd17   :  { %v21684_v9 = vmax.f32 %v22574_v46, %v11760_v20  ;;  %v21686_v19 = vpack.c.bf16 %v11760_v20, %v11756_v11  ;;  %12205 = vmatpush1.bf16.msra.mxu0 %v20772_v48  ;;  %v21780_v20 = vld [vmem:[#allocation2 + $0x90] ss:$8 sps:$4 sm:$0xff]   ;;  %v22580_v46 = vld [vmem:[#allocation32_spill] sm:$0xff] }
 0xd18   :  { %12206 = vmatprep.subr.bf16.mxu0 %v20784_v42  ;;  %22579 = vst [vmem:[#allocation35_spill] sm:$0xff] %v21780_v20 }
 0xd19   :  { %12130 = vmatprep.mubr.bf16.mxu0 %v21686_v19 }
 0xd1a   :  { %12131 = vmatmul.mubr.bf16.gmra.mrb[152].mxu0 %v21679_v18 }
 0xd1b   :  { %12207 = vmatpush1.bf16.msra.mxu0 %v20782_v30  ;;  %15380 = vmatprep.mubr.msk.bf16.mxu0 %vm823_vm0, %v21553_v21  ;;  %v21733_v21 = vld [vmem:[#allocation2 + $0x20] ss:$8 sps:$4 sm:$0xff]  }
 0xd1c   :  { %12208 = vmatprep.subr.bf16.mxu0 %v22461_v29 }
 0xd1f   :  { %12209 = vmatpush1.bf16.msra.mxu0 %v22462_v25 }
 0xd20   :  { %12210 = vmatprep.subr.bf16.mxu0 %v22463_v53 }
 0xd23   :  { %12211 = vmatpush1.bf16.msra.mxu0 %v22464_v0 }
 0xd24   :  { %12212 = vmatprep.subr.bf16.mxu0 %v22465_v50 }
 0xd27   :  { %12213 = vmatpush1.bf16.msra.mxu0 %v22466_v28 }
 0xd28   :  { %12214 = vmatprep.subr.bf16.mxu0 %v22467_v58 }
 0xd2b   :  { %12215 = vmatpush1.bf16.msra.mxu0 %v22468_v8 }
 0xd2c   :  { %12216 = vmatprep.subr.bf16.mxu0 %v22469_v5 }
 0xd2f   :  { %12217 = vmatpush1.bf16.msra.mxu0 %v22470_v56 }
 0xd30   :  { %12218 = vmatprep.subr.bf16.mxu0 %v22471_v51 }
 0xd33   :  { %12219 = vmatpush1.bf16.msra.mxu0 %v22472_v54  ;;  %v17838_v54 = vld [vmem:[#allocation8 + $0xaf8] ss:$12 sps:$4 sm:$0xff]  }
 0xd34   :  { %12220 = vmatprep.subr.bf16.mxu0 %v22473_v60 }
 0xd37   :  { %12221 = vmatpush1.bf16.msra.mxu0 %v22474_v39  ;;  %v21788_v39 = vld [vmem:[#allocation5 + $0xe0] ss:$8 sps:$4 sm:$0xff]  }
 0xd38   :  { %15379 = vmatprep.subr.msk.bf16.mxu0 %vm857_vm1, %v22475_v31  ;;  %v22582_v31 = vld [vmem:[#allocation27_spill] sm:$0xff]  ;;  %22583 = vst [vmem:[#allocation47_spill] sm:$0xff] %v21788_v39 }
 0xd3b   :  { %12223 = vmatpush1.bf16.msra.mxu0 %v22476_v17 }
 0xd3c   :  { %12508 = vmatprep.subr.bf16.mxu0 %v21712_v7 }
 0xd3e   :  { %12235 = vmatmul.mubr.bf16.vlgmr.msra.gmra.mrb[220].mxu0 %v21577_v16  ;;  %v21738_v16 = vld [vmem:[#allocation2 + $0x34] ss:$8 sps:$4 sm:$0xff]  }
 0xd3f   :  { %12509 = vmatpush1.bf16.msra.mxu0 %v21716_v4  ;;  %15381 = vmatprep.mubr.msk.bf16.mxu0 %vm823_vm0, %v21580_v41  ;;  %v21741_v41 = vld [vmem:[#allocation2 + $0x30] ss:$8 sps:$4 sm:$0xff]  }
 0xd40   :  { %12510 = vmatprep.subr.bf16.mxu0 %v21721_v38 }
 0xd43   :  { %12511 = vmatpush1.bf16.msra.mxu0 %v21724_v14 }
 0xd44   :  { %12512 = vmatprep.subr.bf16.mxu0 %v21729_v37 }
 0xd46   :  { %12245 = vmatmul.mubr.bf16.gmra.mrb[224].mxu0 %v21588_v26  ;;  %v21747_v26 = vld [vmem:[#allocation2 + $0x40] ss:$8 sps:$4 sm:$0xff]  }
 0xd47   :  { %12513 = vmatpush1.bf16.msra.mxu0 %v21733_v21  ;;  %15413 = vmatprep.mubr.msk.bf16.mxu0 %vm823_vm0, %v21727_v10 }
 0xd48   :  { %12514 = vmatprep.subr.bf16.mxu0 %v21738_v16 }
 0xd4b   :  { %12515 = vmatpush1.bf16.msra.mxu0 %v21741_v41 }
 0xd4c   :  { %12516 = vmatprep.subr.bf16.mxu0 %v21744_v47 }
 0xd4f   :  { %12517 = vmatpush1.bf16.msra.mxu0 %v21747_v26 }
 0xd50   :  { %12518 = vmatprep.subr.bf16.mxu0 %v21750_v36 }
 0xd53   :  { %12519 = vmatpush1.bf16.msra.mxu0 %v21753_v22 }
 0xd54   :  { %12520 = vmatprep.subr.bf16.mxu0 %v21756_v62 }
 0xd57   :  { %12521 = vmatpush1.bf16.msra.mxu0 %v21759_v45 }
 0xd58   :  { %12522 = vmatprep.subr.bf16.mxu0 %v21762_v13 }
 0xd5b   :  { %12523 = vmatpush1.bf16.msra.mxu0 %v21765_v61 }
 0xd5c   :  { %12524 = vmatprep.subr.bf16.mxu0 %v21768_v59 }
 0xd5e   :  { %v15732_v52 = vpop.f32.mrb[160].mxu1 }
 0xd5f   :  { %12525 = vmatpush1.bf16.msra.mxu0 %v21771_v23  ;;  %v15733_v33 = vpop.f32.mrb[161].mxu1 }
 0xd60   :  { %v15734_v43 = vadd.f32 %v15733_v33, %v15732_v52  ;;  %v15735_v24 = vpop.f32.mrb[162].mxu1  ;;  %12526 = vmatprep.subr.bf16.mxu0 %v21774_v49  ;;  %v17813_v52 = vld [vmem:[#allocation8 + $0xa84] ss:$12 sps:$4 sm:$0xff]   ;;  %v22584_v49 = vld [vmem:[#allocation33_spill] sm:$0xff] }
 0xd61   :  { %v15736_v11 = vpop.f32.mrb[163].mxu1 }
 0xd62   :  { %v21778_v35 = vadd.f32 %v15734_v43, %v22577_v3  ;;  %v15737_v32 = vadd.f32 %v15736_v11, %v15735_v24  ;;  %v21791_v43 = vld [vmem:[#allocation5 + $0xf4] ss:$8 sps:$4 sm:$0xff]  }
 0xd63   :  { %12527 = vmatpush1.bf16.msra.mxu0 %v21780_v20  ;;  %22585 = vst [vmem:[#allocation49_spill] sm:$0xff] %v21791_v43  ;;  %v17811_v24 = vld [vmem:[#allocation8 + $0xa80] ss:$12 sps:$4 sm:$0xff]  }
 0xd64   :  { %22578 = vst [vmem:[#allocation38_spill] sm:$0xff] %v21778_v35  ;;  %v21784_v17 = vadd.f32 %v15737_v32, %v22580_v46  ;;  %15412 = vmatprep.subr.msk.bf16.mxu0 %vm857_vm1, %v22582_v31  ;;  %v17819_v35 = vld [vmem:[#allocation8 + $0xa9c] ss:$12 sps:$4 sm:$0xff]  }
 0xd65   :  { %v22586_v32 = vld [vmem:[#allocation46_spill] sm:$0xff]  ;;  %v22588_v31 = vld [vmem:[#allocation29_spill] sm:$0xff] }
 0xd66   :  { %22581 = vst [vmem:[#allocation50_spill] sm:$0xff] %v21784_v17  ;;  %v15738_v33 = vpop.f32.mrb[164].mxu1 }
 0xd67   :  { %12529 = vmatpush1.bf16.msra.mxu0 %v22584_v49  ;;  %v15739_v60 = vpop.f32.mrb[165].mxu1  ;;  %v17817_v49 = vld [vmem:[#allocation8 + $0xa98] ss:$12 sps:$4 sm:$0xff]  }
 0xd68   :  { %v15740_v11 = vadd.f32 %v15739_v60, %v15738_v33  ;;  %v15741_v3 = vpop.f32.mrb[166].mxu1  ;;  %12886 = vmatprep.subr.bf16.mxu0 %v17813_v52  ;;  %v17825_v60 = vld [vmem:[#allocation8 + $0xab4] ss:$12 sps:$4 sm:$0xff]   ;;  %v21802_v33 = vld [vmem:[#allocation5 + $0xf0] ss:$8 sps:$4 sm:$0xff]  }
 0xd69   :  { %v15742_v20 = vpop.f32.mrb[167].mxu1  ;;  %22590 = vst [vmem:[#allocation55_spill] sm:$0xff] %v21802_v33  ;;  %v17823_v52 = vld [vmem:[#allocation8 + $0xab0] ss:$12 sps:$4 sm:$0xff]  }
 0xd6a   :  { %v21794_v46 = vadd.f32 %v15740_v11, %v22586_v32  ;;  %12541 = vmatmul.mubr.bf16.vlgmr.msra.gmra.mrb[228].mxu0 %v21788_v39  ;;  %v15743_v17 = vadd.f32 %v15742_v20, %v15741_v3  ;;  %v17831_v11 = vld [vmem:[#allocation8 + $0xacc] ss:$12 sps:$4 sm:$0xff]   ;;  %v17829_v20 = vld [vmem:[#allocation8 + $0xac8] ss:$12 sps:$4 sm:$0xff]  }
 0xd6b   :  { %15414 = vmatprep.mubr.msk.bf16.mxu0 %vm823_vm0, %v21791_v43  ;;  %12887 = vmatpush1.bf16.msra.mxu0 %v17811_v24  ;;  %v17774_v43 = vld [vmem:[#allocation8 + $0x920] ss:$12 sps:$4 sm:$0xff]  }
 0xd6c   :  { %22587 = vst [vmem:[#allocation39_spill] sm:$0xff] %v21794_v46  ;;  %v21800_v23 = vadd.f32 %v15743_v17, %v22588_v31  ;;  %12888 = vmatprep.subr.bf16.mxu0 %v17819_v35  ;;  %v17772_v35 = vld [vmem:[#allocation8 + $0x908] ss:$12 sps:$4 sm:$0xff]  }
 0xd6e   :  { %22589 = vst [vmem:[#allocation41_spill] sm:$0xff] %v21800_v23  ;;  %v17773_v23 = vld [vmem:[#allocation8 + $0x9e0] ss:$12 sps:$4 sm:$0xff]  }
 0xd6f   :  { %12889 = vmatpush1.bf16.msra.mxu0 %v17817_v49  ;;  %v17837_v49 = vld [vmem:[#allocation8 + $0xae4] ss:$12 sps:$4 sm:$0xff]  }
 0xd70   :  { %12890 = vmatprep.subr.bf16.mxu0 %v17825_v60 }
 0xd72   :  { %12551 = vmatmul.mubr.bf16.gmra.mrb[232].mxu0 %v21802_v33  ;;  %v17835_v33 = vld [vmem:[#allocation8 + $0xae0] ss:$12 sps:$4 sm:$0xff]  }
 0xd73   :  { %12891 = vmatpush1.bf16.msra.mxu0 %v17823_v52 }
 0xd74   :  { %12892 = vmatprep.subr.bf16.mxu0 %v17831_v11  ;;  %v17775_v11 = vld [vmem:[#allocation8 + $0x9f8] ss:$12 sps:$4 sm:$0xff]  }
 0xd77   :  { %12893 = vmatpush1.bf16.msra.mxu0 %v17829_v20 }
 0xd78   :  { %12894 = vmatprep.subr.bf16.mxu0 %v17837_v49  ;;  %v17850_v49 = vld [vmem:[#allocation8 + $0xb2c] ss:$12 sps:$4 sm:$0xff]  }
 0xd7b   :  { %12895 = vmatpush1.bf16.msra.mxu0 %v17835_v33  ;;  %v17778_v33 = vld [vmem:[#allocation8 + $0x950] ss:$12 sps:$4 sm:$0xff]  }
 0xd8a   :  { %v11438_v3 = vpop.f32.mrb[168].mxu1 }
 0xd8b   :  { %v11440_v24 = vpop.f32.mrb[169].mxu1 }
 0xd8c   :  { %v11442_v32 = vpop.f32.mrb[170].mxu1 }
 0xd8d   :  { %v11457_v46 = vpack.c.bf16 %v11442_v32, %v11438_v3  ;;  %v11444_v31 = vpop.f32.mrb[171].mxu1  ;;  %v17840_v32 = vld [vmem:[#allocation8 + $0xafc] ss:$12 sps:$4 sm:$0xff]  }
 0xd8e   :  { %v11458_v17 = vpack.c.bf16 %v11444_v31, %v11440_v24  ;;  %v17776_v31 = vld [vmem:[#allocation8 + $0x938] ss:$12 sps:$4 sm:$0xff]   ;;  %12896 = vmatprep.subr.bf16.mxu0 %v17840_v32 }
 0xd8f   :  { %12897 = vmatpush1.bf16.msra.mxu0 %v17838_v54  ;;  %v17853_v54 = vld [vmem:[#allocation8 + $0xb40] ss:$12 sps:$4 sm:$0xff]   ;;  %v17784_v32 = vld [vmem:[#allocation8 + $0x998] ss:$12 sps:$4 sm:$0xff]  }
 0xd90   :  { %15322 = vmatprep.mubr.msk.bf16.mxu1 %vm1171_vm2, %v11458_v17  ;;  %v17843_v17 = vld [vmem:[#allocation8 + $0xb10] ss:$12 sps:$4 sm:$0xff]  }
 0xd91   :  { %11645 = vmatmul.mubr.bf16.vlgmr.msra.gmra.mrb[88].mxu1 %v11457_v46  ;;  %v17777_v46 = vld [vmem:[#allocation8 + $0xa10] ss:$12 sps:$4 sm:$0xff]  }
 0xd92   :  { %15745 = vmatpush3.bf16.msra.mxu1 %v17772_v35  ;;  %v11448_v60 = vpop.f32.mrb[172].mxu1  ;;  %v17779_v35 = vld [vmem:[#allocation8 + $0xa28] ss:$12 sps:$4 sm:$0xff]  }
 0xd93   :  { %v11450_v52 = vpop.f32.mrb[173].mxu1  ;;  %15746 = vmatprep.subr.bf16.mxu1 %v17773_v23  ;;  %v17845_v23 = vld [vmem:[#allocation8 + $0xb14] ss:$12 sps:$4 sm:$0xff]  }
 0xd94   :  { %v11452_v20 = vpop.f32.mrb[174].mxu1  ;;  %12898 = vmatprep.subr.bf16.mxu0 %v17845_v23  ;;  %v17789_v23 = vld [vmem:[#allocation16 + $0x484] ss:$8 sps:$4 sm:$0xff]  }
 0xd95   :  { %v11459_v39 = vpack.c.bf16 %v11452_v20, %v11448_v60  ;;  %v11454_v3 = vpop.f32.mrb[175].mxu1  ;;  %12899 = vmatpush1.bf16.msra.mxu0 %v17843_v17  ;;  %v17780_v60 = vld [vmem:[#allocation8 + $0x968] ss:$12 sps:$4 sm:$0xff]   ;;  %v17783_v20 = vld [vmem:[#allocation8 + $0xa58] ss:$12 sps:$4 sm:$0xff]  }
 0xd96   :  { %v11460_v24 = vpack.c.bf16 %v11454_v3, %v11450_v52  ;;  %15747 = vmatpush3.bf16.msra.mxu1 %v17774_v43  ;;  %v17848_v43 = vld [vmem:[#allocation8 + $0xb28] ss:$12 sps:$4 sm:$0xff]   ;;  %v17781_v52 = vld [vmem:[#allocation8 + $0xa40] ss:$12 sps:$4 sm:$0xff]   ;;  %12900 = vmatprep.subr.bf16.mxu0 %v17850_v49  ;;  %v17786_v17 = vld [vmem:[#allocation8 + $0x9b0] ss:$12 sps:$4 sm:$0xff]  }
 0xd97   :  { %15748 = vmatprep.subr.bf16.mxu1 %v17775_v11  ;;  %v17782_v11 = vld [vmem:[#allocation8 + $0x980] ss:$12 sps:$4 sm:$0xff]   ;;  %v17860_v3 = vld [vmem:[#allocation8 + $0xb5c] ss:$12 sps:$4 sm:$0xff]  }
 0xd98   :  { %15323 = vmatprep.mubr.msk.bf16.mxu1 %vm1171_vm2, %v11460_v24  ;;  %v17785_v24 = vld [vmem:[#allocation8 + $0xa70] ss:$12 sps:$4 sm:$0xff]  }
 0xd99   :  { %11655 = vmatmul.mubr.bf16.gmra.mrb[92].mxu1 %v11459_v39  ;;  %12901 = vmatpush1.bf16.msra.mxu0 %v17848_v43  ;;  %v17855_v39 = vld [vmem:[#allocation8 + $0xb44] ss:$12 sps:$4 sm:$0xff]  }
 0xd9a   :  { %15749 = vmatpush3.bf16.msra.mxu1 %v17776_v31  ;;  %12173 = vmatprep.mubr.bf16.mxu1 %v21658_v63  ;;  %v17858_v63 = vld [vmem:[#allocation8 + $0xb58] ss:$12 sps:$4 sm:$0xff]   ;;  %v17863_v31 = vld [vmem:[#allocation8 + $0xb70] ss:$12 sps:$4 sm:$0xff]  }
 0xd9b   :  { %15750 = vmatprep.subr.bf16.mxu1 %v17777_v46  ;;  %12902 = vmatprep.subr.bf16.mxu0 %v17855_v39  ;;  %v17865_v46 = vld [vmem:[#allocation8 + $0xb74] ss:$12 sps:$4 sm:$0xff]   ;;  %v17787_v43 = vld [vmem:[#allocation16 + $0x480] ss:$8 sps:$4 sm:$0xff]   ;;  %v17792_v49 = vld [vmem:[#allocation16 + $0x494] ss:$8 sps:$4 sm:$0xff]  }
 0xd9c   :  { %v17795_v39 = vld [vmem:[#allocation16 + $0x4a4] ss:$8 sps:$4 sm:$0xff]  }
 0xd9d   :  { %12903 = vmatpush1.bf16.msra.mxu0 %v17853_v54  ;;  %v17790_v54 = vld [vmem:[#allocation16 + $0x490] ss:$8 sps:$4 sm:$0xff]  }
 0xd9e   :  { %15751 = vmatpush3.bf16.msra.mxu1 %v17778_v33  ;;  %12904 = vmatprep.subr.bf16.mxu0 %v17860_v3  ;;  %v17868_v33 = vld [vmem:[#allocation8 + $0xb88] ss:$12 sps:$4 sm:$0xff]   ;;  %v17798_v3 = vld [vmem:[#allocation16 + $0x4b4] ss:$8 sps:$4 sm:$0xff]  }
 0xd9f   :  { %15752 = vmatprep.subr.bf16.mxu1 %v17779_v35  ;;  %v17870_v35 = vld [vmem:[#allocation8 + $0xb8c] ss:$12 sps:$4 sm:$0xff]  }
 0xda1   :  { %12905 = vmatpush1.bf16.msra.mxu0 %v17858_v63  ;;  %v17880_v63 = vld [vmem:[#allocation8 + $0xbbc] ss:$12 sps:$4 sm:$0xff]  }
 0xda2   :  { %15753 = vmatpush3.bf16.msra.mxu1 %v17780_v60  ;;  %12906 = vmatprep.subr.bf16.mxu0 %v17865_v46  ;;  %v17873_v60 = vld [vmem:[#allocation8 + $0xba0] ss:$12 sps:$4 sm:$0xff]  }
 0xda3   :  { %15754 = vmatprep.subr.bf16.mxu1 %v17781_v52  ;;  %v17875_v52 = vld [vmem:[#allocation8 + $0xba4] ss:$12 sps:$4 sm:$0xff]   ;;  %v17886_v46 = vld [vmem:[#allocation8 + $0xbec] ss:$12 sps:$4 sm:$0xff]  }
 0xda5   :  { %12907 = vmatpush1.bf16.msra.mxu0 %v17863_v31  ;;  %v17799_v31 = vld [vmem:[#allocation16 + $0x4c0] ss:$8 sps:$4 sm:$0xff]  }
 0xda6   :  { %15755 = vmatpush3.bf16.msra.mxu1 %v17782_v11  ;;  %12908 = vmatprep.subr.bf16.mxu0 %v17870_v35  ;;  %v17793_v11 = vld [vmem:[#allocation16 + $0x4a0] ss:$8 sps:$4 sm:$0xff]  }
 0xda7   :  { %15756 = vmatprep.subr.bf16.mxu1 %v17783_v20  ;;  %v17878_v20 = vld [vmem:[#allocation8 + $0xbb8] ss:$12 sps:$4 sm:$0xff]   ;;  %v17805_v35 = vld [vmem:[#allocation16 + $0x4e0] ss:$8 sps:$4 sm:$0xff]  }
 0xda9   :  { %12909 = vmatpush1.bf16.msra.mxu0 %v17868_v33  ;;  %v17802_v33 = vld [vmem:[#allocation16 + $0x4d0] ss:$8 sps:$4 sm:$0xff]  }
 0xdaa   :  { %15757 = vmatpush3.bf16.msra.mxu1 %v17784_v32  ;;  %12910 = vmatprep.subr.bf16.mxu0 %v17875_v52  ;;  %v17883_v32 = vld [vmem:[#allocation8 + $0xbd4] ss:$12 sps:$4 sm:$0xff]   ;;  %v17814_v52 = vld [vmem:[#allocation16 + $0x500] ss:$8 sps:$4 sm:$0xff]  }
 0xdab   :  { %15758 = vmatprep.subr.bf16.mxu1 %v17785_v24  ;;  %v17801_v24 = vld [vmem:[#allocation16 + $0x4c4] ss:$8 sps:$4 sm:$0xff]  }
 0xdad   :  { %12911 = vmatpush1.bf16.msra.mxu0 %v17873_v60  ;;  %v17816_v60 = vld [vmem:[#allocation16 + $0x504] ss:$8 sps:$4 sm:$0xff]  }
 0xdae   :  { %15759 = vmatpush3.bf16.msra.mxu1 %v17786_v17  ;;  %12912 = vmatprep.subr.bf16.mxu0 %v17880_v63  ;;  %v17804_v17 = vld [vmem:[#allocation16 + $0x4d4] ss:$8 sps:$4 sm:$0xff]   ;;  %v17832_v63 = vld [vmem:[#allocation16 + $0x530] ss:$8 sps:$4 sm:$0xff]  }
 0xdaf   :  { %12410 = vmatprep.subr.bf16.mxu1 %v17789_v23  ;;  %v17884_v23 = vld [vmem:[#allocation8 + $0xbe8] ss:$12 sps:$4 sm:$0xff]  }
 0xdb1   :  { %12174 = vmatmul.mubr.bf16.vlgmr.msra.gmra.mrb[176].mxu1 %v21651_v1  ;;  %12913 = vmatpush1.bf16.msra.mxu0 %v17878_v20  ;;  %v17881_v1 = vld [vmem:[#allocation8 + $0xbd0] ss:$12 sps:$4 sm:$0xff]  }
 0xdb2   :  { %12181 = vmatprep.mubr.bf16.mxu1 %v21686_v19  ;;  %12411 = vmatpush1.bf16.msra.mxu1 %v17787_v43  ;;  %v17796_v19 = vld [vmem:[#allocation16 + $0x4b0] ss:$8 sps:$4 sm:$0xff]   ;;  %v17810_v43 = vld [vmem:[#allocation16 + $0x4f4] ss:$8 sps:$4 sm:$0xff]  }
 0xdb3   :  { %12412 = vmatprep.subr.bf16.mxu1 %v17792_v49  ;;  %12914 = vmatprep.subr.bf16.mxu0 %v17883_v32  ;;  %v17808_v49 = vld [vmem:[#allocation16 + $0x4f0] ss:$8 sps:$4 sm:$0xff]   ;;  %v17834_v20 = vld [vmem:[#allocation16 + $0x534] ss:$8 sps:$4 sm:$0xff]  }
 0xdb5   :  { %12915 = vmatpush1.bf16.msra.mxu0 %v17881_v1 }
 0xdb6   :  { %12413 = vmatpush1.bf16.msra.mxu1 %v17790_v54  ;;  %12916 = vmatprep.subr.bf16.mxu0 %v17886_v46  ;;  %v17822_v54 = vld [vmem:[#allocation16 + $0x514] ss:$8 sps:$4 sm:$0xff]  }
 0xdb7   :  { %12414 = vmatprep.subr.bf16.mxu1 %v17795_v39  ;;  %v17820_v39 = vld [vmem:[#allocation16 + $0x510] ss:$8 sps:$4 sm:$0xff]  }
 0xdb9   :  { %12182 = vmatmul.mubr.bf16.gmra.mrb[180].mxu1 %v21679_v18  ;;  %12917 = vmatpush1.bf16.msra.mxu0 %v17884_v23  ;;  %v17807_v18 = vld [vmem:[#allocation16 + $0x4e4] ss:$8 sps:$4 sm:$0xff]  }
 0xdba   :  { %12415 = vmatpush1.bf16.msra.mxu1 %v17793_v11  ;;  %13306 = vmatprep.subr.bf16.mxu0 %v21712_v7  ;;  %v17828_v11 = vld [vmem:[#allocation16 + $0x524] ss:$8 sps:$4 sm:$0xff]   ;;  %v17826_v7 = vld [vmem:[#allocation16 + $0x520] ss:$8 sps:$4 sm:$0xff]  }
 0xdbb   :  { %12416 = vmatprep.subr.bf16.mxu1 %v17798_v3  ;;  %v17841_v3 = vld [vmem:[#allocation8 + $0xb48] ss:$12 sps:$4 sm:$0xff]   ;;  %v17846_v23 = vld [vmem:[#allocation8 + $0xb60] ss:$12 sps:$4 sm:$0xff]  }
 0xdbe   :  { %12417 = vmatpush1.bf16.msra.mxu1 %v17796_v19 }
 0xdbf   :  { %12418 = vmatprep.subr.bf16.mxu1 %v17801_v24 }
 0xdc2   :  { %12419 = vmatpush1.bf16.msra.mxu1 %v17799_v31 }
 0xdc3   :  { %12420 = vmatprep.subr.bf16.mxu1 %v17804_v17  ;;  %v17842_v17 = vld [vmem:[#allocation8 + $0xa88] ss:$12 sps:$4 sm:$0xff]  }
 0xdc6   :  { %12421 = vmatpush1.bf16.msra.mxu1 %v17802_v33  ;;  %v17847_v33 = vld [vmem:[#allocation8 + $0xaa0] ss:$12 sps:$4 sm:$0xff]  }
 0xdc7   :  { %12422 = vmatprep.subr.bf16.mxu1 %v17807_v18 }
 0xdca   :  { %12423 = vmatpush1.bf16.msra.mxu1 %v17805_v35  ;;  %v17851_v35 = vld [vmem:[#allocation8 + $0xb78] ss:$12 sps:$4 sm:$0xff]  }
 0xdcb   :  { %12424 = vmatprep.subr.bf16.mxu1 %v17810_v43 }
 0xdce   :  { %12425 = vmatpush1.bf16.msra.mxu1 %v17808_v49 }
 0xdcf   :  { %12426 = vmatprep.subr.bf16.mxu1 %v17816_v60 }
 0xdd2   :  { %12427 = vmatpush1.bf16.msra.mxu1 %v17814_v52 }
 0xdd3   :  { %12428 = vmatprep.subr.bf16.mxu1 %v17822_v54  ;;  %v17852_v54 = vld [vmem:[#allocation8 + $0xab8] ss:$12 sps:$4 sm:$0xff]  }
 0xdd6   :  { %12429 = vmatpush1.bf16.msra.mxu1 %v17820_v39 }
 0xdd7   :  { %12430 = vmatprep.subr.bf16.mxu1 %v17828_v11  ;;  %v17856_v11 = vld [vmem:[#allocation8 + $0xb90] ss:$12 sps:$4 sm:$0xff]  }
 0xdda   :  { %12431 = vmatpush1.bf16.msra.mxu1 %v17826_v7  ;;  %v17857_v7 = vld [vmem:[#allocation8 + $0xad0] ss:$12 sps:$4 sm:$0xff]  }
 0xddb   :  { %12432 = vmatprep.subr.bf16.mxu1 %v17834_v20  ;;  %v17861_v20 = vld [vmem:[#allocation8 + $0xba8] ss:$12 sps:$4 sm:$0xff]  }
 0xdde   :  { %12433 = vmatpush1.bf16.msra.mxu1 %v17832_v63  ;;  %v17862_v63 = vld [vmem:[#allocation8 + $0xae8] ss:$12 sps:$4 sm:$0xff]  }
 0xddf   :  { %15772 = vmatprep.subr.bf16.mxu1 %v17841_v3  ;;  %v17866_v3 = vld [vmem:[#allocation8 + $0xbc0] ss:$12 sps:$4 sm:$0xff]  }
 0xe11   :  { %v12236_v32 = vpop.f32.mrb[220].mxu0 }
 0xe12   :  { %v12238_v1 = vpop.f32.mrb[221].mxu0 }
 0xe13   :  { %v12240_v19 = vpop.f32.mrb[222].mxu0 }
 0xe14   :  { %v12255_v24 = vpack.c.bf16 %v12240_v19, %v12236_v32  ;;  %v12242_v31 = vpop.f32.mrb[223].mxu0  ;;  %v17867_v32 = vld [vmem:[#allocation8 + $0xb00] ss:$12 sps:$4 sm:$0xff]   ;;  %v17872_v19 = vld [vmem:[#allocation8 + $0xb18] ss:$12 sps:$4 sm:$0xff]  }
 0xe15   :  { %v12256_v46 = vpack.c.bf16 %v12242_v31, %v12238_v1  ;;  %v17871_v1 = vld [vmem:[#allocation8 + $0xbd8] ss:$12 sps:$4 sm:$0xff]   ;;  %v17877_v31 = vld [vmem:[#allocation8 + $0xb30] ss:$12 sps:$4 sm:$0xff]  }
 0xe17   :  { %15406 = vmatprep.mubr.msk.bf16.mxu1 %vm1171_vm2, %v12256_v46 }
 0xe18   :  { %12443 = vmatmul.mubr.bf16.vlgmr.msra.gmra.mrb[88].mxu1 %v12255_v24  ;;  %v17876_v24 = vld [vmem:[#allocation8 + $0xbf0] ss:$12 sps:$4 sm:$0xff]  }
 0xe19   :  { %15773 = vmatpush3.bf16.msra.mxu1 %v17842_v17  ;;  %v12246_v18 = vpop.f32.mrb[224].mxu0 }
 0xe1a   :  { %15774 = vmatprep.subr.bf16.mxu1 %v17846_v23  ;;  %v12248_v43 = vpop.f32.mrb[225].mxu0 }
 0xe1b   :  { %v12250_v49 = vpop.f32.mrb[226].mxu0 }
 0xe1c   :  { %v12257_v60 = vpack.c.bf16 %v12250_v49, %v12246_v18  ;;  %v12252_v52 = vpop.f32.mrb[227].mxu0 }
 0xe1d   :  { %15775 = vmatpush3.bf16.msra.mxu1 %v17847_v33  ;;  %v12258_v39 = vpack.c.bf16 %v12252_v52, %v12248_v43 }
 0xe1e   :  { %15776 = vmatprep.subr.bf16.mxu1 %v17851_v35  ;;  %v17905_v35 = vld [vmem:[#allocation16 + $0x540] ss:$8 sps:$4 sm:$0xff]  }
 0xe1f   :  { %15407 = vmatprep.mubr.msk.bf16.mxu1 %vm1171_vm2, %v12258_v39  ;;  %v22606_v39 = vld [vmem:[#allocation39_spill] sm:$0xff] }
 0xe20   :  { %12453 = vmatmul.mubr.bf16.gmra.mrb[92].mxu1 %v12257_v60  ;;  %v22607_v60 = vld [vmem:[#allocation41_spill] sm:$0xff] }
 0xe21   :  { %15777 = vmatpush3.bf16.msra.mxu1 %v17852_v54 }
 0xe22   :  { %15778 = vmatprep.subr.bf16.mxu1 %v17856_v11 }
 0xe25   :  { %15779 = vmatpush3.bf16.msra.mxu1 %v17857_v7 }
 0xe26   :  { %15780 = vmatprep.subr.bf16.mxu1 %v17861_v20 }
 0xe29   :  { %15781 = vmatpush3.bf16.msra.mxu1 %v17862_v63 }
 0xe2a   :  { %15782 = vmatprep.subr.bf16.mxu1 %v17866_v3 }
 0xe2d   :  { %15783 = vmatpush3.bf16.msra.mxu1 %v17867_v32 }
 0xe2e   :  { %15784 = vmatprep.subr.bf16.mxu1 %v17871_v1 }
 0xe31   :  { %15785 = vmatpush3.bf16.msra.mxu1 %v17872_v19  ;;  %v22601_v19 = vld [vmem:[#allocation47_spill] sm:$0xff] }
 0xe32   :  { %15786 = vmatprep.subr.bf16.mxu1 %v17876_v24  ;;  %v22602_v24 = vld [vmem:[#allocation49_spill] sm:$0xff] }
 0xe35   :  { %15787 = vmatpush3.bf16.msra.mxu1 %v17877_v31  ;;  %v17896_v31 = vld [vmem:[#allocation8 + $0xc18] ss:$12 sps:$4 sm:$0xff]  }
 0xe36   :  { %13000 = vmatprep.subr.bf16.mxu1 %v20764_v6 }
 0xe3d   :  { %v21815_v46 = vpop.f32.mrb[228].mxu0 }
 0xe3e   :  { %v13269_v17 = vmax.f32 %v21639_v57, %v21815_v46  ;;  %v21819_v23 = vpop.f32.mrb[229].mxu0 }
 0xe3f   :  { %v13270_v33 = vmax.f32 %v21644_v15, %v21819_v23  ;;  %v21823_v18 = vpop.f32.mrb[230].mxu0 }
 0xe40   :  { %v12561_v43 = vpack.c.bf16 %v21823_v18, %v21815_v46  ;;  %v21829_v49 = vpop.f32.mrb[231].mxu0 }
 0xe41   :  { %v12562_v52 = vpack.c.bf16 %v21829_v49, %v21819_v23  ;;  %v22609_v46 = vmax.f32 %v21656_v44, %v21829_v49  ;;  %v17978_v23 = vld [vmem:[#allocation8 + $0xc08] ss:$12 sps:$4 sm:$0xff]  }
 0xe43   :  { %12918 = vmatprep.mubr.bf16.mxu0 %v12562_v52  ;;  %12971 = vmatprep.mubr.bf16.mxu1 %v12562_v52  ;;  %v21915_v52 = vld [vmem:[#allocation5 + $0x110] ss:$8 sps:$4 sm:$0xff]  }
 0xe44   :  { %12919 = vmatmul.mubr.bf16.vlgmr.msra.gmra.mrb[148].mxu0 %v12561_v43  ;;  %12972 = vmatmul.mubr.bf16.vlgmr.msra.gmra.mrb[184].mxu1 %v12561_v43  ;;  %v17901_v43 = vld [vmem:[#allocation8 + $0xc34] ss:$12 sps:$4 sm:$0xff]  }
 0xe45   :  { %13001 = vmatpush1.bf16.msra.mxu1 %v20762_v12  ;;  %13307 = vmatpush1.bf16.msra.mxu0 %v21716_v4  ;;  %v21837_v54 = vpop.f32.mrb[232].mxu0 }
 0xe46   :  { %13002 = vmatprep.subr.bf16.mxu1 %v20774_v55  ;;  %v21842_v11 = vpop.f32.mrb[233].mxu0  ;;  %13308 = vmatprep.subr.bf16.mxu0 %v21721_v38  ;;  %v21863_v38 = vld [vmem:[#allocation5 + $0x104] ss:$8 sps:$4 sm:$0xff]  }
 0xe47   :  { %v21847_v20 = vpop.f32.mrb[234].mxu0 }
 0xe48   :  { %v12563_v4 = vpack.c.bf16 %v21847_v20, %v21837_v54  ;;  %v21853_v3 = vpop.f32.mrb[235].mxu0 }
 0xe49   :  { %v12564_v1 = vpack.c.bf16 %v21853_v3, %v21842_v11  ;;  %13003 = vmatpush1.bf16.msra.mxu1 %v20772_v48  ;;  %13309 = vmatpush1.bf16.msra.mxu0 %v21724_v14  ;;  %v22591_v14 = vld [vmem:[#allocation52_spill] sm:$0xff] }
 0xe4a   :  { %13004 = vmatprep.subr.bf16.mxu1 %v20784_v42  ;;  %13310 = vmatprep.subr.bf16.mxu0 %v21729_v37  ;;  %v22593_v37 = vld [vmem:[#allocation44_spill] sm:$0xff] }
 0xe4b   :  { %12979 = vmatprep.mubr.bf16.mxu1 %v12564_v1  ;;  %12928 = vmatprep.mubr.bf16.mxu0 %v12564_v1  ;;  %v17904_v1 = vld [vmem:[#allocation8 + $0xc4c] ss:$12 sps:$4 sm:$0xff]  }
 0xe4c   :  { %12980 = vmatmul.mubr.bf16.gmra.mrb[188].mxu1 %v12563_v4  ;;  %12929 = vmatmul.mubr.bf16.gmra.mrb[152].mxu0 %v12563_v4  ;;  %v17899_v4 = vld [vmem:[#allocation8 + $0xc30] ss:$12 sps:$4 sm:$0xff]  }
 0xe4d   :  { %13005 = vmatpush1.bf16.msra.mxu1 %v20782_v30  ;;  %13311 = vmatpush1.bf16.msra.mxu0 %v21733_v21  ;;  %v22594_v21 = vld [vmem:[#allocation59_spill] sm:$0xff] }
 0xe4e   :  { %13006 = vmatprep.subr.bf16.mxu1 %v22461_v29  ;;  %13312 = vmatprep.subr.bf16.mxu0 %v21738_v16  ;;  %v22595_v16 = vld [vmem:[#allocation42_spill] sm:$0xff] }
 0xe4f   :  { %15464 = vmatprep.mubr.msk.bf16.mxu1 %vm823_vm0, %v21727_v10  ;;  %15497 = vmatprep.mubr.msk.bf16.mxu0 %vm823_vm0, %v21863_v38  ;;  %v22592_v10 = vld [vmem:[#allocation53_spill] sm:$0xff] }
 0xe51   :  { %13007 = vmatpush1.bf16.msra.mxu1 %v22462_v25  ;;  %13313 = vmatpush1.bf16.msra.mxu0 %v21741_v41  ;;  %v22596_v41 = vld [vmem:[#allocation35_spill] sm:$0xff] }
 0xe52   :  { %13008 = vmatprep.subr.bf16.mxu1 %v22463_v53  ;;  %13314 = vmatprep.subr.bf16.mxu0 %v21744_v47  ;;  %v22597_v47 = vld [vmem:[#allocation43_spill] sm:$0xff] }
 0xe55   :  { %13009 = vmatpush1.bf16.msra.mxu1 %v22464_v0  ;;  %13315 = vmatpush1.bf16.msra.mxu0 %v21747_v26  ;;  %v22598_v26 = vld [vmem:[#allocation27_spill] sm:$0xff] }
 0xe56   :  { %13010 = vmatprep.subr.bf16.mxu1 %v22465_v50  ;;  %13316 = vmatprep.subr.bf16.mxu0 %v21750_v36  ;;  %v17895_v36 = vld [vmem:[#allocation8 + $0xc04] ss:$12 sps:$4 sm:$0xff]  }
 0xe59   :  { %13011 = vmatpush1.bf16.msra.mxu1 %v22466_v28  ;;  %13317 = vmatpush1.bf16.msra.mxu0 %v21753_v22  ;;  %v21903_v22 = vld [vmem:[#allocation5 + $0x100] ss:$8 sps:$4 sm:$0xff]  }
 0xe5a   :  { %13012 = vmatprep.subr.bf16.mxu1 %v22467_v58  ;;  %13318 = vmatprep.subr.bf16.mxu0 %v21756_v62  ;;  %v22599_v62 = vld [vmem:[#allocation45_spill] sm:$0xff] }
 0xe5d   :  { %13013 = vmatpush1.bf16.msra.mxu1 %v22468_v8  ;;  %13319 = vmatpush1.bf16.msra.mxu0 %v21759_v45  ;;  %v22600_v45 = vld [vmem:[#allocation33_spill] sm:$0xff] }
 0xe5e   :  { %13014 = vmatprep.subr.bf16.mxu1 %v22469_v5  ;;  %13320 = vmatprep.subr.bf16.mxu0 %v21762_v13  ;;  %v21907_v13 = vld [vmem:[#allocation5 + $0x114] ss:$8 sps:$4 sm:$0xff]  }
 0xe61   :  { %13015 = vmatpush1.bf16.msra.mxu1 %v22470_v56  ;;  %13321 = vmatpush1.bf16.msra.mxu0 %v21765_v61  ;;  %v17893_v61 = vld [vmem:[#allocation8 + $0xc00] ss:$12 sps:$4 sm:$0xff]  }
 0xe62   :  { %13016 = vmatprep.subr.bf16.mxu1 %v22471_v51  ;;  %13322 = vmatprep.subr.bf16.mxu0 %v21768_v59  ;;  %v17898_v59 = vld [vmem:[#allocation8 + $0xc1c] ss:$12 sps:$4 sm:$0xff]  }
 0xe65   :  { %13017 = vmatpush1.bf16.msra.mxu1 %v22591_v14  ;;  %13323 = vmatpush1.bf16.msra.mxu0 %v22592_v10  ;;  %v22603_v10 = vld [vmem:[#allocation55_spill] sm:$0xff] }
 0xe66   :  { %13018 = vmatprep.subr.bf16.mxu1 %v22593_v37  ;;  %13324 = vmatprep.subr.bf16.mxu0 %v22594_v21  ;;  %v17902_v21 = vld [vmem:[#allocation8 + $0xc48] ss:$12 sps:$4 sm:$0xff]  }
 0xe69   :  { %13019 = vmatpush1.bf16.msra.mxu1 %v22595_v16  ;;  %13325 = vmatpush1.bf16.msra.mxu0 %v22596_v41 }
 0xe6a   :  { %15463 = vmatprep.subr.msk.bf16.mxu1 %vm857_vm1, %v22597_v47  ;;  %15496 = vmatprep.subr.msk.bf16.mxu0 %vm857_vm1, %v22598_v26 }
 0xe6d   :  { %13021 = vmatpush1.bf16.msra.mxu1 %v22599_v62  ;;  %13327 = vmatpush1.bf16.msra.mxu0 %v22600_v45 }
 0xe6e   :  { %13684 = vmatprep.subr.bf16.mxu0 %v17895_v36 }
 0xe70   :  { %13033 = vmatmul.mubr.bf16.vlgmr.msra.gmra.mrb[192].mxu1 %v22601_v19  ;;  %13339 = vmatmul.mubr.bf16.vlgmr.msra.gmra.mrb[236].mxu0 %v21903_v22 }
 0xe71   :  { %15498 = vmatprep.mubr.msk.bf16.mxu0 %vm823_vm0, %v21907_v13  ;;  %15465 = vmatprep.mubr.msk.bf16.mxu1 %vm823_vm0, %v22602_v24 }
 0xe72   :  { %13685 = vmatpush1.bf16.msra.mxu0 %v17893_v61 }
 0xe73   :  { %13686 = vmatprep.subr.bf16.mxu0 %v17898_v59  ;;  %v22604_v59 = vld [vmem:[#allocation38_spill] sm:$0xff] }
 0xe76   :  { %13687 = vmatpush1.bf16.msra.mxu0 %v17896_v31  ;;  %v22605_v31 = vld [vmem:[#allocation50_spill] sm:$0xff] }
 0xe77   :  { %13688 = vmatprep.subr.bf16.mxu0 %v17901_v43 }
 0xe78   :  { %13349 = vmatmul.mubr.bf16.gmra.mrb[240].mxu0 %v21915_v52  ;;  %13043 = vmatmul.mubr.bf16.gmra.mrb[196].mxu1 %v22603_v10 }
 0xe7a   :  { %13689 = vmatpush1.bf16.msra.mxu0 %v17899_v4 }
 0xe7b   :  { %13690 = vmatprep.subr.bf16.mxu0 %v17904_v1 }
 0xe7e   :  { %13691 = vmatpush1.bf16.msra.mxu0 %v17902_v21 }
 0xe84   :  { %v15760_v41 = vpop.f32.mrb[176].mxu1 }
 0xe85   :  { %v15761_v26 = vpop.f32.mrb[177].mxu1 }
 0xe86   :  { %v15762_v36 = vadd.f32 %v15761_v26, %v15760_v41  ;;  %v15763_v45 = vpop.f32.mrb[178].mxu1  ;;  %v17907_v26 = vld [vmem:[#allocation16 + $0x544] ss:$8 sps:$4 sm:$0xff]  }
 0xe87   :  { %v15764_v61 = vpop.f32.mrb[179].mxu1  ;;  %13208 = vmatprep.subr.bf16.mxu1 %v17907_v26  ;;  %v17929_v26 = vld [vmem:[#allocation16 + $0x580] ss:$8 sps:$4 sm:$0xff]  }
 0xe88   :  { %v21920_v19 = vadd.f32 %v15762_v36, %v22604_v59  ;;  %v15765_v24 = vadd.f32 %v15764_v61, %v15763_v45  ;;  %v17910_v36 = vld [vmem:[#allocation8 + $0xc64] ss:$12 sps:$4 sm:$0xff]   ;;  %v17908_v45 = vld [vmem:[#allocation8 + $0xc60] ss:$12 sps:$4 sm:$0xff]   ;;  %13209 = vmatpush1.bf16.msra.mxu1 %v17905_v35 }
 0xe89   :  { %13692 = vmatprep.subr.bf16.mxu0 %v17910_v36  ;;  %v17913_v61 = vld [vmem:[#allocation16 + $0x554] ss:$8 sps:$4 sm:$0xff]   ;;  %v17911_v59 = vld [vmem:[#allocation16 + $0x550] ss:$8 sps:$4 sm:$0xff]  }
 0xe8a   :  { %v21923_v43 = vadd.f32 %v15765_v24, %v22605_v31  ;;  %13693 = vmatpush1.bf16.msra.mxu0 %v17908_v45  ;;  %13210 = vmatprep.subr.bf16.mxu1 %v17913_v61  ;;  %v17920_v24 = vld [vmem:[#allocation8 + $0xc90] ss:$12 sps:$4 sm:$0xff]   ;;  %v17923_v35 = vld [vmem:[#allocation16 + $0x570] ss:$8 sps:$4 sm:$0xff]  }
 0xe8b   :  { %v17925_v31 = vld [vmem:[#allocation16 + $0x574] ss:$8 sps:$4 sm:$0xff]   ;;  %v17932_v45 = vld [vmem:[#allocation8 + $0xcc0] ss:$12 sps:$4 sm:$0xff]  }
 0xe8c   :  { %v15766_v32 = vpop.f32.mrb[180].mxu1  ;;  %13211 = vmatpush1.bf16.msra.mxu1 %v17911_v59  ;;  %v17934_v36 = vld [vmem:[#allocation8 + $0xcc4] ss:$12 sps:$4 sm:$0xff]   ;;  %v17940_v59 = vld [vmem:[#allocation8 + $0xcdc] ss:$12 sps:$4 sm:$0xff]  }
 0xe8d   :  { %v15767_v63 = vpop.f32.mrb[181].mxu1  ;;  %v17937_v61 = vld [vmem:[#allocation16 + $0x594] ss:$8 sps:$4 sm:$0xff]  }
 0xe8e   :  { %v15768_v7 = vadd.f32 %v15767_v63, %v15766_v32  ;;  %v15769_v10 = vpop.f32.mrb[182].mxu1  ;;  %v17916_v63 = vld [vmem:[#allocation8 + $0xc7c] ss:$12 sps:$4 sm:$0xff]   ;;  %v17914_v32 = vld [vmem:[#allocation8 + $0xc78] ss:$12 sps:$4 sm:$0xff]  }
 0xe8f   :  { %v15770_v4 = vpop.f32.mrb[183].mxu1  ;;  %13694 = vmatprep.subr.bf16.mxu0 %v17916_v63  ;;  %v17935_v63 = vld [vmem:[#allocation16 + $0x590] ss:$8 sps:$4 sm:$0xff]  }
 0xe90   :  { %v21926_v1 = vadd.f32 %v15768_v7, %v22606_v39  ;;  %v15771_v21 = vadd.f32 %v15770_v4, %v15769_v10  ;;  %13695 = vmatpush1.bf16.msra.mxu0 %v17914_v32  ;;  %v17919_v39 = vld [vmem:[#allocation16 + $0x564] ss:$8 sps:$4 sm:$0xff]   ;;  %v17917_v7 = vld [vmem:[#allocation16 + $0x560] ss:$8 sps:$4 sm:$0xff]   ;;  %v17938_v32 = vld [vmem:[#allocation8 + $0xcd8] ss:$12 sps:$4 sm:$0xff]  }
 0xe91   :  { %13212 = vmatprep.subr.bf16.mxu1 %v17919_v39  ;;  %v17928_v10 = vld [vmem:[#allocation8 + $0xcac] ss:$12 sps:$4 sm:$0xff]   ;;  %v17926_v4 = vld [vmem:[#allocation8 + $0xca8] ss:$12 sps:$4 sm:$0xff]  }
 0xe92   :  { %v21929_v41 = vadd.f32 %v15771_v21, %v22607_v60  ;;  %v17922_v60 = vld [vmem:[#allocation8 + $0xc94] ss:$12 sps:$4 sm:$0xff]   ;;  %13213 = vmatpush1.bf16.msra.mxu1 %v17917_v7 }
 0xe93   :  { %13696 = vmatprep.subr.bf16.mxu0 %v17922_v60  ;;  %13214 = vmatprep.subr.bf16.mxu1 %v17925_v31  ;;  %v17931_v21 = vld [vmem:[#allocation16 + $0x584] ss:$8 sps:$4 sm:$0xff]   ;;  %v17941_v60 = vld [vmem:[#allocation16 + $0x5a0] ss:$8 sps:$4 sm:$0xff]   ;;  %v17949_v31 = vld [vmem:[#allocation16 + $0x5b4] ss:$8 sps:$4 sm:$0xff]  }
 0xe94   :  { %13697 = vmatpush1.bf16.msra.mxu0 %v17920_v24  ;;  %v17943_v39 = vld [vmem:[#allocation16 + $0x5a4] ss:$8 sps:$4 sm:$0xff]   ;;  %v17944_v24 = vld [vmem:[#allocation8 + $0xcf0] ss:$12 sps:$4 sm:$0xff]  }
 0xe95   :  { %13698 = vmatprep.subr.bf16.mxu0 %v17928_v10  ;;  %v17946_v7 = vld [vmem:[#allocation8 + $0xcf4] ss:$12 sps:$4 sm:$0xff]  }
 0xe96   :  { %13215 = vmatpush1.bf16.msra.mxu1 %v17923_v35  ;;  %v17952_v35 = vld [vmem:[#allocation8 + $0xd0c] ss:$12 sps:$4 sm:$0xff]  }
 0xe97   :  { %13216 = vmatprep.subr.bf16.mxu1 %v17931_v21  ;;  %v17947_v10 = vld [vmem:[#allocation16 + $0x5b0] ss:$8 sps:$4 sm:$0xff]   ;;  %v17955_v21 = vld [vmem:[#allocation16 + $0x5c4] ss:$8 sps:$4 sm:$0xff]  }
 0xe98   :  { %13699 = vmatpush1.bf16.msra.mxu0 %v17926_v4  ;;  %v17950_v4 = vld [vmem:[#allocation8 + $0xd08] ss:$12 sps:$4 sm:$0xff]  }
 0xe99   :  { %13700 = vmatprep.subr.bf16.mxu0 %v17934_v36  ;;  %v17953_v36 = vld [vmem:[#allocation16 + $0x5c0] ss:$8 sps:$4 sm:$0xff]  }
 0xe9a   :  { %13217 = vmatpush1.bf16.msra.mxu1 %v17929_v26  ;;  %v17958_v26 = vld [vmem:[#allocation8 + $0xd24] ss:$12 sps:$4 sm:$0xff]  }
 0xe9b   :  { %13218 = vmatprep.subr.bf16.mxu1 %v17937_v61  ;;  %v17961_v61 = vld [vmem:[#allocation16 + $0x5d4] ss:$8 sps:$4 sm:$0xff]  }
 0xe9c   :  { %13701 = vmatpush1.bf16.msra.mxu0 %v17932_v45  ;;  %v17956_v45 = vld [vmem:[#allocation8 + $0xd20] ss:$12 sps:$4 sm:$0xff]  }
 0xe9d   :  { %13702 = vmatprep.subr.bf16.mxu0 %v17940_v59  ;;  %v17964_v59 = vld [vmem:[#allocation8 + $0xd3c] ss:$12 sps:$4 sm:$0xff]  }
 0xe9e   :  { %13219 = vmatpush1.bf16.msra.mxu1 %v17935_v63  ;;  %v17959_v63 = vld [vmem:[#allocation16 + $0x5d0] ss:$8 sps:$4 sm:$0xff]  }
 0xe9f   :  { %13220 = vmatprep.subr.bf16.mxu1 %v17943_v39  ;;  %v17967_v39 = vld [vmem:[#allocation16 + $0x5e4] ss:$8 sps:$4 sm:$0xff]  }
 0xea0   :  { %13703 = vmatpush1.bf16.msra.mxu0 %v17938_v32  ;;  %v17962_v32 = vld [vmem:[#allocation8 + $0xd38] ss:$12 sps:$4 sm:$0xff]  }
 0xea1   :  { %13704 = vmatprep.subr.bf16.mxu0 %v17946_v7  ;;  %v17970_v7 = vld [vmem:[#allocation8 + $0xd54] ss:$12 sps:$4 sm:$0xff]  }
 0xea2   :  { %13221 = vmatpush1.bf16.msra.mxu1 %v17941_v60  ;;  %v17965_v60 = vld [vmem:[#allocation16 + $0x5e0] ss:$8 sps:$4 sm:$0xff]  }
 0xea3   :  { %13222 = vmatprep.subr.bf16.mxu1 %v17949_v31  ;;  %v17973_v31 = vld [vmem:[#allocation16 + $0x5f4] ss:$8 sps:$4 sm:$0xff]  }
 0xea4   :  { %13705 = vmatpush1.bf16.msra.mxu0 %v17944_v24  ;;  %v17968_v24 = vld [vmem:[#allocation8 + $0xd50] ss:$12 sps:$4 sm:$0xff]  }
 0xea5   :  { %13706 = vmatprep.subr.bf16.mxu0 %v17952_v35  ;;  %v17971_v35 = vld [vmem:[#allocation16 + $0x5f0] ss:$8 sps:$4 sm:$0xff]  }
 0xea6   :  { %13223 = vmatpush1.bf16.msra.mxu1 %v17947_v10  ;;  %v17976_v10 = vld [vmem:[#allocation8 + $0xd6c] ss:$12 sps:$4 sm:$0xff]  }
 0xea7   :  { %13224 = vmatprep.subr.bf16.mxu1 %v17955_v21  ;;  %v17977_v21 = vld [vmem:[#allocation8 + $0xcc8] ss:$12 sps:$4 sm:$0xff]  }
 0xea8   :  { %13707 = vmatpush1.bf16.msra.mxu0 %v17950_v4  ;;  %v17974_v4 = vld [vmem:[#allocation8 + $0xd68] ss:$12 sps:$4 sm:$0xff]  }
 0xea9   :  { %13708 = vmatprep.subr.bf16.mxu0 %v17958_v26 }
 0xeaa   :  { %13225 = vmatpush1.bf16.msra.mxu1 %v17953_v36 }
 0xeab   :  { %13226 = vmatprep.subr.bf16.mxu1 %v17961_v61 }
 0xeac   :  { %13709 = vmatpush1.bf16.msra.mxu0 %v17956_v45 }
 0xead   :  { %13710 = vmatprep.subr.bf16.mxu0 %v17964_v59 }
 0xeae   :  { %13227 = vmatpush1.bf16.msra.mxu1 %v17959_v63 }
 0xeaf   :  { %13228 = vmatprep.subr.bf16.mxu1 %v17967_v39 }
 0xeb0   :  { %13711 = vmatpush1.bf16.msra.mxu0 %v17962_v32 }
 0xeb1   :  { %13712 = vmatprep.subr.bf16.mxu0 %v17970_v7 }
 0xeb2   :  { %13229 = vmatpush1.bf16.msra.mxu1 %v17965_v60 }
 0xeb3   :  { %13230 = vmatprep.subr.bf16.mxu1 %v17973_v31 }
 0xeb4   :  { %13713 = vmatpush1.bf16.msra.mxu0 %v17968_v24 }
 0xeb5   :  { %13714 = vmatprep.subr.bf16.mxu0 %v17976_v10 }
 0xeb6   :  { %13231 = vmatpush1.bf16.msra.mxu1 %v17971_v35 }
 0xeb7   :  { %15800 = vmatprep.subr.bf16.mxu1 %v17977_v21 }
 0xeb8   :  { %13715 = vmatpush1.bf16.msra.mxu0 %v17974_v4 }
 0xf17   :  { %v15788_v26 = vpop.f32.mrb[184].mxu1 }
 0xf18   :  { %v15789_v36 = vpop.f32.mrb[185].mxu1 }
 0xf19   :  { %v15790_v45 = vadd.f32 %v15789_v36, %v15788_v26  ;;  %v15791_v61 = vpop.f32.mrb[186].mxu1 }
 0xf1a   :  { %v15792_v59 = vpop.f32.mrb[187].mxu1 }
 0xf1b   :  { %v21932_v63 = vadd.f32 %v15790_v45, %v21920_v19  ;;  %v15793_v32 = vadd.f32 %v15792_v59, %v15791_v61 }
 0xf1d   :  { %v21935_v39 = vadd.f32 %v15793_v32, %v21923_v43 }
 0xf1f   :  { %v15794_v7 = vpop.f32.mrb[188].mxu1 }
 0xf20   :  { %v15795_v60 = vpop.f32.mrb[189].mxu1 }
 0xf21   :  { %v15796_v24 = vadd.f32 %v15795_v60, %v15794_v7  ;;  %v15797_v31 = vpop.f32.mrb[190].mxu1 }
 0xf22   :  { %v15798_v35 = vpop.f32.mrb[191].mxu1 }
 0xf23   :  { %v21938_v10 = vadd.f32 %v15796_v24, %v21926_v1  ;;  %v15799_v4 = vadd.f32 %v15798_v35, %v15797_v31 }
 0xf25   :  { %v21941_v21 = vadd.f32 %v15799_v4, %v21929_v41  ;;  %v22608_v41 = vmax.f32 %v21649_v34, %v21823_v18  ;;  %v17980_v18 = vld [vmem:[#allocation8 + $0xc20] ss:$12 sps:$4 sm:$0xff]   ;;  %v22610_v4 = vmax.f32 %v21666_v27, %v21837_v54  ;;  %v22613_v54 = vmax.f32 %v21684_v9, %v21853_v3  ;;  %v17986_v9 = vld [vmem:[#allocation8 + $0xc68] ss:$12 sps:$4 sm:$0xff]  }
 0xf26   :  { %v17987_v3 = vld [vmem:[#allocation8 + $0xd40] ss:$12 sps:$4 sm:$0xff]  }
 0xf43   :  { %v13034_v26 = vpop.f32.mrb[192].mxu1  ;;  %v13340_v36 = vpop.f32.mrb[236].mxu0 }
 0xf44   :  { %v14067_v19 = vmax.f32 %v13269_v17, %v13340_v36  ;;  %v13036_v43 = vpop.f32.mrb[193].mxu1  ;;  %v13342_v45 = vpop.f32.mrb[237].mxu0 }
 0xf45   :  { %v14068_v61 = vmax.f32 %v13270_v33, %v13342_v45  ;;  %v13038_v59 = vpop.f32.mrb[194].mxu1  ;;  %v13344_v32 = vpop.f32.mrb[238].mxu0  ;;  %v17979_v33 = vld [vmem:[#allocation8 + $0xce0] ss:$12 sps:$4 sm:$0xff]  }
 0xf46   :  { %14115 = vst [vmem:[#allocation19 + $0x28] sm:$0xff] %v14067_v19  ;;  %v13053_v1 = vpack.c.bf16 %v13038_v59, %v13034_v26  ;;  %v14069_v7 = vmax.f32 %v22608_v41, %v13344_v32  ;;  %v21952_v60 = vpack.c.bf16 %v13344_v32, %v13340_v36  ;;  %v13040_v24 = vpop.f32.mrb[195].mxu1  ;;  %v13346_v31 = vpop.f32.mrb[239].mxu0  ;;  %v17981_v26 = vld [vmem:[#allocation8 + $0xcf8] ss:$12 sps:$4 sm:$0xff]   ;;  %v22611_v19 = vmax.f32 %v21672_v2, %v21842_v11 }
 0xf47   :  { %14116 = vst [vmem:[#allocation19 + $0x30] sm:$0xff] %v14068_v61  ;;  %v13054_v57 = vpack.c.bf16 %v13040_v24, %v13036_v43  ;;  %v14070_v17 = vmax.f32 %v22609_v46, %v13346_v31  ;;  %v13360_v15 = vpack.c.bf16 %v13346_v31, %v13342_v45  ;;  %v22612_v59 = vmax.f32 %v21677_v40, %v21847_v20  ;;  %v17982_v2 = vld [vmem:[#allocation8 + $0xc38] ss:$12 sps:$4 sm:$0xff]   ;;  %v17984_v40 = vld [vmem:[#allocation8 + $0xc50] ss:$12 sps:$4 sm:$0xff]  }
 0xf48   :  { %14117 = vst [vmem:[#allocation19 + $0x60] sm:$0xff] %v14069_v7  ;;  %v17985_v20 = vld [vmem:[#allocation8 + $0xd28] ss:$12 sps:$4 sm:$0xff]   ;;  %v17988_v46 = vld [vmem:[#allocation8 + $0xc80] ss:$12 sps:$4 sm:$0xff]  }
 0xf49   :  { %14118 = vst [vmem:[#allocation19 + $0x68] sm:$0xff] %v14070_v17  ;;  %15490 = vmatprep.mubr.msk.bf16.mxu1 %vm1171_vm2, %v13054_v57  ;;  %13716 = vmatprep.mubr.bf16.mxu0 %v13360_v15  ;;  %v17983_v57 = vld [vmem:[#allocation8 + $0xd10] ss:$12 sps:$4 sm:$0xff]   ;;  %v17989_v17 = vld [vmem:[#allocation8 + $0xd58] ss:$12 sps:$4 sm:$0xff]  }
 0xf4a   :  { %13241 = vmatmul.mubr.bf16.vlgmr.msra.gmra.mrb[88].mxu1 %v13053_v1  ;;  %13717 = vmatmul.mubr.bf16.vlgmr.msra.gmra.mrb[148].mxu0 %v21952_v60 }
 0xf4b   :  { %15801 = vmatpush3.bf16.msra.mxu1 %v17978_v23  ;;  %v13350_v34 = vpop.f32.mrb[240].mxu0  ;;  %v13044_v35 = vpop.f32.mrb[196].mxu1  ;;  %v17990_v23 = vld [vmem:[#allocation8 + $0xc98] ss:$12 sps:$4 sm:$0xff]  }
 0xf4c   :  { %v14071_v44 = vmax.f32 %v22610_v4, %v13350_v34  ;;  %v13352_v49 = vpop.f32.mrb[241].mxu0  ;;  %15802 = vmatprep.subr.bf16.mxu1 %v17979_v33  ;;  %v13046_v36 = vpop.f32.mrb[197].mxu1  ;;  %v17991_v33 = vld [vmem:[#allocation8 + $0xd70] ss:$12 sps:$4 sm:$0xff]  }
 0xf4d   :  { %v14072_v43 = vmax.f32 %v22611_v19, %v13352_v49  ;;  %v13354_v45 = vpop.f32.mrb[242].mxu0  ;;  %v13048_v61 = vpop.f32.mrb[198].mxu1 }
 0xf4e   :  { %14119 = vst [vmem:[#allocation19 + $0x98] sm:$0xff] %v14071_v44  ;;  %v14073_v32 = vmax.f32 %v22612_v59, %v13354_v45  ;;  %v13361_v1 = vpack.c.bf16 %v13354_v45, %v13350_v34  ;;  %v13356_v41 = vpop.f32.mrb[243].mxu0  ;;  %v13055_v7 = vpack.c.bf16 %v13048_v61, %v13044_v35  ;;  %v13050_v27 = vpop.f32.mrb[199].mxu1  ;;  %v17992_v34 = vld [vmem:[#allocation8 + $0xcb0] ss:$12 sps:$4 sm:$0xff]  }
 0xf4f   :  { %14120 = vst [vmem:[#allocation19 + $0xa0] sm:$0xff] %v14072_v43  ;;  %v14074_v24 = vmax.f32 %v22613_v54, %v13356_v41  ;;  %v13362_v31 = vpack.c.bf16 %v13356_v41, %v13352_v49  ;;  %15803 = vmatpush3.bf16.msra.mxu1 %v17980_v18  ;;  %v13056_v11 = vpack.c.bf16 %v13050_v27, %v13046_v36 }
 0xf50   :  { %14121 = vst [vmem:[#allocation19 + $0xd0] sm:$0xff] %v14073_v32  ;;  %15804 = vmatprep.subr.bf16.mxu1 %v17981_v26 }
 0xf51   :  { %14122 = vst [vmem:[#allocation19 + $0xd8] sm:$0xff] %v14074_v24  ;;  %13726 = vmatprep.mubr.bf16.mxu0 %v13362_v31  ;;  %15491 = vmatprep.mubr.msk.bf16.mxu1 %vm1171_vm2, %v13056_v11 }
 0xf52   :  { %13727 = vmatmul.mubr.bf16.gmra.mrb[152].mxu0 %v13361_v1  ;;  %13251 = vmatmul.mubr.bf16.gmra.mrb[92].mxu1 %v13055_v7 }
 0xf53   :  { %15805 = vmatpush3.bf16.msra.mxu1 %v17982_v2  ;;  %13769 = vmatprep.mubr.bf16.mxu1 %v13360_v15  ;;  %v22615_v15 = vld [vmem:[#allocation31_spill] sm:$0xff] }
 0xf54   :  { %15806 = vmatprep.subr.bf16.mxu1 %v17983_v57 }
 0xf57   :  { %15807 = vmatpush3.bf16.msra.mxu1 %v17984_v40 }
 0xf58   :  { %15808 = vmatprep.subr.bf16.mxu1 %v17985_v20 }
 0xf5b   :  { %15809 = vmatpush3.bf16.msra.mxu1 %v17986_v9 }
 0xf5c   :  { %15810 = vmatprep.subr.bf16.mxu1 %v17987_v3 }
 0xf5f   :  { %15811 = vmatpush3.bf16.msra.mxu1 %v17988_v46 }
 0xf60   :  { %15812 = vmatprep.subr.bf16.mxu1 %v17989_v17 }
 0xf63   :  { %15813 = vmatpush3.bf16.msra.mxu1 %v17990_v23 }
 0xf64   :  { %15814 = vmatprep.subr.bf16.mxu1 %v17991_v33 }
 0xf67   :  { %15815 = vmatpush3.bf16.msra.mxu1 %v17992_v34 }
 0xf68   :  { %13798 = vmatprep.subr.bf16.mxu1 %v20764_v6  ;;  %v17993_v6 = vld [vmem:[#allocation16 + $0x600] ss:$8 sps:$4 sm:$0xff]  }
 0xf6a   :  { %13770 = vmatmul.mubr.bf16.vlgmr.msra.gmra.mrb[200].mxu1 %v21952_v60 }
 0xf6b   :  { %13799 = vmatpush1.bf16.msra.mxu1 %v20762_v12  ;;  %13777 = vmatprep.mubr.bf16.mxu1 %v13362_v31  ;;  %v17995_v12 = vld [vmem:[#allocation16 + $0x604] ss:$8 sps:$4 sm:$0xff]  }
 0xf6c   :  { %13800 = vmatprep.subr.bf16.mxu1 %v20774_v55  ;;  %v17996_v55 = vld [vmem:[#allocation16 + $0x610] ss:$8 sps:$4 sm:$0xff]  }
 0xf6f   :  { %13801 = vmatpush1.bf16.msra.mxu1 %v20772_v48  ;;  %v17998_v48 = vld [vmem:[#allocation16 + $0x614] ss:$8 sps:$4 sm:$0xff]  }
 0xf70   :  { %13802 = vmatprep.subr.bf16.mxu1 %v20784_v42  ;;  %v17999_v42 = vld [vmem:[#allocation16 + $0x620] ss:$8 sps:$4 sm:$0xff]  }
 0xf72   :  { %13778 = vmatmul.mubr.bf16.gmra.mrb[204].mxu1 %v13361_v1 }
 0xf73   :  { %13803 = vmatpush1.bf16.msra.mxu1 %v20782_v30  ;;  %15548 = vmatprep.mubr.msk.bf16.mxu1 %vm823_vm0, %v21863_v38  ;;  %v18001_v30 = vld [vmem:[#allocation16 + $0x624] ss:$8 sps:$4 sm:$0xff]   ;;  %v18017_v38 = vld [vmem:[#allocation16 + $0x680] ss:$8 sps:$4 sm:$0xff]  }
 0xf74   :  { %13804 = vmatprep.subr.bf16.mxu1 %v22461_v29  ;;  %v18004_v29 = vld [vmem:[#allocation16 + $0x634] ss:$8 sps:$4 sm:$0xff]  }
 0xf77   :  { %13805 = vmatpush1.bf16.msra.mxu1 %v22462_v25  ;;  %v18002_v25 = vld [vmem:[#allocation16 + $0x630] ss:$8 sps:$4 sm:$0xff]  }
 0xf78   :  { %13806 = vmatprep.subr.bf16.mxu1 %v22463_v53  ;;  %v18007_v53 = vld [vmem:[#allocation16 + $0x644] ss:$8 sps:$4 sm:$0xff]  }
 0xf7b   :  { %13807 = vmatpush1.bf16.msra.mxu1 %v22464_v0  ;;  %v18005_v0 = vld [vmem:[#allocation16 + $0x640] ss:$8 sps:$4 sm:$0xff]  }
 0xf7c   :  { %13808 = vmatprep.subr.bf16.mxu1 %v22465_v50  ;;  %v18010_v50 = vld [vmem:[#allocation16 + $0x654] ss:$8 sps:$4 sm:$0xff]  }
 0xf7f   :  { %13809 = vmatpush1.bf16.msra.mxu1 %v22466_v28  ;;  %v18008_v28 = vld [vmem:[#allocation16 + $0x650] ss:$8 sps:$4 sm:$0xff]  }
 0xf80   :  { %13810 = vmatprep.subr.bf16.mxu1 %v22467_v58  ;;  %v18013_v58 = vld [vmem:[#allocation16 + $0x664] ss:$8 sps:$4 sm:$0xff]  }
 0xf83   :  { %13811 = vmatpush1.bf16.msra.mxu1 %v22468_v8  ;;  %v18011_v8 = vld [vmem:[#allocation16 + $0x660] ss:$8 sps:$4 sm:$0xff]  }
 0xf84   :  { %13812 = vmatprep.subr.bf16.mxu1 %v22469_v5  ;;  %v18016_v5 = vld [vmem:[#allocation16 + $0x674] ss:$8 sps:$4 sm:$0xff]  }
 0xf87   :  { %13813 = vmatpush1.bf16.msra.mxu1 %v22470_v56  ;;  %v18014_v56 = vld [vmem:[#allocation16 + $0x670] ss:$8 sps:$4 sm:$0xff]  }
 0xf88   :  { %13814 = vmatprep.subr.bf16.mxu1 %v22471_v51  ;;  %v18019_v51 = vld [vmem:[#allocation16 + $0x684] ss:$8 sps:$4 sm:$0xff]  }
 0xf8b   :  { %13815 = vmatpush1.bf16.msra.mxu1 %v22591_v14  ;;  %v18022_v14 = vld [vmem:[#allocation16 + $0x694] ss:$8 sps:$4 sm:$0xff]  }
 0xf8c   :  { %13816 = vmatprep.subr.bf16.mxu1 %v22593_v37  ;;  %v18020_v37 = vld [vmem:[#allocation16 + $0x690] ss:$8 sps:$4 sm:$0xff]  }
 0xf8f   :  { %13817 = vmatpush1.bf16.msra.mxu1 %v22595_v16  ;;  %v18025_v16 = vld [vmem:[#allocation16 + $0x6a4] ss:$8 sps:$4 sm:$0xff]  }
 0xf90   :  { %15547 = vmatprep.subr.msk.bf16.mxu1 %vm857_vm1, %v22597_v47  ;;  %v18023_v47 = vld [vmem:[#allocation16 + $0x6a0] ss:$8 sps:$4 sm:$0xff]  }
 0xf93   :  { %13819 = vmatpush1.bf16.msra.mxu1 %v22599_v62  ;;  %v18026_v62 = vld [vmem:[#allocation16 + $0x6b0] ss:$8 sps:$4 sm:$0xff]  }
 0xf94   :  { %14006 = vmatprep.subr.bf16.mxu1 %v17995_v12 }
 0xf96   :  { %13831 = vmatmul.mubr.bf16.vlgmr.msra.gmra.mrb[208].mxu1 %v21903_v22  ;;  %v18028_v22 = vld [vmem:[#allocation16 + $0x6b4] ss:$8 sps:$4 sm:$0xff]  }
 0xf97   :  { %15549 = vmatprep.mubr.msk.bf16.mxu1 %vm823_vm0, %v21907_v13  ;;  %14007 = vmatpush1.bf16.msra.mxu1 %v17993_v6  ;;  %v18112_v13 = vld [vmem:[#allocation10] sm:$0x7] }
 0xf98   :  { %14008 = vmatprep.subr.bf16.mxu1 %v17998_v48  ;;  %v7386_v18 = vrot.slane %v18112_v13, %v22615_v15 }
 0xf9b   :  { %14009 = vmatpush1.bf16.msra.mxu1 %v17996_v55 }
 0xf9c   :  { %14010 = vmatprep.subr.bf16.mxu1 %v18001_v30 }
 0xf9e   :  { %13841 = vmatmul.mubr.bf16.gmra.mrb[212].mxu1 %v21915_v52  ;;  %v22614_v52 = vld [vmem:[#allocation30_spill] sm:$0xff] }
 0xf9f   :  { %14011 = vmatpush1.bf16.msra.mxu1 %v17999_v42  ;;  %v7382_v60 = vrot.slane %v18112_v13, %v22614_v52 }
 0xfa0   :  { %14012 = vmatprep.subr.bf16.mxu1 %v18004_v29 }
 0xfa3   :  { %14013 = vmatpush1.bf16.msra.mxu1 %v18002_v25 }
 0xfa4   :  { %14014 = vmatprep.subr.bf16.mxu1 %v18007_v53 }
 0xfa7   :  { %14015 = vmatpush1.bf16.msra.mxu1 %v18005_v0 }
 0xfa8   :  { %14016 = vmatprep.subr.bf16.mxu1 %v18010_v50 }
 0xfab   :  { %14017 = vmatpush1.bf16.msra.mxu1 %v18008_v28 }
 0xfac   :  { %14018 = vmatprep.subr.bf16.mxu1 %v18013_v58 }
 0xfaf   :  { %14019 = vmatpush1.bf16.msra.mxu1 %v18011_v8 }
 0xfb0   :  { %14020 = vmatprep.subr.bf16.mxu1 %v18016_v5 }
 0xfb3   :  { %14021 = vmatpush1.bf16.msra.mxu1 %v18014_v56 }
 0xfb4   :  { %14022 = vmatprep.subr.bf16.mxu1 %v18019_v51 }
 0xfb7   :  { %14023 = vmatpush1.bf16.msra.mxu1 %v18017_v38 }
 0xfb8   :  { %14024 = vmatprep.subr.bf16.mxu1 %v18022_v14 }
 0xfbb   :  { %14025 = vmatpush1.bf16.msra.mxu1 %v18020_v37 }
 0xfbc   :  { %14026 = vmatprep.subr.bf16.mxu1 %v18025_v16 }
 0xfbf   :  { %14027 = vmatpush1.bf16.msra.mxu1 %v18023_v47 }
 0xfc0   :  { %14028 = vmatprep.subr.bf16.mxu1 %v18028_v22 }
 0xfc3   :  { %14029 = vmatpush1.bf16.msra.mxu1 %v18026_v62 }
0x101d   :  { %v13718_v35 = vpop.f32.mrb[148].mxu0 }
0x101e   :  { %v15870_v4 = vadd.f32 %v13718_v35, %v7382_v60  ;;  %v13720_v44 = vpop.f32.mrb[149].mxu0 }
0x101f   :  { %v15871_v49 = vadd.f32 %v13720_v44, %v7386_v18  ;;  %v13722_v26 = vpop.f32.mrb[150].mxu0 }
0x1020   :  { %v14075_v36 = vmax.f32 %v15870_v4, 0.0  ;;  %v15872_v19 = vadd.f32 %v13722_v26, %v7382_v60  ;;  %v13724_v43 = vpop.f32.mrb[151].mxu0 }
0x1021   :  { %v14076_v45 = vmax.f32 %v15871_v49, 0.0  ;;  %v15873_v61 = vadd.f32 %v13724_v43, %v7386_v18 }
0x1022   :  { %14087 = vst [vmem:[#allocation19] sm:$0xff] %v14075_v36  ;;  %v14078_v59 = vmax.f32 %v15872_v19, 0.0 }
0x1023   :  { %14088 = vst [vmem:[#allocation19 + $0x8] sm:$0xff] %v14076_v45  ;;  %v14079_v32 = vmax.f32 %v15873_v61, 0.0 }
0x1024   :  { %14090 = vst [vmem:[#allocation19 + $0x38] sm:$0xff] %v14078_v59 }
0x1025   :  { %14091 = vst [vmem:[#allocation19 + $0x40] sm:$0xff] %v14079_v32  ;;  %v13728_v1 = vpop.f32.mrb[152].mxu0 }
0x1026   :  { %v15874_v41 = vadd.f32 %v13728_v1, %v7382_v60  ;;  %v13730_v7 = vpop.f32.mrb[153].mxu0 }
0x1027   :  { %v15875_v27 = vadd.f32 %v13730_v7, %v7386_v18  ;;  %v13732_v54 = vpop.f32.mrb[154].mxu0 }
0x1028   :  { %v14081_v24 = vmax.f32 %v15874_v41, 0.0  ;;  %v15876_v31 = vadd.f32 %v13732_v54, %v7382_v60  ;;  %v13734_v2 = vpop.f32.mrb[155].mxu0 }
0x1029   :  { %v14082_v11 = vmax.f32 %v15875_v27, 0.0  ;;  %v15877_v57 = vadd.f32 %v13734_v2, %v7386_v18 }
0x102a   :  { %14093 = vst [vmem:[#allocation19 + $0x70] sm:$0xff] %v14081_v24  ;;  %v14084_v40 = vmax.f32 %v15876_v31, 0.0 }
0x102b   :  { %14094 = vst [vmem:[#allocation19 + $0x78] sm:$0xff] %v14082_v11  ;;  %v14085_v20 = vmax.f32 %v15877_v57, 0.0 }
0x102c   :  { %14096 = vst [vmem:[#allocation19 + $0xa8] sm:$0xff] %v14084_v40 }
0x102d   :  { %14097 = vst [vmem:[#allocation19 + $0xb0] sm:$0xff] %v14085_v20 }
0x103d   :  { %v15816_v9 = vpop.f32.mrb[200].mxu1 }
0x103e   :  { %v15817_v3 = vpop.f32.mrb[201].mxu1 }
0x103f   :  { %v15818_v46 = vadd.f32 %v15817_v3, %v15816_v9  ;;  %v15819_v17 = vpop.f32.mrb[202].mxu1 }
0x1040   :  { %v15820_v23 = vpop.f32.mrb[203].mxu1 }
0x1041   :  { %v13788_v33 = vadd.f32 %v15818_v46, %v21932_v63  ;;  %v15821_v34 = vadd.f32 %v15820_v23, %v15819_v17 }
0x1043   :  { %v14077_v12 = vmax.f32 %v13788_v33, 0.0  ;;  %v13791_v6 = vadd.f32 %v15821_v34, %v21935_v39 }
0x1045   :  { %14089 = vst [vmem:[#allocation19 + $0x10] sm:$0xff] %v14077_v12  ;;  %v14080_v48 = vmax.f32 %v13791_v6, 0.0  ;;  %v15822_v55 = vpop.f32.mrb[204].mxu1 }
0x1046   :  { %v15823_v30 = vpop.f32.mrb[205].mxu1 }
0x1047   :  { %14092 = vst [vmem:[#allocation19 + $0x48] sm:$0xff] %v14080_v48  ;;  %v15824_v42 = vadd.f32 %v15823_v30, %v15822_v55  ;;  %v15825_v29 = vpop.f32.mrb[206].mxu1 }
0x1048   :  { %v15826_v25 = vpop.f32.mrb[207].mxu1 }
0x1049   :  { %v13794_v53 = vadd.f32 %v15824_v42, %v21938_v10  ;;  %v15827_v0 = vadd.f32 %v15826_v25, %v15825_v29 }
0x104b   :  { %v14083_v50 = vmax.f32 %v13794_v53, 0.0  ;;  %v13797_v28 = vadd.f32 %v15827_v0, %v21941_v21  ;;  %v6864_v21 = vld [vmem:[#allocation17] sm:$0x3] }
0x104c   :  { %v7676_v22 = vrot.slane %v6864_v21, %v22614_v52  ;;  %v7680_v62 = vrot.slane %v6864_v21, %v22615_v15 }
0x104d   :  { %14095 = vst [vmem:[#allocation19 + $0x80] sm:$0xff] %v14083_v50  ;;  %v14086_v63 = vmax.f32 %v13797_v28, 0.0 }
0x104f   :  { %14098 = vst [vmem:[#allocation19 + $0xb8] sm:$0xff] %v14086_v63 }
0x1069   :  { %v13832_v58 = vpop.f32.mrb[208].mxu1 }
0x106a   :  { %v13834_v8 = vpop.f32.mrb[209].mxu1 }
0x106b   :  { %v13836_v39 = vpop.f32.mrb[210].mxu1 }
0x106c   :  { %v13851_v5 = vpack.c.bf16 %v13836_v39, %v13832_v58  ;;  %v13838_v56 = vpop.f32.mrb[211].mxu1 }
0x106d   :  { %v13852_v51 = vpack.c.bf16 %v13838_v56, %v13834_v8 }
0x106f   :  { %15574 = vmatprep.mubr.msk.bf16.mxu1 %vm1171_vm2, %v13852_v51 }
0x1070   :  { %14039 = vmatmul.mubr.bf16.vlgmr.msra.gmra.mrb[88].mxu1 %v13851_v5 }
0x1071   :  { %v13842_v38 = vpop.f32.mrb[212].mxu1 }
0x1072   :  { %v13844_v14 = vpop.f32.mrb[213].mxu1 }
0x1073   :  { %v13846_v37 = vpop.f32.mrb[214].mxu1 }
0x1074   :  { %v13853_v10 = vpack.c.bf16 %v13846_v37, %v13842_v38  ;;  %v13848_v16 = vpop.f32.mrb[215].mxu1 }
0x1075   :  { %v13854_v47 = vpack.c.bf16 %v13848_v16, %v13844_v14 }
0x1077   :  { %15575 = vmatprep.mubr.msk.bf16.mxu1 %vm1171_vm2, %v13854_v47 }
0x1078   :  { %14049 = vmatmul.mubr.bf16.gmra.mrb[92].mxu1 %v13853_v10 }
0x1143   :  { %v14040_v13 = vpop.f32.mrb[88].mxu1 }
0x1144   :  { %v15878_v60 = vadd.f32 %v14040_v13, %v7676_v22  ;;  %v14042_v18 = vpop.f32.mrb[89].mxu1 }
0x1145   :  { %v15879_v35 = vadd.f32 %v14042_v18, %v7680_v62  ;;  %v14044_v4 = vpop.f32.mrb[90].mxu1 }
0x1146   :  { %v14099_v44 = vmax.f32 %v15878_v60, 0.0  ;;  %v15880_v49 = vadd.f32 %v14044_v4, %v7676_v22  ;;  %v14046_v26 = vpop.f32.mrb[91].mxu1 }
0x1147   :  { %v14100_v36 = vmax.f32 %v15879_v35, 0.0  ;;  %v15881_v19 = vadd.f32 %v14046_v26, %v7680_v62 }
0x1148   :  { %14107 = vst [vmem:[#allocation19 + $0x18] sm:$0xff] %v14099_v44  ;;  %v14101_v43 = vmax.f32 %v15880_v49, 0.0 }
0x1149   :  { %14108 = vst [vmem:[#allocation19 + $0x20] sm:$0xff] %v14100_v36  ;;  %v14102_v45 = vmax.f32 %v15881_v19, 0.0 }
0x114a   :  { %14109 = vst [vmem:[#allocation19 + $0x50] sm:$0xff] %v14101_v43 }
0x114b   :  { %14110 = vst [vmem:[#allocation19 + $0x58] sm:$0xff] %v14102_v45  ;;  %v14050_v61 = vpop.f32.mrb[92].mxu1 }
0x114c   :  { %v15882_v52 = vadd.f32 %v14050_v61, %v7676_v22  ;;  %v14052_v59 = vpop.f32.mrb[93].mxu1 }
0x114d   :  { %v15883_v15 = vadd.f32 %v14052_v59, %v7680_v62  ;;  %v14054_v32 = vpop.f32.mrb[94].mxu1 }
0x114e   :  { %v14103_v1 = vmax.f32 %v15882_v52, 0.0  ;;  %v15884_v41 = vadd.f32 %v14054_v32, %v7676_v22  ;;  %v14056_v7 = vpop.f32.mrb[95].mxu1 }
0x114f   :  { %v14104_v27 = vmax.f32 %v15883_v15, 0.0  ;;  %v15885_v54 = vadd.f32 %v14056_v7, %v7680_v62 }
0x1150   :  { %14111 = vst [vmem:[#allocation19 + $0x88] sm:$0xff] %v14103_v1  ;;  %v14105_v24 = vmax.f32 %v15884_v41, 0.0 }
0x1151   :  { %14112 = vst [vmem:[#allocation19 + $0x90] sm:$0xff] %v14104_v27  ;;  %v14106_v31 = vmax.f32 %v15885_v54, 0.0 }
0x1152   :  { %14113 = vst [vmem:[#allocation19 + $0xc0] sm:$0xff] %v14105_v24 }
0x1153   :  { %14114 = vst [vmem:[#allocation19 + $0xc8] sm:$0xff] %v14106_v31 }
0x1154   :  { %18344 = shalt.err (!%p18341_p0)
}
0x1155   :  { %s18345_s1 = scalar_lea.hbm %s22035_s11, 3584 }
0x1156   :  { %p18346_p1 = scmp.ne.s32.totalorder %s22035_s11, %s18345_s1  ;;  %p18349_p2 = scmp.lt.u32.totalorder %s18345_s1, %s22035_s11 }
0x1158   :  { %p18351_p3 = pnand %p18349_p2, %p18346_p1 }
0x115a   :  { %18354 = shalt.err (!%p18351_p3)
}
0x115b   :  { %s18384_s17 = smov 896   ;;  %s18385_s7 = smov 56  }
0x115c   :  { %14134 = dma.vmem_to_hbm [thread:$0]  %s14129_s21, 3584, %s22035_s11, [#allocation4], %s18384_s17, %s18384_s17, %s18385_s7  }
0x115d   :  { %18367 = dma.done.wait [#allocation4], 3584  }
0x115e   :  { %18368 = vsyncadd [#allocation4], 4294963712 }
0x115f   :  { %14138 = vsyncpa [#allocation3], 1 }
0x1160   :  { %14139 = vsyncpa [#allocation6], 1 }
0x1161   :  { %14140 = vsyncpa [#allocation9], 1 }
0x1162   :  { %14141 = vsyncpa [#allocation12], 1 }
0x1163   :  { %14142 = vsyncpa [#allocation15], 1 }
0x1164   :  { %14143 = vsyncpa [#allocation18], 1 }
0x1165   :  { %14144 = vsyncpa [#allocation4], 1 }

</bundles_post_ra>
